<compile_context>
chip_gen: v6e
topology: v6e:2x2x1
jax: 0.10.0
libtpu: 0.0.40
codegen_flags: <defaults>
</compile_context>

<pallas_src>
import functools

import jax
import jax.numpy as jnp
from jax.experimental import pallas as pl
from jax.experimental.pallas import tpu as pltpu


# --------------------------------------------------------------------------
# Model hyper-parameters (small, shapes consistent with vq-wav2vec structure)
# --------------------------------------------------------------------------
CONV_LAYERS = [(32, 10, 5), (32, 8, 4), (64, 4, 2)]   # (out_ch, kernel, stride)
C0, K0, S0 = CONV_LAYERS[0]
C1, K1, S1 = CONV_LAYERS[1]
C2, K2, S2 = CONV_LAYERS[2]
FEAT_DIM = C2                          # 64
GROUPS = 2                             # vector_quantizer.groups
CODEBOOK_SIZE = 32                     # vector_quantizer.embedding.shape[0]
VAR_DIM = FEAT_DIM // GROUPS           # per-group code dimension
GN_EPS = 1e-5

LANES = 128
KPAD = 16                              # conv0 taps padded 10 -> 16 (4*16 = 64 lanes)

# Structural assumptions of the lane-dense folding (fail loudly if changed).
assert S1 * C0 == LANES, "conv1 folding assumes stride1 * ch0 == 128 lanes"
assert K1 == 2 * S1, "conv1 two-slab decomposition assumes kernel1 == 2*stride1"
assert KPAD >= K0 and S1 * KPAD <= LANES


def _out_len(t, k, s):
    return (t - k) // s + 1


# --------------------------------------------------------------------------
# Packed-parameter layout: one (PACK_ROWS, 128) f32 array, statically sliced
# inside the kernel (single DMA instead of ~15 tiny ones).
# --------------------------------------------------------------------------
def _build_pack_layout():
    layout, off = {}, 0

    def add(name, rows):
        nonlocal off
        layout[name] = (off, off + rows)
        off += rows

    add("w0f", S1 * KPAD)                 # (64, 128) block-diag folded conv0 weight
    add("g0f", 1); add("b0f", 1)          # GN0 affine, tiled x S1 -> 128 lanes
    add("w1aT", C1); add("w1bT", C1)      # conv1 slab weights, transposed (32, 128)
    add("g1", 1); add("b1", 1)            # GN1 affine (32 lanes)
    add("w2", K2 * C1)                    # conv2 tap weights stacked (128, 64)
    add("g2", 1); add("b2", 1)            # GN2 affine (64 lanes)
    add("wp", FEAT_DIM)                   # block-diag grouped 1x1 proj (64, 64)
    add("gp", 1); add("bp", 1)            # proj GN affine (64 lanes)
    add("emb", GROUPS * CODEBOOK_SIZE)    # codebook (G*V, 32)
    add("embsq", GROUPS)                  # codebook squared norms (G, 32)
    rows = ((off + 7) // 8) * 8
    return layout, rows


PACK_LAYOUT, PACK_ROWS = _build_pack_layout()


# --------------------------------------------------------------------------
# In-kernel GroupNorm(num_groups=1 over the given tile) with optional padding
# correction (pad slots are exactly 0 before normalization -> exact stats).
# --------------------------------------------------------------------------
def _gn_affine(x, gamma, beta, n_valid, n_pad=0, relu=True):
    inv_n = 1.0 / float(n_valid)
    mean = jnp.sum(x) * inv_n
    ss = jnp.sum(jnp.square(x - mean))
    if n_pad:
        ss = ss - float(n_pad) * mean * mean      # remove the zero-pad contribution
    var = ss * inv_n
    y = (x - mean) * jax.lax.rsqrt(var + GN_EPS) * gamma + beta
    return jnp.maximum(y, 0.0) if relu else y


# --------------------------------------------------------------------------
# Fused kernel: conv stack -> log compression -> grouped proj -> GN -> VQ idx
# One grid step handles `bblk` samples; all activations stay VMEM resident.
# --------------------------------------------------------------------------
def _fused_kernel(x0f_ref, par_ref, idx_ref, x1f_scr, x2_scr,
                  *, bblk, t1, t2, t3, t1r):

    def pk(name, lanes=LANES, rows=None):
        """Static view+load of a piece of the packed parameter array."""
        r0, r1 = PACK_LAYOUT[name]
        if rows is not None:
            r0, r1 = r0 + rows[0], r0 + rows[1]
        return par_ref[r0:r1, 0:lanes]

    # Static loop over the samples of this batch block (GN stats stay per-sample).
    for b in range(bblk):
        # ---- conv0: one MXU matmul of the stride-folded im2col against a
        #      block-diagonal weight; output lands directly in the conv1-ready
        #      (t1r rows, 4 time-steps * 32 ch = 128 lanes) layout. ------------
        y0 = jnp.dot(x0f_ref[b], pk("w0f"),
                     preferred_element_type=jnp.float32)          # (t1r, 128)
        y0 = _gn_affine(y0, pk("g0f"), pk("b0f"),
                        n_valid=t1 * C0, n_pad=(t1r * S1 - t1) * C0)
        x1f_scr[...] = y0

        # ---- conv1 (k=8, s=4): two contiguous lane-dense slab matmuls --------
        slab_a = x1f_scr[0:t2, :]                                 # (t2, 128)
        slab_b = x1f_scr[1:t2 + 1, :]                             # (t2, 128)
        y1 = (jax.lax.dot_general(slab_a, pk("w1aT"), (((1,), (1,)), ((), ())),
                                  preferred_element_type=jnp.float32)
              + jax.lax.dot_general(slab_b, pk("w1bT"), (((1,), (1,)), ((), ())),
                                    preferred_element_type=jnp.float32))
        y1 = _gn_affine(y1, pk("g1", C1), pk("b1", C1), n_valid=t2 * C1)
        x2_scr[...] = y1

        # ---- conv2 (k=4, s=2): tiny per-tap matmuls over a (t2, 32) scratch --
        y2 = jnp.zeros((t3, C2), jnp.float32)
        for m in range(K2):
            xm = x2_scr[pl.ds(m, t3, stride=S2), :]               # (t3, 32)
            y2 = y2 + jnp.dot(xm, pk("w2", C2, rows=(m * C1, (m + 1) * C1)),
                              preferred_element_type=jnp.float32)
        y2 = _gn_affine(y2, pk("g2", C2), pk("b2", C2), n_valid=t3 * C2)

        # ---- log compression --------------------------------------------------
        y2 = jnp.log(jnp.abs(y2) + 1.0)

        # ---- grouped 1x1 projection as ONE block-diagonal matmul --------------
        ze = jnp.dot(y2, pk("wp", FEAT_DIM),
                     preferred_element_type=jnp.float32)          # (t3, 64)

        # ---- per-group GroupNorm + nearest codeword (L2 argmin) ---------------
        for g in range(GROUPS):
            lo, hi = g * VAR_DIM, (g + 1) * VAR_DIM
            zg = _gn_affine(ze[:, lo:hi],
                            pk("gp", FEAT_DIM)[:, lo:hi],
                            pk("bp", FEAT_DIM)[:, lo:hi],
                            n_valid=t3 * VAR_DIM, relu=False)     # (t3, 32)
            emb_g = pk("emb", VAR_DIM,
                       rows=(g * CODEBOOK_SIZE, (g + 1) * CODEBOOK_SIZE))
            cross = jax.lax.dot_general(zg, emb_g, (((1,), (1,)), ((), ())),
                                        preferred_element_type=jnp.float32)
            # ||z||^2 dropped (argmin-invariant); ||e||^2 precomputed on host.
            d2 = pk("embsq", CODEBOOK_SIZE, rows=(g, g + 1)) - 2.0 * cross
            idx_ref[b, g:g + 1, :] = (
                jnp.argmin(d2, axis=-1).astype(jnp.int32)[None, :])


# --------------------------------------------------------------------------
# Parameter construction & one-time packing into the kernel layout
# --------------------------------------------------------------------------
def init_params(key):
    params = {"convs": []}
    c_in = 1
    for li, (c_out, k, _) in enumerate(CONV_LAYERS):
        kw = jax.random.fold_in(key, 10 + li)
        w = 0.05 * jax.random.normal(kw, (c_out, c_in, k), jnp.float32)
        params["convs"].append({
            "w": w,                                   # PyTorch (C_out, C_in, K)
            "gamma": jnp.ones((c_out,), jnp.float32),
            "beta": jnp.zeros((c_out,), jnp.float32),
        })
        c_in = c_out
    kp = jax.random.fold_in(key, 100)
    params["proj_w"] = 0.05 * jax.random.normal(
        kp, (FEAT_DIM, FEAT_DIM // GROUPS, 1), jnp.float32)   # grouped 1x1 conv
    params["proj_gamma"] = jnp.ones((FEAT_DIM,), jnp.float32)
    params["proj_beta"] = jnp.zeros((FEAT_DIM,), jnp.float32)
    ke = jax.random.fold_in(key, 200)
    params["embedding"] = 0.01 * jax.random.normal(
        ke, (CODEBOOK_SIZE, GROUPS, VAR_DIM), jnp.float32)    # (num_vars, G, Cg)
    return params


def pack_params(params):
    """One-time packing of PyTorch-layout weights into a single (PACK_ROWS, 128)
    array consumed by the fused kernel (runs once, outside the hot path)."""
    pk = jnp.zeros((PACK_ROWS, LANES), jnp.float32)

    def put(arr, name, val):
        r0, r1 = PACK_LAYOUT[name]
        val = jnp.asarray(val, jnp.float32)
        assert val.shape[0] == r1 - r0 and val.shape[1] <= LANES
        return arr.at[r0:r1, : val.shape[1]].set(val)

    # conv0: (C0, 1, K0) -> taps (K0, C0) -> block-diag folded (S1*KPAD, S1*C0)
    w0t = jnp.transpose(params["convs"][0]["w"][:, 0, :], (1, 0))      # (K0, C0)
    w0f = jnp.zeros((S1 * KPAD, S1 * C0), jnp.float32)
    for j in range(S1):
        w0f = w0f.at[j * KPAD: j * KPAD + K0, j * C0: (j + 1) * C0].set(w0t)
    pk = put(pk, "w0f", w0f)
    pk = put(pk, "g0f", jnp.tile(params["convs"][0]["gamma"], S1)[None, :])
    pk = put(pk, "b0f", jnp.tile(params["convs"][0]["beta"], S1)[None, :])

    # conv1: (C1, C0, K1) -> (K1, C0, C1); 2 slabs of S1 taps -> (S1*C0, C1)^T
    w1t = jnp.transpose(params["convs"][1]["w"], (2, 1, 0))            # (K1, C0, C1)
    pk = put(pk, "w1aT", w1t[:S1].reshape(S1 * C0, C1).T)              # (32, 128)
    pk = put(pk, "w1bT", w1t[S1:].reshape(S1 * C0, C1).T)              # (32, 128)
    pk = put(pk, "g1", params["convs"][1]["gamma"][None, :])
    pk = put(pk, "b1", params["convs"][1]["beta"][None, :])

    # conv2: (C2, C1, K2) -> tap-major (K2*C1, C2)
    w2t = jnp.transpose(params["convs"][2]["w"], (2, 1, 0)).reshape(K2 * C1, C2)
    pk = put(pk, "w2", w2t)
    pk = put(pk, "g2", params["convs"][2]["gamma"][None, :])
    pk = put(pk, "b2", params["convs"][2]["beta"][None, :])

    # grouped 1x1 projection -> single block-diagonal (C, C) matmul weight
    pw = params["proj_w"][:, :, 0]                                     # (C_out, C_in/g)
    wp = jnp.zeros((FEAT_DIM, FEAT_DIM), jnp.float32)
    for g in range(GROUPS):
        lo, hi = g * VAR_DIM, (g + 1) * VAR_DIM
        wp = wp.at[lo:hi, lo:hi].set(pw[lo:hi, :].T)
    pk = put(pk, "wp", wp)
    pk = put(pk, "gp", params["proj_gamma"][None, :])
    pk = put(pk, "bp", params["proj_beta"][None, :])

    # codebook (V, G, Cg) -> (G*V, Cg) + precomputed per-group squared norms
    emb = jnp.transpose(params["embedding"], (1, 0, 2))                # (G, V, Cg)
    pk = put(pk, "emb", emb.reshape(GROUPS * CODEBOOK_SIZE, VAR_DIM))
    pk = put(pk, "embsq", jnp.sum(emb * emb, axis=-1))                 # (G, V)
    return pk


# --------------------------------------------------------------------------
# Wrapper-side data prep
# --------------------------------------------------------------------------
def _pick_bblk(b, max_blk=8):
    """Largest divisor of b (<= max_blk) that still leaves >= 2 grid steps,
    so v7x's two TensorCores both get work; on v5e/v6e it is just fewer,
    fatter serial steps."""
    best = 1
    for cand in range(1, min(b, max_blk) + 1):
        if b % cand == 0 and b // cand >= 2:
            best = cand
    return best


def _im2col_fold(wav, t1, t1r):
    """Stride-folded im2col: x0f[b, r, j*KPAD + k] = wav[b, S0*(S1*r + j) + k]
    for k < K0 and S1*r + j < t1, zero otherwise.  (B, t1r, S1*KPAD)."""
    b, t0 = wav.shape
    times = jnp.arange(t1r * S1)                                # folded time index
    win = times[:, None] * S0 + jnp.arange(K0)[None, :]         # (t1r*S1, K0)
    valid = (times < t1)[:, None]
    win = jnp.where(valid, win, 0)
    cols = jnp.where(valid, wav[:, win], 0.0)                   # (B, t1r*S1, K0)
    cols = jnp.pad(cols, ((0, 0), (0, 0), (0, KPAD - K0)))      # pad taps 10 -> 16
    return cols.reshape(b, t1r, S1 * KPAD)


# --------------------------------------------------------------------------
# Forward pass
# --------------------------------------------------------------------------
@functools.partial(jax.jit, static_argnames=("flatten",))
def vq_wav2vec_forward(wav, packed, flatten=True):
    """wav: (B, T) f32 waveform -> codebook indices (B, T'*G) (or (B, T', G))."""
    b, t0 = wav.shape
    t1 = _out_len(t0, K0, S0)
    t2 = _out_len(t1, K1, S1)
    t3 = _out_len(t2, K2, S2)
    t1r = -(-t1 // S1)                                 # ceil(t1 / S1) folded rows
    bblk = _pick_bblk(b)

    x0f = _im2col_fold(wav, t1, t1r)                   # (B, t1r, 64)

    idx = pl.pallas_call(
        functools.partial(_fused_kernel, bblk=bblk, t1=t1, t2=t2, t3=t3, t1r=t1r),
        out_shape=jax.ShapeDtypeStruct((b, GROUPS, t3), jnp.int32),
        grid=(b // bblk,),
        in_specs=[
            pl.BlockSpec((bblk, t1r, S1 * KPAD), lambda i: (i, 0, 0)),  # waveform
            pl.BlockSpec((PACK_ROWS, LANES), lambda i: (0, 0)),         # all params
        ],
        out_specs=pl.BlockSpec((bblk, GROUPS, t3), lambda i: (i, 0, 0)),
        scratch_shapes=[
            pltpu.VMEM((t1r, S1 * C0), jnp.float32),   # folded conv0 output (128 lanes)
            pltpu.VMEM((t2, C1), jnp.float32),         # conv1 output
        ],
        compiler_params=pltpu.CompilerParams(
            dimension_semantics=("parallel",)),
    )(x0f, packed)

    idx = jnp.transpose(idx, (0, 2, 1))                # (B, T', G)
    if flatten:
        idx = idx.reshape(b, t3 * GROUPS)              # 'b ... -> b (...)'
    return idx


if __name__ == "__main__":
    key = jax.random.PRNGKey(0)
    params = init_params(key)
    packed = pack_params(params)

    # B=8 so the batch-blocked grid has 2 "parallel" steps of 4 samples each.
    wav = jax.random.normal(jax.random.fold_in(key, 1), (8, 1024), jnp.float32)

    out = vq_wav2vec_forward(wav, packed, flatten=True)
    jax.block_until_ready(out)
    assert out.shape == (8, 23 * GROUPS) and out.dtype == jnp.int32
    print("KERNEL_OK")
</pallas_src>

<mosaic_0001>
module attributes {stable_mosaic.version = 11 : i64} {
  func.func @_fused_kernel(%arg0: i32, %arg1: memref<4x51x64xf32, #tpu.memory_space<vmem>>, %arg2: memref<400x128xf32, #tpu.memory_space<vmem>>, %arg3: memref<4x2x23xi32, #tpu.memory_space<vmem>>, %arg4: memref<51x128xf32, #tpu.memory_space<vmem>>, %arg5: memref<49x32xf32, #tpu.memory_space<vmem>>) attributes {dimension_semantics = [#tpu.dimension_semantics<parallel>], iteration_bounds = array<i64: 2>, scalar_prefetch = 0 : i64, scratch_operands = 2 : i64, tpu.core_type = #tpu.core_type<tc>, window_params = [{transform_indices = @transform_0, window_bounds = array<i64: 4, 51, 64>}, {pipeline_mode = #tpu.pipeline_mode<synchronous>, transform_indices = @transform_1, window_bounds = array<i64: 400, 128>}, {transform_indices = @transform_2, window_bounds = array<i64: 4, 2, 23>}]} {
    %c0 = arith.constant 0 : index
    %c0_0 = arith.constant 0 : index
    %c0_1 = arith.constant 0 : index
    %0 = vector.load %arg1[%c0, %c0_0, %c0_1] : memref<4x51x64xf32, #tpu.memory_space<vmem>>, vector<1x51x64xf32>
    %1 = vector.shape_cast %0 : vector<1x51x64xf32> to vector<51x64xf32>
    %c0_2 = arith.constant 0 : index
    %c0_3 = arith.constant 0 : index
    %2 = vector.load %arg2[%c0_2, %c0_3] : memref<400x128xf32, #tpu.memory_space<vmem>>, vector<64x128xf32>
    %cst = arith.constant dense<0.000000e+00> : vector<51x128xf32>
    %3 = tpu.matmul %1, %2, %cst {dimension_numbers = #tpu.dot_dimension_numbers<[1], [0], [0], [1], [0, 0, 1, 1], [], []>} : vector<51x64xf32>, vector<64x128xf32>, vector<51x128xf32> -> vector<51x128xf32>
    %c64 = arith.constant 64 : index
    %c0_4 = arith.constant 0 : index
    %4 = vector.load %arg2[%c64, %c0_4] : memref<400x128xf32, #tpu.memory_space<vmem>>, vector<1x128xf32>
    %c65 = arith.constant 65 : index
    %c0_5 = arith.constant 0 : index
    %5 = vector.load %arg2[%c65, %c0_5] : memref<400x128xf32, #tpu.memory_space<vmem>>, vector<1x128xf32>
    %6 = vector.shape_cast %3 : vector<51x128xf32> to vector<1x51x128xf32>
    %cst_6 = arith.constant dense<0.000000e+00> : vector<1xf32>
    %7 = vector.multi_reduction <add>, %6, %cst_6 [1, 2] : vector<1x51x128xf32> to vector<1xf32>
    %8 = vector.shape_cast %7 : vector<1xf32> to vector<1x1x1xf32>
    %9 = vector.extract %8[0, 0, 0] : f32 from vector<1x1x1xf32>
    %cst_7 = arith.constant 1.53940884E-4 : f32
    %10 = arith.mulf %9, %cst_7 : f32
    %11 = vector.broadcast %10 : f32 to vector<51x128xf32>
    %12 = arith.subf %3, %11 : vector<51x128xf32>
    %13 = arith.mulf %12, %12 : vector<51x128xf32>
    %14 = vector.shape_cast %13 : vector<51x128xf32> to vector<1x51x128xf32>
    %cst_8 = arith.constant dense<0.000000e+00> : vector<1xf32>
    %15 = vector.multi_reduction <add>, %14, %cst_8 [1, 2] : vector<1x51x128xf32> to vector<1xf32>
    %16 = vector.shape_cast %15 : vector<1xf32> to vector<1x1x1xf32>
    %17 = vector.extract %16[0, 0, 0] : f32 from vector<1x1x1xf32>
    %cst_9 = arith.constant 3.200000e+01 : f32
    %18 = arith.mulf %cst_9, %10 : f32
    %19 = arith.mulf %18, %10 : f32
    %20 = arith.subf %17, %19 : f32
    %cst_10 = arith.constant 1.53940884E-4 : f32
    %21 = arith.mulf %20, %cst_10 : f32
    %22 = vector.broadcast %10 : f32 to vector<51x128xf32>
    %23 = arith.subf %3, %22 : vector<51x128xf32>
    %cst_11 = arith.constant 9.99999974E-6 : f32
    %24 = arith.addf %21, %cst_11 : f32
    %25 = math.rsqrt %24 : f32
    %26 = vector.broadcast %25 : f32 to vector<51x128xf32>
    %27 = arith.mulf %23, %26 : vector<51x128xf32>
    %28 = vector.broadcast %4 : vector<1x128xf32> to vector<51x128xf32>
    %29 = arith.mulf %27, %28 : vector<51x128xf32>
    %30 = vector.broadcast %5 : vector<1x128xf32> to vector<51x128xf32>
    %31 = arith.addf %29, %30 : vector<51x128xf32>
    %cst_12 = arith.constant 0.000000e+00 : f32
    %32 = vector.broadcast %cst_12 : f32 to vector<51x128xf32>
    %33 = arith.maximumf %31, %32 : vector<51x128xf32>
    %c0_13 = arith.constant 0 : index
    %c0_14 = arith.constant 0 : index
    %34 = vector.load %arg4[%c0_13, %c0_14] : memref<51x128xf32, #tpu.memory_space<vmem>>, vector<51x128xf32>
    tpu.vector_store %arg4[%c0_13, %c0_14], %33 {strides = array<i32>} : memref<51x128xf32, #tpu.memory_space<vmem>>, vector<51x128xf32>,
    %c0_15 = arith.constant 0 : index
    %c0_16 = arith.constant 0 : index
    %35 = vector.load %arg4[%c0_15, %c0_16] : memref<51x128xf32, #tpu.memory_space<vmem>>, vector<49x128xf32>
    %c1 = arith.constant 1 : index
    %c0_17 = arith.constant 0 : index
    %36 = vector.load %arg4[%c1, %c0_17] : memref<51x128xf32, #tpu.memory_space<vmem>>, vector<49x128xf32>
    %c66 = arith.constant 66 : index
    %c0_18 = arith.constant 0 : index
    %37 = vector.load %arg2[%c66, %c0_18] : memref<400x128xf32, #tpu.memory_space<vmem>>, vector<32x128xf32>
    %cst_19 = arith.constant dense<0.000000e+00> : vector<49x32xf32>
    %38 = tpu.matmul %35, %37, %cst_19 {dimension_numbers = #tpu.dot_dimension_numbers<[1], [1], [0], [0], [0, 0, 1, 0], [], []>} : vector<49x128xf32>, vector<32x128xf32>, vector<49x32xf32> -> vector<49x32xf32>
    %c98 = arith.constant 98 : index
    %c0_20 = arith.constant 0 : index
    %39 = vector.load %arg2[%c98, %c0_20] : memref<400x128xf32, #tpu.memory_space<vmem>>, vector<32x128xf32>
    %cst_21 = arith.constant dense<0.000000e+00> : vector<49x32xf32>
    %40 = tpu.matmul %36, %39, %cst_21 {dimension_numbers = #tpu.dot_dimension_numbers<[1], [1], [0], [0], [0, 0, 1, 0], [], []>} : vector<49x128xf32>, vector<32x128xf32>, vector<49x32xf32> -> vector<49x32xf32>
    %41 = arith.addf %38, %40 : vector<49x32xf32>
    %c130 = arith.constant 130 : index
    %c0_22 = arith.constant 0 : index
    %42 = vector.load %arg2[%c130, %c0_22] : memref<400x128xf32, #tpu.memory_space<vmem>>, vector<1x32xf32>
    %c131 = arith.constant 131 : index
    %c0_23 = arith.constant 0 : index
    %43 = vector.load %arg2[%c131, %c0_23] : memref<400x128xf32, #tpu.memory_space<vmem>>, vector<1x32xf32>
    %44 = vector.shape_cast %41 : vector<49x32xf32> to vector<1x49x32xf32>
    %cst_24 = arith.constant dense<0.000000e+00> : vector<1xf32>
    %45 = vector.multi_reduction <add>, %44, %cst_24 [1, 2] : vector<1x49x32xf32> to vector<1xf32>
    %46 = vector.shape_cast %45 : vector<1xf32> to vector<1x1x1xf32>
    %47 = vector.extract %46[0, 0, 0] : f32 from vector<1x1x1xf32>
    %cst_25 = arith.constant 6.37755089E-4 : f32
    %48 = arith.mulf %47, %cst_25 : f32
    %49 = vector.broadcast %48 : f32 to vector<49x32xf32>
    %50 = arith.subf %41, %49 : vector<49x32xf32>
    %51 = arith.mulf %50, %50 : vector<49x32xf32>
    %52 = vector.shape_cast %51 : vector<49x32xf32> to vector<1x49x32xf32>
    %cst_26 = arith.constant dense<0.000000e+00> : vector<1xf32>
    %53 = vector.multi_reduction <add>, %52, %cst_26 [1, 2] : vector<1x49x32xf32> to vector<1xf32>
    %54 = vector.shape_cast %53 : vector<1xf32> to vector<1x1x1xf32>
    %55 = vector.extract %54[0, 0, 0] : f32 from vector<1x1x1xf32>
    %cst_27 = arith.constant 6.37755089E-4 : f32
    %56 = arith.mulf %55, %cst_27 : f32
    %57 = vector.broadcast %48 : f32 to vector<49x32xf32>
    %58 = arith.subf %41, %57 : vector<49x32xf32>
    %cst_28 = arith.constant 9.99999974E-6 : f32
    %59 = arith.addf %56, %cst_28 : f32
    %60 = math.rsqrt %59 : f32
    %61 = vector.broadcast %60 : f32 to vector<49x32xf32>
    %62 = arith.mulf %58, %61 : vector<49x32xf32>
    %63 = vector.broadcast %42 : vector<1x32xf32> to vector<49x32xf32>
    %64 = arith.mulf %62, %63 : vector<49x32xf32>
    %65 = vector.broadcast %43 : vector<1x32xf32> to vector<49x32xf32>
    %66 = arith.addf %64, %65 : vector<49x32xf32>
    %cst_29 = arith.constant 0.000000e+00 : f32
    %67 = vector.broadcast %cst_29 : f32 to vector<49x32xf32>
    %68 = arith.maximumf %66, %67 : vector<49x32xf32>
    %c0_30 = arith.constant 0 : index
    %c0_31 = arith.constant 0 : index
    %69 = vector.load %arg5[%c0_30, %c0_31] : memref<49x32xf32, #tpu.memory_space<vmem>>, vector<49x32xf32>
    tpu.vector_store %arg5[%c0_30, %c0_31], %68 {strides = array<i32>} : memref<49x32xf32, #tpu.memory_space<vmem>>, vector<49x32xf32>,
    %cst_32 = arith.constant 0.000000e+00 : f32
    %70 = vector.broadcast %cst_32 : f32 to vector<23x64xf32>
    %c0_33 = arith.constant 0 : index
    %c0_34 = arith.constant 0 : index
    %71 = tpu.strided_load %arg5[%c0_33, %c0_34] {strides = array<i32: 2, 1>} : memref<49x32xf32, #tpu.memory_space<vmem>>, vector<23x32xf32>
    %c132 = arith.constant 132 : index
    %c0_35 = arith.constant 0 : index
    %72 = vector.load %arg2[%c132, %c0_35] : memref<400x128xf32, #tpu.memory_space<vmem>>, vector<32x64xf32>
    %cst_36 = arith.constant dense<0.000000e+00> : vector<23x64xf32>
    %73 = tpu.matmul %71, %72, %cst_36 {dimension_numbers = #tpu.dot_dimension_numbers<[1], [0], [0], [1], [0, 0, 1, 1], [], []>} : vector<23x32xf32>, vector<32x64xf32>, vector<23x64xf32> -> vector<23x64xf32>
    %74 = arith.addf %70, %73 : vector<23x64xf32>
    %c1_37 = arith.constant 1 : index
    %c0_38 = arith.constant 0 : index
    %75 = tpu.strided_load %arg5[%c1_37, %c0_38] {strides = array<i32: 2, 1>} : memref<49x32xf32, #tpu.memory_space<vmem>>, vector<23x32xf32>
    %c164 = arith.constant 164 : index
    %c0_39 = arith.constant 0 : index
    %76 = vector.load %arg2[%c164, %c0_39] : memref<400x128xf32, #tpu.memory_space<vmem>>, vector<32x64xf32>
    %cst_40 = arith.constant dense<0.000000e+00> : vector<23x64xf32>
    %77 = tpu.matmul %75, %76, %cst_40 {dimension_numbers = #tpu.dot_dimension_numbers<[1], [0], [0], [1], [0, 0, 1, 1], [], []>} : vector<23x32xf32>, vector<32x64xf32>, vector<23x64xf32> -> vector<23x64xf32>
    %78 = arith.addf %74, %77 : vector<23x64xf32>
    %c2 = arith.constant 2 : index
    %c0_41 = arith.constant 0 : index
    %79 = tpu.strided_load %arg5[%c2, %c0_41] {strides = array<i32: 2, 1>} : memref<49x32xf32, #tpu.memory_space<vmem>>, vector<23x32xf32>
    %c196 = arith.constant 196 : index
    %c0_42 = arith.constant 0 : index
    %80 = vector.load %arg2[%c196, %c0_42] : memref<400x128xf32, #tpu.memory_space<vmem>>, vector<32x64xf32>
    %cst_43 = arith.constant dense<0.000000e+00> : vector<23x64xf32>
    %81 = tpu.matmul %79, %80, %cst_43 {dimension_numbers = #tpu.dot_dimension_numbers<[1], [0], [0], [1], [0, 0, 1, 1], [], []>} : vector<23x32xf32>, vector<32x64xf32>, vector<23x64xf32> -> vector<23x64xf32>
    %82 = arith.addf %78, %81 : vector<23x64xf32>
    %c3 = arith.constant 3 : index
    %c0_44 = arith.constant 0 : index
    %83 = tpu.strided_load %arg5[%c3, %c0_44] {strides = array<i32: 2, 1>} : memref<49x32xf32, #tpu.memory_space<vmem>>, vector<23x32xf32>
    %c228 = arith.constant 228 : index
    %c0_45 = arith.constant 0 : index
    %84 = vector.load %arg2[%c228, %c0_45] : memref<400x128xf32, #tpu.memory_space<vmem>>, vector<32x64xf32>
    %cst_46 = arith.constant dense<0.000000e+00> : vector<23x64xf32>
    %85 = tpu.matmul %83, %84, %cst_46 {dimension_numbers = #tpu.dot_dimension_numbers<[1], [0], [0], [1], [0, 0, 1, 1], [], []>} : vector<23x32xf32>, vector<32x64xf32>, vector<23x64xf32> -> vector<23x64xf32>
    %86 = arith.addf %82, %85 : vector<23x64xf32>
    %c260 = arith.constant 260 : index
    %c0_47 = arith.constant 0 : index
    %87 = vector.load %arg2[%c260, %c0_47] : memref<400x128xf32, #tpu.memory_space<vmem>>, vector<1x64xf32>
    %c261 = arith.constant 261 : index
    %c0_48 = arith.constant 0 : index
    %88 = vector.load %arg2[%c261, %c0_48] : memref<400x128xf32, #tpu.memory_space<vmem>>, vector<1x64xf32>
    %89 = vector.shape_cast %86 : vector<23x64xf32> to vector<1x23x64xf32>
    %cst_49 = arith.constant dense<0.000000e+00> : vector<1xf32>
    %90 = vector.multi_reduction <add>, %89, %cst_49 [1, 2] : vector<1x23x64xf32> to vector<1xf32>
    %91 = vector.shape_cast %90 : vector<1xf32> to vector<1x1x1xf32>
    %92 = vector.extract %91[0, 0, 0] : f32 from vector<1x1x1xf32>
    %cst_50 = arith.constant 6.79347839E-4 : f32
    %93 = arith.mulf %92, %cst_50 : f32
    %94 = vector.broadcast %93 : f32 to vector<23x64xf32>
    %95 = arith.subf %86, %94 : vector<23x64xf32>
    %96 = arith.mulf %95, %95 : vector<23x64xf32>
    %97 = vector.shape_cast %96 : vector<23x64xf32> to vector<1x23x64xf32>
    %cst_51 = arith.constant dense<0.000000e+00> : vector<1xf32>
    %98 = vector.multi_reduction <add>, %97, %cst_51 [1, 2] : vector<1x23x64xf32> to vector<1xf32>
    %99 = vector.shape_cast %98 : vector<1xf32> to vector<1x1x1xf32>
    %100 = vector.extract %99[0, 0, 0] : f32 from vector<1x1x1xf32>
    %cst_52 = arith.constant 6.79347839E-4 : f32
    %101 = arith.mulf %100, %cst_52 : f32
    %102 = vector.broadcast %93 : f32 to vector<23x64xf32>
    %103 = arith.subf %86, %102 : vector<23x64xf32>
    %cst_53 = arith.constant 9.99999974E-6 : f32
    %104 = arith.addf %101, %cst_53 : f32
    %105 = math.rsqrt %104 : f32
    %106 = vector.broadcast %105 : f32 to vector<23x64xf32>
    %107 = arith.mulf %103, %106 : vector<23x64xf32>
    %108 = vector.broadcast %87 : vector<1x64xf32> to vector<23x64xf32>
    %109 = arith.mulf %107, %108 : vector<23x64xf32>
    %110 = vector.broadcast %88 : vector<1x64xf32> to vector<23x64xf32>
    %111 = arith.addf %109, %110 : vector<23x64xf32>
    %cst_54 = arith.constant 0.000000e+00 : f32
    %112 = vector.broadcast %cst_54 : f32 to vector<23x64xf32>
    %113 = arith.maximumf %111, %112 : vector<23x64xf32>
    %114 = math.absf %113 : vector<23x64xf32>
    %cst_55 = arith.constant 1.000000e+00 : f32
    %115 = vector.broadcast %cst_55 : f32 to vector<23x64xf32>
    %116 = arith.addf %114, %115 : vector<23x64xf32>
    %117 = math.log %116 : vector<23x64xf32>
    %c262 = arith.constant 262 : index
    %c0_56 = arith.constant 0 : index
    %118 = vector.load %arg2[%c262, %c0_56] : memref<400x128xf32, #tpu.memory_space<vmem>>, vector<64x64xf32>
    %cst_57 = arith.constant dense<0.000000e+00> : vector<23x64xf32>
    %119 = tpu.matmul %117, %118, %cst_57 {dimension_numbers = #tpu.dot_dimension_numbers<[1], [0], [0], [1], [0, 0, 1, 1], [], []>} : vector<23x64xf32>, vector<64x64xf32>, vector<23x64xf32> -> vector<23x64xf32>
    %120 = vector.extract_strided_slice %119 {offsets = [0, 0], sizes = [23, 32], strides = [1, 1]} : vector<23x64xf32> to vector<23x32xf32>
    %c326 = arith.constant 326 : index
    %c0_58 = arith.constant 0 : index
    %121 = vector.load %arg2[%c326, %c0_58] : memref<400x128xf32, #tpu.memory_space<vmem>>, vector<1x64xf32>
    %122 = vector.extract_strided_slice %121 {offsets = [0, 0], sizes = [1, 32], strides = [1, 1]} : vector<1x64xf32> to vector<1x32xf32>
    %c327 = arith.constant 327 : index
    %c0_59 = arith.constant 0 : index
    %123 = vector.load %arg2[%c327, %c0_59] : memref<400x128xf32, #tpu.memory_space<vmem>>, vector<1x64xf32>
    %124 = vector.extract_strided_slice %123 {offsets = [0, 0], sizes = [1, 32], strides = [1, 1]} : vector<1x64xf32> to vector<1x32xf32>
    %125 = vector.shape_cast %120 : vector<23x32xf32> to vector<1x23x32xf32>
    %cst_60 = arith.constant dense<0.000000e+00> : vector<1xf32>
    %126 = vector.multi_reduction <add>, %125, %cst_60 [1, 2] : vector<1x23x32xf32> to vector<1xf32>
    %127 = vector.shape_cast %126 : vector<1xf32> to vector<1x1x1xf32>
    %128 = vector.extract %127[0, 0, 0] : f32 from vector<1x1x1xf32>
    %cst_61 = arith.constant 0.00135869568 : f32
    %129 = arith.mulf %128, %cst_61 : f32
    %130 = vector.broadcast %129 : f32 to vector<23x32xf32>
    %131 = arith.subf %120, %130 : vector<23x32xf32>
    %132 = arith.mulf %131, %131 : vector<23x32xf32>
    %133 = vector.shape_cast %132 : vector<23x32xf32> to vector<1x23x32xf32>
    %cst_62 = arith.constant dense<0.000000e+00> : vector<1xf32>
    %134 = vector.multi_reduction <add>, %133, %cst_62 [1, 2] : vector<1x23x32xf32> to vector<1xf32>
    %135 = vector.shape_cast %134 : vector<1xf32> to vector<1x1x1xf32>
    %136 = vector.extract %135[0, 0, 0] : f32 from vector<1x1x1xf32>
    %cst_63 = arith.constant 0.00135869568 : f32
    %137 = arith.mulf %136, %cst_63 : f32
    %138 = vector.broadcast %129 : f32 to vector<23x32xf32>
    %139 = arith.subf %120, %138 : vector<23x32xf32>
    %cst_64 = arith.constant 9.99999974E-6 : f32
    %140 = arith.addf %137, %cst_64 : f32
    %141 = math.rsqrt %140 : f32
    %142 = vector.broadcast %141 : f32 to vector<23x32xf32>
    %143 = arith.mulf %139, %142 : vector<23x32xf32>
    %144 = vector.broadcast %122 : vector<1x32xf32> to vector<23x32xf32>
    %145 = arith.mulf %143, %144 : vector<23x32xf32>
    %146 = vector.broadcast %124 : vector<1x32xf32> to vector<23x32xf32>
    %147 = arith.addf %145, %146 : vector<23x32xf32>
    %c328 = arith.constant 328 : index
    %c0_65 = arith.constant 0 : index
    %148 = vector.load %arg2[%c328, %c0_65] : memref<400x128xf32, #tpu.memory_space<vmem>>, vector<32x32xf32>
    %cst_66 = arith.constant dense<0.000000e+00> : vector<23x32xf32>
    %149 = tpu.matmul %147, %148, %cst_66 {dimension_numbers = #tpu.dot_dimension_numbers<[1], [1], [0], [0], [0, 0, 1, 0], [], []>} : vector<23x32xf32>, vector<32x32xf32>, vector<23x32xf32> -> vector<23x32xf32>
    %c392 = arith.constant 392 : index
    %c0_67 = arith.constant 0 : index
    %150 = vector.load %arg2[%c392, %c0_67] : memref<400x128xf32, #tpu.memory_space<vmem>>, vector<1x32xf32>
    %cst_68 = arith.constant 2.000000e+00 : f32
    %151 = vector.broadcast %cst_68 : f32 to vector<23x32xf32>
    %152 = arith.mulf %151, %149 : vector<23x32xf32>
    %153 = vector.broadcast %150 : vector<1x32xf32> to vector<23x32xf32>
    %154 = arith.subf %153, %152 : vector<23x32xf32>
    %155 = tpu.reduce_index %154 {axis = 1 : i32, kind = #tpu.reduction_kind<arg_min>} : vector<23x32xf32> -> vector<23xi32>
    %156 = vector.shape_cast %155 : vector<23xi32> to vector<1x23xi32>
    %c0_69 = arith.constant 0 : index
    %c0_70 = arith.constant 0 : index
    %c0_71 = arith.constant 0 : index
    %157 = vector.load %arg3[%c0_69, %c0_70, %c0_71] : memref<4x2x23xi32, #tpu.memory_space<vmem>>, vector<1x1x23xi32>
    %158 = vector.shape_cast %157 : vector<1x1x23xi32> to vector<1x23xi32>
    %159 = vector.shape_cast %156 : vector<1x23xi32> to vector<1x1x23xi32>
    tpu.vector_store %arg3[%c0_69, %c0_70, %c0_71], %159 {strides = array<i32>} : memref<4x2x23xi32, #tpu.memory_space<vmem>>, vector<1x1x23xi32>,
    %160 = vector.extract_strided_slice %119 {offsets = [0, 32], sizes = [23, 32], strides = [1, 1]} : vector<23x64xf32> to vector<23x32xf32>
    %c326_72 = arith.constant 326 : index
    %c0_73 = arith.constant 0 : index
    %161 = vector.load %arg2[%c326_72, %c0_73] : memref<400x128xf32, #tpu.memory_space<vmem>>, vector<1x64xf32>
    %162 = vector.extract_strided_slice %161 {offsets = [0, 32], sizes = [1, 32], strides = [1, 1]} : vector<1x64xf32> to vector<1x32xf32>
    %c327_74 = arith.constant 327 : index
    %c0_75 = arith.constant 0 : index
    %163 = vector.load %arg2[%c327_74, %c0_75] : memref<400x128xf32, #tpu.memory_space<vmem>>, vector<1x64xf32>
    %164 = vector.extract_strided_slice %163 {offsets = [0, 32], sizes = [1, 32], strides = [1, 1]} : vector<1x64xf32> to vector<1x32xf32>
    %165 = vector.shape_cast %160 : vector<23x32xf32> to vector<1x23x32xf32>
    %cst_76 = arith.constant dense<0.000000e+00> : vector<1xf32>
    %166 = vector.multi_reduction <add>, %165, %cst_76 [1, 2] : vector<1x23x32xf32> to vector<1xf32>
    %167 = vector.shape_cast %166 : vector<1xf32> to vector<1x1x1xf32>
    %168 = vector.extract %167[0, 0, 0] : f32 from vector<1x1x1xf32>
    %cst_77 = arith.constant 0.00135869568 : f32
    %169 = arith.mulf %168, %cst_77 : f32
    %170 = vector.broadcast %169 : f32 to vector<23x32xf32>
    %171 = arith.subf %160, %170 : vector<23x32xf32>
    %172 = arith.mulf %171, %171 : vector<23x32xf32>
    %173 = vector.shape_cast %172 : vector<23x32xf32> to vector<1x23x32xf32>
    %cst_78 = arith.constant dense<0.000000e+00> : vector<1xf32>
    %174 = vector.multi_reduction <add>, %173, %cst_78 [1, 2] : vector<1x23x32xf32> to vector<1xf32>
    %175 = vector.shape_cast %174 : vector<1xf32> to vector<1x1x1xf32>
    %176 = vector.extract %175[0, 0, 0] : f32 from vector<1x1x1xf32>
    %cst_79 = arith.constant 0.00135869568 : f32
    %177 = arith.mulf %176, %cst_79 : f32
    %178 = vector.broadcast %169 : f32 to vector<23x32xf32>
    %179 = arith.subf %160, %178 : vector<23x32xf32>
    %cst_80 = arith.constant 9.99999974E-6 : f32
    %180 = arith.addf %177, %cst_80 : f32
    %181 = math.rsqrt %180 : f32
    %182 = vector.broadcast %181 : f32 to vector<23x32xf32>
    %183 = arith.mulf %179, %182 : vector<23x32xf32>
    %184 = vector.broadcast %162 : vector<1x32xf32> to vector<23x32xf32>
    %185 = arith.mulf %183, %184 : vector<23x32xf32>
    %186 = vector.broadcast %164 : vector<1x32xf32> to vector<23x32xf32>
    %187 = arith.addf %185, %186 : vector<23x32xf32>
    %c360 = arith.constant 360 : index
    %c0_81 = arith.constant 0 : index
    %188 = vector.load %arg2[%c360, %c0_81] : memref<400x128xf32, #tpu.memory_space<vmem>>, vector<32x32xf32>
    %cst_82 = arith.constant dense<0.000000e+00> : vector<23x32xf32>
    %189 = tpu.matmul %187, %188, %cst_82 {dimension_numbers = #tpu.dot_dimension_numbers<[1], [1], [0], [0], [0, 0, 1, 0], [], []>} : vector<23x32xf32>, vector<32x32xf32>, vector<23x32xf32> -> vector<23x32xf32>
    %c393 = arith.constant 393 : index
    %c0_83 = arith.constant 0 : index
    %190 = vector.load %arg2[%c393, %c0_83] : memref<400x128xf32, #tpu.memory_space<vmem>>, vector<1x32xf32>
    %cst_84 = arith.constant 2.000000e+00 : f32
    %191 = vector.broadcast %cst_84 : f32 to vector<23x32xf32>
    %192 = arith.mulf %191, %189 : vector<23x32xf32>
    %193 = vector.broadcast %190 : vector<1x32xf32> to vector<23x32xf32>
    %194 = arith.subf %193, %192 : vector<23x32xf32>
    %195 = tpu.reduce_index %194 {axis = 1 : i32, kind = #tpu.reduction_kind<arg_min>} : vector<23x32xf32> -> vector<23xi32>
    %196 = vector.shape_cast %195 : vector<23xi32> to vector<1x23xi32>
    %c0_85 = arith.constant 0 : index
    %c1_86 = arith.constant 1 : index
    %c0_87 = arith.constant 0 : index
    %197 = vector.load %arg3[%c0_85, %c1_86, %c0_87] : memref<4x2x23xi32, #tpu.memory_space<vmem>>, vector<1x1x23xi32>
    %198 = vector.shape_cast %197 : vector<1x1x23xi32> to vector<1x23xi32>
    %199 = vector.shape_cast %196 : vector<1x23xi32> to vector<1x1x23xi32>
    tpu.vector_store %arg3[%c0_85, %c1_86, %c0_87], %199 {strides = array<i32>} : memref<4x2x23xi32, #tpu.memory_space<vmem>>, vector<1x1x23xi32>,
    %c1_88 = arith.constant 1 : index
    %c0_89 = arith.constant 0 : index
    %c0_90 = arith.constant 0 : index
    %200 = vector.load %arg1[%c1_88, %c0_89, %c0_90] : memref<4x51x64xf32, #tpu.memory_space<vmem>>, vector<1x51x64xf32>
    %201 = vector.shape_cast %200 : vector<1x51x64xf32> to vector<51x64xf32>
    %c0_91 = arith.constant 0 : index
    %c0_92 = arith.constant 0 : index
    %202 = vector.load %arg2[%c0_91, %c0_92] : memref<400x128xf32, #tpu.memory_space<vmem>>, vector<64x128xf32>
    %cst_93 = arith.constant dense<0.000000e+00> : vector<51x128xf32>
    %203 = tpu.matmul %201, %202, %cst_93 {dimension_numbers = #tpu.dot_dimension_numbers<[1], [0], [0], [1], [0, 0, 1, 1], [], []>} : vector<51x64xf32>, vector<64x128xf32>, vector<51x128xf32> -> vector<51x128xf32>
    %c64_94 = arith.constant 64 : index
    %c0_95 = arith.constant 0 : index
    %204 = vector.load %arg2[%c64_94, %c0_95] : memref<400x128xf32, #tpu.memory_space<vmem>>, vector<1x128xf32>
    %c65_96 = arith.constant 65 : index
    %c0_97 = arith.constant 0 : index
    %205 = vector.load %arg2[%c65_96, %c0_97] : memref<400x128xf32, #tpu.memory_space<vmem>>, vector<1x128xf32>
    %206 = vector.shape_cast %203 : vector<51x128xf32> to vector<1x51x128xf32>
    %cst_98 = arith.constant dense<0.000000e+00> : vector<1xf32>
    %207 = vector.multi_reduction <add>, %206, %cst_98 [1, 2] : vector<1x51x128xf32> to vector<1xf32>
    %208 = vector.shape_cast %207 : vector<1xf32> to vector<1x1x1xf32>
    %209 = vector.extract %208[0, 0, 0] : f32 from vector<1x1x1xf32>
    %cst_99 = arith.constant 1.53940884E-4 : f32
    %210 = arith.mulf %209, %cst_99 : f32
    %211 = vector.broadcast %210 : f32 to vector<51x128xf32>
    %212 = arith.subf %203, %211 : vector<51x128xf32>
    %213 = arith.mulf %212, %212 : vector<51x128xf32>
    %214 = vector.shape_cast %213 : vector<51x128xf32> to vector<1x51x128xf32>
    %cst_100 = arith.constant dense<0.000000e+00> : vector<1xf32>
    %215 = vector.multi_reduction <add>, %214, %cst_100 [1, 2] : vector<1x51x128xf32> to vector<1xf32>
    %216 = vector.shape_cast %215 : vector<1xf32> to vector<1x1x1xf32>
    %217 = vector.extract %216[0, 0, 0] : f32 from vector<1x1x1xf32>
    %cst_101 = arith.constant 3.200000e+01 : f32
    %218 = arith.mulf %cst_101, %210 : f32
    %219 = arith.mulf %218, %210 : f32
    %220 = arith.subf %217, %219 : f32
    %cst_102 = arith.constant 1.53940884E-4 : f32
    %221 = arith.mulf %220, %cst_102 : f32
    %222 = vector.broadcast %210 : f32 to vector<51x128xf32>
    %223 = arith.subf %203, %222 : vector<51x128xf32>
    %cst_103 = arith.constant 9.99999974E-6 : f32
    %224 = arith.addf %221, %cst_103 : f32
    %225 = math.rsqrt %224 : f32
    %226 = vector.broadcast %225 : f32 to vector<51x128xf32>
    %227 = arith.mulf %223, %226 : vector<51x128xf32>
    %228 = vector.broadcast %204 : vector<1x128xf32> to vector<51x128xf32>
    %229 = arith.mulf %227, %228 : vector<51x128xf32>
    %230 = vector.broadcast %205 : vector<1x128xf32> to vector<51x128xf32>
    %231 = arith.addf %229, %230 : vector<51x128xf32>
    %cst_104 = arith.constant 0.000000e+00 : f32
    %232 = vector.broadcast %cst_104 : f32 to vector<51x128xf32>
    %233 = arith.maximumf %231, %232 : vector<51x128xf32>
    %c0_105 = arith.constant 0 : index
    %c0_106 = arith.constant 0 : index
    %234 = vector.load %arg4[%c0_105, %c0_106] : memref<51x128xf32, #tpu.memory_space<vmem>>, vector<51x128xf32>
    tpu.vector_store %arg4[%c0_105, %c0_106], %233 {strides = array<i32>} : memref<51x128xf32, #tpu.memory_space<vmem>>, vector<51x128xf32>,
    %c0_107 = arith.constant 0 : index
    %c0_108 = arith.constant 0 : index
    %235 = vector.load %arg4[%c0_107, %c0_108] : memref<51x128xf32, #tpu.memory_space<vmem>>, vector<49x128xf32>
    %c1_109 = arith.constant 1 : index
    %c0_110 = arith.constant 0 : index
    %236 = vector.load %arg4[%c1_109, %c0_110] : memref<51x128xf32, #tpu.memory_space<vmem>>, vector<49x128xf32>
    %c66_111 = arith.constant 66 : index
    %c0_112 = arith.constant 0 : index
    %237 = vector.load %arg2[%c66_111, %c0_112] : memref<400x128xf32, #tpu.memory_space<vmem>>, vector<32x128xf32>
    %cst_113 = arith.constant dense<0.000000e+00> : vector<49x32xf32>
    %238 = tpu.matmul %235, %237, %cst_113 {dimension_numbers = #tpu.dot_dimension_numbers<[1], [1], [0], [0], [0, 0, 1, 0], [], []>} : vector<49x128xf32>, vector<32x128xf32>, vector<49x32xf32> -> vector<49x32xf32>
    %c98_114 = arith.constant 98 : index
    %c0_115 = arith.constant 0 : index
    %239 = vector.load %arg2[%c98_114, %c0_115] : memref<400x128xf32, #tpu.memory_space<vmem>>, vector<32x128xf32>
    %cst_116 = arith.constant dense<0.000000e+00> : vector<49x32xf32>
    %240 = tpu.matmul %236, %239, %cst_116 {dimension_numbers = #tpu.dot_dimension_numbers<[1], [1], [0], [0], [0, 0, 1, 0], [], []>} : vector<49x128xf32>, vector<32x128xf32>, vector<49x32xf32> -> vector<49x32xf32>
    %241 = arith.addf %238, %240 : vector<49x32xf32>
    %c130_117 = arith.constant 130 : index
    %c0_118 = arith.constant 0 : index
    %242 = vector.load %arg2[%c130_117, %c0_118] : memref<400x128xf32, #tpu.memory_space<vmem>>, vector<1x32xf32>
    %c131_119 = arith.constant 131 : index
    %c0_120 = arith.constant 0 : index
    %243 = vector.load %arg2[%c131_119, %c0_120] : memref<400x128xf32, #tpu.memory_space<vmem>>, vector<1x32xf32>
    %244 = vector.shape_cast %241 : vector<49x32xf32> to vector<1x49x32xf32>
    %cst_121 = arith.constant dense<0.000000e+00> : vector<1xf32>
    %245 = vector.multi_reduction <add>, %244, %cst_121 [1, 2] : vector<1x49x32xf32> to vector<1xf32>
    %246 = vector.shape_cast %245 : vector<1xf32> to vector<1x1x1xf32>
    %247 = vector.extract %246[0, 0, 0] : f32 from vector<1x1x1xf32>
    %cst_122 = arith.constant 6.37755089E-4 : f32
    %248 = arith.mulf %247, %cst_122 : f32
    %249 = vector.broadcast %248 : f32 to vector<49x32xf32>
    %250 = arith.subf %241, %249 : vector<49x32xf32>
    %251 = arith.mulf %250, %250 : vector<49x32xf32>
    %252 = vector.shape_cast %251 : vector<49x32xf32> to vector<1x49x32xf32>
    %cst_123 = arith.constant dense<0.000000e+00> : vector<1xf32>
    %253 = vector.multi_reduction <add>, %252, %cst_123 [1, 2] : vector<1x49x32xf32> to vector<1xf32>
    %254 = vector.shape_cast %253 : vector<1xf32> to vector<1x1x1xf32>
    %255 = vector.extract %254[0, 0, 0] : f32 from vector<1x1x1xf32>
    %cst_124 = arith.constant 6.37755089E-4 : f32
    %256 = arith.mulf %255, %cst_124 : f32
    %257 = vector.broadcast %248 : f32 to vector<49x32xf32>
    %258 = arith.subf %241, %257 : vector<49x32xf32>
    %cst_125 = arith.constant 9.99999974E-6 : f32
    %259 = arith.addf %256, %cst_125 : f32
    %260 = math.rsqrt %259 : f32
    %261 = vector.broadcast %260 : f32 to vector<49x32xf32>
    %262 = arith.mulf %258, %261 : vector<49x32xf32>
    %263 = vector.broadcast %242 : vector<1x32xf32> to vector<49x32xf32>
    %264 = arith.mulf %262, %263 : vector<49x32xf32>
    %265 = vector.broadcast %243 : vector<1x32xf32> to vector<49x32xf32>
    %266 = arith.addf %264, %265 : vector<49x32xf32>
    %cst_126 = arith.constant 0.000000e+00 : f32
    %267 = vector.broadcast %cst_126 : f32 to vector<49x32xf32>
    %268 = arith.maximumf %266, %267 : vector<49x32xf32>
    %c0_127 = arith.constant 0 : index
    %c0_128 = arith.constant 0 : index
    %269 = vector.load %arg5[%c0_127, %c0_128] : memref<49x32xf32, #tpu.memory_space<vmem>>, vector<49x32xf32>
    tpu.vector_store %arg5[%c0_127, %c0_128], %268 {strides = array<i32>} : memref<49x32xf32, #tpu.memory_space<vmem>>, vector<49x32xf32>,
    %cst_129 = arith.constant 0.000000e+00 : f32
    %270 = vector.broadcast %cst_129 : f32 to vector<23x64xf32>
    %c0_130 = arith.constant 0 : index
    %c0_131 = arith.constant 0 : index
    %271 = tpu.strided_load %arg5[%c0_130, %c0_131] {strides = array<i32: 2, 1>} : memref<49x32xf32, #tpu.memory_space<vmem>>, vector<23x32xf32>
    %c132_132 = arith.constant 132 : index
    %c0_133 = arith.constant 0 : index
    %272 = vector.load %arg2[%c132_132, %c0_133] : memref<400x128xf32, #tpu.memory_space<vmem>>, vector<32x64xf32>
    %cst_134 = arith.constant dense<0.000000e+00> : vector<23x64xf32>
    %273 = tpu.matmul %271, %272, %cst_134 {dimension_numbers = #tpu.dot_dimension_numbers<[1], [0], [0], [1], [0, 0, 1, 1], [], []>} : vector<23x32xf32>, vector<32x64xf32>, vector<23x64xf32> -> vector<23x64xf32>
    %274 = arith.addf %270, %273 : vector<23x64xf32>
    %c1_135 = arith.constant 1 : index
    %c0_136 = arith.constant 0 : index
    %275 = tpu.strided_load %arg5[%c1_135, %c0_136] {strides = array<i32: 2, 1>} : memref<49x32xf32, #tpu.memory_space<vmem>>, vector<23x32xf32>
    %c164_137 = arith.constant 164 : index
    %c0_138 = arith.constant 0 : index
    %276 = vector.load %arg2[%c164_137, %c0_138] : memref<400x128xf32, #tpu.memory_space<vmem>>, vector<32x64xf32>
    %cst_139 = arith.constant dense<0.000000e+00> : vector<23x64xf32>
    %277 = tpu.matmul %275, %276, %cst_139 {dimension_numbers = #tpu.dot_dimension_numbers<[1], [0], [0], [1], [0, 0, 1, 1], [], []>} : vector<23x32xf32>, vector<32x64xf32>, vector<23x64xf32> -> vector<23x64xf32>
    %278 = arith.addf %274, %277 : vector<23x64xf32>
    %c2_140 = arith.constant 2 : index
    %c0_141 = arith.constant 0 : index
    %279 = tpu.strided_load %arg5[%c2_140, %c0_141] {strides = array<i32: 2, 1>} : memref<49x32xf32, #tpu.memory_space<vmem>>, vector<23x32xf32>
    %c196_142 = arith.constant 196 : index
    %c0_143 = arith.constant 0 : index
    %280 = vector.load %arg2[%c196_142, %c0_143] : memref<400x128xf32, #tpu.memory_space<vmem>>, vector<32x64xf32>
    %cst_144 = arith.constant dense<0.000000e+00> : vector<23x64xf32>
    %281 = tpu.matmul %279, %280, %cst_144 {dimension_numbers = #tpu.dot_dimension_numbers<[1], [0], [0], [1], [0, 0, 1, 1], [], []>} : vector<23x32xf32>, vector<32x64xf32>, vector<23x64xf32> -> vector<23x64xf32>
    %282 = arith.addf %278, %281 : vector<23x64xf32>
    %c3_145 = arith.constant 3 : index
    %c0_146 = arith.constant 0 : index
    %283 = tpu.strided_load %arg5[%c3_145, %c0_146] {strides = array<i32: 2, 1>} : memref<49x32xf32, #tpu.memory_space<vmem>>, vector<23x32xf32>
    %c228_147 = arith.constant 228 : index
    %c0_148 = arith.constant 0 : index
    %284 = vector.load %arg2[%c228_147, %c0_148] : memref<400x128xf32, #tpu.memory_space<vmem>>, vector<32x64xf32>
    %cst_149 = arith.constant dense<0.000000e+00> : vector<23x64xf32>
    %285 = tpu.matmul %283, %284, %cst_149 {dimension_numbers = #tpu.dot_dimension_numbers<[1], [0], [0], [1], [0, 0, 1, 1], [], []>} : vector<23x32xf32>, vector<32x64xf32>, vector<23x64xf32> -> vector<23x64xf32>
    %286 = arith.addf %282, %285 : vector<23x64xf32>
    %c260_150 = arith.constant 260 : index
    %c0_151 = arith.constant 0 : index
    %287 = vector.load %arg2[%c260_150, %c0_151] : memref<400x128xf32, #tpu.memory_space<vmem>>, vector<1x64xf32>
    %c261_152 = arith.constant 261 : index
    %c0_153 = arith.constant 0 : index
    %288 = vector.load %arg2[%c261_152, %c0_153] : memref<400x128xf32, #tpu.memory_space<vmem>>, vector<1x64xf32>
    %289 = vector.shape_cast %286 : vector<23x64xf32> to vector<1x23x64xf32>
    %cst_154 = arith.constant dense<0.000000e+00> : vector<1xf32>
    %290 = vector.multi_reduction <add>, %289, %cst_154 [1, 2] : vector<1x23x64xf32> to vector<1xf32>
    %291 = vector.shape_cast %290 : vector<1xf32> to vector<1x1x1xf32>
    %292 = vector.extract %291[0, 0, 0] : f32 from vector<1x1x1xf32>
    %cst_155 = arith.constant 6.79347839E-4 : f32
    %293 = arith.mulf %292, %cst_155 : f32
    %294 = vector.broadcast %293 : f32 to vector<23x64xf32>
    %295 = arith.subf %286, %294 : vector<23x64xf32>
    %296 = arith.mulf %295, %295 : vector<23x64xf32>
    %297 = vector.shape_cast %296 : vector<23x64xf32> to vector<1x23x64xf32>
    %cst_156 = arith.constant dense<0.000000e+00> : vector<1xf32>
    %298 = vector.multi_reduction <add>, %297, %cst_156 [1, 2] : vector<1x23x64xf32> to vector<1xf32>
    %299 = vector.shape_cast %298 : vector<1xf32> to vector<1x1x1xf32>
    %300 = vector.extract %299[0, 0, 0] : f32 from vector<1x1x1xf32>
    %cst_157 = arith.constant 6.79347839E-4 : f32
    %301 = arith.mulf %300, %cst_157 : f32
    %302 = vector.broadcast %293 : f32 to vector<23x64xf32>
    %303 = arith.subf %286, %302 : vector<23x64xf32>
    %cst_158 = arith.constant 9.99999974E-6 : f32
    %304 = arith.addf %301, %cst_158 : f32
    %305 = math.rsqrt %304 : f32
    %306 = vector.broadcast %305 : f32 to vector<23x64xf32>
    %307 = arith.mulf %303, %306 : vector<23x64xf32>
    %308 = vector.broadcast %287 : vector<1x64xf32> to vector<23x64xf32>
    %309 = arith.mulf %307, %308 : vector<23x64xf32>
    %310 = vector.broadcast %288 : vector<1x64xf32> to vector<23x64xf32>
    %311 = arith.addf %309, %310 : vector<23x64xf32>
    %cst_159 = arith.constant 0.000000e+00 : f32
    %312 = vector.broadcast %cst_159 : f32 to vector<23x64xf32>
    %313 = arith.maximumf %311, %312 : vector<23x64xf32>
    %314 = math.absf %313 : vector<23x64xf32>
    %cst_160 = arith.constant 1.000000e+00 : f32
    %315 = vector.broadcast %cst_160 : f32 to vector<23x64xf32>
    %316 = arith.addf %314, %315 : vector<23x64xf32>
    %317 = math.log %316 : vector<23x64xf32>
    %c262_161 = arith.constant 262 : index
    %c0_162 = arith.constant 0 : index
    %318 = vector.load %arg2[%c262_161, %c0_162] : memref<400x128xf32, #tpu.memory_space<vmem>>, vector<64x64xf32>
    %cst_163 = arith.constant dense<0.000000e+00> : vector<23x64xf32>
    %319 = tpu.matmul %317, %318, %cst_163 {dimension_numbers = #tpu.dot_dimension_numbers<[1], [0], [0], [1], [0, 0, 1, 1], [], []>} : vector<23x64xf32>, vector<64x64xf32>, vector<23x64xf32> -> vector<23x64xf32>
    %320 = vector.extract_strided_slice %319 {offsets = [0, 0], sizes = [23, 32], strides = [1, 1]} : vector<23x64xf32> to vector<23x32xf32>
    %c326_164 = arith.constant 326 : index
    %c0_165 = arith.constant 0 : index
    %321 = vector.load %arg2[%c326_164, %c0_165] : memref<400x128xf32, #tpu.memory_space<vmem>>, vector<1x64xf32>
    %322 = vector.extract_strided_slice %321 {offsets = [0, 0], sizes = [1, 32], strides = [1, 1]} : vector<1x64xf32> to vector<1x32xf32>
    %c327_166 = arith.constant 327 : index
    %c0_167 = arith.constant 0 : index
    %323 = vector.load %arg2[%c327_166, %c0_167] : memref<400x128xf32, #tpu.memory_space<vmem>>, vector<1x64xf32>
    %324 = vector.extract_strided_slice %323 {offsets = [0, 0], sizes = [1, 32], strides = [1, 1]} : vector<1x64xf32> to vector<1x32xf32>
    %325 = vector.shape_cast %320 : vector<23x32xf32> to vector<1x23x32xf32>
    %cst_168 = arith.constant dense<0.000000e+00> : vector<1xf32>
    %326 = vector.multi_reduction <add>, %325, %cst_168 [1, 2] : vector<1x23x32xf32> to vector<1xf32>
    %327 = vector.shape_cast %326 : vector<1xf32> to vector<1x1x1xf32>
    %328 = vector.extract %327[0, 0, 0] : f32 from vector<1x1x1xf32>
    %cst_169 = arith.constant 0.00135869568 : f32
    %329 = arith.mulf %328, %cst_169 : f32
    %330 = vector.broadcast %329 : f32 to vector<23x32xf32>
    %331 = arith.subf %320, %330 : vector<23x32xf32>
    %332 = arith.mulf %331, %331 : vector<23x32xf32>
    %333 = vector.shape_cast %332 : vector<23x32xf32> to vector<1x23x32xf32>
    %cst_170 = arith.constant dense<0.000000e+00> : vector<1xf32>
    %334 = vector.multi_reduction <add>, %333, %cst_170 [1, 2] : vector<1x23x32xf32> to vector<1xf32>
    %335 = vector.shape_cast %334 : vector<1xf32> to vector<1x1x1xf32>
    %336 = vector.extract %335[0, 0, 0] : f32 from vector<1x1x1xf32>
    %cst_171 = arith.constant 0.00135869568 : f32
    %337 = arith.mulf %336, %cst_171 : f32
    %338 = vector.broadcast %329 : f32 to vector<23x32xf32>
    %339 = arith.subf %320, %338 : vector<23x32xf32>
    %cst_172 = arith.constant 9.99999974E-6 : f32
    %340 = arith.addf %337, %cst_172 : f32
    %341 = math.rsqrt %340 : f32
    %342 = vector.broadcast %341 : f32 to vector<23x32xf32>
    %343 = arith.mulf %339, %342 : vector<23x32xf32>
    %344 = vector.broadcast %322 : vector<1x32xf32> to vector<23x32xf32>
    %345 = arith.mulf %343, %344 : vector<23x32xf32>
    %346 = vector.broadcast %324 : vector<1x32xf32> to vector<23x32xf32>
    %347 = arith.addf %345, %346 : vector<23x32xf32>
    %c328_173 = arith.constant 328 : index
    %c0_174 = arith.constant 0 : index
    %348 = vector.load %arg2[%c328_173, %c0_174] : memref<400x128xf32, #tpu.memory_space<vmem>>, vector<32x32xf32>
    %cst_175 = arith.constant dense<0.000000e+00> : vector<23x32xf32>
    %349 = tpu.matmul %347, %348, %cst_175 {dimension_numbers = #tpu.dot_dimension_numbers<[1], [1], [0], [0], [0, 0, 1, 0], [], []>} : vector<23x32xf32>, vector<32x32xf32>, vector<23x32xf32> -> vector<23x32xf32>
    %c392_176 = arith.constant 392 : index
    %c0_177 = arith.constant 0 : index
    %350 = vector.load %arg2[%c392_176, %c0_177] : memref<400x128xf32, #tpu.memory_space<vmem>>, vector<1x32xf32>
    %cst_178 = arith.constant 2.000000e+00 : f32
    %351 = vector.broadcast %cst_178 : f32 to vector<23x32xf32>
    %352 = arith.mulf %351, %349 : vector<23x32xf32>
    %353 = vector.broadcast %350 : vector<1x32xf32> to vector<23x32xf32>
    %354 = arith.subf %353, %352 : vector<23x32xf32>
    %355 = tpu.reduce_index %354 {axis = 1 : i32, kind = #tpu.reduction_kind<arg_min>} : vector<23x32xf32> -> vector<23xi32>
    %356 = vector.shape_cast %355 : vector<23xi32> to vector<1x23xi32>
    %c1_179 = arith.constant 1 : index
    %c0_180 = arith.constant 0 : index
    %c0_181 = arith.constant 0 : index
    %357 = vector.load %arg3[%c1_179, %c0_180, %c0_181] : memref<4x2x23xi32, #tpu.memory_space<vmem>>, vector<1x1x23xi32>
    %358 = vector.shape_cast %357 : vector<1x1x23xi32> to vector<1x23xi32>
    %359 = vector.shape_cast %356 : vector<1x23xi32> to vector<1x1x23xi32>
    tpu.vector_store %arg3[%c1_179, %c0_180, %c0_181], %359 {strides = array<i32>} : memref<4x2x23xi32, #tpu.memory_space<vmem>>, vector<1x1x23xi32>,
    %360 = vector.extract_strided_slice %319 {offsets = [0, 32], sizes = [23, 32], strides = [1, 1]} : vector<23x64xf32> to vector<23x32xf32>
    %c326_182 = arith.constant 326 : index
    %c0_183 = arith.constant 0 : index
    %361 = vector.load %arg2[%c326_182, %c0_183] : memref<400x128xf32, #tpu.memory_space<vmem>>, vector<1x64xf32>
    %362 = vector.extract_strided_slice %361 {offsets = [0, 32], sizes = [1, 32], strides = [1, 1]} : vector<1x64xf32> to vector<1x32xf32>
    %c327_184 = arith.constant 327 : index
    %c0_185 = arith.constant 0 : index
    %363 = vector.load %arg2[%c327_184, %c0_185] : memref<400x128xf32, #tpu.memory_space<vmem>>, vector<1x64xf32>
    %364 = vector.extract_strided_slice %363 {offsets = [0, 32], sizes = [1, 32], strides = [1, 1]} : vector<1x64xf32> to vector<1x32xf32>
    %365 = vector.shape_cast %360 : vector<23x32xf32> to vector<1x23x32xf32>
    %cst_186 = arith.constant dense<0.000000e+00> : vector<1xf32>
    %366 = vector.multi_reduction <add>, %365, %cst_186 [1, 2] : vector<1x23x32xf32> to vector<1xf32>
    %367 = vector.shape_cast %366 : vector<1xf32> to vector<1x1x1xf32>
    %368 = vector.extract %367[0, 0, 0] : f32 from vector<1x1x1xf32>
    %cst_187 = arith.constant 0.00135869568 : f32
    %369 = arith.mulf %368, %cst_187 : f32
    %370 = vector.broadcast %369 : f32 to vector<23x32xf32>
    %371 = arith.subf %360, %370 : vector<23x32xf32>
    %372 = arith.mulf %371, %371 : vector<23x32xf32>
    %373 = vector.shape_cast %372 : vector<23x32xf32> to vector<1x23x32xf32>
    %cst_188 = arith.constant dense<0.000000e+00> : vector<1xf32>
    %374 = vector.multi_reduction <add>, %373, %cst_188 [1, 2] : vector<1x23x32xf32> to vector<1xf32>
    %375 = vector.shape_cast %374 : vector<1xf32> to vector<1x1x1xf32>
    %376 = vector.extract %375[0, 0, 0] : f32 from vector<1x1x1xf32>
    %cst_189 = arith.constant 0.00135869568 : f32
    %377 = arith.mulf %376, %cst_189 : f32
    %378 = vector.broadcast %369 : f32 to vector<23x32xf32>
    %379 = arith.subf %360, %378 : vector<23x32xf32>
    %cst_190 = arith.constant 9.99999974E-6 : f32
    %380 = arith.addf %377, %cst_190 : f32
    %381 = math.rsqrt %380 : f32
    %382 = vector.broadcast %381 : f32 to vector<23x32xf32>
    %383 = arith.mulf %379, %382 : vector<23x32xf32>
    %384 = vector.broadcast %362 : vector<1x32xf32> to vector<23x32xf32>
    %385 = arith.mulf %383, %384 : vector<23x32xf32>
    %386 = vector.broadcast %364 : vector<1x32xf32> to vector<23x32xf32>
    %387 = arith.addf %385, %386 : vector<23x32xf32>
    %c360_191 = arith.constant 360 : index
    %c0_192 = arith.constant 0 : index
    %388 = vector.load %arg2[%c360_191, %c0_192] : memref<400x128xf32, #tpu.memory_space<vmem>>, vector<32x32xf32>
    %cst_193 = arith.constant dense<0.000000e+00> : vector<23x32xf32>
    %389 = tpu.matmul %387, %388, %cst_193 {dimension_numbers = #tpu.dot_dimension_numbers<[1], [1], [0], [0], [0, 0, 1, 0], [], []>} : vector<23x32xf32>, vector<32x32xf32>, vector<23x32xf32> -> vector<23x32xf32>
    %c393_194 = arith.constant 393 : index
    %c0_195 = arith.constant 0 : index
    %390 = vector.load %arg2[%c393_194, %c0_195] : memref<400x128xf32, #tpu.memory_space<vmem>>, vector<1x32xf32>
    %cst_196 = arith.constant 2.000000e+00 : f32
    %391 = vector.broadcast %cst_196 : f32 to vector<23x32xf32>
    %392 = arith.mulf %391, %389 : vector<23x32xf32>
    %393 = vector.broadcast %390 : vector<1x32xf32> to vector<23x32xf32>
    %394 = arith.subf %393, %392 : vector<23x32xf32>
    %395 = tpu.reduce_index %394 {axis = 1 : i32, kind = #tpu.reduction_kind<arg_min>} : vector<23x32xf32> -> vector<23xi32>
    %396 = vector.shape_cast %395 : vector<23xi32> to vector<1x23xi32>
    %c1_197 = arith.constant 1 : index
    %c1_198 = arith.constant 1 : index
    %c0_199 = arith.constant 0 : index
    %397 = vector.load %arg3[%c1_197, %c1_198, %c0_199] : memref<4x2x23xi32, #tpu.memory_space<vmem>>, vector<1x1x23xi32>
    %398 = vector.shape_cast %397 : vector<1x1x23xi32> to vector<1x23xi32>
    %399 = vector.shape_cast %396 : vector<1x23xi32> to vector<1x1x23xi32>
    tpu.vector_store %arg3[%c1_197, %c1_198, %c0_199], %399 {strides = array<i32>} : memref<4x2x23xi32, #tpu.memory_space<vmem>>, vector<1x1x23xi32>,
    %c2_200 = arith.constant 2 : index
    %c0_201 = arith.constant 0 : index
    %c0_202 = arith.constant 0 : index
    %400 = vector.load %arg1[%c2_200, %c0_201, %c0_202] : memref<4x51x64xf32, #tpu.memory_space<vmem>>, vector<1x51x64xf32>
    %401 = vector.shape_cast %400 : vector<1x51x64xf32> to vector<51x64xf32>
    %c0_203 = arith.constant 0 : index
    %c0_204 = arith.constant 0 : index
    %402 = vector.load %arg2[%c0_203, %c0_204] : memref<400x128xf32, #tpu.memory_space<vmem>>, vector<64x128xf32>
    %cst_205 = arith.constant dense<0.000000e+00> : vector<51x128xf32>
    %403 = tpu.matmul %401, %402, %cst_205 {dimension_numbers = #tpu.dot_dimension_numbers<[1], [0], [0], [1], [0, 0, 1, 1], [], []>} : vector<51x64xf32>, vector<64x128xf32>, vector<51x128xf32> -> vector<51x128xf32>
    %c64_206 = arith.constant 64 : index
    %c0_207 = arith.constant 0 : index
    %404 = vector.load %arg2[%c64_206, %c0_207] : memref<400x128xf32, #tpu.memory_space<vmem>>, vector<1x128xf32>
    %c65_208 = arith.constant 65 : index
    %c0_209 = arith.constant 0 : index
    %405 = vector.load %arg2[%c65_208, %c0_209] : memref<400x128xf32, #tpu.memory_space<vmem>>, vector<1x128xf32>
    %406 = vector.shape_cast %403 : vector<51x128xf32> to vector<1x51x128xf32>
    %cst_210 = arith.constant dense<0.000000e+00> : vector<1xf32>
    %407 = vector.multi_reduction <add>, %406, %cst_210 [1, 2] : vector<1x51x128xf32> to vector<1xf32>
    %408 = vector.shape_cast %407 : vector<1xf32> to vector<1x1x1xf32>
    %409 = vector.extract %408[0, 0, 0] : f32 from vector<1x1x1xf32>
    %cst_211 = arith.constant 1.53940884E-4 : f32
    %410 = arith.mulf %409, %cst_211 : f32
    %411 = vector.broadcast %410 : f32 to vector<51x128xf32>
    %412 = arith.subf %403, %411 : vector<51x128xf32>
    %413 = arith.mulf %412, %412 : vector<51x128xf32>
    %414 = vector.shape_cast %413 : vector<51x128xf32> to vector<1x51x128xf32>
    %cst_212 = arith.constant dense<0.000000e+00> : vector<1xf32>
    %415 = vector.multi_reduction <add>, %414, %cst_212 [1, 2] : vector<1x51x128xf32> to vector<1xf32>
    %416 = vector.shape_cast %415 : vector<1xf32> to vector<1x1x1xf32>
    %417 = vector.extract %416[0, 0, 0] : f32 from vector<1x1x1xf32>
    %cst_213 = arith.constant 3.200000e+01 : f32
    %418 = arith.mulf %cst_213, %410 : f32
    %419 = arith.mulf %418, %410 : f32
    %420 = arith.subf %417, %419 : f32
    %cst_214 = arith.constant 1.53940884E-4 : f32
    %421 = arith.mulf %420, %cst_214 : f32
    %422 = vector.broadcast %410 : f32 to vector<51x128xf32>
    %423 = arith.subf %403, %422 : vector<51x128xf32>
    %cst_215 = arith.constant 9.99999974E-6 : f32
    %424 = arith.addf %421, %cst_215 : f32
    %425 = math.rsqrt %424 : f32
    %426 = vector.broadcast %425 : f32 to vector<51x128xf32>
    %427 = arith.mulf %423, %426 : vector<51x128xf32>
    %428 = vector.broadcast %404 : vector<1x128xf32> to vector<51x128xf32>
    %429 = arith.mulf %427, %428 : vector<51x128xf32>
    %430 = vector.broadcast %405 : vector<1x128xf32> to vector<51x128xf32>
    %431 = arith.addf %429, %430 : vector<51x128xf32>
    %cst_216 = arith.constant 0.000000e+00 : f32
    %432 = vector.broadcast %cst_216 : f32 to vector<51x128xf32>
    %433 = arith.maximumf %431, %432 : vector<51x128xf32>
    %c0_217 = arith.constant 0 : index
    %c0_218 = arith.constant 0 : index
    %434 = vector.load %arg4[%c0_217, %c0_218] : memref<51x128xf32, #tpu.memory_space<vmem>>, vector<51x128xf32>
    tpu.vector_store %arg4[%c0_217, %c0_218], %433 {strides = array<i32>} : memref<51x128xf32, #tpu.memory_space<vmem>>, vector<51x128xf32>,
    %c0_219 = arith.constant 0 : index
    %c0_220 = arith.constant 0 : index
    %435 = vector.load %arg4[%c0_219, %c0_220] : memref<51x128xf32, #tpu.memory_space<vmem>>, vector<49x128xf32>
    %c1_221 = arith.constant 1 : index
    %c0_222 = arith.constant 0 : index
    %436 = vector.load %arg4[%c1_221, %c0_222] : memref<51x128xf32, #tpu.memory_space<vmem>>, vector<49x128xf32>
    %c66_223 = arith.constant 66 : index
    %c0_224 = arith.constant 0 : index
    %437 = vector.load %arg2[%c66_223, %c0_224] : memref<400x128xf32, #tpu.memory_space<vmem>>, vector<32x128xf32>
    %cst_225 = arith.constant dense<0.000000e+00> : vector<49x32xf32>
    %438 = tpu.matmul %435, %437, %cst_225 {dimension_numbers = #tpu.dot_dimension_numbers<[1], [1], [0], [0], [0, 0, 1, 0], [], []>} : vector<49x128xf32>, vector<32x128xf32>, vector<49x32xf32> -> vector<49x32xf32>
    %c98_226 = arith.constant 98 : index
    %c0_227 = arith.constant 0 : index
    %439 = vector.load %arg2[%c98_226, %c0_227] : memref<400x128xf32, #tpu.memory_space<vmem>>, vector<32x128xf32>
    %cst_228 = arith.constant dense<0.000000e+00> : vector<49x32xf32>
    %440 = tpu.matmul %436, %439, %cst_228 {dimension_numbers = #tpu.dot_dimension_numbers<[1], [1], [0], [0], [0, 0, 1, 0], [], []>} : vector<49x128xf32>, vector<32x128xf32>, vector<49x32xf32> -> vector<49x32xf32>
    %441 = arith.addf %438, %440 : vector<49x32xf32>
    %c130_229 = arith.constant 130 : index
    %c0_230 = arith.constant 0 : index
    %442 = vector.load %arg2[%c130_229, %c0_230] : memref<400x128xf32, #tpu.memory_space<vmem>>, vector<1x32xf32>
    %c131_231 = arith.constant 131 : index
    %c0_232 = arith.constant 0 : index
    %443 = vector.load %arg2[%c131_231, %c0_232] : memref<400x128xf32, #tpu.memory_space<vmem>>, vector<1x32xf32>
    %444 = vector.shape_cast %441 : vector<49x32xf32> to vector<1x49x32xf32>
    %cst_233 = arith.constant dense<0.000000e+00> : vector<1xf32>
    %445 = vector.multi_reduction <add>, %444, %cst_233 [1, 2] : vector<1x49x32xf32> to vector<1xf32>
    %446 = vector.shape_cast %445 : vector<1xf32> to vector<1x1x1xf32>
    %447 = vector.extract %446[0, 0, 0] : f32 from vector<1x1x1xf32>
    %cst_234 = arith.constant 6.37755089E-4 : f32
    %448 = arith.mulf %447, %cst_234 : f32
    %449 = vector.broadcast %448 : f32 to vector<49x32xf32>
    %450 = arith.subf %441, %449 : vector<49x32xf32>
    %451 = arith.mulf %450, %450 : vector<49x32xf32>
    %452 = vector.shape_cast %451 : vector<49x32xf32> to vector<1x49x32xf32>
    %cst_235 = arith.constant dense<0.000000e+00> : vector<1xf32>
    %453 = vector.multi_reduction <add>, %452, %cst_235 [1, 2] : vector<1x49x32xf32> to vector<1xf32>
    %454 = vector.shape_cast %453 : vector<1xf32> to vector<1x1x1xf32>
    %455 = vector.extract %454[0, 0, 0] : f32 from vector<1x1x1xf32>
    %cst_236 = arith.constant 6.37755089E-4 : f32
    %456 = arith.mulf %455, %cst_236 : f32
    %457 = vector.broadcast %448 : f32 to vector<49x32xf32>
    %458 = arith.subf %441, %457 : vector<49x32xf32>
    %cst_237 = arith.constant 9.99999974E-6 : f32
    %459 = arith.addf %456, %cst_237 : f32
    %460 = math.rsqrt %459 : f32
    %461 = vector.broadcast %460 : f32 to vector<49x32xf32>
    %462 = arith.mulf %458, %461 : vector<49x32xf32>
    %463 = vector.broadcast %442 : vector<1x32xf32> to vector<49x32xf32>
    %464 = arith.mulf %462, %463 : vector<49x32xf32>
    %465 = vector.broadcast %443 : vector<1x32xf32> to vector<49x32xf32>
    %466 = arith.addf %464, %465 : vector<49x32xf32>
    %cst_238 = arith.constant 0.000000e+00 : f32
    %467 = vector.broadcast %cst_238 : f32 to vector<49x32xf32>
    %468 = arith.maximumf %466, %467 : vector<49x32xf32>
    %c0_239 = arith.constant 0 : index
    %c0_240 = arith.constant 0 : index
    %469 = vector.load %arg5[%c0_239, %c0_240] : memref<49x32xf32, #tpu.memory_space<vmem>>, vector<49x32xf32>
    tpu.vector_store %arg5[%c0_239, %c0_240], %468 {strides = array<i32>} : memref<49x32xf32, #tpu.memory_space<vmem>>, vector<49x32xf32>,
    %cst_241 = arith.constant 0.000000e+00 : f32
    %470 = vector.broadcast %cst_241 : f32 to vector<23x64xf32>
    %c0_242 = arith.constant 0 : index
    %c0_243 = arith.constant 0 : index
    %471 = tpu.strided_load %arg5[%c0_242, %c0_243] {strides = array<i32: 2, 1>} : memref<49x32xf32, #tpu.memory_space<vmem>>, vector<23x32xf32>
    %c132_244 = arith.constant 132 : index
    %c0_245 = arith.constant 0 : index
    %472 = vector.load %arg2[%c132_244, %c0_245] : memref<400x128xf32, #tpu.memory_space<vmem>>, vector<32x64xf32>
    %cst_246 = arith.constant dense<0.000000e+00> : vector<23x64xf32>
    %473 = tpu.matmul %471, %472, %cst_246 {dimension_numbers = #tpu.dot_dimension_numbers<[1], [0], [0], [1], [0, 0, 1, 1], [], []>} : vector<23x32xf32>, vector<32x64xf32>, vector<23x64xf32> -> vector<23x64xf32>
    %474 = arith.addf %470, %473 : vector<23x64xf32>
    %c1_247 = arith.constant 1 : index
    %c0_248 = arith.constant 0 : index
    %475 = tpu.strided_load %arg5[%c1_247, %c0_248] {strides = array<i32: 2, 1>} : memref<49x32xf32, #tpu.memory_space<vmem>>, vector<23x32xf32>
    %c164_249 = arith.constant 164 : index
    %c0_250 = arith.constant 0 : index
    %476 = vector.load %arg2[%c164_249, %c0_250] : memref<400x128xf32, #tpu.memory_space<vmem>>, vector<32x64xf32>
    %cst_251 = arith.constant dense<0.000000e+00> : vector<23x64xf32>
    %477 = tpu.matmul %475, %476, %cst_251 {dimension_numbers = #tpu.dot_dimension_numbers<[1], [0], [0], [1], [0, 0, 1, 1], [], []>} : vector<23x32xf32>, vector<32x64xf32>, vector<23x64xf32> -> vector<23x64xf32>
    %478 = arith.addf %474, %477 : vector<23x64xf32>
    %c2_252 = arith.constant 2 : index
    %c0_253 = arith.constant 0 : index
    %479 = tpu.strided_load %arg5[%c2_252, %c0_253] {strides = array<i32: 2, 1>} : memref<49x32xf32, #tpu.memory_space<vmem>>, vector<23x32xf32>
    %c196_254 = arith.constant 196 : index
    %c0_255 = arith.constant 0 : index
    %480 = vector.load %arg2[%c196_254, %c0_255] : memref<400x128xf32, #tpu.memory_space<vmem>>, vector<32x64xf32>
    %cst_256 = arith.constant dense<0.000000e+00> : vector<23x64xf32>
    %481 = tpu.matmul %479, %480, %cst_256 {dimension_numbers = #tpu.dot_dimension_numbers<[1], [0], [0], [1], [0, 0, 1, 1], [], []>} : vector<23x32xf32>, vector<32x64xf32>, vector<23x64xf32> -> vector<23x64xf32>
    %482 = arith.addf %478, %481 : vector<23x64xf32>
    %c3_257 = arith.constant 3 : index
    %c0_258 = arith.constant 0 : index
    %483 = tpu.strided_load %arg5[%c3_257, %c0_258] {strides = array<i32: 2, 1>} : memref<49x32xf32, #tpu.memory_space<vmem>>, vector<23x32xf32>
    %c228_259 = arith.constant 228 : index
    %c0_260 = arith.constant 0 : index
    %484 = vector.load %arg2[%c228_259, %c0_260] : memref<400x128xf32, #tpu.memory_space<vmem>>, vector<32x64xf32>
    %cst_261 = arith.constant dense<0.000000e+00> : vector<23x64xf32>
    %485 = tpu.matmul %483, %484, %cst_261 {dimension_numbers = #tpu.dot_dimension_numbers<[1], [0], [0], [1], [0, 0, 1, 1], [], []>} : vector<23x32xf32>, vector<32x64xf32>, vector<23x64xf32> -> vector<23x64xf32>
    %486 = arith.addf %482, %485 : vector<23x64xf32>
    %c260_262 = arith.constant 260 : index
    %c0_263 = arith.constant 0 : index
    %487 = vector.load %arg2[%c260_262, %c0_263] : memref<400x128xf32, #tpu.memory_space<vmem>>, vector<1x64xf32>
    %c261_264 = arith.constant 261 : index
    %c0_265 = arith.constant 0 : index
    %488 = vector.load %arg2[%c261_264, %c0_265] : memref<400x128xf32, #tpu.memory_space<vmem>>, vector<1x64xf32>
    %489 = vector.shape_cast %486 : vector<23x64xf32> to vector<1x23x64xf32>
    %cst_266 = arith.constant dense<0.000000e+00> : vector<1xf32>
    %490 = vector.multi_reduction <add>, %489, %cst_266 [1, 2] : vector<1x23x64xf32> to vector<1xf32>
    %491 = vector.shape_cast %490 : vector<1xf32> to vector<1x1x1xf32>
    %492 = vector.extract %491[0, 0, 0] : f32 from vector<1x1x1xf32>
    %cst_267 = arith.constant 6.79347839E-4 : f32
    %493 = arith.mulf %492, %cst_267 : f32
    %494 = vector.broadcast %493 : f32 to vector<23x64xf32>
    %495 = arith.subf %486, %494 : vector<23x64xf32>
    %496 = arith.mulf %495, %495 : vector<23x64xf32>
    %497 = vector.shape_cast %496 : vector<23x64xf32> to vector<1x23x64xf32>
    %cst_268 = arith.constant dense<0.000000e+00> : vector<1xf32>
    %498 = vector.multi_reduction <add>, %497, %cst_268 [1, 2] : vector<1x23x64xf32> to vector<1xf32>
    %499 = vector.shape_cast %498 : vector<1xf32> to vector<1x1x1xf32>
    %500 = vector.extract %499[0, 0, 0] : f32 from vector<1x1x1xf32>
    %cst_269 = arith.constant 6.79347839E-4 : f32
    %501 = arith.mulf %500, %cst_269 : f32
    %502 = vector.broadcast %493 : f32 to vector<23x64xf32>
    %503 = arith.subf %486, %502 : vector<23x64xf32>
    %cst_270 = arith.constant 9.99999974E-6 : f32
    %504 = arith.addf %501, %cst_270 : f32
    %505 = math.rsqrt %504 : f32
    %506 = vector.broadcast %505 : f32 to vector<23x64xf32>
    %507 = arith.mulf %503, %506 : vector<23x64xf32>
    %508 = vector.broadcast %487 : vector<1x64xf32> to vector<23x64xf32>
    %509 = arith.mulf %507, %508 : vector<23x64xf32>
    %510 = vector.broadcast %488 : vector<1x64xf32> to vector<23x64xf32>
    %511 = arith.addf %509, %510 : vector<23x64xf32>
    %cst_271 = arith.constant 0.000000e+00 : f32
    %512 = vector.broadcast %cst_271 : f32 to vector<23x64xf32>
    %513 = arith.maximumf %511, %512 : vector<23x64xf32>
    %514 = math.absf %513 : vector<23x64xf32>
    %cst_272 = arith.constant 1.000000e+00 : f32
    %515 = vector.broadcast %cst_272 : f32 to vector<23x64xf32>
    %516 = arith.addf %514, %515 : vector<23x64xf32>
    %517 = math.log %516 : vector<23x64xf32>
    %c262_273 = arith.constant 262 : index
    %c0_274 = arith.constant 0 : index
    %518 = vector.load %arg2[%c262_273, %c0_274] : memref<400x128xf32, #tpu.memory_space<vmem>>, vector<64x64xf32>
    %cst_275 = arith.constant dense<0.000000e+00> : vector<23x64xf32>
    %519 = tpu.matmul %517, %518, %cst_275 {dimension_numbers = #tpu.dot_dimension_numbers<[1], [0], [0], [1], [0, 0, 1, 1], [], []>} : vector<23x64xf32>, vector<64x64xf32>, vector<23x64xf32> -> vector<23x64xf32>
    %520 = vector.extract_strided_slice %519 {offsets = [0, 0], sizes = [23, 32], strides = [1, 1]} : vector<23x64xf32> to vector<23x32xf32>
    %c326_276 = arith.constant 326 : index
    %c0_277 = arith.constant 0 : index
    %521 = vector.load %arg2[%c326_276, %c0_277] : memref<400x128xf32, #tpu.memory_space<vmem>>, vector<1x64xf32>
    %522 = vector.extract_strided_slice %521 {offsets = [0, 0], sizes = [1, 32], strides = [1, 1]} : vector<1x64xf32> to vector<1x32xf32>
    %c327_278 = arith.constant 327 : index
    %c0_279 = arith.constant 0 : index
    %523 = vector.load %arg2[%c327_278, %c0_279] : memref<400x128xf32, #tpu.memory_space<vmem>>, vector<1x64xf32>
    %524 = vector.extract_strided_slice %523 {offsets = [0, 0], sizes = [1, 32], strides = [1, 1]} : vector<1x64xf32> to vector<1x32xf32>
    %525 = vector.shape_cast %520 : vector<23x32xf32> to vector<1x23x32xf32>
    %cst_280 = arith.constant dense<0.000000e+00> : vector<1xf32>
    %526 = vector.multi_reduction <add>, %525, %cst_280 [1, 2] : vector<1x23x32xf32> to vector<1xf32>
    %527 = vector.shape_cast %526 : vector<1xf32> to vector<1x1x1xf32>
    %528 = vector.extract %527[0, 0, 0] : f32 from vector<1x1x1xf32>
    %cst_281 = arith.constant 0.00135869568 : f32
    %529 = arith.mulf %528, %cst_281 : f32
    %530 = vector.broadcast %529 : f32 to vector<23x32xf32>
    %531 = arith.subf %520, %530 : vector<23x32xf32>
    %532 = arith.mulf %531, %531 : vector<23x32xf32>
    %533 = vector.shape_cast %532 : vector<23x32xf32> to vector<1x23x32xf32>
    %cst_282 = arith.constant dense<0.000000e+00> : vector<1xf32>
    %534 = vector.multi_reduction <add>, %533, %cst_282 [1, 2] : vector<1x23x32xf32> to vector<1xf32>
    %535 = vector.shape_cast %534 : vector<1xf32> to vector<1x1x1xf32>
    %536 = vector.extract %535[0, 0, 0] : f32 from vector<1x1x1xf32>
    %cst_283 = arith.constant 0.00135869568 : f32
    %537 = arith.mulf %536, %cst_283 : f32
    %538 = vector.broadcast %529 : f32 to vector<23x32xf32>
    %539 = arith.subf %520, %538 : vector<23x32xf32>
    %cst_284 = arith.constant 9.99999974E-6 : f32
    %540 = arith.addf %537, %cst_284 : f32
    %541 = math.rsqrt %540 : f32
    %542 = vector.broadcast %541 : f32 to vector<23x32xf32>
    %543 = arith.mulf %539, %542 : vector<23x32xf32>
    %544 = vector.broadcast %522 : vector<1x32xf32> to vector<23x32xf32>
    %545 = arith.mulf %543, %544 : vector<23x32xf32>
    %546 = vector.broadcast %524 : vector<1x32xf32> to vector<23x32xf32>
    %547 = arith.addf %545, %546 : vector<23x32xf32>
    %c328_285 = arith.constant 328 : index
    %c0_286 = arith.constant 0 : index
    %548 = vector.load %arg2[%c328_285, %c0_286] : memref<400x128xf32, #tpu.memory_space<vmem>>, vector<32x32xf32>
    %cst_287 = arith.constant dense<0.000000e+00> : vector<23x32xf32>
    %549 = tpu.matmul %547, %548, %cst_287 {dimension_numbers = #tpu.dot_dimension_numbers<[1], [1], [0], [0], [0, 0, 1, 0], [], []>} : vector<23x32xf32>, vector<32x32xf32>, vector<23x32xf32> -> vector<23x32xf32>
    %c392_288 = arith.constant 392 : index
    %c0_289 = arith.constant 0 : index
    %550 = vector.load %arg2[%c392_288, %c0_289] : memref<400x128xf32, #tpu.memory_space<vmem>>, vector<1x32xf32>
    %cst_290 = arith.constant 2.000000e+00 : f32
    %551 = vector.broadcast %cst_290 : f32 to vector<23x32xf32>
    %552 = arith.mulf %551, %549 : vector<23x32xf32>
    %553 = vector.broadcast %550 : vector<1x32xf32> to vector<23x32xf32>
    %554 = arith.subf %553, %552 : vector<23x32xf32>
    %555 = tpu.reduce_index %554 {axis = 1 : i32, kind = #tpu.reduction_kind<arg_min>} : vector<23x32xf32> -> vector<23xi32>
    %556 = vector.shape_cast %555 : vector<23xi32> to vector<1x23xi32>
    %c2_291 = arith.constant 2 : index
    %c0_292 = arith.constant 0 : index
    %c0_293 = arith.constant 0 : index
    %557 = vector.load %arg3[%c2_291, %c0_292, %c0_293] : memref<4x2x23xi32, #tpu.memory_space<vmem>>, vector<1x1x23xi32>
    %558 = vector.shape_cast %557 : vector<1x1x23xi32> to vector<1x23xi32>
    %559 = vector.shape_cast %556 : vector<1x23xi32> to vector<1x1x23xi32>
    tpu.vector_store %arg3[%c2_291, %c0_292, %c0_293], %559 {strides = array<i32>} : memref<4x2x23xi32, #tpu.memory_space<vmem>>, vector<1x1x23xi32>,
    %560 = vector.extract_strided_slice %519 {offsets = [0, 32], sizes = [23, 32], strides = [1, 1]} : vector<23x64xf32> to vector<23x32xf32>
    %c326_294 = arith.constant 326 : index
    %c0_295 = arith.constant 0 : index
    %561 = vector.load %arg2[%c326_294, %c0_295] : memref<400x128xf32, #tpu.memory_space<vmem>>, vector<1x64xf32>
    %562 = vector.extract_strided_slice %561 {offsets = [0, 32], sizes = [1, 32], strides = [1, 1]} : vector<1x64xf32> to vector<1x32xf32>
    %c327_296 = arith.constant 327 : index
    %c0_297 = arith.constant 0 : index
    %563 = vector.load %arg2[%c327_296, %c0_297] : memref<400x128xf32, #tpu.memory_space<vmem>>, vector<1x64xf32>
    %564 = vector.extract_strided_slice %563 {offsets = [0, 32], sizes = [1, 32], strides = [1, 1]} : vector<1x64xf32> to vector<1x32xf32>
    %565 = vector.shape_cast %560 : vector<23x32xf32> to vector<1x23x32xf32>
    %cst_298 = arith.constant dense<0.000000e+00> : vector<1xf32>
    %566 = vector.multi_reduction <add>, %565, %cst_298 [1, 2] : vector<1x23x32xf32> to vector<1xf32>
    %567 = vector.shape_cast %566 : vector<1xf32> to vector<1x1x1xf32>
    %568 = vector.extract %567[0, 0, 0] : f32 from vector<1x1x1xf32>
    %cst_299 = arith.constant 0.00135869568 : f32
    %569 = arith.mulf %568, %cst_299 : f32
    %570 = vector.broadcast %569 : f32 to vector<23x32xf32>
    %571 = arith.subf %560, %570 : vector<23x32xf32>
    %572 = arith.mulf %571, %571 : vector<23x32xf32>
    %573 = vector.shape_cast %572 : vector<23x32xf32> to vector<1x23x32xf32>
    %cst_300 = arith.constant dense<0.000000e+00> : vector<1xf32>
    %574 = vector.multi_reduction <add>, %573, %cst_300 [1, 2] : vector<1x23x32xf32> to vector<1xf32>
    %575 = vector.shape_cast %574 : vector<1xf32> to vector<1x1x1xf32>
    %576 = vector.extract %575[0, 0, 0] : f32 from vector<1x1x1xf32>
    %cst_301 = arith.constant 0.00135869568 : f32
    %577 = arith.mulf %576, %cst_301 : f32
    %578 = vector.broadcast %569 : f32 to vector<23x32xf32>
    %579 = arith.subf %560, %578 : vector<23x32xf32>
    %cst_302 = arith.constant 9.99999974E-6 : f32
    %580 = arith.addf %577, %cst_302 : f32
    %581 = math.rsqrt %580 : f32
    %582 = vector.broadcast %581 : f32 to vector<23x32xf32>
    %583 = arith.mulf %579, %582 : vector<23x32xf32>
    %584 = vector.broadcast %562 : vector<1x32xf32> to vector<23x32xf32>
    %585 = arith.mulf %583, %584 : vector<23x32xf32>
    %586 = vector.broadcast %564 : vector<1x32xf32> to vector<23x32xf32>
    %587 = arith.addf %585, %586 : vector<23x32xf32>
    %c360_303 = arith.constant 360 : index
    %c0_304 = arith.constant 0 : index
    %588 = vector.load %arg2[%c360_303, %c0_304] : memref<400x128xf32, #tpu.memory_space<vmem>>, vector<32x32xf32>
    %cst_305 = arith.constant dense<0.000000e+00> : vector<23x32xf32>
    %589 = tpu.matmul %587, %588, %cst_305 {dimension_numbers = #tpu.dot_dimension_numbers<[1], [1], [0], [0], [0, 0, 1, 0], [], []>} : vector<23x32xf32>, vector<32x32xf32>, vector<23x32xf32> -> vector<23x32xf32>
    %c393_306 = arith.constant 393 : index
    %c0_307 = arith.constant 0 : index
    %590 = vector.load %arg2[%c393_306, %c0_307] : memref<400x128xf32, #tpu.memory_space<vmem>>, vector<1x32xf32>
    %cst_308 = arith.constant 2.000000e+00 : f32
    %591 = vector.broadcast %cst_308 : f32 to vector<23x32xf32>
    %592 = arith.mulf %591, %589 : vector<23x32xf32>
    %593 = vector.broadcast %590 : vector<1x32xf32> to vector<23x32xf32>
    %594 = arith.subf %593, %592 : vector<23x32xf32>
    %595 = tpu.reduce_index %594 {axis = 1 : i32, kind = #tpu.reduction_kind<arg_min>} : vector<23x32xf32> -> vector<23xi32>
    %596 = vector.shape_cast %595 : vector<23xi32> to vector<1x23xi32>
    %c2_309 = arith.constant 2 : index
    %c1_310 = arith.constant 1 : index
    %c0_311 = arith.constant 0 : index
    %597 = vector.load %arg3[%c2_309, %c1_310, %c0_311] : memref<4x2x23xi32, #tpu.memory_space<vmem>>, vector<1x1x23xi32>
    %598 = vector.shape_cast %597 : vector<1x1x23xi32> to vector<1x23xi32>
    %599 = vector.shape_cast %596 : vector<1x23xi32> to vector<1x1x23xi32>
    tpu.vector_store %arg3[%c2_309, %c1_310, %c0_311], %599 {strides = array<i32>} : memref<4x2x23xi32, #tpu.memory_space<vmem>>, vector<1x1x23xi32>,
    %c3_312 = arith.constant 3 : index
    %c0_313 = arith.constant 0 : index
    %c0_314 = arith.constant 0 : index
    %600 = vector.load %arg1[%c3_312, %c0_313, %c0_314] : memref<4x51x64xf32, #tpu.memory_space<vmem>>, vector<1x51x64xf32>
    %601 = vector.shape_cast %600 : vector<1x51x64xf32> to vector<51x64xf32>
    %c0_315 = arith.constant 0 : index
    %c0_316 = arith.constant 0 : index
    %602 = vector.load %arg2[%c0_315, %c0_316] : memref<400x128xf32, #tpu.memory_space<vmem>>, vector<64x128xf32>
    %cst_317 = arith.constant dense<0.000000e+00> : vector<51x128xf32>
    %603 = tpu.matmul %601, %602, %cst_317 {dimension_numbers = #tpu.dot_dimension_numbers<[1], [0], [0], [1], [0, 0, 1, 1], [], []>} : vector<51x64xf32>, vector<64x128xf32>, vector<51x128xf32> -> vector<51x128xf32>
    %c64_318 = arith.constant 64 : index
    %c0_319 = arith.constant 0 : index
    %604 = vector.load %arg2[%c64_318, %c0_319] : memref<400x128xf32, #tpu.memory_space<vmem>>, vector<1x128xf32>
    %c65_320 = arith.constant 65 : index
    %c0_321 = arith.constant 0 : index
    %605 = vector.load %arg2[%c65_320, %c0_321] : memref<400x128xf32, #tpu.memory_space<vmem>>, vector<1x128xf32>
    %606 = vector.shape_cast %603 : vector<51x128xf32> to vector<1x51x128xf32>
    %cst_322 = arith.constant dense<0.000000e+00> : vector<1xf32>
    %607 = vector.multi_reduction <add>, %606, %cst_322 [1, 2] : vector<1x51x128xf32> to vector<1xf32>
    %608 = vector.shape_cast %607 : vector<1xf32> to vector<1x1x1xf32>
    %609 = vector.extract %608[0, 0, 0] : f32 from vector<1x1x1xf32>
    %cst_323 = arith.constant 1.53940884E-4 : f32
    %610 = arith.mulf %609, %cst_323 : f32
    %611 = vector.broadcast %610 : f32 to vector<51x128xf32>
    %612 = arith.subf %603, %611 : vector<51x128xf32>
    %613 = arith.mulf %612, %612 : vector<51x128xf32>
    %614 = vector.shape_cast %613 : vector<51x128xf32> to vector<1x51x128xf32>
    %cst_324 = arith.constant dense<0.000000e+00> : vector<1xf32>
    %615 = vector.multi_reduction <add>, %614, %cst_324 [1, 2] : vector<1x51x128xf32> to vector<1xf32>
    %616 = vector.shape_cast %615 : vector<1xf32> to vector<1x1x1xf32>
    %617 = vector.extract %616[0, 0, 0] : f32 from vector<1x1x1xf32>
    %cst_325 = arith.constant 3.200000e+01 : f32
    %618 = arith.mulf %cst_325, %610 : f32
    %619 = arith.mulf %618, %610 : f32
    %620 = arith.subf %617, %619 : f32
    %cst_326 = arith.constant 1.53940884E-4 : f32
    %621 = arith.mulf %620, %cst_326 : f32
    %622 = vector.broadcast %610 : f32 to vector<51x128xf32>
    %623 = arith.subf %603, %622 : vector<51x128xf32>
    %cst_327 = arith.constant 9.99999974E-6 : f32
    %624 = arith.addf %621, %cst_327 : f32
    %625 = math.rsqrt %624 : f32
    %626 = vector.broadcast %625 : f32 to vector<51x128xf32>
    %627 = arith.mulf %623, %626 : vector<51x128xf32>
    %628 = vector.broadcast %604 : vector<1x128xf32> to vector<51x128xf32>
    %629 = arith.mulf %627, %628 : vector<51x128xf32>
    %630 = vector.broadcast %605 : vector<1x128xf32> to vector<51x128xf32>
    %631 = arith.addf %629, %630 : vector<51x128xf32>
    %cst_328 = arith.constant 0.000000e+00 : f32
    %632 = vector.broadcast %cst_328 : f32 to vector<51x128xf32>
    %633 = arith.maximumf %631, %632 : vector<51x128xf32>
    %c0_329 = arith.constant 0 : index
    %c0_330 = arith.constant 0 : index
    %634 = vector.load %arg4[%c0_329, %c0_330] : memref<51x128xf32, #tpu.memory_space<vmem>>, vector<51x128xf32>
    tpu.vector_store %arg4[%c0_329, %c0_330], %633 {strides = array<i32>} : memref<51x128xf32, #tpu.memory_space<vmem>>, vector<51x128xf32>,
    %c0_331 = arith.constant 0 : index
    %c0_332 = arith.constant 0 : index
    %635 = vector.load %arg4[%c0_331, %c0_332] : memref<51x128xf32, #tpu.memory_space<vmem>>, vector<49x128xf32>
    %c1_333 = arith.constant 1 : index
    %c0_334 = arith.constant 0 : index
    %636 = vector.load %arg4[%c1_333, %c0_334] : memref<51x128xf32, #tpu.memory_space<vmem>>, vector<49x128xf32>
    %c66_335 = arith.constant 66 : index
    %c0_336 = arith.constant 0 : index
    %637 = vector.load %arg2[%c66_335, %c0_336] : memref<400x128xf32, #tpu.memory_space<vmem>>, vector<32x128xf32>
    %cst_337 = arith.constant dense<0.000000e+00> : vector<49x32xf32>
    %638 = tpu.matmul %635, %637, %cst_337 {dimension_numbers = #tpu.dot_dimension_numbers<[1], [1], [0], [0], [0, 0, 1, 0], [], []>} : vector<49x128xf32>, vector<32x128xf32>, vector<49x32xf32> -> vector<49x32xf32>
    %c98_338 = arith.constant 98 : index
    %c0_339 = arith.constant 0 : index
    %639 = vector.load %arg2[%c98_338, %c0_339] : memref<400x128xf32, #tpu.memory_space<vmem>>, vector<32x128xf32>
    %cst_340 = arith.constant dense<0.000000e+00> : vector<49x32xf32>
    %640 = tpu.matmul %636, %639, %cst_340 {dimension_numbers = #tpu.dot_dimension_numbers<[1], [1], [0], [0], [0, 0, 1, 0], [], []>} : vector<49x128xf32>, vector<32x128xf32>, vector<49x32xf32> -> vector<49x32xf32>
    %641 = arith.addf %638, %640 : vector<49x32xf32>
    %c130_341 = arith.constant 130 : index
    %c0_342 = arith.constant 0 : index
    %642 = vector.load %arg2[%c130_341, %c0_342] : memref<400x128xf32, #tpu.memory_space<vmem>>, vector<1x32xf32>
    %c131_343 = arith.constant 131 : index
    %c0_344 = arith.constant 0 : index
    %643 = vector.load %arg2[%c131_343, %c0_344] : memref<400x128xf32, #tpu.memory_space<vmem>>, vector<1x32xf32>
    %644 = vector.shape_cast %641 : vector<49x32xf32> to vector<1x49x32xf32>
    %cst_345 = arith.constant dense<0.000000e+00> : vector<1xf32>
    %645 = vector.multi_reduction <add>, %644, %cst_345 [1, 2] : vector<1x49x32xf32> to vector<1xf32>
    %646 = vector.shape_cast %645 : vector<1xf32> to vector<1x1x1xf32>
    %647 = vector.extract %646[0, 0, 0] : f32 from vector<1x1x1xf32>
    %cst_346 = arith.constant 6.37755089E-4 : f32
    %648 = arith.mulf %647, %cst_346 : f32
    %649 = vector.broadcast %648 : f32 to vector<49x32xf32>
    %650 = arith.subf %641, %649 : vector<49x32xf32>
    %651 = arith.mulf %650, %650 : vector<49x32xf32>
    %652 = vector.shape_cast %651 : vector<49x32xf32> to vector<1x49x32xf32>
    %cst_347 = arith.constant dense<0.000000e+00> : vector<1xf32>
    %653 = vector.multi_reduction <add>, %652, %cst_347 [1, 2] : vector<1x49x32xf32> to vector<1xf32>
    %654 = vector.shape_cast %653 : vector<1xf32> to vector<1x1x1xf32>
    %655 = vector.extract %654[0, 0, 0] : f32 from vector<1x1x1xf32>
    %cst_348 = arith.constant 6.37755089E-4 : f32
    %656 = arith.mulf %655, %cst_348 : f32
    %657 = vector.broadcast %648 : f32 to vector<49x32xf32>
    %658 = arith.subf %641, %657 : vector<49x32xf32>
    %cst_349 = arith.constant 9.99999974E-6 : f32
    %659 = arith.addf %656, %cst_349 : f32
    %660 = math.rsqrt %659 : f32
    %661 = vector.broadcast %660 : f32 to vector<49x32xf32>
    %662 = arith.mulf %658, %661 : vector<49x32xf32>
    %663 = vector.broadcast %642 : vector<1x32xf32> to vector<49x32xf32>
    %664 = arith.mulf %662, %663 : vector<49x32xf32>
    %665 = vector.broadcast %643 : vector<1x32xf32> to vector<49x32xf32>
    %666 = arith.addf %664, %665 : vector<49x32xf32>
    %cst_350 = arith.constant 0.000000e+00 : f32
    %667 = vector.broadcast %cst_350 : f32 to vector<49x32xf32>
    %668 = arith.maximumf %666, %667 : vector<49x32xf32>
    %c0_351 = arith.constant 0 : index
    %c0_352 = arith.constant 0 : index
    %669 = vector.load %arg5[%c0_351, %c0_352] : memref<49x32xf32, #tpu.memory_space<vmem>>, vector<49x32xf32>
    tpu.vector_store %arg5[%c0_351, %c0_352], %668 {strides = array<i32>} : memref<49x32xf32, #tpu.memory_space<vmem>>, vector<49x32xf32>,
    %cst_353 = arith.constant 0.000000e+00 : f32
    %670 = vector.broadcast %cst_353 : f32 to vector<23x64xf32>
    %c0_354 = arith.constant 0 : index
    %c0_355 = arith.constant 0 : index
    %671 = tpu.strided_load %arg5[%c0_354, %c0_355] {strides = array<i32: 2, 1>} : memref<49x32xf32, #tpu.memory_space<vmem>>, vector<23x32xf32>
    %c132_356 = arith.constant 132 : index
    %c0_357 = arith.constant 0 : index
    %672 = vector.load %arg2[%c132_356, %c0_357] : memref<400x128xf32, #tpu.memory_space<vmem>>, vector<32x64xf32>
    %cst_358 = arith.constant dense<0.000000e+00> : vector<23x64xf32>
    %673 = tpu.matmul %671, %672, %cst_358 {dimension_numbers = #tpu.dot_dimension_numbers<[1], [0], [0], [1], [0, 0, 1, 1], [], []>} : vector<23x32xf32>, vector<32x64xf32>, vector<23x64xf32> -> vector<23x64xf32>
    %674 = arith.addf %670, %673 : vector<23x64xf32>
    %c1_359 = arith.constant 1 : index
    %c0_360 = arith.constant 0 : index
    %675 = tpu.strided_load %arg5[%c1_359, %c0_360] {strides = array<i32: 2, 1>} : memref<49x32xf32, #tpu.memory_space<vmem>>, vector<23x32xf32>
    %c164_361 = arith.constant 164 : index
    %c0_362 = arith.constant 0 : index
    %676 = vector.load %arg2[%c164_361, %c0_362] : memref<400x128xf32, #tpu.memory_space<vmem>>, vector<32x64xf32>
    %cst_363 = arith.constant dense<0.000000e+00> : vector<23x64xf32>
    %677 = tpu.matmul %675, %676, %cst_363 {dimension_numbers = #tpu.dot_dimension_numbers<[1], [0], [0], [1], [0, 0, 1, 1], [], []>} : vector<23x32xf32>, vector<32x64xf32>, vector<23x64xf32> -> vector<23x64xf32>
    %678 = arith.addf %674, %677 : vector<23x64xf32>
    %c2_364 = arith.constant 2 : index
    %c0_365 = arith.constant 0 : index
    %679 = tpu.strided_load %arg5[%c2_364, %c0_365] {strides = array<i32: 2, 1>} : memref<49x32xf32, #tpu.memory_space<vmem>>, vector<23x32xf32>
    %c196_366 = arith.constant 196 : index
    %c0_367 = arith.constant 0 : index
    %680 = vector.load %arg2[%c196_366, %c0_367] : memref<400x128xf32, #tpu.memory_space<vmem>>, vector<32x64xf32>
    %cst_368 = arith.constant dense<0.000000e+00> : vector<23x64xf32>
    %681 = tpu.matmul %679, %680, %cst_368 {dimension_numbers = #tpu.dot_dimension_numbers<[1], [0], [0], [1], [0, 0, 1, 1], [], []>} : vector<23x32xf32>, vector<32x64xf32>, vector<23x64xf32> -> vector<23x64xf32>
    %682 = arith.addf %678, %681 : vector<23x64xf32>
    %c3_369 = arith.constant 3 : index
    %c0_370 = arith.constant 0 : index
    %683 = tpu.strided_load %arg5[%c3_369, %c0_370] {strides = array<i32: 2, 1>} : memref<49x32xf32, #tpu.memory_space<vmem>>, vector<23x32xf32>
    %c228_371 = arith.constant 228 : index
    %c0_372 = arith.constant 0 : index
    %684 = vector.load %arg2[%c228_371, %c0_372] : memref<400x128xf32, #tpu.memory_space<vmem>>, vector<32x64xf32>
    %cst_373 = arith.constant dense<0.000000e+00> : vector<23x64xf32>
    %685 = tpu.matmul %683, %684, %cst_373 {dimension_numbers = #tpu.dot_dimension_numbers<[1], [0], [0], [1], [0, 0, 1, 1], [], []>} : vector<23x32xf32>, vector<32x64xf32>, vector<23x64xf32> -> vector<23x64xf32>
    %686 = arith.addf %682, %685 : vector<23x64xf32>
    %c260_374 = arith.constant 260 : index
    %c0_375 = arith.constant 0 : index
    %687 = vector.load %arg2[%c260_374, %c0_375] : memref<400x128xf32, #tpu.memory_space<vmem>>, vector<1x64xf32>
    %c261_376 = arith.constant 261 : index
    %c0_377 = arith.constant 0 : index
    %688 = vector.load %arg2[%c261_376, %c0_377] : memref<400x128xf32, #tpu.memory_space<vmem>>, vector<1x64xf32>
    %689 = vector.shape_cast %686 : vector<23x64xf32> to vector<1x23x64xf32>
    %cst_378 = arith.constant dense<0.000000e+00> : vector<1xf32>
    %690 = vector.multi_reduction <add>, %689, %cst_378 [1, 2] : vector<1x23x64xf32> to vector<1xf32>
    %691 = vector.shape_cast %690 : vector<1xf32> to vector<1x1x1xf32>
    %692 = vector.extract %691[0, 0, 0] : f32 from vector<1x1x1xf32>
    %cst_379 = arith.constant 6.79347839E-4 : f32
    %693 = arith.mulf %692, %cst_379 : f32
    %694 = vector.broadcast %693 : f32 to vector<23x64xf32>
    %695 = arith.subf %686, %694 : vector<23x64xf32>
    %696 = arith.mulf %695, %695 : vector<23x64xf32>
    %697 = vector.shape_cast %696 : vector<23x64xf32> to vector<1x23x64xf32>
    %cst_380 = arith.constant dense<0.000000e+00> : vector<1xf32>
    %698 = vector.multi_reduction <add>, %697, %cst_380 [1, 2] : vector<1x23x64xf32> to vector<1xf32>
    %699 = vector.shape_cast %698 : vector<1xf32> to vector<1x1x1xf32>
    %700 = vector.extract %699[0, 0, 0] : f32 from vector<1x1x1xf32>
    %cst_381 = arith.constant 6.79347839E-4 : f32
    %701 = arith.mulf %700, %cst_381 : f32
    %702 = vector.broadcast %693 : f32 to vector<23x64xf32>
    %703 = arith.subf %686, %702 : vector<23x64xf32>
    %cst_382 = arith.constant 9.99999974E-6 : f32
    %704 = arith.addf %701, %cst_382 : f32
    %705 = math.rsqrt %704 : f32
    %706 = vector.broadcast %705 : f32 to vector<23x64xf32>
    %707 = arith.mulf %703, %706 : vector<23x64xf32>
    %708 = vector.broadcast %687 : vector<1x64xf32> to vector<23x64xf32>
    %709 = arith.mulf %707, %708 : vector<23x64xf32>
    %710 = vector.broadcast %688 : vector<1x64xf32> to vector<23x64xf32>
    %711 = arith.addf %709, %710 : vector<23x64xf32>
    %cst_383 = arith.constant 0.000000e+00 : f32
    %712 = vector.broadcast %cst_383 : f32 to vector<23x64xf32>
    %713 = arith.maximumf %711, %712 : vector<23x64xf32>
    %714 = math.absf %713 : vector<23x64xf32>
    %cst_384 = arith.constant 1.000000e+00 : f32
    %715 = vector.broadcast %cst_384 : f32 to vector<23x64xf32>
    %716 = arith.addf %714, %715 : vector<23x64xf32>
    %717 = math.log %716 : vector<23x64xf32>
    %c262_385 = arith.constant 262 : index
    %c0_386 = arith.constant 0 : index
    %718 = vector.load %arg2[%c262_385, %c0_386] : memref<400x128xf32, #tpu.memory_space<vmem>>, vector<64x64xf32>
    %cst_387 = arith.constant dense<0.000000e+00> : vector<23x64xf32>
    %719 = tpu.matmul %717, %718, %cst_387 {dimension_numbers = #tpu.dot_dimension_numbers<[1], [0], [0], [1], [0, 0, 1, 1], [], []>} : vector<23x64xf32>, vector<64x64xf32>, vector<23x64xf32> -> vector<23x64xf32>
    %720 = vector.extract_strided_slice %719 {offsets = [0, 0], sizes = [23, 32], strides = [1, 1]} : vector<23x64xf32> to vector<23x32xf32>
    %c326_388 = arith.constant 326 : index
    %c0_389 = arith.constant 0 : index
    %721 = vector.load %arg2[%c326_388, %c0_389] : memref<400x128xf32, #tpu.memory_space<vmem>>, vector<1x64xf32>
    %722 = vector.extract_strided_slice %721 {offsets = [0, 0], sizes = [1, 32], strides = [1, 1]} : vector<1x64xf32> to vector<1x32xf32>
    %c327_390 = arith.constant 327 : index
    %c0_391 = arith.constant 0 : index
    %723 = vector.load %arg2[%c327_390, %c0_391] : memref<400x128xf32, #tpu.memory_space<vmem>>, vector<1x64xf32>
    %724 = vector.extract_strided_slice %723 {offsets = [0, 0], sizes = [1, 32], strides = [1, 1]} : vector<1x64xf32> to vector<1x32xf32>
    %725 = vector.shape_cast %720 : vector<23x32xf32> to vector<1x23x32xf32>
    %cst_392 = arith.constant dense<0.000000e+00> : vector<1xf32>
    %726 = vector.multi_reduction <add>, %725, %cst_392 [1, 2] : vector<1x23x32xf32> to vector<1xf32>
    %727 = vector.shape_cast %726 : vector<1xf32> to vector<1x1x1xf32>
    %728 = vector.extract %727[0, 0, 0] : f32 from vector<1x1x1xf32>
    %cst_393 = arith.constant 0.00135869568 : f32
    %729 = arith.mulf %728, %cst_393 : f32
    %730 = vector.broadcast %729 : f32 to vector<23x32xf32>
    %731 = arith.subf %720, %730 : vector<23x32xf32>
    %732 = arith.mulf %731, %731 : vector<23x32xf32>
    %733 = vector.shape_cast %732 : vector<23x32xf32> to vector<1x23x32xf32>
    %cst_394 = arith.constant dense<0.000000e+00> : vector<1xf32>
    %734 = vector.multi_reduction <add>, %733, %cst_394 [1, 2] : vector<1x23x32xf32> to vector<1xf32>
    %735 = vector.shape_cast %734 : vector<1xf32> to vector<1x1x1xf32>
    %736 = vector.extract %735[0, 0, 0] : f32 from vector<1x1x1xf32>
    %cst_395 = arith.constant 0.00135869568 : f32
    %737 = arith.mulf %736, %cst_395 : f32
    %738 = vector.broadcast %729 : f32 to vector<23x32xf32>
    %739 = arith.subf %720, %738 : vector<23x32xf32>
    %cst_396 = arith.constant 9.99999974E-6 : f32
    %740 = arith.addf %737, %cst_396 : f32
    %741 = math.rsqrt %740 : f32
    %742 = vector.broadcast %741 : f32 to vector<23x32xf32>
    %743 = arith.mulf %739, %742 : vector<23x32xf32>
    %744 = vector.broadcast %722 : vector<1x32xf32> to vector<23x32xf32>
    %745 = arith.mulf %743, %744 : vector<23x32xf32>
    %746 = vector.broadcast %724 : vector<1x32xf32> to vector<23x32xf32>
    %747 = arith.addf %745, %746 : vector<23x32xf32>
    %c328_397 = arith.constant 328 : index
    %c0_398 = arith.constant 0 : index
    %748 = vector.load %arg2[%c328_397, %c0_398] : memref<400x128xf32, #tpu.memory_space<vmem>>, vector<32x32xf32>
    %cst_399 = arith.constant dense<0.000000e+00> : vector<23x32xf32>
    %749 = tpu.matmul %747, %748, %cst_399 {dimension_numbers = #tpu.dot_dimension_numbers<[1], [1], [0], [0], [0, 0, 1, 0], [], []>} : vector<23x32xf32>, vector<32x32xf32>, vector<23x32xf32> -> vector<23x32xf32>
    %c392_400 = arith.constant 392 : index
    %c0_401 = arith.constant 0 : index
    %750 = vector.load %arg2[%c392_400, %c0_401] : memref<400x128xf32, #tpu.memory_space<vmem>>, vector<1x32xf32>
    %cst_402 = arith.constant 2.000000e+00 : f32
    %751 = vector.broadcast %cst_402 : f32 to vector<23x32xf32>
    %752 = arith.mulf %751, %749 : vector<23x32xf32>
    %753 = vector.broadcast %750 : vector<1x32xf32> to vector<23x32xf32>
    %754 = arith.subf %753, %752 : vector<23x32xf32>
    %755 = tpu.reduce_index %754 {axis = 1 : i32, kind = #tpu.reduction_kind<arg_min>} : vector<23x32xf32> -> vector<23xi32>
    %756 = vector.shape_cast %755 : vector<23xi32> to vector<1x23xi32>
    %c3_403 = arith.constant 3 : index
    %c0_404 = arith.constant 0 : index
    %c0_405 = arith.constant 0 : index
    %757 = vector.load %arg3[%c3_403, %c0_404, %c0_405] : memref<4x2x23xi32, #tpu.memory_space<vmem>>, vector<1x1x23xi32>
    %758 = vector.shape_cast %757 : vector<1x1x23xi32> to vector<1x23xi32>
    %759 = vector.shape_cast %756 : vector<1x23xi32> to vector<1x1x23xi32>
    tpu.vector_store %arg3[%c3_403, %c0_404, %c0_405], %759 {strides = array<i32>} : memref<4x2x23xi32, #tpu.memory_space<vmem>>, vector<1x1x23xi32>,
    %760 = vector.extract_strided_slice %719 {offsets = [0, 32], sizes = [23, 32], strides = [1, 1]} : vector<23x64xf32> to vector<23x32xf32>
    %c326_406 = arith.constant 326 : index
    %c0_407 = arith.constant 0 : index
    %761 = vector.load %arg2[%c326_406, %c0_407] : memref<400x128xf32, #tpu.memory_space<vmem>>, vector<1x64xf32>
    %762 = vector.extract_strided_slice %761 {offsets = [0, 32], sizes = [1, 32], strides = [1, 1]} : vector<1x64xf32> to vector<1x32xf32>
    %c327_408 = arith.constant 327 : index
    %c0_409 = arith.constant 0 : index
    %763 = vector.load %arg2[%c327_408, %c0_409] : memref<400x128xf32, #tpu.memory_space<vmem>>, vector<1x64xf32>
    %764 = vector.extract_strided_slice %763 {offsets = [0, 32], sizes = [1, 32], strides = [1, 1]} : vector<1x64xf32> to vector<1x32xf32>
    %765 = vector.shape_cast %760 : vector<23x32xf32> to vector<1x23x32xf32>
    %cst_410 = arith.constant dense<0.000000e+00> : vector<1xf32>
    %766 = vector.multi_reduction <add>, %765, %cst_410 [1, 2] : vector<1x23x32xf32> to vector<1xf32>
    %767 = vector.shape_cast %766 : vector<1xf32> to vector<1x1x1xf32>
    %768 = vector.extract %767[0, 0, 0] : f32 from vector<1x1x1xf32>
    %cst_411 = arith.constant 0.00135869568 : f32
    %769 = arith.mulf %768, %cst_411 : f32
    %770 = vector.broadcast %769 : f32 to vector<23x32xf32>
    %771 = arith.subf %760, %770 : vector<23x32xf32>
    %772 = arith.mulf %771, %771 : vector<23x32xf32>
    %773 = vector.shape_cast %772 : vector<23x32xf32> to vector<1x23x32xf32>
    %cst_412 = arith.constant dense<0.000000e+00> : vector<1xf32>
    %774 = vector.multi_reduction <add>, %773, %cst_412 [1, 2] : vector<1x23x32xf32> to vector<1xf32>
    %775 = vector.shape_cast %774 : vector<1xf32> to vector<1x1x1xf32>
    %776 = vector.extract %775[0, 0, 0] : f32 from vector<1x1x1xf32>
    %cst_413 = arith.constant 0.00135869568 : f32
    %777 = arith.mulf %776, %cst_413 : f32
    %778 = vector.broadcast %769 : f32 to vector<23x32xf32>
    %779 = arith.subf %760, %778 : vector<23x32xf32>
    %cst_414 = arith.constant 9.99999974E-6 : f32
    %780 = arith.addf %777, %cst_414 : f32
    %781 = math.rsqrt %780 : f32
    %782 = vector.broadcast %781 : f32 to vector<23x32xf32>
    %783 = arith.mulf %779, %782 : vector<23x32xf32>
    %784 = vector.broadcast %762 : vector<1x32xf32> to vector<23x32xf32>
    %785 = arith.mulf %783, %784 : vector<23x32xf32>
    %786 = vector.broadcast %764 : vector<1x32xf32> to vector<23x32xf32>
    %787 = arith.addf %785, %786 : vector<23x32xf32>
    %c360_415 = arith.constant 360 : index
    %c0_416 = arith.constant 0 : index
    %788 = vector.load %arg2[%c360_415, %c0_416] : memref<400x128xf32, #tpu.memory_space<vmem>>, vector<32x32xf32>
    %cst_417 = arith.constant dense<0.000000e+00> : vector<23x32xf32>
    %789 = tpu.matmul %787, %788, %cst_417 {dimension_numbers = #tpu.dot_dimension_numbers<[1], [1], [0], [0], [0, 0, 1, 0], [], []>} : vector<23x32xf32>, vector<32x32xf32>, vector<23x32xf32> -> vector<23x32xf32>
    %c393_418 = arith.constant 393 : index
    %c0_419 = arith.constant 0 : index
    %790 = vector.load %arg2[%c393_418, %c0_419] : memref<400x128xf32, #tpu.memory_space<vmem>>, vector<1x32xf32>
    %cst_420 = arith.constant 2.000000e+00 : f32
    %791 = vector.broadcast %cst_420 : f32 to vector<23x32xf32>
    %792 = arith.mulf %791, %789 : vector<23x32xf32>
    %793 = vector.broadcast %790 : vector<1x32xf32> to vector<23x32xf32>
    %794 = arith.subf %793, %792 : vector<23x32xf32>
    %795 = tpu.reduce_index %794 {axis = 1 : i32, kind = #tpu.reduction_kind<arg_min>} : vector<23x32xf32> -> vector<23xi32>
    %796 = vector.shape_cast %795 : vector<23xi32> to vector<1x23xi32>
    %c3_421 = arith.constant 3 : index
    %c1_422 = arith.constant 1 : index
    %c0_423 = arith.constant 0 : index
    %797 = vector.load %arg3[%c3_421, %c1_422, %c0_423] : memref<4x2x23xi32, #tpu.memory_space<vmem>>, vector<1x1x23xi32>
    %798 = vector.shape_cast %797 : vector<1x1x23xi32> to vector<1x23xi32>
    %799 = vector.shape_cast %796 : vector<1x23xi32> to vector<1x1x23xi32>
    tpu.vector_store %arg3[%c3_421, %c1_422, %c0_423], %799 {strides = array<i32>} : memref<4x2x23xi32, #tpu.memory_space<vmem>>, vector<1x1x23xi32>,
    return
  }
  func.func @transform_0(%arg0: i32) -> (i32, i32, i32) {
    %c0_i32 = arith.constant 0 : i32
    %c0_i32_0 = arith.constant 0 : i32
    %c0_i32_1 = arith.constant 0 : i32
    return %arg0, %c0_i32, %c0_i32_0 : i32, i32, i32
  }
  func.func @transform_1(%arg0: i32) -> (i32, i32) {
    %c0_i32 = arith.constant 0 : i32
    %c0_i32_0 = arith.constant 0 : i32
    %c0_i32_1 = arith.constant 0 : i32
    return %c0_i32, %c0_i32_0 : i32, i32
  }
  func.func @transform_2(%arg0: i32) -> (i32, i32, i32) {
    %c0_i32 = arith.constant 0 : i32
    %c0_i32_0 = arith.constant 0 : i32
    %c0_i32_1 = arith.constant 0 : i32
    return %arg0, %c0_i32, %c0_i32_0 : i32, i32, i32
  }
}

</mosaic_0001>

<bundles_post_ra>
// kernel: vq_wav2vec_forward.1
= control target key start
LH: loop header
LB: loop body
LE: loop exit
PB: predicated region body
PF: predicated region fallthrough
CT: control target
= control target key end

     0   :  { %s8200_s9 = smov 0   ;;  %s10453_s0 = inlined_call_operand.vmem [shape: f32[8,51,64], index: 0, kind: input, shape index: {}]   ;;  %s10454_s1 = inlined_call_operand.vmem [shape: f32[400,128], index: 1, kind: input, shape index: {}]   ;;  %s10455_s2 = inlined_call_operand.vmem [shape: s32[8,2,23], index: 2, kind: output, shape index: {}]  }
   0x1 LB: > { %s6500_s10 = sadd.s32 4294967295, %s8180_s9   ;;  %p6504_p0 = scmp.ge.s32.totalorder %s8180_s9, 1  ;;  %s8180_s9 = sphi %s8200_s9, %s12_s9  }
   0x2   : > { %p114_p1 = scmp.lt.s32.totalorder %s8180_s9, 3 }
   0x4   : > { %p115_p2 = pnand %p6504_p0, %p114_p1 }
   0x5   : > { %s6505_s13 = sshll.u32 (!%p115_p2), %s6500_s10, 2 }
   0x6   : > { %118 = sbr.rel (%p115_p2) target bundleno = 12687 (0x318f), region = 28  ;;  %p138_p3 = scmp.lt.s32.totalorder (!%p115_p2), %s6505_s13, 7 }
   0xb   : > { %v164_v0 = vld [vmem:[%s10454_s1 + $0x38] sm:$0xff]  ;;  %v8182_v1 = vmov 0.0   ;;  %v163_v2 = vld [vmem:[%s10454_s1 + $0x30] sm:$0xff]  ;;  %vm8183_vm0 = vmmov 0   ;;  %v162_v3 = vld [vmem:[%s10454_s1 + $0x28] sm:$0xff]  ;;  %s10457_s13 = smov (!%p138_p3, %s6505_s13), 7 }
   0xc   : > { %7090 = vmatprep.subr.mxu0 %v8182_v1  ;;  %7106 = vmatprep.mubr.msk.f32.mxu0 %vm8183_vm0, %v8182_v1  ;;  %v161_v4 = vld [vmem:[%s10454_s1 + $0x20] sm:$0xff]  ;;  %v160_v5 = vld [vmem:[%s10454_s1 + $0x18] sm:$0xff]  ;;  %s7978_s22 = smul.u32 56, %s10457_s13  ;;  %v159_v6 = vld [vmem:[%s10454_s1 + $0x10] sm:$0xff]  ;;  %vm165_vm1 = vcmask 523264   ;;  %vm294_vm2 = vcmask 1042432  }
   0xd   : > { %7091 = vmatpush3.msra.mxu0 %v164_v0  ;;  %7127 = vmatprep.subr.mxu1 %v8182_v1  ;;  %v158_v7 = vld [vmem:[%s10454_s1 + $0x8] sm:$0xff]  ;;  %v157_v8 = vld [vmem:[%s10454_s1] sm:$0xff]  ;;  %vm614_vm3 = vcmask 261120   ;;  %vm626_vm4 = vcmask 253952   ;;  %vm1131_vm5 = vcmask 522240   ;;  %vm1305_vm6 = vcmask 260096  }
   0xe   : > { %7092 = vmatprep.subr.mxu0 %v8182_v1  ;;  %7135 = vmatprep.mubr.msk.f32.mxu1 %vm8183_vm0, %v8182_v1  ;;  %s8246_s29 = scalar_lea.vmem %s10453_s0, %s7978_s22  ;;  %vm1498_vm7 = vcmask 130112   ;;  %vm1505_vm8 = vcmask 195712   ;;  %vm1507_vm9 = vcmask 180224  }
   0xf   : > { %7093 = vmatpush3.msra.mxu0 %v163_v2  ;;  %v150_v9 = vld [vmem:[%s8246_s29] sm:$0xff]  ;;  %v151_v10 = vld [vmem:[%s8246_s29 + $0x8] sm:$0xff]  ;;  %v152_v11 = vld [vmem:[%s8246_s29 + $0x10] sm:$0xff] }
  0x10   : > { %7094 = vmatprep.subr.mxu0 %v8182_v1  ;;  %v153_v12 = vld [vmem:[%s8246_s29 + $0x18] sm:$0xff]  ;;  %v154_v13 = vld [vmem:[%s8246_s29 + $0x20] sm:$0xff]  ;;  %v155_v14 = vld [vmem:[%s8246_s29 + $0x28] sm:$0xff] }
  0x11   : > { %7095 = vmatpush3.msra.mxu0 %v162_v3  ;;  %v156_v15 = vld [vmem:[%s8246_s29 + $0x30] sm:$0x7]  ;;  %v407_v3 = vld [vmem:[%s10454_s1 + $0x5a] sm:$0xff] }
  0x12   : > { %7096 = vmatprep.subr.mxu0 %v8182_v1 }
  0x13   : > { %7097 = vmatpush3.msra.mxu0 %v161_v4  ;;  %v406_v4 = vld [vmem:[%s10454_s1 + $0x52] sm:$0xff] }
  0x14   : > { %7098 = vmatprep.subr.mxu0 %v8182_v1 }
  0x15   : > { %7099 = vmatpush3.msra.mxu0 %v160_v5 }
  0x16   : > { %7100 = vmatprep.subr.mxu0 %v8182_v1 }
  0x17   : > { %7101 = vmatpush3.msra.mxu0 %v159_v6 }
  0x18   : > { %7102 = vmatprep.subr.mxu0 %v8182_v1 }
  0x19   : > { %7103 = vmatpush3.msra.mxu0 %v158_v7 }
  0x1a   : > { %7104 = vmatprep.subr.mxu0 %v8182_v1 }
  0x1b   : > { %7105 = vmatpush3.msra.mxu0 %v157_v8 }
  0x1c   : > { %7107 = vmatmul.mubr.msk.f32.vlgmr.msra.gmra.mxu0 %vm165_vm1, %v150_v9  ;;  %7156 = vmatprep.subr.mxu0 %v8182_v1 }
  0x1d   : > { %7109 = vmatprep.mubr.msk.f32.mxu0 %vm8183_vm0, %v8182_v1  ;;  %7157 = vmatpush3.xpose.msra.mxu0 %v407_v3 }
  0x1e   : > { %7158 = vmatprep.subr.mxu0 %v8182_v1 }
  0x20   : > { %7110 = vmatmul.mubr.msk.f32.gmra.mxu0 %vm165_vm1, %v151_v10  ;;  %v411_v10 = vld [vmem:[%s10454_s1 + $0x7a] sm:$0xff] }
  0x21   : > { %7112 = vmatprep.mubr.msk.f32.mxu0 %vm8183_vm0, %v8182_v1  ;;  %7159 = vmatpush3.xpose.msra.mxu0 %v406_v4 }
  0x22   : > { %7160 = vmatprep.subr.mxu0 %v8182_v1  ;;  %7128 = vmatpush3.xpose.msra.mxu1 %v411_v10 }
  0x23   : > { %7129 = vmatprep.subr.mxu1 %v8182_v1 }
  0x24   : > { %7113 = vmatmul.mubr.msk.f32.gmra.mxu0 %vm165_vm1, %v152_v11  ;;  %v405_v11 = vld [vmem:[%s10454_s1 + $0x4a] sm:$0xff] }
  0x25   : > { %7115 = vmatprep.mubr.msk.f32.mxu0 %vm8183_vm0, %v8182_v1  ;;  %7161 = vmatpush3.xpose.msra.mxu0 %v405_v11 }
  0x26   : > { %7162 = vmatprep.subr.mxu0 %v8182_v1 }
  0x28   : > { %7116 = vmatmul.mubr.msk.f32.gmra.mxu0 %vm165_vm1, %v153_v12 }
  0x29   : > { %7118 = vmatprep.mubr.msk.f32.mxu0 %vm8183_vm0, %v8182_v1 }
  0x2c   : > { %7119 = vmatmul.mubr.msk.f32.gmra.mxu0 %vm165_vm1, %v154_v13 }
  0x2d   : > { %7121 = vmatprep.mubr.msk.f32.mxu0 %vm8183_vm0, %v8182_v1 }
  0x30   : > { %7122 = vmatmul.mubr.msk.f32.gmra.mxu0 %vm165_vm1, %v155_v14  ;;  %v410_v14 = vld [vmem:[%s10454_s1 + $0x72] sm:$0xff] }
  0x31   : > { %7124 = vmatprep.mubr.msk.f32.mxu0 %vm8183_vm0, %v8182_v1  ;;  %7130 = vmatpush3.xpose.msra.mxu1 %v410_v14 }
  0x32   : > { %7131 = vmatprep.subr.mxu1 %v8182_v1 }
  0x34   : > { %7125 = vmatmul.mubr.msk.f32.gmra.mxu0 %vm165_vm1, %v156_v15  ;;  %v404_v15 = vld [vmem:[%s10454_s1 + $0x42] sm:$0xff] }
  0x35   : > { %7164 = vmatprep.mubr.msk.f32.mxu0 %vm8183_vm0, %v8182_v1  ;;  %7163 = vmatpush3.xpose.msra.mxu0 %v404_v15 }
  0x36   : > { %7236 = vmatprep.subr.mxu0 %v8182_v1 }
  0xdc   : > { %v253_v16 = vpop.f32.mrf.mxu0 }
  0xde   : > { %v7108_v17 = vpop.f32.mrf.mxu0 }
  0xdf   : > { %v408_v17 = vld [vmem:[%s10454_s1 + $0x62] sm:$0xff] }
  0xe0   : > { %v258_v18 = vpop.f32.mrf.mxu0 }
  0xe1   : > { %v289_v24 = vadd.f32 %v258_v18, %v253_v16 }
  0xe2   : > { %v7111_v19 = vpop.f32.mrf.mxu0 }
  0xe4   : > { %v263_v20 = vpop.f32.mrf.mxu0 }
  0xe5   : > { %v290_v26 = vadd.f32 %v289_v24, %v263_v20 }
  0xe6   : > { %v7114_v21 = vpop.f32.mrf.mxu0 }
  0xe8   : > { %v268_v22 = vpop.f32.mrf.mxu0 }
  0xe9   : > { %v291_v28 = vadd.f32 %v290_v26, %v268_v22  ;;  %v6517_v26 = vld [vmem:[%s10454_s1 + $0x41] ss:$0 sm:$0xff] }
  0xea   : > { %v7117_v23 = vpop.f32.mrf.mxu0 }
  0xec   : > { %v273_v25 = vpop.f32.mrf.mxu0 }
  0xed   : > { %v292_v30 = vadd.f32 %v291_v28, %v273_v25 }
  0xee   : > { %v7120_v27 = vpop.f32.mrf.mxu0 }
  0xf0   : > { %v278_v29 = vpop.f32.mrf.mxu0 }
  0xf1   : > { %v293_v32 = vadd.f32 %v292_v30, %v278_v29 }
  0xf2   : > { %v7123_v31 = vpop.f32.mrf.mxu0 }
  0xf4   : > { %v283_v33 = vpop.f32.mrf.mxu0 }
  0xf5   : > { %v295_v34 = vsel %vm294_vm2, %v283_v33, 0.0 }
  0xf6   : > { %v7126_v35 = vpop.f32.mrf.mxu0  ;;  %v296_v36 = vadd.f32 %v295_v34, %v293_v32 }
  0xf8   : > { %297 = vadd.xlane.f32.xlu0 %v296_v36 }
 0x181   : > { %v298_v37 = vpop.xlane.xlu0 %297 }
 0x182   : > { %v299_v38 = vrot.slane %v298_v37, 4 }
 0x184   : > { %v300_v39 = vadd.f32 %v299_v38, %v298_v37 }
 0x186   : > { %v301_v40 = vrot.slane %v300_v39, 2 }
 0x188   : > { %v302_v41 = vadd.f32 %v301_v40, %v300_v39 }
 0x18a   : > { %v303_v42 = vrot.slane %v302_v41, 1 }
 0x18c   : > { %v304_v43 = vadd.f32 %v303_v42, %v302_v41 }
 0x18e   : > { %7979 = vpush %v304_v43 }
 0x1bf   : > { %s7980_s4 = spop %7979 }
 0x1c0   : > { %s8283_s5 = smul.f32 0.00015394088, %s7980_s4 }
 0x1c2   : > { %v307_v44 = vstv %s8283_s5  ;;  %s338_s24 = smul.f32 32.0, %s8283_s5 }
 0x1c3   : > { %v8286_v45 = vsub.f32 %v253_v16, %v307_v44  ;;  %v8288_v46 = vsub.f32 %v258_v18, %v307_v44  ;;  %v8290_v47 = vsub.f32 %v263_v20, %v307_v44  ;;  %v8292_v48 = vsub.f32 %v268_v22, %v307_v44  ;;  %v409_v16 = vld [vmem:[%s10454_s1 + $0x6a] sm:$0xff]  ;;  %v6516_v20 = vld [vmem:[%s10454_s1 + $0x40] ss:$0 sm:$0xff] }
 0x1c4   : > { %v8298_v51 = vsub.f32 %v273_v25, %v307_v44  ;;  %v8302_v54 = vsub.f32 %v283_v33, %v307_v44  ;;  %v8304_v55 = vsub.f32 %v278_v29, %v307_v44  ;;  %7132 = vmatpush3.xpose.msra.mxu1 %v409_v16  ;;  %s339_s25 = smul.f32 %s338_s24, %s8283_s5 }
 0x1c5   : > { %v315_v49 = vmul.f32 %v8286_v45, %v8286_v45  ;;  %v316_v50 = vmul.f32 %v8288_v46, %v8288_v46  ;;  %v317_v52 = vmul.f32 %v8290_v47, %v8290_v47  ;;  %v318_v56 = vmul.f32 %v8292_v48, %v8292_v48  ;;  %7133 = vmatprep.subr.mxu1 %v8182_v1 }
 0x1c6   : > { %v319_v58 = vmul.f32 %v8298_v51, %v8298_v51  ;;  %v321_v60 = vmul.f32 %v8302_v54, %v8302_v54  ;;  %v320_v61 = vmul.f32 %v8304_v55, %v8304_v55 }
 0x1c7   : > { %v322_v53 = vadd.f32 %v316_v50, %v315_v49 }
 0x1c8   : > { %v327_v0 = vsel %vm294_vm2, %v321_v60, 0.0  ;;  %7134 = vmatpush3.xpose.msra.mxu1 %v408_v17 }
 0x1c9   : > { %v323_v57 = vadd.f32 %v322_v53, %v317_v52  ;;  %7185 = vmatprep.subr.mxu1 %v8182_v1 }
 0x1cb   : > { %v324_v59 = vadd.f32 %v323_v57, %v318_v56 }
 0x1cd   : > { %v325_v62 = vadd.f32 %v324_v59, %v319_v58 }
 0x1cf   : > { %v326_v63 = vadd.f32 %v325_v62, %v320_v61 }
 0x1d1   : > { %v328_v2 = vadd.f32 %v327_v0, %v326_v63 }
 0x1d3   : > { %329 = vadd.xlane.f32.xlu0 %v328_v2 }
 0x25c   : > { %v330_v5 = vpop.xlane.xlu0 %329 }
 0x25d   : > { %v331_v6 = vrot.slane %v330_v5, 4 }
 0x25f   : > { %v332_v7 = vadd.f32 %v331_v6, %v330_v5 }
 0x261   : > { %v333_v8 = vrot.slane %v332_v7, 2 }
 0x263   : > { %v334_v9 = vadd.f32 %v333_v8, %v332_v7 }
 0x265   : > { %v335_v12 = vrot.slane %v334_v9, 1 }
 0x267   : > { %v336_v13 = vadd.f32 %v335_v12, %v334_v9 }
 0x269   : > { %7981 = vpush %v336_v13 }
 0x29a   : > { %s7982_s26 = spop %7981 }
 0x29b   : > { %s340_s27 = ssub.f32 %s7982_s26, %s339_s25 }
 0x29d   : > { %s341_s28 = smul.f32 0.00015394088, %s340_s27 }
 0x29f   : > { %s342_s30 = sadd.f32 1e-05, %s341_s28 }
 0x2a1   : > { %v343_v18 = vstv %s342_s30 }
 0x2a2   : > { %8110 = vrsqrt.f32 %v343_v18 }
 0x2af   : > { %v8111_v19 = vpop.eup %8110 }
 0x2b0   : > { %7983 = vpush %v8111_v19 }
 0x2e1   : > { %s7984_s3 = spop %7983 }
 0x2e2   : > { %v346_v21 = vstv %s7984_s3 }
 0x2e3   : > { %v347_v22 = vmul.f32 %v346_v21, %v8286_v45  ;;  %v348_v23 = vmul.f32 %v346_v21, %v8288_v46  ;;  %v349_v24 = vmul.f32 %v346_v21, %v8290_v47  ;;  %v350_v25 = vmul.f32 %v346_v21, %v8292_v48 }
 0x2e4   : > { %v351_v27 = vmul.f32 %v346_v21, %v8298_v51  ;;  %v352_v28 = vmul.f32 %v346_v21, %v8304_v55  ;;  %v353_v29 = vmul.f32 %v346_v21, %v8302_v54 }
 0x2e5   : > { %v358_v30 = vmul.f32 %v6516_v20, %v347_v22  ;;  %v359_v31 = vmul.f32 %v6516_v20, %v348_v23  ;;  %v360_v32 = vmul.f32 %v6516_v20, %v349_v24  ;;  %v361_v33 = vmul.f32 %v6516_v20, %v350_v25 }
 0x2e6   : > { %v362_v34 = vmul.f32 %v6516_v20, %v351_v27  ;;  %v363_v35 = vmul.f32 %v6516_v20, %v352_v28  ;;  %v364_v36 = vmul.f32 %v6516_v20, %v353_v29 }
 0x2e7   : > { %v369_v37 = vadd.f32 %v6517_v26, %v358_v30  ;;  %v370_v38 = vadd.f32 %v6517_v26, %v359_v31  ;;  %v371_v39 = vadd.f32 %v6517_v26, %v360_v32  ;;  %v372_v40 = vadd.f32 %v6517_v26, %v361_v33 }
 0x2e8   : > { %v373_v41 = vadd.f32 %v6517_v26, %v362_v34  ;;  %v374_v42 = vadd.f32 %v6517_v26, %v363_v35  ;;  %v375_v43 = vadd.f32 %v6517_v26, %v364_v36 }
 0x2e9   : > { %v376_v44 = vmax.f32 %v369_v37, 0.0  ;;  %v377_v45 = vmax.f32 %v370_v38, 0.0  ;;  %v378_v46 = vmax.f32 %v371_v39, 0.0  ;;  %v379_v47 = vmax.f32 %v372_v40, 0.0 }
 0x2ea   : > { %v380_v48 = vmax.f32 %v373_v41, 0.0  ;;  %v381_v49 = vmax.f32 %v374_v42, 0.0  ;;  %v382_v50 = vmax.f32 %v375_v43, 0.0 }
 0x2eb   : > { %383 = vst [vmem:[#allocation2] sm:$0xff] %v376_v44  ;;  %384 = vst [vmem:[#allocation2 + $0x8] sm:$0xff] %v377_v45  ;;  %7165 = vmatmul.mubr.f32.vlgmr.msra.gmra.mxu0 %v376_v44 }
 0x2ec   : > { %385 = vst [vmem:[#allocation2 + $0x10] sm:$0xff] %v378_v46  ;;  %386 = vst [vmem:[#allocation2 + $0x18] sm:$0xff] %v379_v47  ;;  %7167 = vmatprep.mubr.msk.f32.mxu0 %vm8183_vm0, %v8182_v1 }
 0x2ed   : > { %387 = vst [vmem:[#allocation2 + $0x20] sm:$0xff] %v380_v48  ;;  %388 = vst [vmem:[#allocation2 + $0x28] sm:$0xff] %v381_v49 }
 0x2ee   : > { %389 = vst [vmem:[#allocation2 + $0x30] sm:$0x7] %v382_v50 }
 0x2ef   : > { %7168 = vmatmul.mubr.f32.gmra.mxu0 %v377_v45 }
 0x2f0   : > { %7170 = vmatprep.mubr.msk.f32.mxu0 %vm8183_vm0, %v8182_v1 }
 0x2f2   : > { %v397_v51 = vld [vmem:[#allocation2 + $0x1] sm:$0xff] }
 0x2f3   : > { %7136 = vmatmul.mubr.f32.vlgmr.msra.gmra.mxu1 %v397_v51  ;;  %7171 = vmatmul.mubr.f32.gmra.mxu0 %v378_v46  ;;  %v398_v52 = vld [vmem:[#allocation2 + $0x9] sm:$0xff]  ;;  %v399_v53 = vld [vmem:[#allocation2 + $0x11] sm:$0xff] }
 0x2f4   : > { %7138 = vmatprep.mubr.msk.f32.mxu1 %vm8183_vm0, %v8182_v1  ;;  %7173 = vmatprep.mubr.msk.f32.mxu0 %vm8183_vm0, %v8182_v1  ;;  %v400_v54 = vld [vmem:[#allocation2 + $0x19] sm:$0xff]  ;;  %v401_v55 = vld [vmem:[#allocation2 + $0x21] sm:$0xff] }
 0x2f5   : > { %v396_v56 = vld [vmem:[#allocation2 + $0x30] sm:$0x1]  ;;  %v403_v58 = vld [vmem:[#allocation2 + $0x31] sm:$0x1] }
 0x2f6   : > { %v402_v57 = vld [vmem:[#allocation2 + $0x29] sm:$0xff] }
 0x2f7   : > { %7139 = vmatmul.mubr.f32.gmra.mxu1 %v398_v52  ;;  %7174 = vmatmul.mubr.f32.gmra.mxu0 %v379_v47 }
 0x2f8   : > { %7141 = vmatprep.mubr.msk.f32.mxu1 %vm8183_vm0, %v8182_v1  ;;  %7176 = vmatprep.mubr.msk.f32.mxu0 %vm8183_vm0, %v8182_v1 }
 0x2fb   : > { %7142 = vmatmul.mubr.f32.gmra.mxu1 %v399_v53  ;;  %7177 = vmatmul.mubr.f32.gmra.mxu0 %v380_v48 }
 0x2fc   : > { %7144 = vmatprep.mubr.msk.f32.mxu1 %vm8183_vm0, %v8182_v1  ;;  %7179 = vmatprep.mubr.msk.f32.mxu0 %vm8183_vm0, %v8182_v1 }
 0x2ff   : > { %7145 = vmatmul.mubr.f32.gmra.mxu1 %v400_v54  ;;  %7180 = vmatmul.mubr.f32.gmra.mxu0 %v381_v49 }
 0x300   : > { %7147 = vmatprep.mubr.msk.f32.mxu1 %vm8183_vm0, %v8182_v1  ;;  %7182 = vmatprep.mubr.msk.f32.mxu0 %vm8183_vm0, %v8182_v1 }
 0x303   : > { %7148 = vmatmul.mubr.f32.gmra.mxu1 %v401_v55  ;;  %7183 = vmatmul.mubr.f32.gmra.mxu0 %v396_v56 }
 0x304   : > { %7150 = vmatprep.mubr.msk.f32.mxu1 %vm8183_vm0, %v8182_v1  ;;  %7244 = vmatprep.mubr.msk.f32.mxu0 %vm8183_vm0, %v8182_v1 }
 0x307   : > { %7151 = vmatmul.mubr.f32.gmra.mxu1 %v402_v57 }
 0x308   : > { %7153 = vmatprep.mubr.msk.f32.mxu1 %vm8183_vm0, %v8182_v1 }
 0x30b   : > { %7154 = vmatmul.mubr.f32.gmra.mxu1 %v403_v58 }
 0x30c   : > { %7193 = vmatprep.mubr.msk.f32.mxu1 %vm8183_vm0, %v8182_v1 }
 0x3ab   : > { %v578_v59 = vpop.f32.mrf.mxu0 }
 0x3ad   : > { %v7166_v60 = vpop.f32.mrf.mxu0 }
 0x3af   : > { %v583_v61 = vpop.f32.mrf.mxu0 }
 0x3b1   : > { %v7169_v62 = vpop.f32.mrf.mxu0 }
 0x3b3   : > { %v478_v63 = vpop.f32.mrf.mxu1  ;;  %v588_v0 = vpop.f32.mrf.mxu0 }
 0x3b4   : > { %v579_v15 = vadd.f32 %v578_v59, %v478_v63 }
 0x3b5   : > { %v7137_v2 = vpop.f32.mrf.mxu1  ;;  %v7172_v3 = vpop.f32.mrf.mxu0 }
 0x3b6   : > { %v615_v23 = vsel %vm614_vm3, %v579_v15, 0.0 }
 0x3b7   : > { %v483_v4 = vpop.f32.mrf.mxu1  ;;  %v593_v5 = vpop.f32.mrf.mxu0 }
 0x3b8   : > { %v584_v12 = vadd.f32 %v583_v61, %v483_v4 }
 0x3b9   : > { %v7140_v6 = vpop.f32.mrf.mxu1  ;;  %v7175_v7 = vpop.f32.mrf.mxu0 }
 0x3ba   : > { %v616_v19 = vsel %vm614_vm3, %v584_v12, 0.0 }
 0x3bb   : > { %v488_v8 = vpop.f32.mrf.mxu1  ;;  %v598_v9 = vpop.f32.mrf.mxu0  ;;  %v617_v26 = vadd.f32 %v616_v19, %v615_v23 }
 0x3bc   : > { %v589_v16 = vadd.f32 %v588_v0, %v488_v8 }
 0x3bd   : > { %v7143_v10 = vpop.f32.mrf.mxu1  ;;  %v7178_v11 = vpop.f32.mrf.mxu0 }
 0x3be   : > { %v618_v24 = vsel %vm614_vm3, %v589_v16, 0.0 }
 0x3bf   : > { %v493_v13 = vpop.f32.mrf.mxu1  ;;  %v603_v14 = vpop.f32.mrf.mxu0  ;;  %v619_v30 = vadd.f32 %v618_v24, %v617_v26  ;;  %v740_v26 = vld [vmem:[%s10454_s1 + $0xa4] sm:$0xff] }
 0x3c0   : > { %v594_v20 = vadd.f32 %v593_v5, %v493_v13 }
 0x3c1   : > { %v7146_v17 = vpop.f32.mrf.mxu1  ;;  %v7181_v18 = vpop.f32.mrf.mxu0 }
 0x3c2   : > { %v620_v29 = vsel %vm614_vm3, %v594_v20, 0.0  ;;  %v742_v17 = vld [vmem:[%s10454_s1 + $0xb4] sm:$0xff] }
 0x3c3   : > { %v498_v21 = vpop.f32.mrf.mxu1  ;;  %v608_v22 = vpop.f32.mrf.mxu0  ;;  %v621_v34 = vadd.f32 %v620_v29, %v619_v30  ;;  %v1031_v29 = vld [vmem:[%s10454_s1 + $0xec] sm:$0xff]  ;;  %v1030_v30 = vld [vmem:[%s10454_s1 + $0xe4] sm:$0xff] }
 0x3c4   : > { %v599_v25 = vadd.f32 %v598_v9, %v498_v21 }
 0x3c5   : > { %v7149_v27 = vpop.f32.mrf.mxu1  ;;  %v7184_v28 = vpop.f32.mrf.mxu0 }
 0x3c6   : > { %v622_v32 = vsel %vm614_vm3, %v599_v25, 0.0  ;;  %v1033_v27 = vld [vmem:[%s10454_s1 + $0xfc] sm:$0xff]  ;;  %v1032_v28 = vld [vmem:[%s10454_s1 + $0xf4] sm:$0xff] }
 0x3c7   : > { %v503_v31 = vpop.f32.mrf.mxu1  ;;  %v623_v37 = vadd.f32 %v622_v32, %v621_v34  ;;  %7237 = vmatpush3.msra.mxu0 %v1033_v27 }
 0x3c8   : > { %v604_v33 = vadd.f32 %v603_v14, %v503_v31  ;;  %7238 = vmatprep.subr.mxu0 %v8182_v1 }
 0x3c9   : > { %v7152_v35 = vpop.f32.mrf.mxu1  ;;  %7239 = vmatpush3.msra.mxu0 %v1032_v28 }
 0x3ca   : > { %v624_v36 = vsel %vm614_vm3, %v604_v33, 0.0  ;;  %7240 = vmatprep.subr.mxu0 %v8182_v1 }
 0x3cb   : > { %v508_v38 = vpop.f32.mrf.mxu1  ;;  %v625_v41 = vadd.f32 %v624_v36, %v623_v37  ;;  %7241 = vmatpush3.msra.mxu0 %v1031_v29 }
 0x3cc   : > { %v609_v39 = vadd.f32 %v608_v22, %v508_v38  ;;  %7242 = vmatprep.subr.mxu0 %v8182_v1 }
 0x3cd   : > { %v7155_v40 = vpop.f32.mrf.mxu1  ;;  %7243 = vmatpush3.msra.mxu0 %v1030_v30 }
 0x3ce   : > { %v627_v42 = vsel %vm626_vm4, %v609_v39, 0.0  ;;  %7278 = vmatprep.subr.mxu0 %v8182_v1 }
 0x3cf   : > { %v628_v43 = vadd.f32 %v627_v42, %v625_v41 }
 0x3d1   : > { %629 = vadd.xlane.f32.xlu1 %v628_v43 }
 0x45a   : > { %v630_v44 = vpop.xlane.xlu1 %629 }
 0x45b   : > { %v631_v45 = vrot.slane %v630_v44, 4 }
 0x45d   : > { %v632_v46 = vadd.f32 %v631_v45, %v630_v44 }
 0x45f   : > { %v633_v47 = vrot.slane %v632_v46, 2 }
 0x461   : > { %v634_v48 = vadd.f32 %v633_v47, %v632_v46 }
 0x463   : > { %v635_v49 = vrot.slane %v634_v48, 1 }
 0x465   : > { %v636_v50 = vadd.f32 %v635_v49, %v634_v48 }
 0x467   : > { %7985 = vpush %v636_v50 }
 0x498   : > { %s7986_s8 = spop %7985 }
 0x499   : > { %s638_s10 = smul.f32 0.0006377551, %s7986_s8 }
 0x49b   : > { %v639_v51 = vstv %s638_s10 }
 0x49c   : > { %v8397_v52 = vsub.f32 %v579_v15, %v639_v51  ;;  %v8399_v53 = vsub.f32 %v584_v12, %v639_v51  ;;  %v8401_v54 = vsub.f32 %v589_v16, %v639_v51  ;;  %v8403_v55 = vsub.f32 %v594_v20, %v639_v51  ;;  %v743_v16 = vld [vmem:[%s10454_s1 + $0xbc] sm:$0xff] }
 0x49d   : > { %v8405_v56 = vsub.f32 %v599_v25, %v639_v51  ;;  %v8413_v60 = vsub.f32 %v604_v33, %v639_v51  ;;  %v646_v2 = vsub.f32 %v609_v39, %v639_v51  ;;  %7186 = vmatpush3.msra.mxu1 %v743_v16  ;;  %v741_v25 = vld [vmem:[%s10454_s1 + $0xac] sm:$0xff]  ;;  %v6518_v33 = vld [vmem:[%s10454_s1 + $0x82] ss:$0 sm:$0xff]  ;;  %v6519_v39 = vld [vmem:[%s10454_s1 + $0x83] ss:$0 sm:$0xff] }
 0x49e   : > { %v647_v57 = vmul.f32 %v8397_v52, %v8397_v52  ;;  %v648_v58 = vmul.f32 %v8399_v53, %v8399_v53  ;;  %v649_v59 = vmul.f32 %v8401_v54, %v8401_v54  ;;  %v650_v61 = vmul.f32 %v8403_v55, %v8403_v55  ;;  %7187 = vmatprep.subr.mxu1 %v8182_v1 }
 0x49f   : > { %v651_v3 = vmul.f32 %v8405_v56, %v8405_v56  ;;  %v652_v6 = vmul.f32 %v8413_v60, %v8413_v60  ;;  %v653_v9 = vmul.f32 %v646_v2, %v646_v2  ;;  %7188 = vmatpush3.msra.mxu1 %v742_v17 }
 0x4a0   : > { %v654_v62 = vsel %vm614_vm3, %v647_v57, 0.0  ;;  %v655_v63 = vsel %vm614_vm3, %v648_v58, 0.0  ;;  %v657_v4 = vsel %vm614_vm3, %v649_v59, 0.0  ;;  %v659_v7 = vsel %vm614_vm3, %v650_v61, 0.0  ;;  %7189 = vmatprep.subr.mxu1 %v8182_v1 }
 0x4a1   : > { %v656_v0 = vadd.f32 %v655_v63, %v654_v62  ;;  %v661_v10 = vsel %vm614_vm3, %v651_v3, 0.0  ;;  %v663_v12 = vsel %vm614_vm3, %v652_v6, 0.0  ;;  %v665_v14 = vsel %vm626_vm4, %v653_v9, 0.0  ;;  %7190 = vmatpush3.msra.mxu1 %v741_v25  ;;  %v732_v63 = vld [vmem:[%s10454_s1 + $0x94] sm:$0xff]  ;;  %v731_v3 = vld [vmem:[%s10454_s1 + $0x8c] sm:$0xff] }
 0x4a2   : > { %7191 = vmatprep.subr.mxu1 %v8182_v1  ;;  %v930_v9 = vld [vmem:[%s10454_s1 + $0xd4] sm:$0xff] }
 0x4a3   : > { %v658_v5 = vadd.f32 %v657_v4, %v656_v0  ;;  %7192 = vmatpush3.msra.mxu1 %v740_v26  ;;  %v730_v4 = vld [vmem:[%s10454_s1 + $0x84] sm:$0xff] }
 0x4a4   : > { %7202 = vmatprep.subr.mxu1 %v8182_v1 }
 0x4a5   : > { %v660_v8 = vadd.f32 %v659_v7, %v658_v5  ;;  %v931_v7 = vld [vmem:[%s10454_s1 + $0xdc] sm:$0xff] }
 0x4a7   : > { %v662_v11 = vadd.f32 %v661_v10, %v660_v8  ;;  %v929_v10 = vld [vmem:[%s10454_s1 + $0xcc] sm:$0xff] }
 0x4a9   : > { %v664_v13 = vadd.f32 %v663_v12, %v662_v11  ;;  %v928_v12 = vld [vmem:[%s10454_s1 + $0xc4] sm:$0xff] }
 0x4ab   : > { %v666_v15 = vadd.f32 %v665_v14, %v664_v13 }
 0x4ad   : > { %667 = vadd.xlane.f32.xlu1 %v666_v15 }
 0x536   : > { %v668_v18 = vpop.xlane.xlu1 %667 }
 0x537   : > { %v669_v19 = vrot.slane %v668_v18, 4 }
 0x539   : > { %v670_v20 = vadd.f32 %v669_v19, %v668_v18 }
 0x53b   : > { %v671_v21 = vrot.slane %v670_v20, 2 }
 0x53d   : > { %v672_v22 = vadd.f32 %v671_v21, %v670_v20 }
 0x53f   : > { %v673_v23 = vrot.slane %v672_v22, 1 }
 0x541   : > { %v674_v24 = vadd.f32 %v673_v23, %v672_v22 }
 0x543   : > { %7987 = vpush %v674_v24 }
 0x574   : > { %s7988_s28 = spop %7987 }
 0x575   : > { %s676_s30 = smul.f32 0.0006377551, %s7988_s28 }
 0x577   : > { %s677_s3 = sadd.f32 1e-05, %s676_s30 }
 0x579   : > { %v678_v31 = vstv %s677_s3 }
 0x57a   : > { %8112 = vrsqrt.f32 %v678_v31 }
 0x587   : > { %v8113_v32 = vpop.eup %8112 }
 0x588   : > { %7989 = vpush %v8113_v32 }
 0x5b9   : > { %s7990_s4 = spop %7989 }
 0x5ba   : > { %v681_v34 = vstv %s7990_s4 }
 0x5bb   : > { %v682_v35 = vmul.f32 %v681_v34, %v8397_v52  ;;  %v683_v36 = vmul.f32 %v681_v34, %v8399_v53  ;;  %v684_v37 = vmul.f32 %v681_v34, %v8401_v54  ;;  %v685_v38 = vmul.f32 %v681_v34, %v8403_v55 }
 0x5bc   : > { %v686_v40 = vmul.f32 %v681_v34, %v8405_v56  ;;  %v687_v41 = vmul.f32 %v681_v34, %v8413_v60  ;;  %v733_v60 = vld [vmem:[%s10454_s1 + $0x9c] sm:$0xff] }
 0x5bd   : > { %v693_v42 = vmul.f32 %v6518_v33, %v682_v35  ;;  %v694_v43 = vmul.f32 %v6518_v33, %v683_v36  ;;  %v695_v44 = vmul.f32 %v6518_v33, %v684_v37  ;;  %v696_v45 = vmul.f32 %v6518_v33, %v685_v38 }
 0x5be   : > { %v697_v46 = vmul.f32 %v6518_v33, %v686_v40  ;;  %v698_v47 = vmul.f32 %v6518_v33, %v687_v41 }
 0x5bf   : > { %v704_v48 = vadd.f32 %v6519_v39, %v693_v42  ;;  %v705_v49 = vadd.f32 %v6519_v39, %v694_v43  ;;  %v706_v50 = vadd.f32 %v6519_v39, %v695_v44  ;;  %v707_v51 = vadd.f32 %v6519_v39, %v696_v45 }
 0x5c0   : > { %v708_v52 = vadd.f32 %v6519_v39, %v697_v46  ;;  %v709_v53 = vadd.f32 %v6519_v39, %v698_v47 }
 0x5c1   : > { %v711_v54 = vmax.f32 %v704_v48, 0.0  ;;  %v712_v55 = vmax.f32 %v705_v49, 0.0  ;;  %v713_v57 = vmax.f32 %v706_v50, 0.0  ;;  %v714_v58 = vmax.f32 %v707_v51, 0.0 }
 0x5c2   : > { %v715_v59 = vmax.f32 %v708_v52, 0.0  ;;  %v716_v56 = vmax.f32 %v709_v53, 0.0 }
 0x5c3   : > { %718 = vst.msk [vmem:[#allocation3] sm:$0xff] %vm614_vm3, %v711_v54  ;;  %719 = vst.msk [vmem:[#allocation3 + $0x8] sm:$0xff] %vm614_vm3, %v712_v55 }
 0x5c4   : > { %720 = vst.msk [vmem:[#allocation3 + $0x10] sm:$0xff] %vm614_vm3, %v713_v57  ;;  %721 = vst.msk [vmem:[#allocation3 + $0x18] sm:$0xff] %vm614_vm3, %v714_v58 }
 0x5c5   : > { %722 = vst.msk [vmem:[#allocation3 + $0x20] sm:$0xff] %vm614_vm3, %v715_v59  ;;  %723 = vst.msk [vmem:[#allocation3 + $0x28] sm:$0xff] %vm614_vm3, %v716_v56 }
 0x5ca   : > { %v735_v61 = vld [vmem:[#allocation3 + $0x1] ss:$2 sm:$0xff]  ;;  %v725_v8 = vld [vmem:[#allocation3] ss:$2 sm:$0xff] }
 0x5cb   : > { %v1025_v62 = vld [vmem:[#allocation3 + $0x3] ss:$2 sm:$0xff]  ;;  %7194 = vmatmul.mubr.msk.f32.vlgmr.msra.gmra.mxu1 %vm614_vm3, %v735_v61  ;;  %v727_v11 = vld [vmem:[#allocation3 + $0x10] ss:$2 sm:$0xff] }
 0x5cc   : > { %7245 = vmatmul.mubr.msk.f32.vlgmr.msra.gmra.mxu0 %vm614_vm3, %v1025_v62  ;;  %7203 = vmatpush3.msra.mxu1 %v733_v60  ;;  %v737_v0 = vld [vmem:[#allocation3 + $0x11] ss:$2 sm:$0xff]  ;;  %v739_v5 = vld [vmem:[#allocation3 + $0x21] ss:$2 sm:$0x7f] }
 0x5cd   : > { %7196 = vmatprep.mubr.msk.f32.mxu1 %vm8183_vm0, %v8182_v1  ;;  %7204 = vmatprep.subr.mxu1 %v8182_v1  ;;  %v1027_v2 = vld [vmem:[#allocation3 + $0x13] ss:$2 sm:$0xff]  ;;  %v1029_v6 = vld [vmem:[#allocation3 + $0x23] ss:$2 sm:$0x7f] }
 0x5ce   : > { %7247 = vmatprep.mubr.msk.f32.mxu0 %vm8183_vm0, %v8182_v1  ;;  %7205 = vmatpush3.msra.mxu1 %v732_v63  ;;  %v729_v13 = vld [vmem:[#allocation3 + $0x20] ss:$2 sm:$0x7f] }
 0x5cf   : > { %7197 = vmatmul.mubr.msk.f32.gmra.mxu1 %vm614_vm3, %v737_v0  ;;  %7206 = vmatprep.subr.mxu1 %v8182_v1  ;;  %v923_v14 = vld [vmem:[#allocation3 + $0x2] ss:$2 sm:$0xff]  ;;  %v925_v15 = vld [vmem:[#allocation3 + $0x12] ss:$2 sm:$0xff] }
 0x5d0   : > { %7248 = vmatmul.mubr.msk.f32.gmra.mxu0 %vm614_vm3, %v1027_v2  ;;  %7199 = vmatprep.mubr.msk.f32.mxu1 %vm8183_vm0, %v8182_v1  ;;  %v927_v16 = vld [vmem:[#allocation3 + $0x22] ss:$2 sm:$0x7f] }
 0x5d1   : > { %7207 = vmatpush3.msra.mxu1 %v731_v3  ;;  %7250 = vmatprep.mubr.msk.f32.mxu0 %vm8183_vm0, %v8182_v1 }
 0x5d2   : > { %7208 = vmatprep.subr.mxu1 %v8182_v1 }
 0x5d3   : > { %7200 = vmatmul.mubr.msk.f32.gmra.mxu1 %vm614_vm3, %v739_v5 }
 0x5d4   : > { %7251 = vmatmul.mubr.msk.f32.gmra.mxu0 %vm614_vm3, %v1029_v6  ;;  %7209 = vmatpush3.msra.mxu1 %v730_v4 }
 0x5d5   : > { %7210 = vmatprep.mubr.msk.f32.mxu1 %vm8183_vm0, %v8182_v1  ;;  %7219 = vmatprep.subr.mxu1 %v8182_v1 }
 0x5d6   : > { %7286 = vmatprep.mubr.msk.f32.mxu0 %vm8183_vm0, %v8182_v1 }
 0x5d7   : > { %7211 = vmatmul.mubr.msk.f32.vlgmr.msra.gmra.mxu1 %vm614_vm3, %v725_v8 }
 0x5d8   : > { %7220 = vmatpush3.msra.mxu1 %v931_v7  ;;  %7213 = vmatprep.mubr.msk.f32.mxu1 %vm8183_vm0, %v8182_v1 }
 0x5d9   : > { %7221 = vmatprep.subr.mxu1 %v8182_v1 }
 0x5da   : > { %7222 = vmatpush3.msra.mxu1 %v930_v9 }
 0x5db   : > { %7214 = vmatmul.mubr.msk.f32.gmra.mxu1 %vm614_vm3, %v727_v11  ;;  %7223 = vmatprep.subr.mxu1 %v8182_v1 }
 0x5dc   : > { %7224 = vmatpush3.msra.mxu1 %v929_v10  ;;  %7216 = vmatprep.mubr.msk.f32.mxu1 %vm8183_vm0, %v8182_v1 }
 0x5dd   : > { %7225 = vmatprep.subr.mxu1 %v8182_v1 }
 0x5de   : > { %7226 = vmatpush3.msra.mxu1 %v928_v12 }
 0x5df   : > { %7217 = vmatmul.mubr.msk.f32.gmra.mxu1 %vm614_vm3, %v729_v13  ;;  %7253 = vmatprep.subr.mxu1 %v8182_v1 }
 0x5e0   : > { %7227 = vmatprep.mubr.msk.f32.mxu1 %vm8183_vm0, %v8182_v1 }
 0x5e3   : > { %7228 = vmatmul.mubr.msk.f32.vlgmr.msra.gmra.mxu1 %vm614_vm3, %v923_v14 }
 0x5e4   : > { %7230 = vmatprep.mubr.msk.f32.mxu1 %vm8183_vm0, %v8182_v1 }
 0x5e7   : > { %7231 = vmatmul.mubr.msk.f32.gmra.mxu1 %vm614_vm3, %v925_v15 }
 0x5e8   : > { %7233 = vmatprep.mubr.msk.f32.mxu1 %vm8183_vm0, %v8182_v1 }
 0x5eb   : > { %7234 = vmatmul.mubr.msk.f32.gmra.mxu1 %vm614_vm3, %v927_v16 }
 0x5ec   : > { %7269 = vmatprep.mubr.msk.f32.mxu1 %vm8183_vm0, %v8182_v1 }
 0x68b   : > { %v819_v17 = vpop.f32.mrf.mxu1 }
 0x68c   : > { %v1109_v18 = vpop.f32.mrf.mxu0 }
 0x68d   : > { %v7195_v19 = vpop.f32.mrf.mxu1 }
 0x68e   : > { %v7246_v20 = vpop.f32.mrf.mxu0  ;;  %v1209_v19 = vld [vmem:[%s10454_s1 + $0x136] sm:$0xff] }
 0x68f   : > { %v824_v21 = vpop.f32.mrf.mxu1  ;;  %v1208_v20 = vld [vmem:[%s10454_s1 + $0x12e] sm:$0xff] }
 0x690   : > { %v1114_v22 = vpop.f32.mrf.mxu0 }
 0x691   : > { %v7198_v23 = vpop.f32.mrf.mxu1 }
 0x692   : > { %v7249_v24 = vpop.f32.mrf.mxu0  ;;  %v1205_v23 = vld [vmem:[%s10454_s1 + $0x116] sm:$0xff] }
 0x693   : > { %v829_v25 = vpop.f32.mrf.mxu1  ;;  %v1204_v24 = vld [vmem:[%s10454_s1 + $0x10e] sm:$0xff] }
 0x694   : > { %v1119_v26 = vpop.f32.mrf.mxu0 }
 0x695   : > { %v7201_v27 = vpop.f32.mrf.mxu1 }
 0x696   : > { %v7252_v28 = vpop.f32.mrf.mxu0 }
 0x697   : > { %v908_v29 = vpop.f32.mrf.mxu1  ;;  %v6532_v28 = vld [vmem:[%s10454_s1 + $0x104] ss:$0 sm:$0xff] }
 0x698   : > { %v909_v36 = vadd.f32 %v908_v29, %v819_v17 }
 0x699   : > { %v7212_v30 = vpop.f32.mrf.mxu1 }
 0x69b   : > { %v913_v31 = vpop.f32.mrf.mxu1 }
 0x69c   : > { %v914_v38 = vadd.f32 %v913_v31, %v824_v21  ;;  %v1207_v21 = vld [vmem:[%s10454_s1 + $0x126] sm:$0xff] }
 0x69d   : > { %v7215_v32 = vpop.f32.mrf.mxu1 }
 0x69f   : > { %v918_v33 = vpop.f32.mrf.mxu1 }
 0x6a0   : > { %v919_v43 = vadd.f32 %v918_v33, %v829_v25  ;;  %v1203_v25 = vld [vmem:[%s10454_s1 + $0x106] sm:$0xff]  ;;  %v6533_v33 = vld [vmem:[%s10454_s1 + $0x105] ss:$0 sm:$0xff] }
 0x6a1   : > { %v7218_v34 = vpop.f32.mrf.mxu1 }
 0x6a3   : > { %v1007_v35 = vpop.f32.mrf.mxu1 }
 0x6a4   : > { %v1021_v39 = vadd.f32 %v1007_v35, %v909_v36 }
 0x6a5   : > { %v7229_v37 = vpop.f32.mrf.mxu1 }
 0x6a6   : > { %v1123_v44 = vadd.f32 %v1109_v18, %v1021_v39  ;;  %v1210_v18 = vld [vmem:[%s10454_s1 + $0x13e] sm:$0xff] }
 0x6a7   : > { %v1012_v40 = vpop.f32.mrf.mxu1  ;;  %7254 = vmatpush3.msra.mxu1 %v1210_v18 }
 0x6a8   : > { %v1022_v41 = vadd.f32 %v1012_v40, %v914_v38  ;;  %v1128_v51 = vsel %vm165_vm1, %v1123_v44, 0.0  ;;  %7255 = vmatprep.subr.mxu1 %v8182_v1 }
 0x6a9   : > { %v7232_v42 = vpop.f32.mrf.mxu1  ;;  %7256 = vmatpush3.msra.mxu1 %v1209_v19 }
 0x6aa   : > { %v1124_v45 = vadd.f32 %v1114_v22, %v1022_v41  ;;  %7257 = vmatprep.subr.mxu1 %v8182_v1  ;;  %v1206_v22 = vld [vmem:[%s10454_s1 + $0x11e] sm:$0xff] }
 0x6ab   : > { %v1017_v46 = vpop.f32.mrf.mxu1  ;;  %7258 = vmatpush3.msra.mxu1 %v1208_v20 }
 0x6ac   : > { %v1023_v47 = vadd.f32 %v1017_v46, %v919_v43  ;;  %v1129_v48 = vsel %vm165_vm1, %v1124_v45, 0.0  ;;  %7259 = vmatprep.subr.mxu1 %v8182_v1 }
 0x6ad   : > { %v7235_v49 = vpop.f32.mrf.mxu1  ;;  %v1130_v52 = vadd.f32 %v1129_v48, %v1128_v51  ;;  %7260 = vmatpush3.msra.mxu1 %v1207_v21 }
 0x6ae   : > { %v1125_v50 = vadd.f32 %v1119_v26, %v1023_v47  ;;  %7261 = vmatprep.subr.mxu1 %v8182_v1 }
 0x6af   : > { %7262 = vmatpush3.msra.mxu1 %v1206_v22  ;;  %v1365_v22 = vld [vmem:[%s10454_s1 + $0x160] sm:$0xff] }
 0x6b0   : > { %v1132_v53 = vsel %vm1131_vm5, %v1125_v50, 0.0  ;;  %7263 = vmatprep.subr.mxu1 %v8182_v1  ;;  %7279 = vmatpush3.xpose.msk.msra.mxu0 %vm614_vm3, %v1365_v22 }
 0x6b1   : > { %v1133_v54 = vadd.f32 %v1132_v53, %v1130_v52  ;;  %7264 = vmatpush3.msra.mxu1 %v1205_v23  ;;  %7280 = vmatprep.subr.mxu0 %v8182_v1  ;;  %v1364_v23 = vld [vmem:[%s10454_s1 + $0x158] sm:$0xff] }
 0x6b2   : > { %7265 = vmatprep.subr.mxu1 %v8182_v1 }
 0x6b3   : > { %1134 = vadd.xlane.f32.xlu0 %v1133_v54  ;;  %7266 = vmatpush3.msra.mxu1 %v1204_v24 }
 0x6b4   : > { %7267 = vmatprep.subr.mxu1 %v8182_v1  ;;  %7281 = vmatpush3.xpose.msk.msra.mxu0 %vm614_vm3, %v1364_v23 }
 0x6b5   : > { %7268 = vmatpush3.msra.mxu1 %v1203_v25  ;;  %7282 = vmatprep.subr.mxu0 %v8182_v1 }
 0x6b6   : > { %7295 = vmatprep.subr.mxu1 %v8182_v1 }
 0x73c   : > { %v1135_v55 = vpop.xlane.xlu0 %1134 }
 0x73d   : > { %v1136_v57 = vrot.slane %v1135_v55, 4 }
 0x73f   : > { %v1137_v58 = vadd.f32 %v1136_v57, %v1135_v55 }
 0x741   : > { %v1138_v59 = vrot.slane %v1137_v58, 2 }
 0x743   : > { %v1139_v56 = vadd.f32 %v1138_v59, %v1137_v58 }
 0x745   : > { %v1140_v60 = vrot.slane %v1139_v56, 1 }
 0x747   : > { %v1141_v61 = vadd.f32 %v1140_v60, %v1139_v56 }
 0x749   : > { %7991 = vpush %v1141_v61 }
 0x77a   : > { %s7992_s27 = spop %7991 }
 0x77b   : > { %s1143_s28 = smul.f32 0.00067934784, %s7992_s27 }
 0x77d   : > { %v1144_v62 = vstv %s1143_s28  ;;  %s8184_s28 = smov 96  }
 0x77e   : > { %v1145_v63 = vsub.f32 %v1123_v44, %v1144_v62  ;;  %v1146_v0 = vsub.f32 %v1124_v45, %v1144_v62  ;;  %v1147_v2 = vsub.f32 %v1125_v50, %v1144_v62 }
 0x780   : > { %v1148_v3 = vmul.f32 %v1145_v63, %v1145_v63  ;;  %v1149_v4 = vmul.f32 %v1146_v0, %v1146_v0  ;;  %v1150_v5 = vmul.f32 %v1147_v2, %v1147_v2 }
 0x782   : > { %v1151_v6 = vsel %vm165_vm1, %v1148_v3, 0.0  ;;  %v1152_v7 = vsel %vm165_vm1, %v1149_v4, 0.0  ;;  %v1154_v9 = vsel %vm1131_vm5, %v1150_v5, 0.0 }
 0x783   : > { %v1153_v8 = vadd.f32 %v1152_v7, %v1151_v6 }
 0x785   : > { %v1155_v10 = vadd.f32 %v1154_v9, %v1153_v8 }
 0x787   : > { %1156 = vadd.xlane.f32.xlu1 %v1155_v10 }
 0x810   : > { %v1157_v11 = vpop.xlane.xlu1 %1156 }
 0x811   : > { %v1158_v12 = vrot.slane %v1157_v11, 4 }
 0x813   : > { %v1159_v13 = vadd.f32 %v1158_v12, %v1157_v11 }
 0x815   : > { %v1160_v14 = vrot.slane %v1159_v13, 2 }
 0x817   : > { %v1161_v15 = vadd.f32 %v1160_v14, %v1159_v13 }
 0x819   : > { %v1162_v16 = vrot.slane %v1161_v15, 1 }
 0x81b   : > { %v1163_v17 = vadd.f32 %v1162_v16, %v1161_v15 }
 0x81d   : > { %7993 = vpush %v1163_v17 }
 0x84e   : > { %s7994_s20 = spop %7993 }
 0x84f   : > { %s1165_s21 = smul.f32 0.00067934784, %s7994_s20 }
 0x851   : > { %s1166_s22 = sadd.f32 1e-05, %s1165_s21 }
 0x853   : > { %v1167_v26 = vstv %s1166_s22 }
 0x854   : > { %8114 = vrsqrt.f32 %v1167_v26 }
 0x861   : > { %v8115_v27 = vpop.eup %8114 }
 0x862   : > { %7995 = vpush %v8115_v27 }
 0x893   : > { %s7996_s23 = spop %7995 }
 0x894   : > { %v1170_v29 = vstv %s7996_s23 }
 0x895   : > { %v1171_v30 = vmul.f32 %v1170_v29, %v1145_v63  ;;  %v1172_v31 = vmul.f32 %v1170_v29, %v1146_v0  ;;  %v1173_v32 = vmul.f32 %v1170_v29, %v1147_v2 }
 0x897   : > { %v1178_v34 = vmul.f32 %v6532_v28, %v1171_v30  ;;  %v1179_v35 = vmul.f32 %v6532_v28, %v1172_v31  ;;  %v1180_v36 = vmul.f32 %v6532_v28, %v1173_v32 }
 0x899   : > { %v1185_v37 = vadd.f32 %v6533_v33, %v1178_v34  ;;  %v1186_v38 = vadd.f32 %v6533_v33, %v1179_v35  ;;  %v1187_v39 = vadd.f32 %v6533_v33, %v1180_v36  ;;  %v1363_v35 = vld [vmem:[%s10454_s1 + $0x150] sm:$0xff] }
 0x89a   : > { %7283 = vmatpush3.xpose.msk.msra.mxu0 %vm614_vm3, %v1363_v35 }
 0x89b   : > { %v1188_v40 = vmax.f32 %v1185_v37, 0.0  ;;  %v1189_v41 = vmax.f32 %v1186_v38, 0.0  ;;  %v1190_v42 = vmax.f32 %v1187_v39, 0.0  ;;  %7284 = vmatprep.subr.mxu0 %v8182_v1  ;;  %v1362_v39 = vld [vmem:[%s10454_s1 + $0x148] sm:$0xff] }
 0x89d   : > { %v1191_v43 = vand.u32 2147483647, %v1188_v40  ;;  %v1192_v44 = vand.u32 2147483647, %v1189_v41  ;;  %v1193_v45 = vand.u32 2147483647, %v1190_v42 }
 0x89e   : > { %7285 = vmatpush3.xpose.msk.msra.mxu0 %vm614_vm3, %v1362_v39 }
 0x89f   : > { %v1194_v46 = vadd.f32 1.0, %v1191_v43  ;;  %v1195_v47 = vadd.f32 1.0, %v1192_v44  ;;  %v1196_v48 = vadd.f32 1.0, %v1193_v45  ;;  %7312 = vmatprep.subr.mxu0 %v8182_v1  ;;  %v8649_v43 = vld [vmem:[%s10454_s1 + $0x146] ss:$0 sm:$0xff] }
 0x8a1   : > { %8116 = vlog2.f32 %v1194_v46 }
 0x8a2   : > { %8118 = vlog2.f32 %v1195_v47  ;;  %v8654_v47 = vld [vmem:[%s10454_s1 + $0x147] ss:$0 sm:$0xff] }
 0x8a3   : > { %8120 = vlog2.f32 %v1196_v48 }
 0x8ae   : > { %v8117_v49 = vpop.eup %8116 }
 0x8af   : > { %v1198_v50 = vmul.f32 0.6931472, %v8117_v49  ;;  %v8119_v51 = vpop.eup %8118 }
 0x8b0   : > { %v1200_v52 = vmul.f32 0.6931472, %v8119_v51  ;;  %v8121_v53 = vpop.eup %8120 }
 0x8b1   : > { %7270 = vmatmul.mubr.msk.f32.vlgmr.msra.gmra.mxu1 %vm165_vm1, %v1198_v50  ;;  %v1202_v54 = vmul.f32 0.6931472, %v8121_v53  ;;  %v1754_v53 = vld [vmem:[%s10454_s1 + $0x30] sm:$0xff] }
 0x8b2   : > { %7272 = vmatprep.mubr.msk.f32.mxu1 %vm8183_vm0, %v8182_v1 }
 0x8b5   : > { %7273 = vmatmul.mubr.msk.f32.gmra.mxu1 %vm165_vm1, %v1200_v52  ;;  %v1755_v52 = vld [vmem:[%s10454_s1 + $0x38] sm:$0xff] }
 0x8b6   : > { %7275 = vmatprep.mubr.msk.f32.mxu1 %vm8183_vm0, %v8182_v1 }
 0x8b9   : > { %7276 = vmatmul.mubr.msk.f32.gmra.mxu1 %vm165_vm1, %v1202_v54 }
 0x8ba   : > { %7303 = vmatprep.mubr.msk.f32.mxu1 %vm8183_vm0, %v8182_v1 }
 0x971   : > { %v8599_v55 = vpop.f32.mrf.mxu1 }
 0x972   : > { %v1302_v60 = vsel %vm614_vm3, %v8599_v55, 0.0 }
 0x973   : > { %v7271_v57 = vpop.f32.mrf.mxu1 }
 0x975   : > { %v8601_v58 = vpop.f32.mrf.mxu1 }
 0x976   : > { %v1303_v59 = vsel %vm614_vm3, %v8601_v58, 0.0 }
 0x977   : > { %v7274_v56 = vpop.f32.mrf.mxu1  ;;  %v1304_v62 = vadd.f32 %v1303_v59, %v1302_v60  ;;  %v1753_v59 = vld [vmem:[%s10454_s1 + $0x28] sm:$0xff] }
 0x978   : > { %v1752_v56 = vld [vmem:[%s10454_s1 + $0x20] sm:$0xff] }
 0x979   : > { %v8607_v61 = vpop.f32.mrf.mxu1 }
 0x97a   : > { %v1306_v63 = vsel %vm1305_vm6, %v8607_v61, 0.0 }
 0x97b   : > { %v7277_v0 = vpop.f32.mrf.mxu1  ;;  %v1307_v2 = vadd.f32 %v1306_v63, %v1304_v62  ;;  %v1751_v62 = vld [vmem:[%s10454_s1 + $0x18] sm:$0xff]  ;;  %v1750_v63 = vld [vmem:[%s10454_s1 + $0x10] sm:$0xff] }
 0x97d   : > { %1308 = vadd.xlane.f32.xlu0 %v1307_v2  ;;  %v1749_v2 = vld [vmem:[%s10454_s1 + $0x8] sm:$0xff] }
 0x993   : > { %1514 = vrot.lane.b32.xlu0 %v8599_v55, %s8184_s28 }
 0xa06   : > { %v1309_v3 = vpop.xlane.xlu0 %1308 }
 0xa07   : > { %v1310_v4 = vrot.slane %v1309_v3, 4 }
 0xa09   : > { %v1311_v5 = vadd.f32 %v1310_v4, %v1309_v3  ;;  %v1748_v4 = vld [vmem:[%s10454_s1] sm:$0xff] }
 0xa0a   : > { %v1515_v27 = vpop.permute.xlu0 %1514 }
 0xa0b   : > { %v1312_v6 = vrot.slane %v1311_v5, 2  ;;  %v1523_v31 = vsel %vm614_vm3, %v1515_v27, 0.0 }
 0xa0d   : > { %v1313_v7 = vadd.f32 %v1312_v6, %v1311_v5  ;;  %v6557_v6 = vld [vmem:[%s8246_s29 + $0x38] sm:$0xff] }
 0xa0f   : > { %v1314_v8 = vrot.slane %v1313_v7, 1 }
 0xa11   : > { %v1315_v9 = vadd.f32 %v1314_v8, %v1313_v7 }
 0xa13   : > { %7997 = vpush %v1315_v9  ;;  %v6558_v9 = vld [vmem:[%s8246_s29 + $0x40] sm:$0xff] }
 0xa44   : > { %s7998_s30 = spop %7997 }
 0xa45   : > { %s1317_s3 = smul.f32 0.0013586957, %s7998_s30 }
 0xa47   : > { %v1318_v10 = vstv %s1317_s3 }
 0xa48   : > { %v1319_v11 = vsub.f32 %v8599_v55, %v1318_v10  ;;  %v1320_v12 = vsub.f32 %v8601_v58, %v1318_v10  ;;  %v1321_v13 = vsub.f32 %v8607_v61, %v1318_v10 }
 0xa4a   : > { %v1322_v14 = vmul.f32 %v1319_v11, %v1319_v11  ;;  %v1323_v15 = vmul.f32 %v1320_v12, %v1320_v12  ;;  %v1324_v16 = vmul.f32 %v1321_v13, %v1321_v13 }
 0xa4c   : > { %v1325_v17 = vsel %vm614_vm3, %v1322_v14, 0.0  ;;  %v1326_v18 = vsel %vm614_vm3, %v1323_v15, 0.0  ;;  %v1328_v20 = vsel %vm1305_vm6, %v1324_v16, 0.0  ;;  %v6561_v14 = vld [vmem:[%s8246_s29 + $0x58] sm:$0xff]  ;;  %v6562_v15 = vld [vmem:[%s8246_s29 + $0x60] sm:$0xff] }
 0xa4d   : > { %v1327_v19 = vadd.f32 %v1326_v18, %v1325_v17  ;;  %v6563_v16 = vld [vmem:[%s8246_s29 + $0x68] sm:$0x7] }
 0xa4f   : > { %v1329_v21 = vadd.f32 %v1328_v20, %v1327_v19 }
 0xa51   : > { %1330 = vadd.xlane.f32.xlu1 %v1329_v21 }
 0xa62   : > { %1516 = vrot.lane.b32.xlu1 %v8601_v58, %s8184_s28 }
 0xa66   : > { %1518 = vrot.lane.b32.xlu1 %v8607_v61, %s8184_s28 }
 0xada   : > { %v1331_v24 = vpop.xlane.xlu1 %1330 }
 0xadb   : > { %v1332_v25 = vrot.slane %v1331_v24, 4 }
 0xadd   : > { %v1333_v26 = vadd.f32 %v1332_v25, %v1331_v24 }
 0xade   : > { %v1517_v28 = vpop.permute.xlu1 %1516 }
 0xadf   : > { %v1334_v29 = vrot.slane %v1333_v26, 2  ;;  %v1524_v30 = vsel %vm614_vm3, %v1517_v28, 0.0 }
 0xae0   : > { %v1525_v33 = vadd.f32 %v1524_v30, %v1523_v31 }
 0xae1   : > { %v1335_v32 = vadd.f32 %v1334_v29, %v1333_v26 }
 0xae2   : > { %v1519_v34 = vpop.permute.xlu1 %1518 }
 0xae3   : > { %v1526_v36 = vsel %vm1305_vm6, %v1519_v34, 0.0  ;;  %v1336_v37 = vrot.slane %v1335_v32, 1 }
 0xae4   : > { %v1527_v38 = vadd.f32 %v1526_v36, %v1525_v33 }
 0xae5   : > { %v1337_v40 = vadd.f32 %v1336_v37, %v1335_v32 }
 0xae6   : > { %1528 = vadd.xlane.f32.xlu1 %v1527_v38 }
 0xae7   : > { %7999 = vpush %v1337_v40 }
 0xb18   : > { %s8000_s14 = spop %7999 }
 0xb19   : > { %s1339_s15 = smul.f32 0.0013586957, %s8000_s14 }
 0xb1b   : > { %s1340_s16 = sadd.f32 1e-05, %s1339_s15 }
 0xb1d   : > { %v1341_v41 = vstv %s1340_s16 }
 0xb1e   : > { %8122 = vrsqrt.f32 %v1341_v41 }
 0xb2b   : > { %v8123_v42 = vpop.eup %8122 }
 0xb2c   : > { %8001 = vpush %v8123_v42 }
 0xb5d   : > { %s8002_s17 = spop %8001 }
 0xb5e   : > { %v1344_v44 = vstv %s8002_s17 }
 0xb5f   : > { %v1345_v45 = vmul.f32 %v1344_v44, %v1319_v11  ;;  %v1346_v46 = vmul.f32 %v1344_v44, %v1320_v12  ;;  %v1347_v49 = vmul.f32 %v1344_v44, %v1321_v13  ;;  %v6559_v12 = vld [vmem:[%s8246_s29 + $0x48] sm:$0xff]  ;;  %v6560_v13 = vld [vmem:[%s8246_s29 + $0x50] sm:$0xff] }
 0xb61   : > { %v1352_v48 = vmul.f32 %v8649_v43, %v1345_v45  ;;  %v1353_v50 = vmul.f32 %v8649_v43, %v1346_v46  ;;  %v1354_v54 = vmul.f32 %v8649_v43, %v1347_v49 }
 0xb63   : > { %v1359_v51 = vadd.f32 %v8654_v47, %v1352_v48  ;;  %v1360_v57 = vadd.f32 %v8654_v47, %v1353_v50  ;;  %v1361_v60 = vadd.f32 %v8654_v47, %v1354_v54 }
 0xb65   : > { %7287 = vmatmul.mubr.msk.f32.vlgmr.msra.gmra.mxu0 %vm614_vm3, %v1359_v51 }
 0xb66   : > { %7289 = vmatprep.mubr.msk.f32.mxu0 %vm8183_vm0, %v8182_v1  ;;  %7313 = vmatpush3.msra.mxu0 %v1755_v52 }
 0xb67   : > { %7314 = vmatprep.subr.mxu0 %v8182_v1 }
 0xb68   : > { %7315 = vmatpush3.msra.mxu0 %v1754_v53 }
 0xb69   : > { %7290 = vmatmul.mubr.msk.f32.gmra.mxu0 %vm614_vm3, %v1360_v57  ;;  %7316 = vmatprep.subr.mxu0 %v8182_v1 }
 0xb6a   : > { %7292 = vmatprep.mubr.msk.f32.mxu0 %vm8183_vm0, %v8182_v1  ;;  %7317 = vmatpush3.msra.mxu0 %v1753_v59 }
 0xb6b   : > { %7318 = vmatprep.subr.mxu0 %v8182_v1 }
 0xb6c   : > { %7319 = vmatpush3.msra.mxu0 %v1752_v56 }
 0xb6d   : > { %7293 = vmatmul.mubr.msk.f32.gmra.mxu0 %vm614_vm3, %v1361_v60  ;;  %7320 = vmatprep.subr.mxu0 %v8182_v1 }
 0xb6e   : > { %7321 = vmatpush3.msra.mxu0 %v1751_v62  ;;  %7328 = vmatprep.mubr.msk.f32.mxu0 %vm8183_vm0, %v8182_v1 }
 0xb6f   : > { %v1529_v0 = vpop.xlane.xlu1 %1528  ;;  %7322 = vmatprep.subr.mxu0 %v8182_v1 }
 0xb70   : > { %v1530_v3 = vrot.slane %v1529_v0, 4  ;;  %7323 = vmatpush3.msra.mxu0 %v1750_v63 }
 0xb71   : > { %7324 = vmatprep.subr.mxu0 %v8182_v1 }
 0xb72   : > { %v1531_v5 = vadd.f32 %v1530_v3, %v1529_v0  ;;  %7325 = vmatpush3.msra.mxu0 %v1749_v2 }
 0xb73   : > { %7326 = vmatprep.subr.mxu0 %v8182_v1 }
 0xb74   : > { %v1532_v7 = vrot.slane %v1531_v5, 2  ;;  %7327 = vmatpush3.msra.mxu0 %v1748_v4 }
 0xb75   : > { %7329 = vmatmul.mubr.msk.f32.vlgmr.msra.gmra.mxu0 %vm165_vm1, %v6557_v6  ;;  %7378 = vmatprep.subr.mxu0 %v8182_v1  ;;  %v1596_v6 = vld [vmem:[%s10454_s1 + $0x178] sm:$0xff] }
 0xb76   : > { %v1533_v8 = vadd.f32 %v1532_v7, %v1531_v5  ;;  %7331 = vmatprep.mubr.msk.f32.mxu0 %vm8183_vm0, %v8182_v1  ;;  %v1597_v5 = vld [vmem:[%s10454_s1 + $0x180] sm:$0xff]  ;;  %v1595_v7 = vld [vmem:[%s10454_s1 + $0x170] sm:$0xff] }
 0xb77   : > { %7296 = vmatpush3.xpose.msk.msra.mxu1 %vm614_vm3, %v1597_v5  ;;  %v1993_v5 = vld [vmem:[%s10454_s1 + $0x42] sm:$0xff] }
 0xb78   : > { %v1534_v10 = vrot.slane %v1533_v8, 1  ;;  %7297 = vmatprep.subr.mxu1 %v8182_v1 }
 0xb79   : > { %7332 = vmatmul.mubr.msk.f32.gmra.mxu0 %vm165_vm1, %v6558_v9 }
 0xb7a   : > { %v1535_v11 = vadd.f32 %v1534_v10, %v1533_v8  ;;  %7334 = vmatprep.mubr.msk.f32.mxu0 %vm8183_vm0, %v8182_v1  ;;  %v1594_v8 = vld [vmem:[%s10454_s1 + $0x168] sm:$0xff] }
 0xb7b   : > { %7298 = vmatpush3.xpose.msk.msra.mxu1 %vm614_vm3, %v1596_v6  ;;  %v1998_v6 = vld [vmem:[%s10454_s1 + $0x6a] sm:$0xff] }
 0xb7c   : > { %8003 = vpush %v1535_v11  ;;  %7299 = vmatprep.subr.mxu1 %v8182_v1 }
 0xb7d   : > { %7335 = vmatmul.mubr.msk.f32.gmra.mxu0 %vm165_vm1, %v6559_v12 }
 0xb7e   : > { %7337 = vmatprep.mubr.msk.f32.mxu0 %vm8183_vm0, %v8182_v1 }
 0xb7f   : > { %7300 = vmatpush3.xpose.msk.msra.mxu1 %vm614_vm3, %v1595_v7  ;;  %v1997_v7 = vld [vmem:[%s10454_s1 + $0x62] sm:$0xff] }
 0xb80   : > { %7301 = vmatprep.subr.mxu1 %v8182_v1 }
 0xb81   : > { %7338 = vmatmul.mubr.msk.f32.gmra.mxu0 %vm165_vm1, %v6560_v13 }
 0xb82   : > { %7340 = vmatprep.mubr.msk.f32.mxu0 %vm8183_vm0, %v8182_v1 }
 0xb83   : > { %7302 = vmatpush3.xpose.msk.msra.mxu1 %vm614_vm3, %v1594_v8 }
 0xb84   : > { %7349 = vmatprep.subr.mxu1 %v8182_v1 }
 0xb85   : > { %7341 = vmatmul.mubr.msk.f32.gmra.mxu0 %vm165_vm1, %v6561_v14 }
 0xb86   : > { %7343 = vmatprep.mubr.msk.f32.mxu0 %vm8183_vm0, %v8182_v1 }
 0xb89   : > { %7344 = vmatmul.mubr.msk.f32.gmra.mxu0 %vm165_vm1, %v6562_v15 }
 0xb8a   : > { %7346 = vmatprep.mubr.msk.f32.mxu0 %vm8183_vm0, %v8182_v1 }
 0xb8d   : > { %7347 = vmatmul.mubr.msk.f32.gmra.mxu0 %vm165_vm1, %v6563_v16 }
 0xb8e   : > { %7386 = vmatprep.mubr.msk.f32.mxu0 %vm8183_vm0, %v8182_v1 }
 0xbad   : > { %s8004_s14 = spop %8003 }
 0xbae   : > { %s1537_s15 = smul.f32 0.0013586957, %s8004_s14 }
 0xbb0   : > { %v1538_v17 = vstv %s1537_s15 }
 0xbb1   : > { %v8732_v18 = vsub.f32 %v8599_v55, %v1538_v17  ;;  %v8735_v19 = vsub.f32 %v8601_v58, %v1538_v17  ;;  %v8741_v21 = vsub.f32 %v8607_v61, %v1538_v17 }
 0xbb3   : > { %v1542_v20 = vmul.f32 %v8732_v18, %v8732_v18  ;;  %v1543_v22 = vmul.f32 %v8735_v19, %v8735_v19  ;;  %v1544_v55 = vmul.f32 %v8741_v21, %v8741_v21 }
 0xbb5   : > { %1548 = vrot.lane.b32.xlu0 %v1542_v20, %s8184_s28 }
 0xbb9   : > { %1550 = vrot.lane.b32.xlu0 %v1543_v22, %s8184_s28 }
 0xbbd   : > { %1552 = vrot.lane.b32.xlu0 %v1544_v55, %s8184_s28 }
 0xc25   : > { %v8749_v58 = vpop.f32.mrf.mxu0 }
 0xc27   : > { %v1549_v23 = vpop.permute.xlu0 %1548  ;;  %v7288_v24 = vpop.f32.mrf.mxu0 }
 0xc28   : > { %v1557_v29 = vsel %vm614_vm3, %v1549_v23, 0.0 }
 0xc29   : > { %v8751_v25 = vpop.f32.mrf.mxu0 }
 0xc2b   : > { %v1551_v26 = vpop.permute.xlu0 %1550  ;;  %v7291_v27 = vpop.f32.mrf.mxu0 }
 0xc2c   : > { %v1558_v61 = vsel %vm614_vm3, %v1551_v26, 0.0 }
 0xc2d   : > { %v8754_v28 = vpop.f32.mrf.mxu0  ;;  %v1559_v30 = vadd.f32 %v1558_v61, %v1557_v29 }
 0xc2f   : > { %v1553_v31 = vpop.permute.xlu0 %1552  ;;  %v7294_v32 = vpop.f32.mrf.mxu0 }
 0xc30   : > { %v1560_v33 = vsel %vm1305_vm6, %v1553_v31, 0.0 }
 0xc31   : > { %v1561_v34 = vadd.f32 %v1560_v33, %v1559_v30 }
 0xc33   : > { %1562 = vadd.xlane.f32.xlu0 %v1561_v34 }
 0xc35   : > { %v8758_v35 = vpop.f32.mrf.mxu0 }
 0xc37   : > { %v7330_v36 = vpop.f32.mrf.mxu0 }
 0xc39   : > { %v8760_v37 = vpop.f32.mrf.mxu0 }
 0xc3a   : > { %v1879_v38 = vadd.f32 %v8760_v37, %v8758_v35 }
 0xc3b   : > { %v7333_v39 = vpop.f32.mrf.mxu0 }
 0xc3d   : > { %v1853_v40 = vpop.f32.mrf.mxu0 }
 0xc3e   : > { %v1880_v41 = vadd.f32 %v1879_v38, %v1853_v40 }
 0xc3f   : > { %v7336_v42 = vpop.f32.mrf.mxu0 }
 0xc41   : > { %v1858_v44 = vpop.f32.mrf.mxu0 }
 0xc42   : > { %v1881_v45 = vadd.f32 %v1880_v41, %v1858_v44 }
 0xc43   : > { %v7339_v46 = vpop.f32.mrf.mxu0 }
 0xc45   : > { %v1863_v48 = vpop.f32.mrf.mxu0 }
 0xc46   : > { %v1882_v49 = vadd.f32 %v1881_v45, %v1863_v48 }
 0xc47   : > { %v7342_v50 = vpop.f32.mrf.mxu0 }
 0xc49   : > { %v1868_v51 = vpop.f32.mrf.mxu0 }
 0xc4a   : > { %v1883_v52 = vadd.f32 %v1882_v49, %v1868_v51 }
 0xc4b   : > { %v7345_v53 = vpop.f32.mrf.mxu0 }
 0xc4d   : > { %v1873_v54 = vpop.f32.mrf.mxu0 }
 0xc4e   : > { %v1884_v57 = vsel %vm294_vm2, %v1873_v54, 0.0 }
 0xc4f   : > { %v1885_v59 = vadd.f32 %v1884_v57, %v1883_v52  ;;  %v7348_v56 = vpop.f32.mrf.mxu0 }
 0xc51   : > { %1886 = vadd.xlane.f32.xlu1 %v1885_v59 }
 0xcbc   : > { %v1563_v60 = vpop.xlane.xlu0 %1562 }
 0xcbd   : > { %v1564_v62 = vrot.slane %v1563_v60, 4 }
 0xcbf   : > { %v1565_v63 = vadd.f32 %v1564_v62, %v1563_v60 }
 0xcc1   : > { %v1566_v0 = vrot.slane %v1565_v63, 2 }
 0xcc3   : > { %v1567_v2 = vadd.f32 %v1566_v0, %v1565_v63 }
 0xcc5   : > { %v1568_v3 = vrot.slane %v1567_v2, 1 }
 0xcc7   : > { %v1569_v4 = vadd.f32 %v1568_v3, %v1567_v2  ;;  %v2000_v2 = vld [vmem:[%s10454_s1 + $0x7a] sm:$0xff]  ;;  %v1994_v3 = vld [vmem:[%s10454_s1 + $0x4a] sm:$0xff] }
 0xcc9   : > { %8005 = vpush %v1569_v4  ;;  %v1999_v4 = vld [vmem:[%s10454_s1 + $0x72] sm:$0xff] }
 0xcda   : > { %v1887_v9 = vpop.xlane.xlu1 %1886 }
 0xcdb   : > { %v1888_v10 = vrot.slane %v1887_v9, 4 }
 0xcdd   : > { %v1889_v11 = vadd.f32 %v1888_v10, %v1887_v9  ;;  %v6571_v10 = vld [vmem:[%s10454_s1 + $0x40] ss:$0 sm:$0xff] }
 0xcdf   : > { %v1890_v13 = vrot.slane %v1889_v11, 2 }
 0xce1   : > { %v1891_v14 = vadd.f32 %v1890_v13, %v1889_v11 }
 0xce3   : > { %v1892_v15 = vrot.slane %v1891_v14, 1 }
 0xce5   : > { %v1893_v17 = vadd.f32 %v1892_v15, %v1891_v14 }
 0xcfa   : > { %s8006_s24 = spop %8005 }
 0xcfb   : > { %s1571_s25 = smul.f32 0.0013586957, %s8006_s24 }
 0xcfd   : > { %s1572_s26 = sadd.f32 1e-05, %s1571_s25 }
 0xcff   : > { %v1573_v12 = vstv %s1572_s26 }
 0xd00   : > { %8124 = vrsqrt.f32 %v1573_v12 }
 0xd0d   : > { %v8125_v16 = vpop.eup %8124 }
 0xd0e   : > { %8007 = vpush %v8125_v16  ;;  %v6572_v16 = vld [vmem:[%s10454_s1 + $0x41] ss:$0 sm:$0xff] }
 0xd0f   : > { %8009 = vpush %v1893_v17 }
 0xd3f   : > { %s8008_s27 = spop %8007 }
 0xd40   : > { %v1576_v20 = vstv %s8008_s27  ;;  %s8010_s30 = spop %8009 }
 0xd41   : > { %v1577_v22 = vmul.f32 %v1576_v20, %v8732_v18  ;;  %s8786_s3 = smul.f32 0.00015394088, %s8010_s30  ;;  %v1579_v49 = vmul.f32 %v1576_v20, %v8741_v21 }
 0xd43   : > { %v1584_v55 = vmul.f32 %v8649_v43, %v1577_v22  ;;  %v1896_v23 = vstv %s8786_s3  ;;  %s1927_s22 = smul.f32 32.0, %s8786_s3 }
 0xd44   : > { %v8791_v24 = vsub.f32 %v8758_v35, %v1896_v23  ;;  %v8794_v26 = vsub.f32 %v8760_v37, %v1896_v23  ;;  %v8796_v27 = vsub.f32 %v1853_v40, %v1896_v23  ;;  %v8799_v29 = vsub.f32 %v1858_v44, %v1896_v23 }
 0xd45   : > { %v1591_v61 = vadd.f32 %v8654_v47, %v1584_v55  ;;  %v8806_v31 = vsub.f32 %v1863_v48, %v1896_v23  ;;  %v8810_v34 = vsub.f32 %v1873_v54, %v1896_v23  ;;  %v8812_v35 = vsub.f32 %v1868_v51, %v1896_v23  ;;  %v1996_v54 = vld [vmem:[%s10454_s1 + $0x5a] sm:$0xff]  ;;  %s1928_s23 = smul.f32 %s1927_s22, %s8786_s3 }
 0xd46   : > { %v1904_v18 = vmul.f32 %v8791_v24, %v8791_v24  ;;  %v1905_v30 = vmul.f32 %v8794_v26, %v8794_v26  ;;  %v1906_v32 = vmul.f32 %v8796_v27, %v8796_v27  ;;  %v1907_v36 = vmul.f32 %v8799_v29, %v8799_v29  ;;  %7379 = vmatpush3.xpose.msra.mxu0 %v1996_v54 }
 0xd47   : > { %1601 = vrot.lane.b32.xlu0 %v1591_v61, %s8184_s28  ;;  %v1908_v38 = vmul.f32 %v8806_v31, %v8806_v31  ;;  %v1910_v40 = vmul.f32 %v8810_v34, %v8810_v34  ;;  %v1909_v41 = vmul.f32 %v8812_v35, %v8812_v35  ;;  %v1578_v48 = vmul.f32 %v1576_v20, %v8735_v19  ;;  %v1995_v19 = vld [vmem:[%s10454_s1 + $0x52] sm:$0xff] }
 0xd48   : > { %v1911_v33 = vadd.f32 %v1905_v30, %v1904_v18  ;;  %v1586_v51 = vmul.f32 %v8649_v43, %v1579_v49  ;;  %7380 = vmatprep.subr.mxu0 %v8182_v1 }
 0xd49   : > { %v1916_v45 = vsel %vm294_vm2, %v1910_v40, 0.0  ;;  %v1585_v50 = vmul.f32 %v8649_v43, %v1578_v48 }
 0xd4a   : > { %v1912_v37 = vadd.f32 %v1911_v33, %v1906_v32  ;;  %v1593_v53 = vadd.f32 %v8654_v47, %v1586_v51  ;;  %7381 = vmatpush3.xpose.msra.mxu0 %v1995_v19 }
 0xd4b   : > { %v1592_v52 = vadd.f32 %v8654_v47, %v1585_v50  ;;  %7382 = vmatprep.subr.mxu0 %v8182_v1 }
 0xd4c   : > { %v1913_v39 = vadd.f32 %v1912_v37, %v1907_v36 }
 0xd4e   : > { %v1914_v42 = vadd.f32 %v1913_v39, %v1908_v38  ;;  %7383 = vmatpush3.xpose.msra.mxu0 %v1994_v3 }
 0xd4f   : > { %7384 = vmatprep.subr.mxu0 %v8182_v1 }
 0xd50   : > { %v1915_v44 = vadd.f32 %v1914_v42, %v1909_v41 }
 0xd52   : > { %v1917_v46 = vadd.f32 %v1916_v45, %v1915_v44  ;;  %7385 = vmatpush3.xpose.msra.mxu0 %v1993_v5 }
 0xd53   : > { %7441 = vmatprep.subr.mxu0 %v8182_v1 }
 0xd54   : > { %1918 = vadd.xlane.f32.xlu1 %v1917_v46 }
 0xd65   : > { %1603 = vrot.lane.b32.xlu1 %v1592_v52, %s8184_s28 }
 0xd69   : > { %1605 = vrot.lane.b32.xlu1 %v1593_v53, %s8184_s28 }
 0xdb9   : > { %v1602_v43 = vpop.permute.xlu0 %1601 }
 0xdba   : > { %7304 = vmatmul.mubr.msk.f32.vlgmr.msra.gmra.mxu1 %vm614_vm3, %v1602_v43 }
 0xdbb   : > { %7306 = vmatprep.mubr.msk.f32.mxu1 %vm8183_vm0, %v8182_v1  ;;  %7350 = vmatpush3.xpose.msra.mxu1 %v2000_v2 }
 0xdbc   : > { %7351 = vmatprep.subr.mxu1 %v8182_v1 }
 0xdbf   : > { %7352 = vmatpush3.xpose.msra.mxu1 %v1999_v4 }
 0xdc0   : > { %7353 = vmatprep.subr.mxu1 %v8182_v1 }
 0xdc3   : > { %7354 = vmatpush3.xpose.msra.mxu1 %v1998_v6 }
 0xdc4   : > { %7355 = vmatprep.subr.mxu1 %v8182_v1 }
 0xdc7   : > { %7356 = vmatpush3.xpose.msra.mxu1 %v1997_v7 }
 0xdc8   : > { %7407 = vmatprep.subr.mxu1 %v8182_v1 }
 0xddd   : > { %v1919_v47 = vpop.xlane.xlu1 %1918 }
 0xdde   : > { %v1920_v21 = vrot.slane %v1919_v47, 4 }
 0xde0   : > { %v1921_v57 = vadd.f32 %v1920_v21, %v1919_v47 }
 0xde1   : > { %v1604_v59 = vpop.permute.xlu1 %1603 }
 0xde2   : > { %v1922_v56 = vrot.slane %v1921_v57, 2  ;;  %7307 = vmatmul.mubr.msk.f32.gmra.mxu1 %vm614_vm3, %v1604_v59 }
 0xde3   : > { %7309 = vmatprep.mubr.msk.f32.mxu1 %vm8183_vm0, %v8182_v1 }
 0xde4   : > { %v1923_v60 = vadd.f32 %v1922_v56, %v1921_v57 }
 0xde5   : > { %v1606_v62 = vpop.permute.xlu1 %1605 }
 0xde6   : > { %7310 = vmatmul.mubr.msk.f32.gmra.mxu1 %vm614_vm3, %v1606_v62  ;;  %v1924_v63 = vrot.slane %v1923_v60, 1 }
 0xde7   : > { %7357 = vmatprep.mubr.msk.f32.mxu1 %vm8183_vm0, %v8182_v1 }
 0xde8   : > { %v1925_v0 = vadd.f32 %v1924_v63, %v1923_v60 }
 0xdea   : > { %8011 = vpush %v1925_v0 }
 0xe1b   : > { %s8012_s24 = spop %8011 }
 0xe1c   : > { %s1929_s25 = ssub.f32 %s8012_s24, %s1928_s23 }
 0xe1e   : > { %s1930_s26 = smul.f32 0.00015394088, %s1929_s25 }
 0xe20   : > { %s1931_s27 = sadd.f32 1e-05, %s1930_s26 }
 0xe22   : > { %v1932_v8 = vstv %s1931_s27 }
 0xe23   : > { %8126 = vrsqrt.f32 %v1932_v8 }
 0xe30   : > { %v8127_v9 = vpop.eup %8126 }
 0xe31   : > { %8013 = vpush %v8127_v9 }
 0xe62   : > { %s8014_s30 = spop %8013 }
 0xe63   : > { %v1935_v11 = vstv %s8014_s30 }
 0xe64   : > { %v1936_v12 = vmul.f32 %v1935_v11, %v8791_v24  ;;  %v1937_v13 = vmul.f32 %v1935_v11, %v8794_v26  ;;  %v1938_v14 = vmul.f32 %v1935_v11, %v8796_v27  ;;  %v1939_v15 = vmul.f32 %v1935_v11, %v8799_v29 }
 0xe65   : > { %v1940_v17 = vmul.f32 %v1935_v11, %v8806_v31  ;;  %v1941_v20 = vmul.f32 %v1935_v11, %v8812_v35  ;;  %v1942_v22 = vmul.f32 %v1935_v11, %v8810_v34 }
 0xe66   : > { %v1947_v55 = vmul.f32 %v6571_v10, %v1936_v12  ;;  %v1948_v23 = vmul.f32 %v6571_v10, %v1937_v13  ;;  %v1949_v61 = vmul.f32 %v6571_v10, %v1938_v14  ;;  %v1950_v24 = vmul.f32 %v6571_v10, %v1939_v15 }
 0xe67   : > { %v1951_v18 = vmul.f32 %v6571_v10, %v1940_v17  ;;  %v1952_v26 = vmul.f32 %v6571_v10, %v1941_v20  ;;  %v1953_v30 = vmul.f32 %v6571_v10, %v1942_v22 }
 0xe68   : > { %v1958_v27 = vadd.f32 %v6572_v16, %v1947_v55  ;;  %v1959_v32 = vadd.f32 %v6572_v16, %v1948_v23  ;;  %v1960_v29 = vadd.f32 %v6572_v16, %v1949_v61  ;;  %v1961_v33 = vadd.f32 %v6572_v16, %v1950_v24 }
 0xe69   : > { %v1962_v36 = vadd.f32 %v6572_v16, %v1951_v18  ;;  %v1963_v37 = vadd.f32 %v6572_v16, %v1952_v26  ;;  %v1964_v38 = vadd.f32 %v6572_v16, %v1953_v30 }
 0xe6a   : > { %v1965_v39 = vmax.f32 %v1958_v27, 0.0  ;;  %v1966_v31 = vmax.f32 %v1959_v32, 0.0  ;;  %v1967_v40 = vmax.f32 %v1960_v29, 0.0  ;;  %v1968_v35 = vmax.f32 %v1961_v33, 0.0 }
 0xe6b   : > { %v1969_v41 = vmax.f32 %v1962_v36, 0.0  ;;  %v1970_v34 = vmax.f32 %v1963_v37, 0.0  ;;  %v1971_v42 = vmax.f32 %v1964_v38, 0.0 }
 0xe6c   : > { %1972 = vst [vmem:[#allocation2] sm:$0xff] %v1965_v39  ;;  %1973 = vst [vmem:[#allocation2 + $0x8] sm:$0xff] %v1966_v31  ;;  %7387 = vmatmul.mubr.f32.vlgmr.msra.gmra.mxu0 %v1965_v39 }
 0xe6d   : > { %1974 = vst [vmem:[#allocation2 + $0x10] sm:$0xff] %v1967_v40  ;;  %1975 = vst [vmem:[#allocation2 + $0x18] sm:$0xff] %v1968_v35  ;;  %7389 = vmatprep.mubr.msk.f32.mxu0 %vm8183_vm0, %v8182_v1 }
 0xe6e   : > { %1976 = vst [vmem:[#allocation2 + $0x20] sm:$0xff] %v1969_v41  ;;  %1977 = vst [vmem:[#allocation2 + $0x28] sm:$0xff] %v1970_v34 }
 0xe6f   : > { %1978 = vst [vmem:[#allocation2 + $0x30] sm:$0x7] %v1971_v42 }
 0xe70   : > { %7390 = vmatmul.mubr.f32.gmra.mxu0 %v1966_v31 }
 0xe71   : > { %7392 = vmatprep.mubr.msk.f32.mxu0 %vm8183_vm0, %v8182_v1 }
 0xe73   : > { %v1986_v44 = vld [vmem:[#allocation2 + $0x1] sm:$0xff] }
 0xe74   : > { %7358 = vmatmul.mubr.f32.vlgmr.msra.gmra.mxu1 %v1986_v44  ;;  %7393 = vmatmul.mubr.f32.gmra.mxu0 %v1967_v40  ;;  %v1987_v45 = vld [vmem:[#allocation2 + $0x9] sm:$0xff]  ;;  %v1988_v48 = vld [vmem:[#allocation2 + $0x11] sm:$0xff] }
 0xe75   : > { %7360 = vmatprep.mubr.msk.f32.mxu1 %vm8183_vm0, %v8182_v1  ;;  %7395 = vmatprep.mubr.msk.f32.mxu0 %vm8183_vm0, %v8182_v1  ;;  %v1989_v50 = vld [vmem:[#allocation2 + $0x19] sm:$0xff]  ;;  %v1990_v51 = vld [vmem:[#allocation2 + $0x21] sm:$0xff] }
 0xe76   : > { %v1985_v52 = vld [vmem:[#allocation2 + $0x30] sm:$0x1]  ;;  %v1992_v54 = vld [vmem:[#allocation2 + $0x31] sm:$0x1] }
 0xe77   : > { %v1991_v53 = vld [vmem:[#allocation2 + $0x29] sm:$0xff] }
 0xe78   : > { %7361 = vmatmul.mubr.f32.gmra.mxu1 %v1987_v45  ;;  %7396 = vmatmul.mubr.f32.gmra.mxu0 %v1968_v35 }
 0xe79   : > { %7363 = vmatprep.mubr.msk.f32.mxu1 %vm8183_vm0, %v8182_v1  ;;  %7398 = vmatprep.mubr.msk.f32.mxu0 %vm8183_vm0, %v8182_v1 }
 0xe7a   : > { %v8899_v46 = vpop.f32.mrf.mxu1 }
 0xe7c   : > { %7364 = vmatmul.mubr.f32.gmra.mxu1 %v1988_v48  ;;  %v7305_v49 = vpop.f32.mrf.mxu1  ;;  %7399 = vmatmul.mubr.f32.gmra.mxu0 %v1969_v41 }
 0xe7d   : > { %7366 = vmatprep.mubr.msk.f32.mxu1 %vm8183_vm0, %v8182_v1  ;;  %7401 = vmatprep.mubr.msk.f32.mxu0 %vm8183_vm0, %v8182_v1 }
 0xe80   : > { %7367 = vmatmul.mubr.f32.gmra.mxu1 %v1989_v50  ;;  %7402 = vmatmul.mubr.f32.gmra.mxu0 %v1970_v34 }
 0xe81   : > { %7369 = vmatprep.mubr.msk.f32.mxu1 %vm8183_vm0, %v8182_v1  ;;  %7404 = vmatprep.mubr.msk.f32.mxu0 %vm8183_vm0, %v8182_v1 }
 0xe84   : > { %7370 = vmatmul.mubr.f32.gmra.mxu1 %v1990_v51  ;;  %7405 = vmatmul.mubr.f32.gmra.mxu0 %v1985_v52 }
 0xe85   : > { %7372 = vmatprep.mubr.msk.f32.mxu1 %vm8183_vm0, %v8182_v1  ;;  %7449 = vmatprep.mubr.msk.f32.mxu0 %vm8183_vm0, %v8182_v1 }
 0xe88   : > { %7373 = vmatmul.mubr.f32.gmra.mxu1 %v1991_v53 }
 0xe89   : > { %7375 = vmatprep.mubr.msk.f32.mxu1 %vm8183_vm0, %v8182_v1 }
 0xe8c   : > { %7376 = vmatmul.mubr.f32.gmra.mxu1 %v1992_v54 }
 0xe8d   : > { %7415 = vmatprep.mubr.msk.f32.mxu1 %vm8183_vm0, %v8182_v1 }
 0xea2   : > { %v8917_v19 = vpop.f32.mrf.mxu1 }
 0xea4   : > { %v7308_v43 = vpop.f32.mrf.mxu1 }
 0xea6   : > { %v8919_v47 = vpop.f32.mrf.mxu1 }
 0xea8   : > { %v7311_v21 = vpop.f32.mrf.mxu1 }
 0xf2c   : > { %v2167_v57 = vpop.f32.mrf.mxu0 }
 0xf2e   : > { %v7388_v59 = vpop.f32.mrf.mxu0 }
 0xf30   : > { %v2172_v56 = vpop.f32.mrf.mxu0 }
 0xf32   : > { %v7391_v60 = vpop.f32.mrf.mxu0 }
 0xf34   : > { %v2067_v62 = vpop.f32.mrf.mxu1  ;;  %v2177_v63 = vpop.f32.mrf.mxu0 }
 0xf35   : > { %v2168_v14 = vadd.f32 %v2167_v57, %v2067_v62 }
 0xf36   : > { %v7359_v0 = vpop.f32.mrf.mxu1  ;;  %v7394_v2 = vpop.f32.mrf.mxu0 }
 0xf37   : > { %v2203_v61 = vsel %vm614_vm3, %v2168_v14, 0.0 }
 0xf38   : > { %v2072_v3 = vpop.f32.mrf.mxu1  ;;  %v2182_v4 = vpop.f32.mrf.mxu0 }
 0xf39   : > { %v2173_v11 = vadd.f32 %v2172_v56, %v2072_v3 }
 0xf3a   : > { %v7362_v5 = vpop.f32.mrf.mxu1  ;;  %v7397_v6 = vpop.f32.mrf.mxu0 }
 0xf3b   : > { %v2204_v20 = vsel %vm614_vm3, %v2173_v11, 0.0 }
 0xf3c   : > { %v2077_v7 = vpop.f32.mrf.mxu1  ;;  %v2187_v8 = vpop.f32.mrf.mxu0  ;;  %v2205_v26 = vadd.f32 %v2204_v20, %v2203_v61  ;;  %v2324_v61 = vld [vmem:[%s10454_s1 + $0xb4] sm:$0xff] }
 0xf3d   : > { %v2178_v15 = vadd.f32 %v2177_v63, %v2077_v7 }
 0xf3e   : > { %v7365_v9 = vpop.f32.mrf.mxu1  ;;  %v7400_v10 = vpop.f32.mrf.mxu0 }
 0xf3f   : > { %v2206_v24 = vsel %vm614_vm3, %v2178_v15, 0.0 }
 0xf40   : > { %v2082_v12 = vpop.f32.mrf.mxu1  ;;  %v2192_v13 = vpop.f32.mrf.mxu0  ;;  %v2207_v29 = vadd.f32 %v2206_v24, %v2205_v26 }
 0xf41   : > { %v2183_v22 = vadd.f32 %v2182_v4, %v2082_v12 }
 0xf42   : > { %v7368_v16 = vpop.f32.mrf.mxu1  ;;  %v7403_v17 = vpop.f32.mrf.mxu0 }
 0xf43   : > { %v2208_v32 = vsel %vm614_vm3, %v2183_v22, 0.0 }
 0xf44   : > { %v2087_v55 = vpop.f32.mrf.mxu1  ;;  %v2197_v23 = vpop.f32.mrf.mxu0  ;;  %v2209_v38 = vadd.f32 %v2208_v32, %v2207_v29 }
 0xf45   : > { %v2188_v18 = vadd.f32 %v2187_v8, %v2087_v55 }
 0xf46   : > { %v7371_v30 = vpop.f32.mrf.mxu1  ;;  %v7406_v27 = vpop.f32.mrf.mxu0 }
 0xf47   : > { %v2210_v36 = vsel %vm614_vm3, %v2188_v18, 0.0 }
 0xf48   : > { %v2092_v33 = vpop.f32.mrf.mxu1  ;;  %v2211_v40 = vadd.f32 %v2210_v36, %v2209_v38  ;;  %v2322_v36 = vld [vmem:[%s10454_s1 + $0xa4] sm:$0xff]  ;;  %v2509_v38 = vld [vmem:[%s10454_s1 + $0xd4] sm:$0xff] }
 0xf49   : > { %v2193_v37 = vadd.f32 %v2192_v13, %v2092_v33  ;;  %v2323_v33 = vld [vmem:[%s10454_s1 + $0xac] sm:$0xff] }
 0xf4a   : > { %v7374_v39 = vpop.f32.mrf.mxu1 }
 0xf4b   : > { %v2212_v31 = vsel %vm614_vm3, %v2193_v37, 0.0  ;;  %v2508_v39 = vld [vmem:[%s10454_s1 + $0xcc] sm:$0xff] }
 0xf4c   : > { %v2097_v35 = vpop.f32.mrf.mxu1  ;;  %v2213_v42 = vadd.f32 %v2212_v31, %v2211_v40  ;;  %v2507_v31 = vld [vmem:[%s10454_s1 + $0xc4] sm:$0xff] }
 0xf4d   : > { %v2198_v41 = vadd.f32 %v2197_v23, %v2097_v35  ;;  %v2325_v23 = vld [vmem:[%s10454_s1 + $0xbc] sm:$0xff] }
 0xf4e   : > { %v7377_v34 = vpop.f32.mrf.mxu1  ;;  %7408 = vmatpush3.msra.mxu1 %v2325_v23  ;;  %v2607_v23 = vld [vmem:[%s10454_s1 + $0xec] sm:$0xff] }
 0xf4f   : > { %v2214_v44 = vsel %vm626_vm4, %v2198_v41, 0.0  ;;  %7409 = vmatprep.subr.mxu1 %v8182_v1 }
 0xf50   : > { %v2215_v45 = vadd.f32 %v2214_v44, %v2213_v42  ;;  %7410 = vmatpush3.msra.mxu1 %v2324_v61 }
 0xf51   : > { %7411 = vmatprep.subr.mxu1 %v8182_v1 }
 0xf52   : > { %2216 = vadd.xlane.f32.xlu1 %v2215_v45  ;;  %7412 = vmatpush3.msra.mxu1 %v2323_v33 }
 0xf53   : > { %7413 = vmatprep.subr.mxu1 %v8182_v1 }
 0xf54   : > { %7414 = vmatpush3.msra.mxu1 %v2322_v36 }
 0xf55   : > { %7424 = vmatprep.subr.mxu1 %v8182_v1 }
 0xfdb   : > { %v2217_v48 = vpop.xlane.xlu1 %2216 }
 0xfdc   : > { %v2218_v49 = vrot.slane %v2217_v48, 4 }
 0xfde   : > { %v2219_v50 = vadd.f32 %v2218_v49, %v2217_v48  ;;  %v6574_v49 = vld [vmem:[%s10454_s1 + $0x83] ss:$0 sm:$0xff] }
 0xfe0   : > { %v2220_v51 = vrot.slane %v2219_v50, 2 }
 0xfe2   : > { %v2221_v52 = vadd.f32 %v2220_v51, %v2219_v50 }
 0xfe4   : > { %v2222_v53 = vrot.slane %v2221_v52, 1 }
 0xfe6   : > { %v2223_v54 = vadd.f32 %v2222_v53, %v2221_v52 }
 0xfe8   : > { %8015 = vpush %v2223_v54 }
0x1019   : > { %s8016_s7 = spop %8015 }
0x101a   : > { %s2225_s8 = smul.f32 0.0006377551, %s8016_s7 }
0x101c   : > { %v2226_v43 = vstv %s2225_s8 }
0x101d   : > { %v8928_v21 = vsub.f32 %v2168_v14, %v2226_v43  ;;  %v8930_v57 = vsub.f32 %v2173_v11, %v2226_v43  ;;  %v8932_v59 = vsub.f32 %v2178_v15, %v2226_v43  ;;  %v8934_v56 = vsub.f32 %v2183_v22, %v2226_v43 }
0x101e   : > { %v8936_v60 = vsub.f32 %v2188_v18, %v2226_v43  ;;  %v8944_v2 = vsub.f32 %v2193_v37, %v2226_v43  ;;  %v2233_v7 = vsub.f32 %v2198_v41, %v2226_v43  ;;  %v2510_v37 = vld [vmem:[%s10454_s1 + $0xdc] sm:$0xff] }
0x101f   : > { %v2234_v62 = vmul.f32 %v8928_v21, %v8928_v21  ;;  %v2235_v63 = vmul.f32 %v8930_v57, %v8930_v57  ;;  %v2236_v0 = vmul.f32 %v8932_v59, %v8932_v59  ;;  %v2237_v3 = vmul.f32 %v8934_v56, %v8934_v56  ;;  %7442 = vmatpush3.msra.mxu0 %v2510_v37  ;;  %v6573_v41 = vld [vmem:[%s10454_s1 + $0x82] ss:$0 sm:$0xff] }
0x1020   : > { %v2238_v8 = vmul.f32 %v8936_v60, %v8936_v60  ;;  %v2239_v11 = vmul.f32 %v8944_v2, %v8944_v2  ;;  %v2240_v14 = vmul.f32 %v2233_v7, %v2233_v7  ;;  %7443 = vmatprep.subr.mxu0 %v8182_v1 }
0x1021   : > { %v2241_v4 = vsel %vm614_vm3, %v2234_v62, 0.0  ;;  %v2242_v5 = vsel %vm614_vm3, %v2235_v63, 0.0  ;;  %v2244_v9 = vsel %vm614_vm3, %v2236_v0, 0.0  ;;  %v2246_v12 = vsel %vm614_vm3, %v2237_v3, 0.0  ;;  %7444 = vmatpush3.msra.mxu0 %v2509_v38 }
0x1022   : > { %v2243_v6 = vadd.f32 %v2242_v5, %v2241_v4  ;;  %v2248_v15 = vsel %vm614_vm3, %v2238_v8, 0.0  ;;  %v2250_v17 = vsel %vm614_vm3, %v2239_v11, 0.0  ;;  %v2252_v22 = vsel %vm626_vm4, %v2240_v14, 0.0  ;;  %7445 = vmatprep.subr.mxu0 %v8182_v1  ;;  %v2317_v11 = vld [vmem:[%s10454_s1 + $0x94] sm:$0xff]  ;;  %v2316_v14 = vld [vmem:[%s10454_s1 + $0x8c] sm:$0xff] }
0x1023   : > { %7446 = vmatpush3.msra.mxu0 %v2508_v39 }
0x1024   : > { %v2245_v10 = vadd.f32 %v2244_v9, %v2243_v6  ;;  %7447 = vmatprep.subr.mxu0 %v8182_v1 }
0x1025   : > { %7448 = vmatpush3.msra.mxu0 %v2507_v31 }
0x1026   : > { %v2247_v13 = vadd.f32 %v2246_v12, %v2245_v10  ;;  %7475 = vmatprep.subr.mxu0 %v8182_v1 }
0x1028   : > { %v2249_v16 = vadd.f32 %v2248_v15, %v2247_v13  ;;  %v2315_v15 = vld [vmem:[%s10454_s1 + $0x84] sm:$0xff] }
0x102a   : > { %v2251_v20 = vadd.f32 %v2250_v17, %v2249_v16 }
0x102c   : > { %v2253_v55 = vadd.f32 %v2252_v22, %v2251_v20  ;;  %v2609_v20 = vld [vmem:[%s10454_s1 + $0xfc] sm:$0xff] }
0x102e   : > { %2254 = vadd.xlane.f32.xlu0 %v2253_v55  ;;  %v2608_v55 = vld [vmem:[%s10454_s1 + $0xf4] sm:$0xff] }
0x10b7   : > { %v2255_v24 = vpop.xlane.xlu0 %2254 }
0x10b8   : > { %v2256_v18 = vrot.slane %v2255_v24, 4 }
0x10ba   : > { %v2257_v26 = vadd.f32 %v2256_v18, %v2255_v24  ;;  %v2606_v24 = vld [vmem:[%s10454_s1 + $0xe4] sm:$0xff] }
0x10bc   : > { %v2258_v30 = vrot.slane %v2257_v26, 2 }
0x10be   : > { %v2259_v27 = vadd.f32 %v2258_v30, %v2257_v26 }
0x10c0   : > { %v2260_v32 = vrot.slane %v2259_v27, 1 }
0x10c2   : > { %v2261_v29 = vadd.f32 %v2260_v32, %v2259_v27 }
0x10c4   : > { %8017 = vpush %v2261_v29 }
0x10f5   : > { %s8018_s27 = spop %8017 }
0x10f6   : > { %s2263_s30 = smul.f32 0.0006377551, %s8018_s27 }
0x10f8   : > { %s2264_s4 = sadd.f32 1e-05, %s2263_s30 }
0x10fa   : > { %v2265_v40 = vstv %s2264_s4 }
0x10fb   : > { %8128 = vrsqrt.f32 %v2265_v40 }
0x1108   : > { %v8129_v35 = vpop.eup %8128 }
0x1109   : > { %8019 = vpush %v8129_v35 }
0x113a   : > { %s8020_s6 = spop %8019 }
0x113b   : > { %v2268_v34 = vstv %s8020_s6 }
0x113c   : > { %v2269_v42 = vmul.f32 %v2268_v34, %v8928_v21  ;;  %v2270_v44 = vmul.f32 %v2268_v34, %v8930_v57  ;;  %v2271_v45 = vmul.f32 %v2268_v34, %v8932_v59  ;;  %v2272_v48 = vmul.f32 %v2268_v34, %v8934_v56 }
0x113d   : > { %v2273_v50 = vmul.f32 %v2268_v34, %v8936_v60  ;;  %v2274_v51 = vmul.f32 %v2268_v34, %v8944_v2  ;;  %v2318_v2 = vld [vmem:[%s10454_s1 + $0x9c] sm:$0xff] }
0x113e   : > { %v2280_v52 = vmul.f32 %v6573_v41, %v2269_v42  ;;  %v2281_v53 = vmul.f32 %v6573_v41, %v2270_v44  ;;  %v2282_v54 = vmul.f32 %v6573_v41, %v2271_v45  ;;  %v2283_v43 = vmul.f32 %v6573_v41, %v2272_v48 }
0x113f   : > { %v2284_v62 = vmul.f32 %v6573_v41, %v2273_v50  ;;  %v2285_v21 = vmul.f32 %v6573_v41, %v2274_v51 }
0x1140   : > { %v2291_v63 = vadd.f32 %v6574_v49, %v2280_v52  ;;  %v2292_v57 = vadd.f32 %v6574_v49, %v2281_v53  ;;  %v2293_v0 = vadd.f32 %v6574_v49, %v2282_v54  ;;  %v2294_v59 = vadd.f32 %v6574_v49, %v2283_v43 }
0x1141   : > { %v2295_v3 = vadd.f32 %v6574_v49, %v2284_v62  ;;  %v2296_v56 = vadd.f32 %v6574_v49, %v2285_v21 }
0x1142   : > { %v2298_v4 = vmax.f32 %v2291_v63, 0.0  ;;  %v2299_v5 = vmax.f32 %v2292_v57, 0.0  ;;  %v2300_v6 = vmax.f32 %v2293_v0, 0.0  ;;  %v2301_v7 = vmax.f32 %v2294_v59, 0.0 }
0x1143   : > { %v2302_v8 = vmax.f32 %v2295_v3, 0.0  ;;  %v2303_v60 = vmax.f32 %v2296_v56, 0.0 }
0x1144   : > { %2305 = vst.msk [vmem:[#allocation3] sm:$0xff] %vm614_vm3, %v2298_v4  ;;  %2306 = vst.msk [vmem:[#allocation3 + $0x8] sm:$0xff] %vm614_vm3, %v2299_v5 }
0x1145   : > { %2307 = vst.msk [vmem:[#allocation3 + $0x10] sm:$0xff] %vm614_vm3, %v2300_v6  ;;  %2308 = vst.msk [vmem:[#allocation3 + $0x18] sm:$0xff] %vm614_vm3, %v2301_v7 }
0x1146   : > { %2309 = vst.msk [vmem:[#allocation3 + $0x20] sm:$0xff] %vm614_vm3, %v2302_v8  ;;  %2310 = vst.msk [vmem:[#allocation3 + $0x28] sm:$0xff] %vm614_vm3, %v2303_v60 }
0x114b   : > { %v2319_v9 = vld [vmem:[#allocation3 + $0x1] ss:$2 sm:$0xff]  ;;  %v2312_v22 = vld [vmem:[#allocation3] ss:$2 sm:$0xff] }
0x114c   : > { %v2504_v10 = vld [vmem:[#allocation3 + $0x2] ss:$2 sm:$0xff]  ;;  %7416 = vmatmul.mubr.msk.f32.vlgmr.msra.gmra.mxu1 %vm614_vm3, %v2319_v9  ;;  %v2320_v12 = vld [vmem:[#allocation3 + $0x11] ss:$2 sm:$0xff] }
0x114d   : > { %7450 = vmatmul.mubr.msk.f32.vlgmr.msra.gmra.mxu0 %vm614_vm3, %v2504_v10  ;;  %7425 = vmatpush3.msra.mxu1 %v2318_v2  ;;  %v2505_v13 = vld [vmem:[#allocation3 + $0x12] ss:$2 sm:$0xff]  ;;  %v2321_v16 = vld [vmem:[#allocation3 + $0x21] ss:$2 sm:$0x7f] }
0x114e   : > { %7418 = vmatprep.mubr.msk.f32.mxu1 %vm8183_vm0, %v8182_v1  ;;  %7426 = vmatprep.subr.mxu1 %v8182_v1  ;;  %v2506_v17 = vld [vmem:[#allocation3 + $0x22] ss:$2 sm:$0x7f]  ;;  %v2313_v61 = vld [vmem:[#allocation3 + $0x10] ss:$2 sm:$0xff] }
0x114f   : > { %7452 = vmatprep.mubr.msk.f32.mxu0 %vm8183_vm0, %v8182_v1  ;;  %7427 = vmatpush3.msra.mxu1 %v2317_v11  ;;  %v2314_v18 = vld [vmem:[#allocation3 + $0x20] ss:$2 sm:$0x7f]  ;;  %v2603_v26 = vld [vmem:[#allocation3 + $0x3] ss:$2 sm:$0xff] }
0x1150   : > { %7419 = vmatmul.mubr.msk.f32.gmra.mxu1 %vm614_vm3, %v2320_v12  ;;  %7428 = vmatprep.subr.mxu1 %v8182_v1  ;;  %v2604_v30 = vld [vmem:[#allocation3 + $0x13] ss:$2 sm:$0xff]  ;;  %v2605_v27 = vld [vmem:[#allocation3 + $0x23] ss:$2 sm:$0x7f] }
0x1151   : > { %7453 = vmatmul.mubr.msk.f32.gmra.mxu0 %vm614_vm3, %v2505_v13  ;;  %7421 = vmatprep.mubr.msk.f32.mxu1 %vm8183_vm0, %v8182_v1 }
0x1152   : > { %7429 = vmatpush3.msra.mxu1 %v2316_v14  ;;  %7455 = vmatprep.mubr.msk.f32.mxu0 %vm8183_vm0, %v8182_v1 }
0x1153   : > { %7430 = vmatprep.subr.mxu1 %v8182_v1 }
0x1154   : > { %7422 = vmatmul.mubr.msk.f32.gmra.mxu1 %vm614_vm3, %v2321_v16 }
0x1155   : > { %7456 = vmatmul.mubr.msk.f32.gmra.mxu0 %vm614_vm3, %v2506_v17  ;;  %7431 = vmatpush3.msra.mxu1 %v2315_v15 }
0x1156   : > { %7432 = vmatprep.mubr.msk.f32.mxu1 %vm8183_vm0, %v8182_v1  ;;  %7458 = vmatprep.subr.mxu1 %v8182_v1 }
0x1157   : > { %7491 = vmatprep.mubr.msk.f32.mxu0 %vm8183_vm0, %v8182_v1 }
0x1158   : > { %7433 = vmatmul.mubr.msk.f32.vlgmr.msra.gmra.mxu1 %vm614_vm3, %v2312_v22 }
0x1159   : > { %7459 = vmatpush3.msra.mxu1 %v2609_v20  ;;  %7435 = vmatprep.mubr.msk.f32.mxu1 %vm8183_vm0, %v8182_v1 }
0x115a   : > { %7460 = vmatprep.subr.mxu1 %v8182_v1 }
0x115b   : > { %7461 = vmatpush3.msra.mxu1 %v2608_v55 }
0x115c   : > { %7436 = vmatmul.mubr.msk.f32.gmra.mxu1 %vm614_vm3, %v2313_v61  ;;  %7462 = vmatprep.subr.mxu1 %v8182_v1 }
0x115d   : > { %7463 = vmatpush3.msra.mxu1 %v2607_v23  ;;  %7438 = vmatprep.mubr.msk.f32.mxu1 %vm8183_vm0, %v8182_v1 }
0x115e   : > { %7464 = vmatprep.subr.mxu1 %v8182_v1 }
0x115f   : > { %7465 = vmatpush3.msra.mxu1 %v2606_v24 }
0x1160   : > { %7439 = vmatmul.mubr.msk.f32.gmra.mxu1 %vm614_vm3, %v2314_v18  ;;  %7500 = vmatprep.subr.mxu1 %v8182_v1 }
0x1161   : > { %7466 = vmatprep.mubr.msk.f32.mxu1 %vm8183_vm0, %v8182_v1 }
0x1164   : > { %7467 = vmatmul.mubr.msk.f32.vlgmr.msra.gmra.mxu1 %vm614_vm3, %v2603_v26 }
0x1165   : > { %7469 = vmatprep.mubr.msk.f32.mxu1 %vm8183_vm0, %v8182_v1 }
0x1168   : > { %7470 = vmatmul.mubr.msk.f32.gmra.mxu1 %vm614_vm3, %v2604_v30 }
0x1169   : > { %7472 = vmatprep.mubr.msk.f32.mxu1 %vm8183_vm0, %v8182_v1 }
0x116c   : > { %7473 = vmatmul.mubr.msk.f32.gmra.mxu1 %vm614_vm3, %v2605_v27 }
0x116d   : > { %7508 = vmatprep.mubr.msk.f32.mxu1 %vm8183_vm0, %v8182_v1 }
0x120c   : > { %v2401_v32 = vpop.f32.mrf.mxu1 }
0x120d   : > { %v2586_v29 = vpop.f32.mrf.mxu0 }
0x120e   : > { %v7417_v33 = vpop.f32.mrf.mxu1 }
0x120f   : > { %v7451_v36 = vpop.f32.mrf.mxu0 }
0x1210   : > { %v2406_v37 = vpop.f32.mrf.mxu1 }
0x1211   : > { %v2591_v38 = vpop.f32.mrf.mxu0 }
0x1212   : > { %v7420_v39 = vpop.f32.mrf.mxu1 }
0x1213   : > { %v7454_v31 = vpop.f32.mrf.mxu0 }
0x1214   : > { %v2411_v40 = vpop.f32.mrf.mxu1  ;;  %v2785_v31 = vld [vmem:[%s10454_s1 + $0x13e] sm:$0xff] }
0x1215   : > { %v2596_v35 = vpop.f32.mrf.mxu0  ;;  %7476 = vmatpush3.msra.mxu0 %v2785_v31 }
0x1216   : > { %v7423_v41 = vpop.f32.mrf.mxu1  ;;  %7477 = vmatprep.subr.mxu0 %v8182_v1 }
0x1217   : > { %v7457_v34 = vpop.f32.mrf.mxu0  ;;  %v2782_v41 = vld [vmem:[%s10454_s1 + $0x126] sm:$0xff] }
0x1218   : > { %v2490_v42 = vpop.f32.mrf.mxu1  ;;  %v2781_v34 = vld [vmem:[%s10454_s1 + $0x11e] sm:$0xff] }
0x1219   : > { %v2491_v51 = vadd.f32 %v2490_v42, %v2401_v32  ;;  %v2780_v42 = vld [vmem:[%s10454_s1 + $0x116] sm:$0xff] }
0x121a   : > { %v7434_v44 = vpop.f32.mrf.mxu1 }
0x121b   : > { %v2600_v62 = vadd.f32 %v2586_v29, %v2491_v51  ;;  %v2779_v44 = vld [vmem:[%s10454_s1 + $0x10e] sm:$0xff] }
0x121c   : > { %v2495_v45 = vpop.f32.mrf.mxu1 }
0x121d   : > { %v2496_v52 = vadd.f32 %v2495_v45, %v2406_v37  ;;  %v2778_v45 = vld [vmem:[%s10454_s1 + $0x106] sm:$0xff] }
0x121e   : > { %v7437_v48 = vpop.f32.mrf.mxu1 }
0x121f   : > { %v2601_v21 = vadd.f32 %v2591_v38, %v2496_v52 }
0x1220   : > { %v2500_v49 = vpop.f32.mrf.mxu1 }
0x1221   : > { %v2501_v43 = vadd.f32 %v2500_v49, %v2411_v40  ;;  %v2784_v40 = vld [vmem:[%s10454_s1 + $0x136] sm:$0xff] }
0x1222   : > { %v7440_v50 = vpop.f32.mrf.mxu1  ;;  %7478 = vmatpush3.msra.mxu0 %v2784_v40 }
0x1223   : > { %v2602_v56 = vadd.f32 %v2596_v35, %v2501_v43  ;;  %7479 = vmatprep.subr.mxu0 %v8182_v1  ;;  %v2783_v35 = vld [vmem:[%s10454_s1 + $0x12e] sm:$0xff]  ;;  %v6587_v50 = vld [vmem:[%s10454_s1 + $0x104] ss:$0 sm:$0xff]  ;;  %v6588_v43 = vld [vmem:[%s10454_s1 + $0x105] ss:$0 sm:$0xff] }
0x1224   : > { %v2685_v53 = vpop.f32.mrf.mxu1  ;;  %7480 = vmatpush3.msra.mxu0 %v2783_v35 }
0x1225   : > { %v2699_v57 = vadd.f32 %v2685_v53, %v2600_v62  ;;  %7481 = vmatprep.subr.mxu0 %v8182_v1 }
0x1226   : > { %v7468_v54 = vpop.f32.mrf.mxu1  ;;  %7482 = vmatpush3.msra.mxu0 %v2782_v41 }
0x1227   : > { %v2704_v5 = vsel %vm165_vm1, %v2699_v57, 0.0  ;;  %7483 = vmatprep.subr.mxu0 %v8182_v1 }
0x1228   : > { %v2690_v63 = vpop.f32.mrf.mxu1  ;;  %7484 = vmatpush3.msra.mxu0 %v2781_v34 }
0x1229   : > { %v2700_v0 = vadd.f32 %v2690_v63, %v2601_v21  ;;  %7485 = vmatprep.subr.mxu0 %v8182_v1 }
0x122a   : > { %v7471_v59 = vpop.f32.mrf.mxu1  ;;  %7486 = vmatpush3.msra.mxu0 %v2780_v42 }
0x122b   : > { %v2705_v3 = vsel %vm165_vm1, %v2700_v0, 0.0  ;;  %7487 = vmatprep.subr.mxu0 %v8182_v1 }
0x122c   : > { %v2695_v4 = vpop.f32.mrf.mxu1  ;;  %v2706_v8 = vadd.f32 %v2705_v3, %v2704_v5  ;;  %7488 = vmatpush3.msra.mxu0 %v2779_v44 }
0x122d   : > { %v2701_v6 = vadd.f32 %v2695_v4, %v2602_v56  ;;  %7489 = vmatprep.subr.mxu0 %v8182_v1 }
0x122e   : > { %v7474_v7 = vpop.f32.mrf.mxu1  ;;  %7490 = vmatpush3.msra.mxu0 %v2778_v45 }
0x122f   : > { %v2707_v60 = vsel %vm1131_vm5, %v2701_v6, 0.0  ;;  %7517 = vmatprep.subr.mxu0 %v8182_v1 }
0x1230   : > { %v2708_v2 = vadd.f32 %v2707_v60, %v2706_v8 }
0x1232   : > { %2709 = vadd.xlane.f32.xlu0 %v2708_v2 }
0x12bb   : > { %v2710_v9 = vpop.xlane.xlu0 %2709 }
0x12bc   : > { %v2711_v10 = vrot.slane %v2710_v9, 4 }
0x12be   : > { %v2712_v11 = vadd.f32 %v2711_v10, %v2710_v9 }
0x12c0   : > { %v2713_v12 = vrot.slane %v2712_v11, 2 }
0x12c2   : > { %v2714_v13 = vadd.f32 %v2713_v12, %v2712_v11 }
0x12c4   : > { %v2715_v14 = vrot.slane %v2714_v13, 1 }
0x12c6   : > { %v2716_v15 = vadd.f32 %v2715_v14, %v2714_v13 }
0x12c8   : > { %8021 = vpush %v2716_v15 }
0x12f9   : > { %s8022_s27 = spop %8021 }
0x12fa   : > { %s2718_s30 = smul.f32 0.00067934784, %s8022_s27 }
0x12fc   : > { %v2719_v16 = vstv %s2718_s30 }
0x12fd   : > { %v2720_v17 = vsub.f32 %v2699_v57, %v2719_v16  ;;  %v2721_v20 = vsub.f32 %v2700_v0, %v2719_v16  ;;  %v2722_v22 = vsub.f32 %v2701_v6, %v2719_v16 }
0x12ff   : > { %v2723_v55 = vmul.f32 %v2720_v17, %v2720_v17  ;;  %v2724_v23 = vmul.f32 %v2721_v20, %v2721_v20  ;;  %v2725_v61 = vmul.f32 %v2722_v22, %v2722_v22 }
0x1301   : > { %v2726_v24 = vsel %vm165_vm1, %v2723_v55, 0.0  ;;  %v2727_v18 = vsel %vm165_vm1, %v2724_v23, 0.0  ;;  %v2729_v30 = vsel %vm1131_vm5, %v2725_v61, 0.0 }
0x1302   : > { %v2728_v26 = vadd.f32 %v2727_v18, %v2726_v24 }
0x1304   : > { %v2730_v27 = vadd.f32 %v2729_v30, %v2728_v26 }
0x1306   : > { %2731 = vadd.xlane.f32.xlu0 %v2730_v27 }
0x138f   : > { %v2732_v32 = vpop.xlane.xlu0 %2731 }
0x1390   : > { %v2733_v29 = vrot.slane %v2732_v32, 4 }
0x1392   : > { %v2734_v33 = vadd.f32 %v2733_v29, %v2732_v32 }
0x1394   : > { %v2735_v36 = vrot.slane %v2734_v33, 2 }
0x1396   : > { %v2736_v37 = vadd.f32 %v2735_v36, %v2734_v33 }
0x1398   : > { %v2737_v38 = vrot.slane %v2736_v37, 1 }
0x139a   : > { %v2738_v39 = vadd.f32 %v2737_v38, %v2736_v37 }
0x139c   : > { %8023 = vpush %v2738_v39 }
0x13cd   : > { %s8024_s21 = spop %8023 }
0x13ce   : > { %s2740_s22 = smul.f32 0.00067934784, %s8024_s21 }
0x13d0   : > { %s2741_s23 = sadd.f32 1e-05, %s2740_s22 }
0x13d2   : > { %v2742_v48 = vstv %s2741_s23 }
0x13d3   : > { %8130 = vrsqrt.f32 %v2742_v48 }
0x13e0   : > { %v8131_v49 = vpop.eup %8130 }
0x13e1   : > { %8025 = vpush %v8131_v49 }
0x1412   : > { %s8026_s24 = spop %8025 }
0x1413   : > { %v2745_v51 = vstv %s8026_s24 }
0x1414   : > { %v2746_v52 = vmul.f32 %v2745_v51, %v2720_v17  ;;  %v2747_v53 = vmul.f32 %v2745_v51, %v2721_v20  ;;  %v2748_v54 = vmul.f32 %v2745_v51, %v2722_v22  ;;  %v2938_v51 = vld [vmem:[%s10454_s1 + $0x158] sm:$0xff] }
0x1416   : > { %v2753_v62 = vmul.f32 %v6587_v50, %v2746_v52  ;;  %v2754_v21 = vmul.f32 %v6587_v50, %v2747_v53  ;;  %v2755_v63 = vmul.f32 %v6587_v50, %v2748_v54  ;;  %v2939_v50 = vld [vmem:[%s10454_s1 + $0x160] sm:$0xff] }
0x1417   : > { %7501 = vmatpush3.xpose.msk.msra.mxu1 %vm614_vm3, %v2939_v50  ;;  %v6620_v50 = vld [vmem:[%s8246_s29 + $0xa0] sm:$0x7] }
0x1418   : > { %v2760_v57 = vadd.f32 %v6588_v43, %v2753_v62  ;;  %v2761_v0 = vadd.f32 %v6588_v43, %v2754_v21  ;;  %v2762_v59 = vadd.f32 %v6588_v43, %v2755_v63  ;;  %7502 = vmatprep.subr.mxu1 %v8182_v1 }
0x141a   : > { %v2763_v3 = vmax.f32 %v2760_v57, 0.0  ;;  %v2764_v56 = vmax.f32 %v2761_v0, 0.0  ;;  %v2765_v4 = vmax.f32 %v2762_v59, 0.0 }
0x141b   : > { %7503 = vmatpush3.xpose.msk.msra.mxu1 %vm614_vm3, %v2938_v51 }
0x141c   : > { %v2766_v5 = vand.u32 2147483647, %v2763_v3  ;;  %v2767_v6 = vand.u32 2147483647, %v2764_v56  ;;  %v2768_v7 = vand.u32 2147483647, %v2765_v4  ;;  %7504 = vmatprep.subr.mxu1 %v8182_v1 }
0x141e   : > { %v2769_v8 = vadd.f32 1.0, %v2766_v5  ;;  %v2770_v60 = vadd.f32 1.0, %v2767_v6  ;;  %v2771_v2 = vadd.f32 1.0, %v2768_v7  ;;  %v2937_v5 = vld [vmem:[%s10454_s1 + $0x150] sm:$0xff]  ;;  %v2936_v7 = vld [vmem:[%s10454_s1 + $0x148] sm:$0xff] }
0x141f   : > { %7505 = vmatpush3.xpose.msk.msra.mxu1 %vm614_vm3, %v2937_v5 }
0x1420   : > { %8132 = vlog2.f32 %v2769_v8  ;;  %7506 = vmatprep.subr.mxu1 %v8182_v1 }
0x1421   : > { %8134 = vlog2.f32 %v2770_v60 }
0x1422   : > { %8136 = vlog2.f32 %v2771_v2 }
0x1423   : > { %7507 = vmatpush3.xpose.msk.msra.mxu1 %vm614_vm3, %v2936_v7 }
0x1424   : > { %7534 = vmatprep.subr.mxu1 %v8182_v1 }
0x142d   : > { %v8133_v9 = vpop.eup %8132 }
0x142e   : > { %v2773_v10 = vmul.f32 0.6931472, %v8133_v9  ;;  %v8135_v11 = vpop.eup %8134  ;;  %v9180_v9 = vld [vmem:[%s10454_s1 + $0x146] ss:$0 sm:$0xff] }
0x142f   : > { %v2775_v12 = vmul.f32 0.6931472, %v8135_v11  ;;  %v8137_v13 = vpop.eup %8136 }
0x1430   : > { %7492 = vmatmul.mubr.msk.f32.vlgmr.msra.gmra.mxu0 %vm165_vm1, %v2773_v10  ;;  %v2777_v14 = vmul.f32 0.6931472, %v8137_v13  ;;  %v9185_v13 = vld [vmem:[%s10454_s1 + $0x147] ss:$0 sm:$0xff] }
0x1431   : > { %7494 = vmatprep.mubr.msk.f32.mxu0 %vm8183_vm0, %v8182_v1 }
0x1434   : > { %7495 = vmatmul.mubr.msk.f32.gmra.mxu0 %vm165_vm1, %v2775_v12 }
0x1435   : > { %7497 = vmatprep.mubr.msk.f32.mxu0 %vm8183_vm0, %v8182_v1 }
0x1438   : > { %7498 = vmatmul.mubr.msk.f32.gmra.mxu0 %vm165_vm1, %v2777_v14 }
0x1439   : > { %7525 = vmatprep.mubr.msk.f32.mxu0 %vm8183_vm0, %v8182_v1 }
0x14f0   : > { %v9130_v15 = vpop.f32.mrf.mxu0 }
0x14f1   : > { %v2877_v55 = vsel %vm614_vm3, %v9130_v15, 0.0 }
0x14f2   : > { %v7493_v16 = vpop.f32.mrf.mxu0 }
0x14f4   : > { %v9132_v17 = vpop.f32.mrf.mxu0 }
0x14f5   : > { %v2878_v20 = vsel %vm614_vm3, %v9132_v17, 0.0 }
0x14f6   : > { %v7496_v22 = vpop.f32.mrf.mxu0  ;;  %v2879_v61 = vadd.f32 %v2878_v20, %v2877_v55  ;;  %v3323_v55 = vld [vmem:[%s10454_s1 + $0x38] sm:$0xff] }
0x14f8   : > { %v9138_v23 = vpop.f32.mrf.mxu0 }
0x14f9   : > { %v2880_v24 = vsel %vm1305_vm6, %v9138_v23, 0.0 }
0x14fa   : > { %v7499_v18 = vpop.f32.mrf.mxu0  ;;  %v2881_v26 = vadd.f32 %v2880_v24, %v2879_v61  ;;  %v3322_v61 = vld [vmem:[%s10454_s1 + $0x30] sm:$0xff] }
0x14fc   : > { %2882 = vadd.xlane.f32.xlu1 %v2881_v26  ;;  %v3321_v26 = vld [vmem:[%s10454_s1 + $0x28] sm:$0xff] }
0x150d   : > { %3082 = vrot.lane.b32.xlu1 %v9130_v15, %s8184_s28 }
0x1511   : > { %3086 = vrot.lane.b32.xlu1 %v9138_v23, %s8184_s28 }
0x1585   : > { %v2883_v30 = vpop.xlane.xlu1 %2882 }
0x1586   : > { %v2884_v27 = vrot.slane %v2883_v30, 4 }
0x1588   : > { %v2885_v32 = vadd.f32 %v2884_v27, %v2883_v30  ;;  %v3320_v30 = vld [vmem:[%s10454_s1 + $0x20] sm:$0xff] }
0x1589   : > { %v3083_v52 = vpop.permute.xlu1 %3082 }
0x158a   : > { %v2886_v29 = vrot.slane %v2885_v32, 2  ;;  %v3091_v63 = vsel %vm614_vm3, %v3083_v52, 0.0 }
0x158c   : > { %v2887_v33 = vadd.f32 %v2886_v29, %v2885_v32  ;;  %v3319_v32 = vld [vmem:[%s10454_s1 + $0x18] sm:$0xff] }
0x158d   : > { %v3087_v62 = vpop.permute.xlu1 %3086 }
0x158e   : > { %v2888_v36 = vrot.slane %v2887_v33, 1  ;;  %v3094_v3 = vsel %vm1305_vm6, %v3087_v62, 0.0 }
0x1590   : > { %v2889_v37 = vadd.f32 %v2888_v36, %v2887_v33  ;;  %v3318_v33 = vld [vmem:[%s10454_s1 + $0x10] sm:$0xff] }
0x1592   : > { %8027 = vpush %v2889_v37  ;;  %v3317_v37 = vld [vmem:[%s10454_s1 + $0x8] sm:$0xff] }
0x15c3   : > { %s8028_s4 = spop %8027 }
0x15c4   : > { %s2891_s6 = smul.f32 0.0013586957, %s8028_s4 }
0x15c6   : > { %v2892_v38 = vstv %s2891_s6 }
0x15c7   : > { %v2893_v39 = vsub.f32 %v9130_v15, %v2892_v38  ;;  %v2894_v31 = vsub.f32 %v9132_v17, %v2892_v38  ;;  %v2895_v40 = vsub.f32 %v9138_v23, %v2892_v38 }
0x15c9   : > { %v2896_v35 = vmul.f32 %v2893_v39, %v2893_v39  ;;  %v2897_v41 = vmul.f32 %v2894_v31, %v2894_v31  ;;  %v2898_v34 = vmul.f32 %v2895_v40, %v2895_v40 }
0x15cb   : > { %v2899_v42 = vsel %vm614_vm3, %v2896_v35, 0.0  ;;  %v2900_v44 = vsel %vm614_vm3, %v2897_v41, 0.0  ;;  %v2902_v48 = vsel %vm1305_vm6, %v2898_v34, 0.0  ;;  %v6615_v34 = vld [vmem:[%s8246_s29 + $0x78] sm:$0xff] }
0x15cc   : > { %v2901_v45 = vadd.f32 %v2900_v44, %v2899_v42  ;;  %v6616_v44 = vld [vmem:[%s8246_s29 + $0x80] sm:$0xff] }
0x15ce   : > { %v2903_v49 = vadd.f32 %v2902_v48, %v2901_v45  ;;  %v6617_v45 = vld [vmem:[%s8246_s29 + $0x88] sm:$0xff]  ;;  %v6618_v48 = vld [vmem:[%s8246_s29 + $0x90] sm:$0xff] }
0x15d0   : > { %2904 = vadd.xlane.f32.xlu0 %v2903_v49  ;;  %v6619_v49 = vld [vmem:[%s8246_s29 + $0x98] sm:$0xff] }
0x15e6   : > { %3084 = vrot.lane.b32.xlu0 %v9132_v17, %s8184_s28 }
0x1659   : > { %v2905_v53 = vpop.xlane.xlu0 %2904 }
0x165a   : > { %v2906_v54 = vrot.slane %v2905_v53, 4 }
0x165c   : > { %v2907_v43 = vadd.f32 %v2906_v54, %v2905_v53 }
0x165d   : > { %v3085_v21 = vpop.permute.xlu0 %3084 }
0x165e   : > { %v2908_v57 = vrot.slane %v2907_v43, 2  ;;  %v3092_v0 = vsel %vm614_vm3, %v3085_v21, 0.0 }
0x165f   : > { %v3093_v59 = vadd.f32 %v3092_v0, %v3091_v63 }
0x1660   : > { %v2909_v56 = vadd.f32 %v2908_v57, %v2907_v43 }
0x1661   : > { %v3095_v4 = vadd.f32 %v3094_v3, %v3093_v59 }
0x1662   : > { %v2910_v6 = vrot.slane %v2909_v56, 1 }
0x1663   : > { %3096 = vadd.xlane.f32.xlu1 %v3095_v4 }
0x1664   : > { %v2911_v8 = vadd.f32 %v2910_v6, %v2909_v56 }
0x1666   : > { %8029 = vpush %v2911_v8 }
0x1697   : > { %s8030_s15 = spop %8029 }
0x1698   : > { %s2913_s16 = smul.f32 0.0013586957, %s8030_s15 }
0x169a   : > { %s2914_s17 = sadd.f32 1e-05, %s2913_s16 }
0x169c   : > { %v2915_v60 = vstv %s2914_s17 }
0x169d   : > { %8138 = vrsqrt.f32 %v2915_v60 }
0x16aa   : > { %v8139_v2 = vpop.eup %8138 }
0x16ab   : > { %8031 = vpush %v8139_v2 }
0x16dc   : > { %s8032_s18 = spop %8031 }
0x16dd   : > { %v2918_v10 = vstv %s8032_s18 }
0x16de   : > { %v2919_v11 = vmul.f32 %v2918_v10, %v2893_v39  ;;  %v2920_v12 = vmul.f32 %v2918_v10, %v2894_v31  ;;  %v2921_v16 = vmul.f32 %v2918_v10, %v2895_v40  ;;  %v3316_v39 = vld [vmem:[%s10454_s1] sm:$0xff]  ;;  %v6614_v40 = vld [vmem:[%s8246_s29 + $0x70] sm:$0xff] }
0x16e0   : > { %v2926_v14 = vmul.f32 %v9180_v9, %v2919_v11  ;;  %v2927_v20 = vmul.f32 %v9180_v9, %v2920_v12  ;;  %v2928_v24 = vmul.f32 %v9180_v9, %v2921_v16 }
0x16e2   : > { %v2933_v22 = vadd.f32 %v9185_v13, %v2926_v14  ;;  %v2934_v18 = vadd.f32 %v9185_v13, %v2927_v20  ;;  %v2935_v27 = vadd.f32 %v9185_v13, %v2928_v24 }
0x16e4   : > { %7509 = vmatmul.mubr.msk.f32.vlgmr.msra.gmra.mxu1 %vm614_vm3, %v2933_v22 }
0x16e5   : > { %7511 = vmatprep.mubr.msk.f32.mxu1 %vm8183_vm0, %v8182_v1  ;;  %7535 = vmatpush3.msra.mxu1 %v3323_v55 }
0x16e6   : > { %7536 = vmatprep.subr.mxu1 %v8182_v1 }
0x16e7   : > { %7537 = vmatpush3.msra.mxu1 %v3322_v61 }
0x16e8   : > { %7512 = vmatmul.mubr.msk.f32.gmra.mxu1 %vm614_vm3, %v2934_v18  ;;  %7538 = vmatprep.subr.mxu1 %v8182_v1 }
0x16e9   : > { %7514 = vmatprep.mubr.msk.f32.mxu1 %vm8183_vm0, %v8182_v1  ;;  %7539 = vmatpush3.msra.mxu1 %v3321_v26 }
0x16ea   : > { %7540 = vmatprep.subr.mxu1 %v8182_v1 }
0x16eb   : > { %7541 = vmatpush3.msra.mxu1 %v3320_v30 }
0x16ec   : > { %7515 = vmatmul.mubr.msk.f32.gmra.mxu1 %vm614_vm3, %v2935_v27  ;;  %v3097_v29 = vpop.xlane.xlu1 %3096  ;;  %7542 = vmatprep.subr.mxu1 %v8182_v1 }
0x16ed   : > { %v3098_v36 = vrot.slane %v3097_v29, 4  ;;  %7543 = vmatpush3.msra.mxu1 %v3319_v32  ;;  %7550 = vmatprep.mubr.msk.f32.mxu1 %vm8183_vm0, %v8182_v1 }
0x16ee   : > { %7544 = vmatprep.subr.mxu1 %v8182_v1 }
0x16ef   : > { %v3099_v38 = vadd.f32 %v3098_v36, %v3097_v29  ;;  %7545 = vmatpush3.msra.mxu1 %v3318_v33 }
0x16f0   : > { %7546 = vmatprep.subr.mxu1 %v8182_v1 }
0x16f1   : > { %v3100_v31 = vrot.slane %v3099_v38, 2  ;;  %7547 = vmatpush3.msra.mxu1 %v3317_v37 }
0x16f2   : > { %7548 = vmatprep.subr.mxu1 %v8182_v1 }
0x16f3   : > { %v3101_v35 = vadd.f32 %v3100_v31, %v3099_v38  ;;  %7549 = vmatpush3.msra.mxu1 %v3316_v39 }
0x16f4   : > { %7551 = vmatmul.mubr.msk.f32.vlgmr.msra.gmra.mxu1 %vm165_vm1, %v6614_v40  ;;  %7600 = vmatprep.subr.mxu1 %v8182_v1 }
0x16f5   : > { %v3102_v41 = vrot.slane %v3101_v35, 1  ;;  %7553 = vmatprep.mubr.msk.f32.mxu1 %vm8183_vm0, %v8182_v1 }
0x16f7   : > { %v3103_v42 = vadd.f32 %v3102_v41, %v3101_v35 }
0x16f8   : > { %7554 = vmatmul.mubr.msk.f32.gmra.mxu1 %vm165_vm1, %v6615_v34 }
0x16f9   : > { %8033 = vpush %v3103_v42  ;;  %7556 = vmatprep.mubr.msk.f32.mxu1 %vm8183_vm0, %v8182_v1 }
0x16fc   : > { %7557 = vmatmul.mubr.msk.f32.gmra.mxu1 %vm165_vm1, %v6616_v44 }
0x16fd   : > { %7559 = vmatprep.mubr.msk.f32.mxu1 %vm8183_vm0, %v8182_v1 }
0x1700   : > { %7560 = vmatmul.mubr.msk.f32.gmra.mxu1 %vm165_vm1, %v6617_v45 }
0x1701   : > { %7562 = vmatprep.mubr.msk.f32.mxu1 %vm8183_vm0, %v8182_v1 }
0x1704   : > { %7563 = vmatmul.mubr.msk.f32.gmra.mxu1 %vm165_vm1, %v6618_v48 }
0x1705   : > { %7565 = vmatprep.mubr.msk.f32.mxu1 %vm8183_vm0, %v8182_v1 }
0x1708   : > { %7566 = vmatmul.mubr.msk.f32.gmra.mxu1 %vm165_vm1, %v6619_v49 }
0x1709   : > { %7568 = vmatprep.mubr.msk.f32.mxu1 %vm8183_vm0, %v8182_v1 }
0x170c   : > { %7569 = vmatmul.mubr.msk.f32.gmra.mxu1 %vm165_vm1, %v6620_v50 }
0x170d   : > { %7608 = vmatprep.mubr.msk.f32.mxu1 %vm8183_vm0, %v8182_v1 }
0x172a   : > { %s8034_s15 = spop %8033 }
0x172b   : > { %s3105_s16 = smul.f32 0.0013586957, %s8034_s15 }
0x172d   : > { %v3106_v51 = vstv %s3105_s16 }
0x172e   : > { %v9263_v52 = vsub.f32 %v9130_v15, %v3106_v51  ;;  %v9266_v53 = vsub.f32 %v9132_v17, %v3106_v51  ;;  %v9272_v43 = vsub.f32 %v9138_v23, %v3106_v51 }
0x1730   : > { %v3110_v54 = vmul.f32 %v9263_v52, %v9263_v52  ;;  %v3111_v62 = vmul.f32 %v9266_v53, %v9266_v53  ;;  %v3112_v15 = vmul.f32 %v9272_v43, %v9272_v43 }
0x1732   : > { %3116 = vrot.lane.b32.xlu0 %v3110_v54, %s8184_s28 }
0x1736   : > { %3118 = vrot.lane.b32.xlu0 %v3111_v62, %s8184_s28 }
0x173a   : > { %3120 = vrot.lane.b32.xlu0 %v3112_v15, %s8184_s28  ;;  %v3165_v15 = vld [vmem:[%s10454_s1 + $0x180] sm:$0xff] }
0x173b   : > { %7518 = vmatpush3.xpose.msk.msra.mxu0 %vm614_vm3, %v3165_v15 }
0x173c   : > { %7519 = vmatprep.subr.mxu0 %v8182_v1 }
0x17a4   : > { %v9280_v17 = vpop.f32.mrf.mxu1  ;;  %v3117_v21 = vpop.permute.xlu0 %3116 }
0x17a5   : > { %v3125_v3 = vsel %vm614_vm3, %v3117_v21, 0.0  ;;  %v3164_v21 = vld [vmem:[%s10454_s1 + $0x178] sm:$0xff] }
0x17a6   : > { %v7510_v63 = vpop.f32.mrf.mxu1  ;;  %7520 = vmatpush3.xpose.msk.msra.mxu0 %vm614_vm3, %v3164_v21 }
0x17a7   : > { %7521 = vmatprep.subr.mxu0 %v8182_v1  ;;  %v3163_v63 = vld [vmem:[%s10454_s1 + $0x170] sm:$0xff] }
0x17a8   : > { %v9282_v57 = vpop.f32.mrf.mxu1  ;;  %v3119_v0 = vpop.permute.xlu0 %3118 }
0x17a9   : > { %v3126_v23 = vsel %vm614_vm3, %v3119_v0, 0.0 }
0x17aa   : > { %v7513_v59 = vpop.f32.mrf.mxu1  ;;  %v3127_v56 = vadd.f32 %v3126_v23, %v3125_v3  ;;  %7522 = vmatpush3.xpose.msk.msra.mxu0 %vm614_vm3, %v3163_v63  ;;  %v6628_v63 = vld [vmem:[%s10454_s1 + $0x40] ss:$0 sm:$0xff] }
0x17ab   : > { %7523 = vmatprep.subr.mxu0 %v8182_v1 }
0x17ac   : > { %v9286_v4 = vpop.f32.mrf.mxu1  ;;  %v3121_v5 = vpop.permute.xlu0 %3120 }
0x17ad   : > { %v3128_v6 = vsel %vm1305_vm6, %v3121_v5, 0.0 }
0x17ae   : > { %v7516_v7 = vpop.f32.mrf.mxu1  ;;  %v3129_v8 = vadd.f32 %v3128_v6, %v3127_v56 }
0x17b0   : > { %3130 = vadd.xlane.f32.xlu0 %v3129_v8 }
0x17b4   : > { %v3411_v60 = vpop.f32.mrf.mxu1 }
0x17b6   : > { %v7552_v2 = vpop.f32.mrf.mxu1 }
0x17b8   : > { %v3416_v10 = vpop.f32.mrf.mxu1 }
0x17b9   : > { %v3447_v11 = vadd.f32 %v3416_v10, %v3411_v60 }
0x17ba   : > { %v7555_v12 = vpop.f32.mrf.mxu1 }
0x17bc   : > { %v3421_v14 = vpop.f32.mrf.mxu1 }
0x17bd   : > { %v3448_v16 = vadd.f32 %v3447_v11, %v3421_v14 }
0x17be   : > { %v7558_v20 = vpop.f32.mrf.mxu1 }
0x17c0   : > { %v3426_v22 = vpop.f32.mrf.mxu1 }
0x17c1   : > { %v3449_v55 = vadd.f32 %v3448_v16, %v3426_v22 }
0x17c2   : > { %v7561_v61 = vpop.f32.mrf.mxu1 }
0x17c4   : > { %v3431_v24 = vpop.f32.mrf.mxu1 }
0x17c5   : > { %v3450_v18 = vadd.f32 %v3449_v55, %v3431_v24 }
0x17c6   : > { %v7564_v26 = vpop.f32.mrf.mxu1 }
0x17c8   : > { %v3436_v30 = vpop.f32.mrf.mxu1 }
0x17c9   : > { %v3451_v27 = vadd.f32 %v3450_v18, %v3436_v30 }
0x17ca   : > { %v7567_v32 = vpop.f32.mrf.mxu1 }
0x17cc   : > { %v3441_v29 = vpop.f32.mrf.mxu1 }
0x17cd   : > { %v3452_v33 = vsel %vm294_vm2, %v3441_v29, 0.0 }
0x17ce   : > { %v3453_v36 = vadd.f32 %v3452_v33, %v3451_v27  ;;  %v7570_v37 = vpop.f32.mrf.mxu1 }
0x17d0   : > { %3454 = vadd.xlane.f32.xlu1 %v3453_v36  ;;  %v3162_v36 = vld [vmem:[%s10454_s1 + $0x168] sm:$0xff] }
0x17d1   : > { %7524 = vmatpush3.xpose.msk.msra.mxu0 %vm614_vm3, %v3162_v36 }
0x17d2   : > { %7571 = vmatprep.subr.mxu0 %v8182_v1 }
0x1839   : > { %v3131_v38 = vpop.xlane.xlu0 %3130 }
0x183a   : > { %v3132_v39 = vrot.slane %v3131_v38, 4 }
0x183c   : > { %v3133_v31 = vadd.f32 %v3132_v39, %v3131_v38 }
0x183e   : > { %v3134_v40 = vrot.slane %v3133_v31, 2 }
0x1840   : > { %v3135_v35 = vadd.f32 %v3134_v40, %v3133_v31 }
0x1842   : > { %v3136_v41 = vrot.slane %v3135_v35, 1 }
0x1844   : > { %v3137_v34 = vadd.f32 %v3136_v41, %v3135_v35 }
0x1846   : > { %8035 = vpush %v3137_v34 }
0x1859   : > { %v3455_v42 = vpop.xlane.xlu1 %3454 }
0x185a   : > { %v3456_v44 = vrot.slane %v3455_v42, 4 }
0x185c   : > { %v3457_v45 = vadd.f32 %v3456_v44, %v3455_v42 }
0x185e   : > { %v3458_v49 = vrot.slane %v3457_v45, 2 }
0x1860   : > { %v3459_v50 = vadd.f32 %v3458_v49, %v3457_v45  ;;  %v3568_v45 = vld [vmem:[%s10454_s1 + $0x7a] sm:$0xff] }
0x1862   : > { %v3460_v51 = vrot.slane %v3459_v50, 1 }
0x1864   : > { %v3461_v62 = vadd.f32 %v3460_v51, %v3459_v50  ;;  %v3567_v50 = vld [vmem:[%s10454_s1 + $0x72] sm:$0xff]  ;;  %v3561_v51 = vld [vmem:[%s10454_s1 + $0x42] sm:$0xff] }
0x1877   : > { %s8036_s17 = spop %8035 }
0x1878   : > { %s3139_s18 = smul.f32 0.0013586957, %s8036_s17 }
0x187a   : > { %s3140_s19 = sadd.f32 1e-05, %s3139_s18 }
0x187c   : > { %v3141_v48 = vstv %s3140_s19 }
0x187d   : > { %8140 = vrsqrt.f32 %v3141_v48  ;;  %v3562_v48 = vld [vmem:[%s10454_s1 + $0x4a] sm:$0xff] }
0x188a   : > { %v8141_v54 = vpop.eup %8140 }
0x188b   : > { %8037 = vpush %v8141_v54  ;;  %v3566_v54 = vld [vmem:[%s10454_s1 + $0x6a] sm:$0xff] }
0x188c   : > { %8039 = vpush %v3461_v62  ;;  %v3565_v62 = vld [vmem:[%s10454_s1 + $0x62] sm:$0xff] }
0x18bc   : > { %s8038_s24 = spop %8037 }
0x18bd   : > { %v3144_v0 = vstv %s8038_s24  ;;  %s8040_s27 = spop %8039 }
0x18be   : > { %v3146_v23 = vmul.f32 %v3144_v0, %v9266_v53  ;;  %s9304_s30 = smul.f32 0.00015394088, %s8040_s27  ;;  %v3145_v32 = vmul.f32 %v3144_v0, %v9263_v52 }
0x18c0   : > { %v3153_v59 = vmul.f32 %v9180_v9, %v3146_v23  ;;  %v3464_v3 = vstv %s9304_s30  ;;  %v3152_v33 = vmul.f32 %v9180_v9, %v3145_v32  ;;  %s3495_s23 = smul.f32 32.0, %s9304_s30 }
0x18c1   : > { %v9310_v56 = vsub.f32 %v3411_v60, %v3464_v3  ;;  %v9312_v5 = vsub.f32 %v3416_v10, %v3464_v3  ;;  %v9314_v6 = vsub.f32 %v3421_v14, %v3464_v3  ;;  %v9317_v8 = vsub.f32 %v3426_v22, %v3464_v3 }
0x18c2   : > { %v3160_v7 = vadd.f32 %v9185_v13, %v3153_v59  ;;  %v9324_v11 = vsub.f32 %v3431_v24, %v3464_v3  ;;  %v9328_v12 = vsub.f32 %v3441_v29, %v3464_v3  ;;  %v9330_v14 = vsub.f32 %v3436_v30, %v3464_v3  ;;  %s3496_s24 = smul.f32 %s3495_s23, %s9304_s30 }
0x18c3   : > { %v3472_v53 = vmul.f32 %v9310_v56, %v9310_v56  ;;  %v3473_v2 = vmul.f32 %v9312_v5, %v9312_v5  ;;  %v3474_v60 = vmul.f32 %v9314_v6, %v9314_v6  ;;  %v3475_v16 = vmul.f32 %v9317_v8, %v9317_v8 }
0x18c4   : > { %3171 = vrot.lane.b32.xlu0 %v3160_v7, %s8184_s28  ;;  %v3476_v22 = vmul.f32 %v9324_v11, %v9324_v11  ;;  %v3478_v61 = vmul.f32 %v9328_v12, %v9328_v12  ;;  %v3477_v24 = vmul.f32 %v9330_v14, %v9330_v14  ;;  %v3147_v29 = vmul.f32 %v3144_v0, %v9272_v43  ;;  %v3564_v43 = vld [vmem:[%s10454_s1 + $0x5a] sm:$0xff] }
0x18c5   : > { %v3479_v10 = vadd.f32 %v3473_v2, %v3472_v53  ;;  %v3159_v38 = vadd.f32 %v9185_v13, %v3152_v33  ;;  %7601 = vmatpush3.xpose.msra.mxu1 %v3564_v43  ;;  %v6629_v53 = vld [vmem:[%s10454_s1 + $0x41] ss:$0 sm:$0xff] }
0x18c6   : > { %v3484_v27 = vsel %vm294_vm2, %v3478_v61, 0.0  ;;  %v3154_v37 = vmul.f32 %v9180_v9, %v3147_v29  ;;  %7602 = vmatprep.subr.mxu1 %v8182_v1  ;;  %v3563_v9 = vld [vmem:[%s10454_s1 + $0x52] sm:$0xff] }
0x18c7   : > { %v3480_v20 = vadd.f32 %v3479_v10, %v3474_v60 }
0x18c8   : > { %v3161_v52 = vadd.f32 %v9185_v13, %v3154_v37 }
0x18c9   : > { %v3481_v55 = vadd.f32 %v3480_v20, %v3475_v16  ;;  %7603 = vmatpush3.xpose.msra.mxu1 %v3563_v9 }
0x18ca   : > { %7604 = vmatprep.subr.mxu1 %v8182_v1 }
0x18cb   : > { %v3482_v18 = vadd.f32 %v3481_v55, %v3476_v22 }
0x18cd   : > { %v3483_v26 = vadd.f32 %v3482_v18, %v3477_v24  ;;  %7605 = vmatpush3.xpose.msra.mxu1 %v3562_v48 }
0x18ce   : > { %7606 = vmatprep.subr.mxu1 %v8182_v1 }
0x18cf   : > { %v3485_v30 = vadd.f32 %v3484_v27, %v3483_v26 }
0x18d1   : > { %3486 = vadd.xlane.f32.xlu1 %v3485_v30  ;;  %7607 = vmatpush3.xpose.msra.mxu1 %v3561_v51 }
0x18d2   : > { %7663 = vmatprep.subr.mxu1 %v8182_v1 }
0x18e2   : > { %3169 = vrot.lane.b32.xlu1 %v3159_v38, %s8184_s28 }
0x18e6   : > { %3173 = vrot.lane.b32.xlu1 %v3161_v52, %s8184_s28 }
0x1936   : > { %v3172_v34 = vpop.permute.xlu0 %3171 }
0x195a   : > { %v3487_v39 = vpop.xlane.xlu1 %3486 }
0x195b   : > { %v3488_v31 = vrot.slane %v3487_v39, 4 }
0x195d   : > { %v3489_v40 = vadd.f32 %v3488_v31, %v3487_v39 }
0x195e   : > { %v3170_v13 = vpop.permute.xlu1 %3169 }
0x195f   : > { %v3490_v35 = vrot.slane %v3489_v40, 2  ;;  %7526 = vmatmul.mubr.msk.f32.vlgmr.msra.gmra.mxu0 %vm614_vm3, %v3170_v13 }
0x1960   : > { %7528 = vmatprep.mubr.msk.f32.mxu0 %vm8183_vm0, %v8182_v1  ;;  %7572 = vmatpush3.xpose.msra.mxu0 %v3568_v45 }
0x1961   : > { %v3491_v41 = vadd.f32 %v3490_v35, %v3489_v40  ;;  %7573 = vmatprep.subr.mxu0 %v8182_v1 }
0x1962   : > { %v3174_v49 = vpop.permute.xlu1 %3173 }
0x1963   : > { %7529 = vmatmul.mubr.msk.f32.gmra.mxu0 %vm614_vm3, %v3172_v34  ;;  %v3492_v42 = vrot.slane %v3491_v41, 1 }
0x1964   : > { %7531 = vmatprep.mubr.msk.f32.mxu0 %vm8183_vm0, %v8182_v1  ;;  %7574 = vmatpush3.xpose.msra.mxu0 %v3567_v50 }
0x1965   : > { %v3493_v44 = vadd.f32 %v3492_v42, %v3491_v41  ;;  %7575 = vmatprep.subr.mxu0 %v8182_v1 }
0x1967   : > { %7532 = vmatmul.mubr.msk.f32.gmra.mxu0 %vm614_vm3, %v3174_v49  ;;  %8041 = vpush %v3493_v44 }
0x1968   : > { %7579 = vmatprep.mubr.msk.f32.mxu0 %vm8183_vm0, %v8182_v1  ;;  %7576 = vmatpush3.xpose.msra.mxu0 %v3566_v54 }
0x1969   : > { %7577 = vmatprep.subr.mxu0 %v8182_v1 }
0x196c   : > { %7578 = vmatpush3.xpose.msra.mxu0 %v3565_v62 }
0x196d   : > { %7629 = vmatprep.subr.mxu0 %v8182_v1 }
0x1998   : > { %s8042_s25 = spop %8041 }
0x1999   : > { %s3497_s26 = ssub.f32 %s8042_s25, %s3496_s24 }
0x199b   : > { %s3498_s27 = smul.f32 0.00015394088, %s3497_s26 }
0x199d   : > { %s3499_s4 = sadd.f32 1e-05, %s3498_s27 }
0x199f   : > { %v3500_v15 = vstv %s3499_s4 }
0x19a0   : > { %8142 = vrsqrt.f32 %v3500_v15 }
0x19ad   : > { %v8143_v21 = vpop.eup %8142 }
0x19ae   : > { %8043 = vpush %v8143_v21 }
0x19df   : > { %s8044_s6 = spop %8043 }
0x19e0   : > { %v3503_v0 = vstv %s8044_s6 }
0x19e1   : > { %v3504_v23 = vmul.f32 %v3503_v0, %v9310_v56  ;;  %v3505_v59 = vmul.f32 %v3503_v0, %v9312_v5  ;;  %v3506_v3 = vmul.f32 %v3503_v0, %v9314_v6  ;;  %v3507_v7 = vmul.f32 %v3503_v0, %v9317_v8 }
0x19e2   : > { %v3508_v2 = vmul.f32 %v3503_v0, %v9324_v11  ;;  %v3509_v60 = vmul.f32 %v3503_v0, %v9330_v14  ;;  %v3510_v10 = vmul.f32 %v3503_v0, %v9328_v12 }
0x19e3   : > { %v3515_v16 = vmul.f32 %v6628_v63, %v3504_v23  ;;  %v3516_v20 = vmul.f32 %v6628_v63, %v3505_v59  ;;  %v3517_v22 = vmul.f32 %v6628_v63, %v3506_v3  ;;  %v3518_v56 = vmul.f32 %v6628_v63, %v3507_v7 }
0x19e4   : > { %v3519_v55 = vmul.f32 %v6628_v63, %v3508_v2  ;;  %v3520_v5 = vmul.f32 %v6628_v63, %v3509_v60  ;;  %v3521_v61 = vmul.f32 %v6628_v63, %v3510_v10 }
0x19e5   : > { %v3526_v6 = vadd.f32 %v6629_v53, %v3515_v16  ;;  %v3527_v24 = vadd.f32 %v6629_v53, %v3516_v20  ;;  %v3528_v8 = vadd.f32 %v6629_v53, %v3517_v22  ;;  %v3529_v18 = vadd.f32 %v6629_v53, %v3518_v56 }
0x19e6   : > { %v3530_v26 = vadd.f32 %v6629_v53, %v3519_v55  ;;  %v3531_v27 = vadd.f32 %v6629_v53, %v3520_v5  ;;  %v3532_v30 = vadd.f32 %v6629_v53, %v3521_v61 }
0x19e7   : > { %v3533_v32 = vmax.f32 %v3526_v6, 0.0  ;;  %v3534_v11 = vmax.f32 %v3527_v24, 0.0  ;;  %v3535_v29 = vmax.f32 %v3528_v8, 0.0  ;;  %v3536_v14 = vmax.f32 %v3529_v18, 0.0 }
0x19e8   : > { %v3537_v33 = vmax.f32 %v3530_v26, 0.0  ;;  %v3538_v12 = vmax.f32 %v3531_v27, 0.0  ;;  %v3539_v36 = vmax.f32 %v3532_v30, 0.0 }
0x19e9   : > { %3540 = vst [vmem:[#allocation2] sm:$0xff] %v3533_v32  ;;  %3541 = vst [vmem:[#allocation2 + $0x8] sm:$0xff] %v3534_v11  ;;  %7609 = vmatmul.mubr.f32.vlgmr.msra.gmra.mxu1 %v3533_v32 }
0x19ea   : > { %3542 = vst [vmem:[#allocation2 + $0x10] sm:$0xff] %v3535_v29  ;;  %3543 = vst [vmem:[#allocation2 + $0x18] sm:$0xff] %v3536_v14  ;;  %7611 = vmatprep.mubr.msk.f32.mxu1 %vm8183_vm0, %v8182_v1 }
0x19eb   : > { %3544 = vst [vmem:[#allocation2 + $0x20] sm:$0xff] %v3537_v33  ;;  %3545 = vst [vmem:[#allocation2 + $0x28] sm:$0xff] %v3538_v12 }
0x19ec   : > { %3546 = vst [vmem:[#allocation2 + $0x30] sm:$0x7] %v3539_v36 }
0x19ed   : > { %7612 = vmatmul.mubr.f32.gmra.mxu1 %v3534_v11 }
0x19ee   : > { %7614 = vmatprep.mubr.msk.f32.mxu1 %vm8183_vm0, %v8182_v1 }
0x19f0   : > { %v3554_v37 = vld [vmem:[#allocation2 + $0x1] sm:$0xff] }
0x19f1   : > { %7580 = vmatmul.mubr.f32.vlgmr.msra.gmra.mxu0 %v3554_v37  ;;  %7615 = vmatmul.mubr.f32.gmra.mxu1 %v3535_v29  ;;  %v3555_v38 = vld [vmem:[#allocation2 + $0x9] sm:$0xff]  ;;  %v3556_v52 = vld [vmem:[#allocation2 + $0x11] sm:$0xff] }
0x19f2   : > { %7582 = vmatprep.mubr.msk.f32.mxu0 %vm8183_vm0, %v8182_v1  ;;  %7617 = vmatprep.mubr.msk.f32.mxu1 %vm8183_vm0, %v8182_v1  ;;  %v3557_v43 = vld [vmem:[#allocation2 + $0x19] sm:$0xff]  ;;  %v3558_v9 = vld [vmem:[#allocation2 + $0x21] sm:$0xff] }
0x19f3   : > { %v3553_v39 = vld [vmem:[#allocation2 + $0x30] sm:$0x1]  ;;  %v3560_v40 = vld [vmem:[#allocation2 + $0x31] sm:$0x1] }
0x19f4   : > { %v3559_v31 = vld [vmem:[#allocation2 + $0x29] sm:$0xff] }
0x19f5   : > { %7583 = vmatmul.mubr.f32.gmra.mxu0 %v3555_v38  ;;  %7618 = vmatmul.mubr.f32.gmra.mxu1 %v3536_v14 }
0x19f6   : > { %7585 = vmatprep.mubr.msk.f32.mxu0 %vm8183_vm0, %v8182_v1  ;;  %7620 = vmatprep.mubr.msk.f32.mxu1 %vm8183_vm0, %v8182_v1 }
0x19f9   : > { %7586 = vmatmul.mubr.f32.gmra.mxu0 %v3556_v52  ;;  %7621 = vmatmul.mubr.f32.gmra.mxu1 %v3537_v33 }
0x19fa   : > { %7588 = vmatprep.mubr.msk.f32.mxu0 %vm8183_vm0, %v8182_v1  ;;  %7623 = vmatprep.mubr.msk.f32.mxu1 %vm8183_vm0, %v8182_v1 }
0x19fd   : > { %7589 = vmatmul.mubr.f32.gmra.mxu0 %v3557_v43  ;;  %7624 = vmatmul.mubr.f32.gmra.mxu1 %v3538_v12 }
0x19fe   : > { %7591 = vmatprep.mubr.msk.f32.mxu0 %vm8183_vm0, %v8182_v1  ;;  %7626 = vmatprep.mubr.msk.f32.mxu1 %vm8183_vm0, %v8182_v1 }
0x1a01   : > { %7592 = vmatmul.mubr.f32.gmra.mxu0 %v3558_v9  ;;  %7627 = vmatmul.mubr.f32.gmra.mxu1 %v3553_v39 }
0x1a02   : > { %7594 = vmatprep.mubr.msk.f32.mxu0 %vm8183_vm0, %v8182_v1  ;;  %7671 = vmatprep.mubr.msk.f32.mxu1 %vm8183_vm0, %v8182_v1 }
0x1a05   : > { %7595 = vmatmul.mubr.f32.gmra.mxu0 %v3559_v31 }
0x1a06   : > { %7597 = vmatprep.mubr.msk.f32.mxu0 %vm8183_vm0, %v8182_v1 }
0x1a09   : > { %7598 = vmatmul.mubr.f32.gmra.mxu0 %v3560_v40 }
0x1a0a   : > { %7637 = vmatprep.mubr.msk.f32.mxu0 %vm8183_vm0, %v8182_v1 }
0x1a1f   : > { %v9438_v13 = vpop.f32.mrf.mxu0 }
0x1a21   : > { %v7527_v35 = vpop.f32.mrf.mxu0 }
0x1a23   : > { %v9440_v41 = vpop.f32.mrf.mxu0 }
0x1a25   : > { %v7530_v34 = vpop.f32.mrf.mxu0 }
0x1a27   : > { %v9442_v42 = vpop.f32.mrf.mxu0 }
0x1a29   : > { %v7533_v44 = vpop.f32.mrf.mxu0 }
0x1aa9   : > { %v3735_v45 = vpop.f32.mrf.mxu1 }
0x1aab   : > { %v7610_v48 = vpop.f32.mrf.mxu1 }
0x1aad   : > { %v3740_v49 = vpop.f32.mrf.mxu1 }
0x1aaf   : > { %v7613_v50 = vpop.f32.mrf.mxu1 }
0x1ab1   : > { %v3635_v51 = vpop.f32.mrf.mxu0  ;;  %v3745_v54 = vpop.f32.mrf.mxu1 }
0x1ab2   : > { %v3736_v16 = vadd.f32 %v3735_v45, %v3635_v51 }
0x1ab3   : > { %v7581_v62 = vpop.f32.mrf.mxu0  ;;  %v7616_v15 = vpop.f32.mrf.mxu1 }
0x1ab4   : > { %v3771_v24 = vsel %vm614_vm3, %v3736_v16, 0.0 }
0x1ab5   : > { %v3640_v21 = vpop.f32.mrf.mxu0  ;;  %v3750_v63 = vpop.f32.mrf.mxu1 }
0x1ab6   : > { %v3741_v2 = vadd.f32 %v3740_v49, %v3640_v21 }
0x1ab7   : > { %v7584_v0 = vpop.f32.mrf.mxu0  ;;  %v7619_v23 = vpop.f32.mrf.mxu1 }
0x1ab8   : > { %v3772_v55 = vsel %vm614_vm3, %v3741_v2, 0.0 }
0x1ab9   : > { %v3645_v59 = vpop.f32.mrf.mxu0  ;;  %v3755_v3 = vpop.f32.mrf.mxu1  ;;  %v3773_v26 = vadd.f32 %v3772_v55, %v3771_v24 }
0x1aba   : > { %v3746_v20 = vadd.f32 %v3745_v54, %v3645_v59 }
0x1abb   : > { %v7587_v7 = vpop.f32.mrf.mxu0  ;;  %v7622_v53 = vpop.f32.mrf.mxu1 }
0x1abc   : > { %v3774_v8 = vsel %vm614_vm3, %v3746_v20, 0.0 }
0x1abd   : > { %v3650_v60 = vpop.f32.mrf.mxu0  ;;  %v3760_v10 = vpop.f32.mrf.mxu1  ;;  %v3775_v11 = vadd.f32 %v3774_v8, %v3773_v26 }
0x1abe   : > { %v3751_v5 = vadd.f32 %v3750_v63, %v3650_v60 }
0x1abf   : > { %v7590_v22 = vpop.f32.mrf.mxu0  ;;  %v7625_v56 = vpop.f32.mrf.mxu1 }
0x1ac0   : > { %v3776_v32 = vsel %vm614_vm3, %v3751_v5, 0.0 }
0x1ac1   : > { %v3655_v61 = vpop.f32.mrf.mxu0  ;;  %v3765_v6 = vpop.f32.mrf.mxu1  ;;  %v3777_v12 = vadd.f32 %v3776_v32, %v3775_v11  ;;  %v3892_v32 = vld [vmem:[%s10454_s1 + $0xb4] sm:$0xff] }
0x1ac2   : > { %v3756_v18 = vadd.f32 %v3755_v3, %v3655_v61 }
0x1ac3   : > { %v7593_v27 = vpop.f32.mrf.mxu0  ;;  %v7628_v30 = vpop.f32.mrf.mxu1 }
0x1ac4   : > { %v3778_v14 = vsel %vm614_vm3, %v3756_v18, 0.0  ;;  %v3893_v30 = vld [vmem:[%s10454_s1 + $0xbc] sm:$0xff] }
0x1ac5   : > { %v3660_v29 = vpop.f32.mrf.mxu0  ;;  %v3779_v38 = vadd.f32 %v3778_v14, %v3777_v12  ;;  %7630 = vmatpush3.msra.mxu0 %v3893_v30  ;;  %v3883_v30 = vld [vmem:[%s10454_s1 + $0x84] sm:$0xff] }
0x1ac6   : > { %v3761_v33 = vadd.f32 %v3760_v10, %v3660_v29  ;;  %7631 = vmatprep.subr.mxu0 %v8182_v1 }
0x1ac7   : > { %v7596_v36 = vpop.f32.mrf.mxu0  ;;  %7632 = vmatpush3.msra.mxu0 %v3892_v32 }
0x1ac8   : > { %v3780_v37 = vsel %vm614_vm3, %v3761_v33, 0.0  ;;  %7633 = vmatprep.subr.mxu0 %v8182_v1 }
0x1ac9   : > { %v3665_v52 = vpop.f32.mrf.mxu0  ;;  %v3781_v39 = vadd.f32 %v3780_v37, %v3779_v38  ;;  %v3891_v38 = vld [vmem:[%s10454_s1 + $0xac] sm:$0xff] }
0x1aca   : > { %v3766_v43 = vadd.f32 %v3765_v6, %v3665_v52  ;;  %v3890_v52 = vld [vmem:[%s10454_s1 + $0xa4] sm:$0xff]  ;;  %7634 = vmatpush3.msra.mxu0 %v3891_v38 }
0x1acb   : > { %v7599_v9 = vpop.f32.mrf.mxu0  ;;  %7635 = vmatprep.subr.mxu0 %v8182_v1 }
0x1acc   : > { %v3782_v31 = vsel %vm626_vm4, %v3766_v43, 0.0  ;;  %v4077_v9 = vld [vmem:[%s10454_s1 + $0xd4] sm:$0xff]  ;;  %7636 = vmatpush3.msra.mxu0 %v3890_v52 }
0x1acd   : > { %v3783_v40 = vadd.f32 %v3782_v31, %v3781_v39  ;;  %v4076_v39 = vld [vmem:[%s10454_s1 + $0xcc] sm:$0xff]  ;;  %7646 = vmatprep.subr.mxu0 %v8182_v1  ;;  %v4075_v31 = vld [vmem:[%s10454_s1 + $0xc4] sm:$0xff] }
0x1acf   : > { %3784 = vadd.xlane.f32.xlu1 %v3783_v40 }
0x1b58   : > { %v3785_v35 = vpop.xlane.xlu1 %3784 }
0x1b59   : > { %v3786_v34 = vrot.slane %v3785_v35, 4 }
0x1b5b   : > { %v3787_v44 = vadd.f32 %v3786_v34, %v3785_v35  ;;  %v6630_v34 = vld [vmem:[%s10454_s1 + $0x82] ss:$0 sm:$0xff] }
0x1b5d   : > { %v3788_v45 = vrot.slane %v3787_v44, 2 }
0x1b5f   : > { %v3789_v48 = vadd.f32 %v3788_v45, %v3787_v44 }
0x1b61   : > { %v3790_v49 = vrot.slane %v3789_v48, 1 }
0x1b63   : > { %v3791_v50 = vadd.f32 %v3790_v49, %v3789_v48 }
0x1b65   : > { %8045 = vpush %v3791_v50 }
0x1b96   : > { %s8046_s8 = spop %8045 }
0x1b97   : > { %s3793_s10 = smul.f32 0.0006377551, %s8046_s8 }
0x1b99   : > { %v3794_v51 = vstv %s3793_s10 }
0x1b9a   : > { %v9451_v54 = vsub.f32 %v3736_v16, %v3794_v51  ;;  %v9453_v62 = vsub.f32 %v3741_v2, %v3794_v51  ;;  %v9455_v15 = vsub.f32 %v3746_v20, %v3794_v51  ;;  %v9457_v21 = vsub.f32 %v3751_v5, %v3794_v51 }
0x1b9b   : > { %v9459_v63 = vsub.f32 %v3756_v18, %v3794_v51  ;;  %v9467_v3 = vsub.f32 %v3761_v33, %v3794_v51  ;;  %v3801_v10 = vsub.f32 %v3766_v43, %v3794_v51  ;;  %v4078_v43 = vld [vmem:[%s10454_s1 + $0xdc] sm:$0xff] }
0x1b9c   : > { %v3802_v0 = vmul.f32 %v9451_v54, %v9451_v54  ;;  %v3803_v23 = vmul.f32 %v9453_v62, %v9453_v62  ;;  %v3804_v59 = vmul.f32 %v9455_v15, %v9455_v15  ;;  %v3805_v7 = vmul.f32 %v9457_v21, %v9457_v21  ;;  %7664 = vmatpush3.msra.mxu1 %v4078_v43  ;;  %v6631_v51 = vld [vmem:[%s10454_s1 + $0x83] ss:$0 sm:$0xff] }
0x1b9d   : > { %v3806_v16 = vmul.f32 %v9459_v63, %v9459_v63  ;;  %v3807_v56 = vmul.f32 %v9467_v3, %v9467_v3  ;;  %v3808_v61 = vmul.f32 %v3801_v10, %v3801_v10  ;;  %7665 = vmatprep.subr.mxu1 %v8182_v1 }
0x1b9e   : > { %v3809_v53 = vsel %vm614_vm3, %v3802_v0, 0.0  ;;  %v3810_v2 = vsel %vm614_vm3, %v3803_v23, 0.0  ;;  %v3812_v20 = vsel %vm614_vm3, %v3804_v59, 0.0  ;;  %v3814_v55 = vsel %vm614_vm3, %v3805_v7, 0.0  ;;  %7666 = vmatpush3.msra.mxu1 %v4077_v9 }
0x1b9f   : > { %v3811_v60 = vadd.f32 %v3810_v2, %v3809_v53  ;;  %v3816_v6 = vsel %vm614_vm3, %v3806_v16, 0.0  ;;  %v3818_v8 = vsel %vm614_vm3, %v3807_v56, 0.0  ;;  %v3820_v26 = vsel %vm626_vm4, %v3808_v61, 0.0  ;;  %7667 = vmatprep.subr.mxu1 %v8182_v1 }
0x1ba0   : > { %7668 = vmatpush3.msra.mxu1 %v4076_v39 }
0x1ba1   : > { %v3813_v22 = vadd.f32 %v3812_v20, %v3811_v60  ;;  %7669 = vmatprep.subr.mxu1 %v8182_v1 }
0x1ba2   : > { %7670 = vmatpush3.msra.mxu1 %v4075_v31 }
0x1ba3   : > { %v3815_v5 = vadd.f32 %v3814_v55, %v3813_v22  ;;  %7697 = vmatprep.subr.mxu1 %v8182_v1 }
0x1ba5   : > { %v3817_v24 = vadd.f32 %v3816_v6, %v3815_v5 }
0x1ba7   : > { %v3819_v18 = vadd.f32 %v3818_v8, %v3817_v24  ;;  %v3885_v8 = vld [vmem:[%s10454_s1 + $0x94] sm:$0xff] }
0x1ba9   : > { %v3821_v27 = vadd.f32 %v3820_v26, %v3819_v18 }
0x1bab   : > { %3822 = vadd.xlane.f32.xlu0 %v3821_v27  ;;  %v3884_v27 = vld [vmem:[%s10454_s1 + $0x8c] sm:$0xff] }
0x1c34   : > { %v3823_v11 = vpop.xlane.xlu0 %3822 }
0x1c35   : > { %v3824_v29 = vrot.slane %v3823_v11, 4 }
0x1c37   : > { %v3825_v14 = vadd.f32 %v3824_v29, %v3823_v11  ;;  %v4177_v29 = vld [vmem:[%s10454_s1 + $0xfc] sm:$0xff] }
0x1c39   : > { %v3826_v33 = vrot.slane %v3825_v14, 2 }
0x1c3b   : > { %v3827_v12 = vadd.f32 %v3826_v33, %v3825_v14  ;;  %v4176_v33 = vld [vmem:[%s10454_s1 + $0xf4] sm:$0xff] }
0x1c3d   : > { %v3828_v36 = vrot.slane %v3827_v12, 1 }
0x1c3f   : > { %v3829_v37 = vadd.f32 %v3828_v36, %v3827_v12  ;;  %v4175_v12 = vld [vmem:[%s10454_s1 + $0xec] sm:$0xff] }
0x1c41   : > { %8047 = vpush %v3829_v37  ;;  %v4174_v37 = vld [vmem:[%s10454_s1 + $0xe4] sm:$0xff] }
0x1c72   : > { %s8048_s4 = spop %8047 }
0x1c73   : > { %s3831_s6 = smul.f32 0.0006377551, %s8048_s4 }
0x1c75   : > { %s3832_s3 = sadd.f32 1e-05, %s3831_s6 }
0x1c77   : > { %v3833_v40 = vstv %s3832_s3 }
0x1c78   : > { %8144 = vrsqrt.f32 %v3833_v40 }
0x1c85   : > { %v8145_v35 = vpop.eup %8144 }
0x1c86   : > { %8049 = vpush %v8145_v35 }
0x1cb7   : > { %s8050_s5 = spop %8049 }
0x1cb8   : > { %v3836_v44 = vstv %s8050_s5 }
0x1cb9   : > { %v3837_v45 = vmul.f32 %v3836_v44, %v9451_v54  ;;  %v3838_v48 = vmul.f32 %v3836_v44, %v9453_v62  ;;  %v3839_v49 = vmul.f32 %v3836_v44, %v9455_v15  ;;  %v3840_v50 = vmul.f32 %v3836_v44, %v9457_v21 }
0x1cba   : > { %v3841_v0 = vmul.f32 %v3836_v44, %v9459_v63  ;;  %v3842_v23 = vmul.f32 %v3836_v44, %v9467_v3  ;;  %v3886_v3 = vld [vmem:[%s10454_s1 + $0x9c] sm:$0xff] }
0x1cbb   : > { %v3848_v59 = vmul.f32 %v6630_v34, %v3837_v45  ;;  %v3849_v7 = vmul.f32 %v6630_v34, %v3838_v48  ;;  %v3850_v53 = vmul.f32 %v6630_v34, %v3839_v49  ;;  %v3851_v2 = vmul.f32 %v6630_v34, %v3840_v50 }
0x1cbc   : > { %v3852_v60 = vmul.f32 %v6630_v34, %v3841_v0  ;;  %v3853_v54 = vmul.f32 %v6630_v34, %v3842_v23 }
0x1cbd   : > { %v3859_v10 = vadd.f32 %v6631_v51, %v3848_v59  ;;  %v3860_v62 = vadd.f32 %v6631_v51, %v3849_v7  ;;  %v3861_v16 = vadd.f32 %v6631_v51, %v3850_v53  ;;  %v3862_v15 = vadd.f32 %v6631_v51, %v3851_v2 }
0x1cbe   : > { %v3863_v20 = vadd.f32 %v6631_v51, %v3852_v60  ;;  %v3864_v21 = vadd.f32 %v6631_v51, %v3853_v54 }
0x1cbf   : > { %v3866_v22 = vmax.f32 %v3859_v10, 0.0  ;;  %v3867_v56 = vmax.f32 %v3860_v62, 0.0  ;;  %v3868_v55 = vmax.f32 %v3861_v16, 0.0  ;;  %v3869_v5 = vmax.f32 %v3862_v15, 0.0 }
0x1cc0   : > { %v3870_v61 = vmax.f32 %v3863_v20, 0.0  ;;  %v3871_v63 = vmax.f32 %v3864_v21, 0.0 }
0x1cc1   : > { %3873 = vst.msk [vmem:[#allocation3] sm:$0xff] %vm614_vm3, %v3866_v22  ;;  %3874 = vst.msk [vmem:[#allocation3 + $0x8] sm:$0xff] %vm614_vm3, %v3867_v56 }
0x1cc2   : > { %3875 = vst.msk [vmem:[#allocation3 + $0x10] sm:$0xff] %vm614_vm3, %v3868_v55  ;;  %3876 = vst.msk [vmem:[#allocation3 + $0x18] sm:$0xff] %vm614_vm3, %v3869_v5 }
0x1cc3   : > { %3877 = vst.msk [vmem:[#allocation3 + $0x20] sm:$0xff] %vm614_vm3, %v3870_v61  ;;  %3878 = vst.msk [vmem:[#allocation3 + $0x28] sm:$0xff] %vm614_vm3, %v3871_v63 }
0x1cc8   : > { %v3887_v6 = vld [vmem:[#allocation3 + $0x1] ss:$2 sm:$0xff]  ;;  %v3880_v14 = vld [vmem:[#allocation3] ss:$2 sm:$0xff] }
0x1cc9   : > { %v4072_v24 = vld [vmem:[#allocation3 + $0x2] ss:$2 sm:$0xff]  ;;  %7638 = vmatmul.mubr.msk.f32.vlgmr.msra.gmra.mxu0 %vm614_vm3, %v3887_v6  ;;  %v3888_v18 = vld [vmem:[#allocation3 + $0x11] ss:$2 sm:$0xff] }
0x1cca   : > { %7672 = vmatmul.mubr.msk.f32.vlgmr.msra.gmra.mxu1 %vm614_vm3, %v4072_v24  ;;  %7647 = vmatpush3.msra.mxu0 %v3886_v3  ;;  %v4073_v26 = vld [vmem:[#allocation3 + $0x12] ss:$2 sm:$0xff]  ;;  %v3889_v32 = vld [vmem:[#allocation3 + $0x21] ss:$2 sm:$0x7f] }
0x1ccb   : > { %7640 = vmatprep.mubr.msk.f32.mxu0 %vm8183_vm0, %v8182_v1  ;;  %7648 = vmatprep.subr.mxu0 %v8182_v1  ;;  %v4074_v11 = vld [vmem:[#allocation3 + $0x22] ss:$2 sm:$0x7f]  ;;  %v3881_v36 = vld [vmem:[#allocation3 + $0x10] ss:$2 sm:$0xff] }
0x1ccc   : > { %7674 = vmatprep.mubr.msk.f32.mxu1 %vm8183_vm0, %v8182_v1  ;;  %7649 = vmatpush3.msra.mxu0 %v3885_v8  ;;  %v3882_v38 = vld [vmem:[#allocation3 + $0x20] ss:$2 sm:$0x7f]  ;;  %v4171_v52 = vld [vmem:[#allocation3 + $0x3] ss:$2 sm:$0xff] }
0x1ccd   : > { %7641 = vmatmul.mubr.msk.f32.gmra.mxu0 %vm614_vm3, %v3888_v18  ;;  %7650 = vmatprep.subr.mxu0 %v8182_v1  ;;  %v4172_v43 = vld [vmem:[#allocation3 + $0x13] ss:$2 sm:$0xff]  ;;  %v4173_v9 = vld [vmem:[#allocation3 + $0x23] ss:$2 sm:$0x7f] }
0x1cce   : > { %7675 = vmatmul.mubr.msk.f32.gmra.mxu1 %vm614_vm3, %v4073_v26  ;;  %7643 = vmatprep.mubr.msk.f32.mxu0 %vm8183_vm0, %v8182_v1 }
0x1ccf   : > { %7651 = vmatpush3.msra.mxu0 %v3884_v27  ;;  %7677 = vmatprep.mubr.msk.f32.mxu1 %vm8183_vm0, %v8182_v1 }
0x1cd0   : > { %7652 = vmatprep.subr.mxu0 %v8182_v1 }
0x1cd1   : > { %7644 = vmatmul.mubr.msk.f32.gmra.mxu0 %vm614_vm3, %v3889_v32 }
0x1cd2   : > { %7678 = vmatmul.mubr.msk.f32.gmra.mxu1 %vm614_vm3, %v4074_v11  ;;  %7653 = vmatpush3.msra.mxu0 %v3883_v30 }
0x1cd3   : > { %7654 = vmatprep.mubr.msk.f32.mxu0 %vm8183_vm0, %v8182_v1  ;;  %7680 = vmatprep.subr.mxu0 %v8182_v1 }
0x1cd4   : > { %7713 = vmatprep.mubr.msk.f32.mxu1 %vm8183_vm0, %v8182_v1 }
0x1cd5   : > { %7655 = vmatmul.mubr.msk.f32.vlgmr.msra.gmra.mxu0 %vm614_vm3, %v3880_v14 }
0x1cd6   : > { %7681 = vmatpush3.msra.mxu0 %v4177_v29  ;;  %7657 = vmatprep.mubr.msk.f32.mxu0 %vm8183_vm0, %v8182_v1 }
0x1cd7   : > { %7682 = vmatprep.subr.mxu0 %v8182_v1 }
0x1cd8   : > { %7683 = vmatpush3.msra.mxu0 %v4176_v33 }
0x1cd9   : > { %7658 = vmatmul.mubr.msk.f32.gmra.mxu0 %vm614_vm3, %v3881_v36  ;;  %7684 = vmatprep.subr.mxu0 %v8182_v1 }
0x1cda   : > { %7685 = vmatpush3.msra.mxu0 %v4175_v12  ;;  %7660 = vmatprep.mubr.msk.f32.mxu0 %vm8183_vm0, %v8182_v1 }
0x1cdb   : > { %7686 = vmatprep.subr.mxu0 %v8182_v1 }
0x1cdc   : > { %7687 = vmatpush3.msra.mxu0 %v4174_v37 }
0x1cdd   : > { %7661 = vmatmul.mubr.msk.f32.gmra.mxu0 %vm614_vm3, %v3882_v38  ;;  %7722 = vmatprep.subr.mxu0 %v8182_v1 }
0x1cde   : > { %7688 = vmatprep.mubr.msk.f32.mxu0 %vm8183_vm0, %v8182_v1 }
0x1ce1   : > { %7689 = vmatmul.mubr.msk.f32.vlgmr.msra.gmra.mxu0 %vm614_vm3, %v4171_v52 }
0x1ce2   : > { %7691 = vmatprep.mubr.msk.f32.mxu0 %vm8183_vm0, %v8182_v1 }
0x1ce5   : > { %7692 = vmatmul.mubr.msk.f32.gmra.mxu0 %vm614_vm3, %v4172_v43 }
0x1ce6   : > { %7694 = vmatprep.mubr.msk.f32.mxu0 %vm8183_vm0, %v8182_v1 }
0x1ce9   : > { %7695 = vmatmul.mubr.msk.f32.gmra.mxu0 %vm614_vm3, %v4173_v9 }
0x1cea   : > { %7730 = vmatprep.mubr.msk.f32.mxu0 %vm8183_vm0, %v8182_v1 }
0x1d89   : > { %v3969_v39 = vpop.f32.mrf.mxu0 }
0x1d8a   : > { %v4154_v31 = vpop.f32.mrf.mxu1 }
0x1d8b   : > { %v7639_v40 = vpop.f32.mrf.mxu0 }
0x1d8c   : > { %v7673_v35 = vpop.f32.mrf.mxu1 }
0x1d8d   : > { %v3974_v34 = vpop.f32.mrf.mxu0 }
0x1d8e   : > { %v4159_v44 = vpop.f32.mrf.mxu1 }
0x1d8f   : > { %v7642_v45 = vpop.f32.mrf.mxu0 }
0x1d90   : > { %v7676_v48 = vpop.f32.mrf.mxu1 }
0x1d91   : > { %v3979_v49 = vpop.f32.mrf.mxu0 }
0x1d92   : > { %v4164_v50 = vpop.f32.mrf.mxu1 }
0x1d93   : > { %v7645_v51 = vpop.f32.mrf.mxu0 }
0x1d94   : > { %v7679_v0 = vpop.f32.mrf.mxu1 }
0x1d95   : > { %v4058_v23 = vpop.f32.mrf.mxu0 }
0x1d96   : > { %v4059_v54 = vadd.f32 %v4058_v23, %v3969_v39 }
0x1d97   : > { %v7656_v59 = vpop.f32.mrf.mxu0 }
0x1d98   : > { %v4168_v20 = vadd.f32 %v4154_v31, %v4059_v54  ;;  %v4353_v59 = vld [vmem:[%s10454_s1 + $0x13e] sm:$0xff]  ;;  %v4348_v54 = vld [vmem:[%s10454_s1 + $0x116] sm:$0xff] }
0x1d99   : > { %v4063_v7 = vpop.f32.mrf.mxu0  ;;  %7698 = vmatpush3.msra.mxu1 %v4353_v59 }
0x1d9a   : > { %v4064_v10 = vadd.f32 %v4063_v7, %v3974_v34  ;;  %7699 = vmatprep.subr.mxu1 %v8182_v1  ;;  %v4352_v7 = vld [vmem:[%s10454_s1 + $0x136] sm:$0xff] }
0x1d9b   : > { %v7659_v53 = vpop.f32.mrf.mxu0  ;;  %7700 = vmatpush3.msra.mxu1 %v4352_v7 }
0x1d9c   : > { %v4169_v21 = vadd.f32 %v4159_v44, %v4064_v10  ;;  %7701 = vmatprep.subr.mxu1 %v8182_v1  ;;  %v4351_v53 = vld [vmem:[%s10454_s1 + $0x12e] sm:$0xff] }
0x1d9d   : > { %v4068_v2 = vpop.f32.mrf.mxu0  ;;  %7702 = vmatpush3.msra.mxu1 %v4351_v53  ;;  %v4347_v10 = vld [vmem:[%s10454_s1 + $0x10e] sm:$0xff] }
0x1d9e   : > { %v4069_v15 = vadd.f32 %v4068_v2, %v3979_v49  ;;  %7703 = vmatprep.subr.mxu1 %v8182_v1  ;;  %v4350_v2 = vld [vmem:[%s10454_s1 + $0x126] sm:$0xff] }
0x1d9f   : > { %v7662_v60 = vpop.f32.mrf.mxu0  ;;  %7704 = vmatpush3.msra.mxu1 %v4350_v2 }
0x1da0   : > { %v4170_v63 = vadd.f32 %v4164_v50, %v4069_v15  ;;  %7705 = vmatprep.subr.mxu1 %v8182_v1  ;;  %v4349_v60 = vld [vmem:[%s10454_s1 + $0x11e] sm:$0xff] }
0x1da1   : > { %v4253_v62 = vpop.f32.mrf.mxu0  ;;  %7706 = vmatpush3.msra.mxu1 %v4349_v60 }
0x1da2   : > { %v4267_v56 = vadd.f32 %v4253_v62, %v4168_v20  ;;  %7707 = vmatprep.subr.mxu1 %v8182_v1  ;;  %v4346_v62 = vld [vmem:[%s10454_s1 + $0x106] sm:$0xff]  ;;  %v6644_v20 = vld [vmem:[%s10454_s1 + $0x104] ss:$0 sm:$0xff] }
0x1da3   : > { %v7690_v16 = vpop.f32.mrf.mxu0  ;;  %7708 = vmatpush3.msra.mxu1 %v4348_v54 }
0x1da4   : > { %v4272_v6 = vsel %vm165_vm1, %v4267_v56, 0.0  ;;  %7709 = vmatprep.subr.mxu1 %v8182_v1 }
0x1da5   : > { %v4258_v22 = vpop.f32.mrf.mxu0  ;;  %7710 = vmatpush3.msra.mxu1 %v4347_v10 }
0x1da6   : > { %v4268_v55 = vadd.f32 %v4258_v22, %v4169_v21  ;;  %7711 = vmatprep.subr.mxu1 %v8182_v1 }
0x1da7   : > { %v7693_v5 = vpop.f32.mrf.mxu0  ;;  %7712 = vmatpush3.msra.mxu1 %v4346_v62 }
0x1da8   : > { %v4273_v61 = vsel %vm165_vm1, %v4268_v55, 0.0  ;;  %7739 = vmatprep.subr.mxu1 %v8182_v1  ;;  %v6645_v5 = vld [vmem:[%s10454_s1 + $0x105] ss:$0 sm:$0xff] }
0x1da9   : > { %v4263_v3 = vpop.f32.mrf.mxu0  ;;  %v4274_v18 = vadd.f32 %v4273_v61, %v4272_v6 }
0x1daa   : > { %v4269_v24 = vadd.f32 %v4263_v3, %v4170_v63 }
0x1dab   : > { %v7696_v8 = vpop.f32.mrf.mxu0 }
0x1dac   : > { %v4275_v26 = vsel %vm1131_vm5, %v4269_v24, 0.0 }
0x1dad   : > { %v4276_v27 = vadd.f32 %v4275_v26, %v4274_v18 }
0x1daf   : > { %4277 = vadd.xlane.f32.xlu0 %v4276_v27 }
0x1e38   : > { %v4278_v30 = vpop.xlane.xlu0 %4277 }
0x1e39   : > { %v4279_v32 = vrot.slane %v4278_v30, 4 }
0x1e3b   : > { %v4280_v11 = vadd.f32 %v4279_v32, %v4278_v30 }
0x1e3d   : > { %v4281_v29 = vrot.slane %v4280_v11, 2 }
0x1e3f   : > { %v4282_v14 = vadd.f32 %v4281_v29, %v4280_v11 }
0x1e41   : > { %v4283_v33 = vrot.slane %v4282_v14, 1 }
0x1e43   : > { %v4284_v12 = vadd.f32 %v4283_v33, %v4282_v14 }
0x1e45   : > { %8051 = vpush %v4284_v12 }
0x1e76   : > { %s8052_s4 = spop %8051 }
0x1e77   : > { %s4286_s6 = smul.f32 0.00067934784, %s8052_s4 }
0x1e79   : > { %v4287_v36 = vstv %s4286_s6 }
0x1e7a   : > { %v4288_v37 = vsub.f32 %v4267_v56, %v4287_v36  ;;  %v4289_v38 = vsub.f32 %v4268_v55, %v4287_v36  ;;  %v4290_v52 = vsub.f32 %v4269_v24, %v4287_v36 }
0x1e7c   : > { %v4291_v43 = vmul.f32 %v4288_v37, %v4288_v37  ;;  %v4292_v9 = vmul.f32 %v4289_v38, %v4289_v38  ;;  %v4293_v39 = vmul.f32 %v4290_v52, %v4290_v52 }
0x1e7e   : > { %v4294_v31 = vsel %vm165_vm1, %v4291_v43, 0.0  ;;  %v4295_v40 = vsel %vm165_vm1, %v4292_v9, 0.0  ;;  %v4297_v34 = vsel %vm1131_vm5, %v4293_v39, 0.0 }
0x1e7f   : > { %v4296_v35 = vadd.f32 %v4295_v40, %v4294_v31 }
0x1e81   : > { %v4298_v44 = vadd.f32 %v4297_v34, %v4296_v35 }
0x1e83   : > { %4299 = vadd.xlane.f32.xlu1 %v4298_v44 }
0x1f0c   : > { %v4300_v45 = vpop.xlane.xlu1 %4299 }
0x1f0d   : > { %v4301_v48 = vrot.slane %v4300_v45, 4 }
0x1f0f   : > { %v4302_v49 = vadd.f32 %v4301_v48, %v4300_v45 }
0x1f11   : > { %v4303_v50 = vrot.slane %v4302_v49, 2 }
0x1f13   : > { %v4304_v51 = vadd.f32 %v4303_v50, %v4302_v49 }
0x1f15   : > { %v4305_v0 = vrot.slane %v4304_v51, 1 }
0x1f17   : > { %v4306_v23 = vadd.f32 %v4305_v0, %v4304_v51 }
0x1f19   : > { %8053 = vpush %v4306_v23 }
0x1f4a   : > { %s8054_s22 = spop %8053 }
0x1f4b   : > { %s4308_s23 = smul.f32 0.00067934784, %s8054_s22 }
0x1f4d   : > { %s4309_s24 = sadd.f32 1e-05, %s4308_s23 }
0x1f4f   : > { %v4310_v16 = vstv %s4309_s24 }
0x1f50   : > { %8146 = vrsqrt.f32 %v4310_v16 }
0x1f5d   : > { %v8147_v15 = vpop.eup %8146 }
0x1f5e   : > { %8055 = vpush %v8147_v15 }
0x1f8f   : > { %s8056_s25 = spop %8055 }
0x1f90   : > { %v4313_v21 = vstv %s8056_s25 }
0x1f91   : > { %v4314_v22 = vmul.f32 %v4313_v21, %v4288_v37  ;;  %v4315_v56 = vmul.f32 %v4313_v21, %v4289_v38  ;;  %v4316_v55 = vmul.f32 %v4313_v21, %v4290_v52 }
0x1f93   : > { %v4321_v61 = vmul.f32 %v6644_v20, %v4314_v22  ;;  %v4322_v63 = vmul.f32 %v6644_v20, %v4315_v56  ;;  %v4323_v3 = vmul.f32 %v6644_v20, %v4316_v55 }
0x1f95   : > { %v4328_v6 = vadd.f32 %v6645_v5, %v4321_v61  ;;  %v4329_v24 = vadd.f32 %v6645_v5, %v4322_v63  ;;  %v4330_v8 = vadd.f32 %v6645_v5, %v4323_v3  ;;  %v4507_v61 = vld [vmem:[%s10454_s1 + $0x160] sm:$0xff]  ;;  %v4506_v63 = vld [vmem:[%s10454_s1 + $0x158] sm:$0xff] }
0x1f96   : > { %7723 = vmatpush3.xpose.msk.msra.mxu0 %vm614_vm3, %v4507_v61 }
0x1f97   : > { %v4331_v18 = vmax.f32 %v4328_v6, 0.0  ;;  %v4332_v26 = vmax.f32 %v4329_v24, 0.0  ;;  %v4333_v27 = vmax.f32 %v4330_v8, 0.0  ;;  %7724 = vmatprep.subr.mxu0 %v8182_v1 }
0x1f99   : > { %v4334_v30 = vand.u32 2147483647, %v4331_v18  ;;  %v4335_v32 = vand.u32 2147483647, %v4332_v26  ;;  %v4336_v11 = vand.u32 2147483647, %v4333_v27 }
0x1f9a   : > { %7725 = vmatpush3.xpose.msk.msra.mxu0 %vm614_vm3, %v4506_v63 }
0x1f9b   : > { %v4337_v29 = vadd.f32 1.0, %v4334_v30  ;;  %v4338_v14 = vadd.f32 1.0, %v4335_v32  ;;  %v4339_v33 = vadd.f32 1.0, %v4336_v11  ;;  %7726 = vmatprep.subr.mxu0 %v8182_v1 }
0x1f9d   : > { %8148 = vlog2.f32 %v4337_v29 }
0x1f9e   : > { %8150 = vlog2.f32 %v4338_v14  ;;  %v4505_v14 = vld [vmem:[%s10454_s1 + $0x150] sm:$0xff] }
0x1f9f   : > { %8152 = vlog2.f32 %v4339_v33  ;;  %7727 = vmatpush3.xpose.msk.msra.mxu0 %vm614_vm3, %v4505_v14 }
0x1fa0   : > { %7728 = vmatprep.subr.mxu0 %v8182_v1 }
0x1faa   : > { %v8149_v12 = vpop.eup %8148 }
0x1fab   : > { %v4341_v36 = vmul.f32 0.6931472, %v8149_v12  ;;  %v8151_v37 = vpop.eup %8150 }
0x1fac   : > { %v4343_v38 = vmul.f32 0.6931472, %v8151_v37  ;;  %v8153_v52 = vpop.eup %8152  ;;  %v4504_v37 = vld [vmem:[%s10454_s1 + $0x148] sm:$0xff] }
0x1fad   : > { %7714 = vmatmul.mubr.msk.f32.vlgmr.msra.gmra.mxu1 %vm165_vm1, %v4341_v36  ;;  %v4345_v43 = vmul.f32 0.6931472, %v8153_v52  ;;  %7729 = vmatpush3.xpose.msk.msra.mxu0 %vm614_vm3, %v4504_v37 }
0x1fae   : > { %7716 = vmatprep.mubr.msk.f32.mxu1 %vm8183_vm0, %v8182_v1  ;;  %7756 = vmatprep.subr.mxu0 %v8182_v1 }
0x1fb1   : > { %7717 = vmatmul.mubr.msk.f32.gmra.mxu1 %vm165_vm1, %v4343_v38 }
0x1fb2   : > { %7719 = vmatprep.mubr.msk.f32.mxu1 %vm8183_vm0, %v8182_v1 }
0x1fb5   : > { %7720 = vmatmul.mubr.msk.f32.gmra.mxu1 %vm165_vm1, %v4345_v43 }
0x1fb6   : > { %7747 = vmatprep.mubr.msk.f32.mxu1 %vm8183_vm0, %v8182_v1 }
0x206d   : > { %v9653_v9 = vpop.f32.mrf.mxu1 }
0x206e   : > { %v4445_v34 = vsel %vm614_vm3, %v9653_v9, 0.0 }
0x206f   : > { %v7715_v39 = vpop.f32.mrf.mxu1 }
0x2070   : > { %v9703_v39 = vld [vmem:[%s10454_s1 + $0x146] ss:$0 sm:$0xff] }
0x2071   : > { %v9655_v31 = vpop.f32.mrf.mxu1 }
0x2072   : > { %v4446_v40 = vsel %vm614_vm3, %v9655_v31, 0.0 }
0x2073   : > { %v7718_v35 = vpop.f32.mrf.mxu1  ;;  %v4447_v45 = vadd.f32 %v4446_v40, %v4445_v34 }
0x2075   : > { %v9661_v44 = vpop.f32.mrf.mxu1 }
0x2076   : > { %v4448_v48 = vsel %vm1305_vm6, %v9661_v44, 0.0 }
0x2077   : > { %v7721_v49 = vpop.f32.mrf.mxu1  ;;  %v4449_v50 = vadd.f32 %v4448_v48, %v4447_v45  ;;  %v9708_v45 = vld [vmem:[%s10454_s1 + $0x147] ss:$0 sm:$0xff] }
0x2079   : > { %4450 = vadd.xlane.f32.xlu0 %v4449_v50 }
0x208f   : > { %4650 = vrot.lane.b32.xlu0 %v9653_v9, %s8184_s28 }
0x2102   : > { %v4451_v51 = vpop.xlane.xlu0 %4450 }
0x2103   : > { %v4452_v0 = vrot.slane %v4451_v51, 4 }
0x2105   : > { %v4453_v23 = vadd.f32 %v4452_v0, %v4451_v51  ;;  %v4891_v0 = vld [vmem:[%s10454_s1 + $0x38] sm:$0xff] }
0x2106   : > { %v4651_v8 = vpop.permute.xlu0 %4650 }
0x2107   : > { %v4454_v59 = vrot.slane %v4453_v23, 2  ;;  %v4659_v30 = vsel %vm614_vm3, %v4651_v8, 0.0  ;;  %v6676_v8 = vld [vmem:[%s8246_s29 + $0xd0] sm:$0xff] }
0x2109   : > { %v4455_v7 = vadd.f32 %v4454_v59, %v4453_v23  ;;  %v4890_v23 = vld [vmem:[%s10454_s1 + $0x30] sm:$0xff] }
0x210b   : > { %v4456_v53 = vrot.slane %v4455_v7, 1 }
0x210d   : > { %v4457_v2 = vadd.f32 %v4456_v53, %v4455_v7  ;;  %v4889_v53 = vld [vmem:[%s10454_s1 + $0x28] sm:$0xff] }
0x210f   : > { %8057 = vpush %v4457_v2  ;;  %v4888_v2 = vld [vmem:[%s10454_s1 + $0x20] sm:$0xff] }
0x2140   : > { %s8058_s3 = spop %8057 }
0x2141   : > { %s4459_s5 = smul.f32 0.0013586957, %s8058_s3 }
0x2143   : > { %v4460_v60 = vstv %s4459_s5 }
0x2144   : > { %v4461_v54 = vsub.f32 %v9653_v9, %v4460_v60  ;;  %v4462_v10 = vsub.f32 %v9655_v31, %v4460_v60  ;;  %v4463_v62 = vsub.f32 %v9661_v44, %v4460_v60 }
0x2146   : > { %v4464_v16 = vmul.f32 %v4461_v54, %v4461_v54  ;;  %v4465_v15 = vmul.f32 %v4462_v10, %v4462_v10  ;;  %v4466_v20 = vmul.f32 %v4463_v62, %v4463_v62 }
0x2148   : > { %v4467_v21 = vsel %vm614_vm3, %v4464_v16, 0.0  ;;  %v4468_v22 = vsel %vm614_vm3, %v4465_v15, 0.0  ;;  %v4470_v55 = vsel %vm1305_vm6, %v4466_v20, 0.0  ;;  %v4885_v16 = vld [vmem:[%s10454_s1 + $0x8] sm:$0xff]  ;;  %v4884_v20 = vld [vmem:[%s10454_s1] sm:$0xff] }
0x2149   : > { %v4469_v56 = vadd.f32 %v4468_v22, %v4467_v21  ;;  %v6671_v22 = vld [vmem:[%s8246_s29 + $0xa8] sm:$0xff] }
0x214b   : > { %v4471_v5 = vadd.f32 %v4470_v55, %v4469_v56 }
0x214d   : > { %4472 = vadd.xlane.f32.xlu1 %v4471_v5  ;;  %v6672_v5 = vld [vmem:[%s8246_s29 + $0xb0] sm:$0xff] }
0x215e   : > { %4652 = vrot.lane.b32.xlu1 %v9655_v31, %s8184_s28 }
0x2162   : > { %4654 = vrot.lane.b32.xlu1 %v9661_v44, %s8184_s28 }
0x21d6   : > { %v4473_v3 = vpop.xlane.xlu1 %4472 }
0x21d7   : > { %v4474_v6 = vrot.slane %v4473_v3, 4 }
0x21d9   : > { %v4475_v24 = vadd.f32 %v4474_v6, %v4473_v3  ;;  %v6673_v3 = vld [vmem:[%s8246_s29 + $0xb8] sm:$0xff]  ;;  %v6674_v6 = vld [vmem:[%s8246_s29 + $0xc0] sm:$0xff] }
0x21da   : > { %v4653_v18 = vpop.permute.xlu1 %4652 }
0x21db   : > { %v4476_v26 = vrot.slane %v4475_v24, 2  ;;  %v4660_v27 = vsel %vm614_vm3, %v4653_v18, 0.0  ;;  %v6677_v18 = vld [vmem:[%s8246_s29 + $0xd8] sm:$0x7] }
0x21dc   : > { %v4661_v11 = vadd.f32 %v4660_v27, %v4659_v30 }
0x21dd   : > { %v4477_v32 = vadd.f32 %v4476_v26, %v4475_v24  ;;  %v6675_v24 = vld [vmem:[%s8246_s29 + $0xc8] sm:$0xff] }
0x21de   : > { %v4655_v29 = vpop.permute.xlu1 %4654 }
0x21df   : > { %v4662_v33 = vsel %vm1305_vm6, %v4655_v29, 0.0  ;;  %v4478_v12 = vrot.slane %v4477_v32, 1 }
0x21e0   : > { %v4663_v36 = vadd.f32 %v4662_v33, %v4661_v11 }
0x21e1   : > { %v4479_v38 = vadd.f32 %v4478_v12, %v4477_v32 }
0x21e2   : > { %4664 = vadd.xlane.f32.xlu1 %v4663_v36 }
0x21e3   : > { %8059 = vpush %v4479_v38 }
0x2214   : > { %s8060_s16 = spop %8059 }
0x2215   : > { %s4481_s17 = smul.f32 0.0013586957, %s8060_s16 }
0x2217   : > { %s4482_s18 = sadd.f32 1e-05, %s4481_s17 }
0x2219   : > { %v4483_v52 = vstv %s4482_s18 }
0x221a   : > { %8154 = vrsqrt.f32 %v4483_v52 }
0x2227   : > { %v8155_v43 = vpop.eup %8154 }
0x2228   : > { %8061 = vpush %v8155_v43 }
0x2259   : > { %s8062_s19 = spop %8061 }
0x225a   : > { %v4486_v40 = vstv %s8062_s19 }
0x225b   : > { %v4487_v35 = vmul.f32 %v4486_v40, %v4461_v54  ;;  %v4488_v34 = vmul.f32 %v4486_v40, %v4462_v10  ;;  %v4489_v49 = vmul.f32 %v4486_v40, %v4463_v62  ;;  %v4887_v54 = vld [vmem:[%s10454_s1 + $0x18] sm:$0xff]  ;;  %v4886_v10 = vld [vmem:[%s10454_s1 + $0x10] sm:$0xff] }
0x225d   : > { %v4494_v48 = vmul.f32 %v9703_v39, %v4487_v35  ;;  %v4495_v50 = vmul.f32 %v9703_v39, %v4488_v34  ;;  %v4496_v59 = vmul.f32 %v9703_v39, %v4489_v49 }
0x225f   : > { %v4501_v51 = vadd.f32 %v9708_v45, %v4494_v48  ;;  %v4502_v7 = vadd.f32 %v9708_v45, %v4495_v50  ;;  %v4503_v60 = vadd.f32 %v9708_v45, %v4496_v59 }
0x2261   : > { %7731 = vmatmul.mubr.msk.f32.vlgmr.msra.gmra.mxu0 %vm614_vm3, %v4501_v51 }
0x2262   : > { %7733 = vmatprep.mubr.msk.f32.mxu0 %vm8183_vm0, %v8182_v1  ;;  %7757 = vmatpush3.msra.mxu0 %v4891_v0 }
0x2263   : > { %7758 = vmatprep.subr.mxu0 %v8182_v1 }
0x2264   : > { %7759 = vmatpush3.msra.mxu0 %v4890_v23 }
0x2265   : > { %7734 = vmatmul.mubr.msk.f32.gmra.mxu0 %vm614_vm3, %v4502_v7  ;;  %7760 = vmatprep.subr.mxu0 %v8182_v1 }
0x2266   : > { %7736 = vmatprep.mubr.msk.f32.mxu0 %vm8183_vm0, %v8182_v1  ;;  %7761 = vmatpush3.msra.mxu0 %v4889_v53 }
0x2267   : > { %7762 = vmatprep.subr.mxu0 %v8182_v1 }
0x2268   : > { %7763 = vmatpush3.msra.mxu0 %v4888_v2 }
0x2269   : > { %7737 = vmatmul.mubr.msk.f32.gmra.mxu0 %vm614_vm3, %v4503_v60  ;;  %7764 = vmatprep.subr.mxu0 %v8182_v1 }
0x226a   : > { %7765 = vmatpush3.msra.mxu0 %v4887_v54  ;;  %7772 = vmatprep.mubr.msk.f32.mxu0 %vm8183_vm0, %v8182_v1 }
0x226b   : > { %v4665_v62 = vpop.xlane.xlu1 %4664  ;;  %7766 = vmatprep.subr.mxu0 %v8182_v1 }
0x226c   : > { %v4666_v15 = vrot.slane %v4665_v62, 4  ;;  %7767 = vmatpush3.msra.mxu0 %v4886_v10 }
0x226d   : > { %7768 = vmatprep.subr.mxu0 %v8182_v1 }
0x226e   : > { %v4667_v21 = vadd.f32 %v4666_v15, %v4665_v62  ;;  %7769 = vmatpush3.msra.mxu0 %v4885_v16 }
0x226f   : > { %7770 = vmatprep.subr.mxu0 %v8182_v1 }
0x2270   : > { %v4668_v56 = vrot.slane %v4667_v21, 2  ;;  %7771 = vmatpush3.msra.mxu0 %v4884_v20 }
0x2271   : > { %7773 = vmatmul.mubr.msk.f32.vlgmr.msra.gmra.mxu0 %vm165_vm1, %v6671_v22  ;;  %7822 = vmatprep.subr.mxu0 %v8182_v1 }
0x2272   : > { %v4669_v55 = vadd.f32 %v4668_v56, %v4667_v21  ;;  %7775 = vmatprep.mubr.msk.f32.mxu0 %vm8183_vm0, %v8182_v1 }
0x2274   : > { %v4670_v61 = vrot.slane %v4669_v55, 1 }
0x2275   : > { %7776 = vmatmul.mubr.msk.f32.gmra.mxu0 %vm165_vm1, %v6672_v5 }
0x2276   : > { %v4671_v63 = vadd.f32 %v4670_v61, %v4669_v55  ;;  %7778 = vmatprep.mubr.msk.f32.mxu0 %vm8183_vm0, %v8182_v1 }
0x2278   : > { %8063 = vpush %v4671_v63 }
0x2279   : > { %7779 = vmatmul.mubr.msk.f32.gmra.mxu0 %vm165_vm1, %v6673_v3 }
0x227a   : > { %7781 = vmatprep.mubr.msk.f32.mxu0 %vm8183_vm0, %v8182_v1 }
0x227d   : > { %7782 = vmatmul.mubr.msk.f32.gmra.mxu0 %vm165_vm1, %v6674_v6 }
0x227e   : > { %7784 = vmatprep.mubr.msk.f32.mxu0 %vm8183_vm0, %v8182_v1 }
0x2281   : > { %7785 = vmatmul.mubr.msk.f32.gmra.mxu0 %vm165_vm1, %v6675_v24 }
0x2282   : > { %7787 = vmatprep.mubr.msk.f32.mxu0 %vm8183_vm0, %v8182_v1 }
0x2285   : > { %7788 = vmatmul.mubr.msk.f32.gmra.mxu0 %vm165_vm1, %v6676_v8 }
0x2286   : > { %7790 = vmatprep.mubr.msk.f32.mxu0 %vm8183_vm0, %v8182_v1 }
0x2289   : > { %7791 = vmatmul.mubr.msk.f32.gmra.mxu0 %vm165_vm1, %v6677_v18 }
0x228a   : > { %7830 = vmatprep.mubr.msk.f32.mxu0 %vm8183_vm0, %v8182_v1 }
0x22a9   : > { %s8064_s16 = spop %8063 }
0x22aa   : > { %s4673_s17 = smul.f32 0.0013586957, %s8064_s16 }
0x22ac   : > { %v4674_v26 = vstv %s4673_s17 }
0x22ad   : > { %v9786_v27 = vsub.f32 %v9653_v9, %v4674_v26  ;;  %v9789_v30 = vsub.f32 %v9655_v31, %v4674_v26  ;;  %v9795_v11 = vsub.f32 %v9661_v44, %v4674_v26  ;;  %v4733_v26 = vld [vmem:[%s10454_s1 + $0x180] sm:$0xff] }
0x22ae   : > { %7740 = vmatpush3.xpose.msk.msra.mxu1 %vm614_vm3, %v4733_v26 }
0x22af   : > { %v4678_v32 = vmul.f32 %v9786_v27, %v9786_v27  ;;  %v4679_v29 = vmul.f32 %v9789_v30, %v9789_v30  ;;  %v4680_v9 = vmul.f32 %v9795_v11, %v9795_v11  ;;  %7741 = vmatprep.subr.mxu1 %v8182_v1 }
0x22b1   : > { %4684 = vrot.lane.b32.xlu0 %v4678_v32, %s8184_s28  ;;  %v4732_v32 = vld [vmem:[%s10454_s1 + $0x178] sm:$0xff] }
0x22b2   : > { %7742 = vmatpush3.xpose.msk.msra.mxu1 %vm614_vm3, %v4732_v32  ;;  %v5132_v32 = vld [vmem:[%s10454_s1 + $0x5a] sm:$0xff] }
0x22b3   : > { %7743 = vmatprep.subr.mxu1 %v8182_v1  ;;  %7823 = vmatpush3.xpose.msra.mxu0 %v5132_v32 }
0x22b4   : > { %7824 = vmatprep.subr.mxu0 %v8182_v1 }
0x22b5   : > { %4686 = vrot.lane.b32.xlu0 %v4679_v29, %s8184_s28  ;;  %v4731_v29 = vld [vmem:[%s10454_s1 + $0x170] sm:$0xff] }
0x22b6   : > { %7744 = vmatpush3.xpose.msk.msra.mxu1 %vm614_vm3, %v4731_v29 }
0x22b7   : > { %7745 = vmatprep.subr.mxu1 %v8182_v1 }
0x22b9   : > { %4688 = vrot.lane.b32.xlu0 %v4680_v9, %s8184_s28  ;;  %v4730_v9 = vld [vmem:[%s10454_s1 + $0x168] sm:$0xff] }
0x22ba   : > { %7746 = vmatpush3.xpose.msk.msra.mxu1 %vm614_vm3, %v4730_v9 }
0x22bb   : > { %7793 = vmatprep.subr.mxu1 %v8182_v1 }
0x2321   : > { %v9803_v31 = vpop.f32.mrf.mxu0 }
0x2323   : > { %v4685_v14 = vpop.permute.xlu0 %4684  ;;  %v7732_v33 = vpop.f32.mrf.mxu0 }
0x2324   : > { %v4693_v52 = vsel %vm614_vm3, %v4685_v14, 0.0 }
0x2325   : > { %v9805_v12 = vpop.f32.mrf.mxu0 }
0x2327   : > { %v4687_v36 = vpop.permute.xlu0 %4686  ;;  %v7735_v37 = vpop.f32.mrf.mxu0 }
0x2328   : > { %v4694_v44 = vsel %vm614_vm3, %v4687_v36, 0.0 }
0x2329   : > { %v9808_v38 = vpop.f32.mrf.mxu0  ;;  %v4695_v43 = vadd.f32 %v4694_v44, %v4693_v52 }
0x232b   : > { %v4689_v40 = vpop.permute.xlu0 %4688  ;;  %v7738_v35 = vpop.f32.mrf.mxu0 }
0x232c   : > { %v4696_v34 = vsel %vm1305_vm6, %v4689_v40, 0.0 }
0x232d   : > { %v4697_v48 = vadd.f32 %v4696_v34, %v4695_v43 }
0x232f   : > { %4698 = vadd.xlane.f32.xlu0 %v4697_v48 }
0x2331   : > { %v9812_v49 = vpop.f32.mrf.mxu0 }
0x2333   : > { %v7774_v50 = vpop.f32.mrf.mxu0 }
0x2335   : > { %v9814_v51 = vpop.f32.mrf.mxu0 }
0x2336   : > { %v5015_v0 = vadd.f32 %v9814_v51, %v9812_v49 }
0x2337   : > { %v7777_v23 = vpop.f32.mrf.mxu0 }
0x2339   : > { %v4989_v59 = vpop.f32.mrf.mxu0 }
0x233a   : > { %v5016_v7 = vadd.f32 %v5015_v0, %v4989_v59 }
0x233b   : > { %v7780_v53 = vpop.f32.mrf.mxu0 }
0x233d   : > { %v4994_v2 = vpop.f32.mrf.mxu0 }
0x233e   : > { %v5017_v60 = vadd.f32 %v5016_v7, %v4994_v2 }
0x233f   : > { %v7783_v54 = vpop.f32.mrf.mxu0 }
0x2341   : > { %v4999_v10 = vpop.f32.mrf.mxu0 }
0x2342   : > { %v5018_v62 = vadd.f32 %v5017_v60, %v4999_v10 }
0x2343   : > { %v7786_v16 = vpop.f32.mrf.mxu0 }
0x2345   : > { %v5004_v15 = vpop.f32.mrf.mxu0 }
0x2346   : > { %v5019_v20 = vadd.f32 %v5018_v62, %v5004_v15 }
0x2347   : > { %v7789_v21 = vpop.f32.mrf.mxu0 }
0x2349   : > { %v5009_v22 = vpop.f32.mrf.mxu0 }
0x234a   : > { %v5020_v56 = vsel %vm294_vm2, %v5009_v22, 0.0 }
0x234b   : > { %v5021_v55 = vadd.f32 %v5020_v56, %v5019_v20  ;;  %v7792_v5 = vpop.f32.mrf.mxu0 }
0x234d   : > { %5022 = vadd.xlane.f32.xlu1 %v5021_v55 }
0x23b8   : > { %v4699_v61 = vpop.xlane.xlu0 %4698 }
0x23b9   : > { %v4700_v63 = vrot.slane %v4699_v61, 4 }
0x23bb   : > { %v4701_v3 = vadd.f32 %v4700_v63, %v4699_v61 }
0x23bd   : > { %v4702_v6 = vrot.slane %v4701_v3, 2 }
0x23bf   : > { %v4703_v24 = vadd.f32 %v4702_v6, %v4701_v3 }
0x23c1   : > { %v4704_v8 = vrot.slane %v4703_v24, 1 }
0x23c3   : > { %v4705_v18 = vadd.f32 %v4704_v8, %v4703_v24 }
0x23c5   : > { %8065 = vpush %v4705_v18 }
0x23d6   : > { %v5023_v14 = vpop.xlane.xlu1 %5022 }
0x23d7   : > { %v5024_v33 = vrot.slane %v5023_v14, 4 }
0x23d9   : > { %v5025_v36 = vadd.f32 %v5024_v33, %v5023_v14 }
0x23db   : > { %v5026_v44 = vrot.slane %v5025_v36, 2 }
0x23dd   : > { %v5027_v52 = vadd.f32 %v5026_v44, %v5025_v36 }
0x23df   : > { %v5028_v43 = vrot.slane %v5027_v52, 1 }
0x23e1   : > { %v5029_v35 = vadd.f32 %v5028_v43, %v5027_v52  ;;  %v5136_v52 = vld [vmem:[%s10454_s1 + $0x7a] sm:$0xff]  ;;  %v5130_v43 = vld [vmem:[%s10454_s1 + $0x4a] sm:$0xff] }
0x23f6   : > { %s8066_s25 = spop %8065 }
0x23f7   : > { %s4707_s26 = smul.f32 0.0013586957, %s8066_s25 }
0x23f9   : > { %s4708_s27 = sadd.f32 1e-05, %s4707_s26 }
0x23fb   : > { %v4709_v37 = vstv %s4708_s27 }
0x23fc   : > { %8156 = vrsqrt.f32 %v4709_v37 }
0x2409   : > { %v8157_v40 = vpop.eup %8156 }
0x240a   : > { %8067 = vpush %v8157_v40  ;;  %v5135_v40 = vld [vmem:[%s10454_s1 + $0x72] sm:$0xff] }
0x240b   : > { %8069 = vpush %v5029_v35  ;;  %v5129_v35 = vld [vmem:[%s10454_s1 + $0x42] sm:$0xff] }
0x243b   : > { %s8068_s4 = spop %8067 }
0x243c   : > { %v4712_v34 = vstv %s8068_s4  ;;  %s8070_s6 = spop %8069 }
0x243d   : > { %v4713_v48 = vmul.f32 %v4712_v34, %v9786_v27  ;;  %s9840_s3 = smul.f32 0.00015394088, %s8070_s6  ;;  %v4714_v3 = vmul.f32 %v4712_v34, %v9789_v30  ;;  %v4715_v6 = vmul.f32 %v4712_v34, %v9795_v11  ;;  %v5131_v30 = vld [vmem:[%s10454_s1 + $0x52] sm:$0xff]  ;;  %v5134_v34 = vld [vmem:[%s10454_s1 + $0x6a] sm:$0xff] }
0x243e   : > { %7825 = vmatpush3.xpose.msra.mxu0 %v5131_v30 }
0x243f   : > { %v4720_v50 = vmul.f32 %v9703_v39, %v4713_v48  ;;  %v5032_v0 = vstv %s9840_s3  ;;  %v4721_v24 = vmul.f32 %v9703_v39, %v4714_v3  ;;  %v4722_v8 = vmul.f32 %v9703_v39, %v4715_v6  ;;  %7826 = vmatprep.subr.mxu0 %v8182_v1  ;;  %v5133_v48 = vld [vmem:[%s10454_s1 + $0x62] sm:$0xff]  ;;  %s5063_s22 = smul.f32 32.0, %s9840_s3 }
0x2440   : > { %v9845_v23 = vsub.f32 %v9812_v49, %v5032_v0  ;;  %v9848_v7 = vsub.f32 %v9814_v51, %v5032_v0  ;;  %v9850_v53 = vsub.f32 %v4989_v59, %v5032_v0  ;;  %v9853_v54 = vsub.f32 %v4994_v2, %v5032_v0 }
0x2441   : > { %v4727_v60 = vadd.f32 %v9708_v45, %v4720_v50  ;;  %v9860_v16 = vsub.f32 %v4999_v10, %v5032_v0  ;;  %v9864_v59 = vsub.f32 %v5009_v22, %v5032_v0  ;;  %v9866_v20 = vsub.f32 %v5004_v15, %v5032_v0  ;;  %s5064_s23 = smul.f32 %s5063_s22, %s9840_s3 }
0x2442   : > { %v5040_v27 = vmul.f32 %v9845_v23, %v9845_v23  ;;  %v5041_v62 = vmul.f32 %v9848_v7, %v9848_v7  ;;  %v5042_v49 = vmul.f32 %v9850_v53, %v9850_v53  ;;  %v5043_v2 = vmul.f32 %v9853_v54, %v9853_v54  ;;  %7827 = vmatpush3.xpose.msra.mxu0 %v5130_v43 }
0x2443   : > { %4737 = vrot.lane.b32.xlu0 %v4727_v60, %s8184_s28  ;;  %v5044_v56 = vmul.f32 %v9860_v16, %v9860_v16  ;;  %v5046_v10 = vmul.f32 %v9864_v59, %v9864_v59  ;;  %v5045_v5 = vmul.f32 %v9866_v20, %v9866_v20  ;;  %v4728_v18 = vadd.f32 %v9708_v45, %v4721_v24  ;;  %v6685_v60 = vld [vmem:[%s10454_s1 + $0x40] ss:$0 sm:$0xff] }
0x2444   : > { %v5047_v51 = vadd.f32 %v5041_v62, %v5040_v27  ;;  %v4729_v26 = vadd.f32 %v9708_v45, %v4722_v8  ;;  %7828 = vmatprep.subr.mxu0 %v8182_v1 }
0x2445   : > { %v5052_v22 = vsel %vm294_vm2, %v5046_v10, 0.0 }
0x2446   : > { %v5048_v21 = vadd.f32 %v5047_v51, %v5042_v49  ;;  %7829 = vmatpush3.xpose.msra.mxu0 %v5129_v35 }
0x2447   : > { %7885 = vmatprep.subr.mxu0 %v8182_v1 }
0x2448   : > { %v5049_v55 = vadd.f32 %v5048_v21, %v5043_v2  ;;  %v6686_v21 = vld [vmem:[%s10454_s1 + $0x41] ss:$0 sm:$0xff] }
0x244a   : > { %v5050_v61 = vadd.f32 %v5049_v55, %v5044_v56 }
0x244c   : > { %v5051_v63 = vadd.f32 %v5050_v61, %v5045_v5 }
0x244e   : > { %v5053_v15 = vadd.f32 %v5052_v22, %v5051_v63 }
0x2450   : > { %5054 = vadd.xlane.f32.xlu1 %v5053_v15 }
0x2461   : > { %4739 = vrot.lane.b32.xlu1 %v4728_v18, %s8184_s28 }
0x2465   : > { %4741 = vrot.lane.b32.xlu1 %v4729_v26, %s8184_s28 }
0x24b5   : > { %v4738_v39 = vpop.permute.xlu0 %4737 }
0x24b6   : > { %7748 = vmatmul.mubr.msk.f32.vlgmr.msra.gmra.mxu1 %vm614_vm3, %v4738_v39 }
0x24b7   : > { %7750 = vmatprep.mubr.msk.f32.mxu1 %vm8183_vm0, %v8182_v1  ;;  %7794 = vmatpush3.xpose.msra.mxu1 %v5136_v52 }
0x24b8   : > { %7795 = vmatprep.subr.mxu1 %v8182_v1 }
0x24bb   : > { %7796 = vmatpush3.xpose.msra.mxu1 %v5135_v40 }
0x24bc   : > { %7797 = vmatprep.subr.mxu1 %v8182_v1 }
0x24bf   : > { %7798 = vmatpush3.xpose.msra.mxu1 %v5134_v34 }
0x24c0   : > { %7799 = vmatprep.subr.mxu1 %v8182_v1 }
0x24c3   : > { %7800 = vmatpush3.xpose.msra.mxu1 %v5133_v48 }
0x24c4   : > { %7851 = vmatprep.subr.mxu1 %v8182_v1 }
0x24d9   : > { %v5055_v45 = vpop.xlane.xlu1 %5054 }
0x24da   : > { %v5056_v11 = vrot.slane %v5055_v45, 4 }
0x24dc   : > { %v5057_v29 = vadd.f32 %v5056_v11, %v5055_v45 }
0x24dd   : > { %v4740_v9 = vpop.permute.xlu1 %4739 }
0x24de   : > { %v5058_v14 = vrot.slane %v5057_v29, 2  ;;  %7751 = vmatmul.mubr.msk.f32.gmra.mxu1 %vm614_vm3, %v4740_v9 }
0x24df   : > { %7753 = vmatprep.mubr.msk.f32.mxu1 %vm8183_vm0, %v8182_v1 }
0x24e0   : > { %v5059_v33 = vadd.f32 %v5058_v14, %v5057_v29 }
0x24e1   : > { %v4742_v36 = vpop.permute.xlu1 %4741 }
0x24e2   : > { %7754 = vmatmul.mubr.msk.f32.gmra.mxu1 %vm614_vm3, %v4742_v36  ;;  %v5060_v37 = vrot.slane %v5059_v33, 1 }
0x24e3   : > { %7801 = vmatprep.mubr.msk.f32.mxu1 %vm8183_vm0, %v8182_v1 }
0x24e4   : > { %v5061_v44 = vadd.f32 %v5060_v37, %v5059_v33 }
0x24e6   : > { %8071 = vpush %v5061_v44 }
0x2517   : > { %s8072_s24 = spop %8071 }
0x2518   : > { %s5065_s25 = ssub.f32 %s8072_s24, %s5064_s23 }
0x251a   : > { %s5066_s26 = smul.f32 0.00015394088, %s5065_s25 }
0x251c   : > { %s5067_s27 = sadd.f32 1e-05, %s5066_s26 }
0x251e   : > { %v5068_v50 = vstv %s5067_s27 }
0x251f   : > { %8158 = vrsqrt.f32 %v5068_v50 }
0x252c   : > { %v8159_v0 = vpop.eup %8158 }
0x252d   : > { %8073 = vpush %v8159_v0 }
0x255e   : > { %s8074_s4 = spop %8073 }
0x255f   : > { %v5071_v27 = vstv %s8074_s4 }
0x2560   : > { %v5072_v62 = vmul.f32 %v5071_v27, %v9845_v23  ;;  %v5073_v49 = vmul.f32 %v5071_v27, %v9848_v7  ;;  %v5074_v51 = vmul.f32 %v5071_v27, %v9850_v53  ;;  %v5075_v2 = vmul.f32 %v5071_v27, %v9853_v54 }
0x2561   : > { %v5076_v56 = vmul.f32 %v5071_v27, %v9860_v16  ;;  %v5077_v55 = vmul.f32 %v5071_v27, %v9866_v20  ;;  %v5078_v10 = vmul.f32 %v5071_v27, %v9864_v59 }
0x2562   : > { %v5083_v5 = vmul.f32 %v6685_v60, %v5072_v62  ;;  %v5084_v61 = vmul.f32 %v6685_v60, %v5073_v49  ;;  %v5085_v63 = vmul.f32 %v6685_v60, %v5074_v51  ;;  %v5086_v23 = vmul.f32 %v6685_v60, %v5075_v2 }
0x2563   : > { %v5087_v22 = vmul.f32 %v6685_v60, %v5076_v56  ;;  %v5088_v7 = vmul.f32 %v6685_v60, %v5077_v55  ;;  %v5089_v15 = vmul.f32 %v6685_v60, %v5078_v10 }
0x2564   : > { %v5094_v53 = vadd.f32 %v6686_v21, %v5083_v5  ;;  %v5095_v3 = vadd.f32 %v6686_v21, %v5084_v61  ;;  %v5096_v54 = vadd.f32 %v6686_v21, %v5085_v63  ;;  %v5097_v6 = vadd.f32 %v6686_v21, %v5086_v23 }
0x2565   : > { %v5098_v24 = vadd.f32 %v6686_v21, %v5087_v22  ;;  %v5099_v8 = vadd.f32 %v6686_v21, %v5088_v7  ;;  %v5100_v18 = vadd.f32 %v6686_v21, %v5089_v15 }
0x2566   : > { %v5101_v26 = vmax.f32 %v5094_v53, 0.0  ;;  %v5102_v16 = vmax.f32 %v5095_v3, 0.0  ;;  %v5103_v32 = vmax.f32 %v5096_v54, 0.0  ;;  %v5104_v20 = vmax.f32 %v5097_v6, 0.0 }
0x2567   : > { %v5105_v30 = vmax.f32 %v5098_v24, 0.0  ;;  %v5106_v59 = vmax.f32 %v5099_v8, 0.0  ;;  %v5107_v39 = vmax.f32 %v5100_v18, 0.0 }
0x2568   : > { %5108 = vst [vmem:[#allocation2] sm:$0xff] %v5101_v26  ;;  %5109 = vst [vmem:[#allocation2 + $0x8] sm:$0xff] %v5102_v16  ;;  %7831 = vmatmul.mubr.f32.vlgmr.msra.gmra.mxu0 %v5101_v26 }
0x2569   : > { %5110 = vst [vmem:[#allocation2 + $0x10] sm:$0xff] %v5103_v32  ;;  %5111 = vst [vmem:[#allocation2 + $0x18] sm:$0xff] %v5104_v20  ;;  %7833 = vmatprep.mubr.msk.f32.mxu0 %vm8183_vm0, %v8182_v1 }
0x256a   : > { %5112 = vst [vmem:[#allocation2 + $0x20] sm:$0xff] %v5105_v30  ;;  %5113 = vst [vmem:[#allocation2 + $0x28] sm:$0xff] %v5106_v59 }
0x256b   : > { %5114 = vst [vmem:[#allocation2 + $0x30] sm:$0x7] %v5107_v39 }
0x256c   : > { %7834 = vmatmul.mubr.f32.gmra.mxu0 %v5102_v16 }
0x256d   : > { %7836 = vmatprep.mubr.msk.f32.mxu0 %vm8183_vm0, %v8182_v1 }
0x256f   : > { %v5122_v45 = vld [vmem:[#allocation2 + $0x1] sm:$0xff] }
0x2570   : > { %7802 = vmatmul.mubr.f32.vlgmr.msra.gmra.mxu1 %v5122_v45  ;;  %7837 = vmatmul.mubr.f32.gmra.mxu0 %v5103_v32  ;;  %v5123_v11 = vld [vmem:[#allocation2 + $0x9] sm:$0xff]  ;;  %v5124_v9 = vld [vmem:[#allocation2 + $0x11] sm:$0xff] }
0x2571   : > { %7804 = vmatprep.mubr.msk.f32.mxu1 %vm8183_vm0, %v8182_v1  ;;  %7839 = vmatprep.mubr.msk.f32.mxu0 %vm8183_vm0, %v8182_v1  ;;  %v5125_v33 = vld [vmem:[#allocation2 + $0x19] sm:$0xff]  ;;  %v5126_v36 = vld [vmem:[#allocation2 + $0x21] sm:$0xff] }
0x2572   : > { %v5121_v37 = vld [vmem:[#allocation2 + $0x30] sm:$0x1]  ;;  %v5128_v52 = vld [vmem:[#allocation2 + $0x31] sm:$0x1] }
0x2573   : > { %v5127_v44 = vld [vmem:[#allocation2 + $0x29] sm:$0xff] }
0x2574   : > { %7805 = vmatmul.mubr.f32.gmra.mxu1 %v5123_v11  ;;  %7840 = vmatmul.mubr.f32.gmra.mxu0 %v5104_v20 }
0x2575   : > { %7807 = vmatprep.mubr.msk.f32.mxu1 %vm8183_vm0, %v8182_v1  ;;  %7842 = vmatprep.mubr.msk.f32.mxu0 %vm8183_vm0, %v8182_v1 }
0x2576   : > { %v9953_v29 = vpop.f32.mrf.mxu1 }
0x2578   : > { %7808 = vmatmul.mubr.f32.gmra.mxu1 %v5124_v9  ;;  %v7749_v14 = vpop.f32.mrf.mxu1  ;;  %7843 = vmatmul.mubr.f32.gmra.mxu0 %v5105_v30 }
0x2579   : > { %7810 = vmatprep.mubr.msk.f32.mxu1 %vm8183_vm0, %v8182_v1  ;;  %7845 = vmatprep.mubr.msk.f32.mxu0 %vm8183_vm0, %v8182_v1 }
0x257c   : > { %7811 = vmatmul.mubr.f32.gmra.mxu1 %v5125_v33  ;;  %7846 = vmatmul.mubr.f32.gmra.mxu0 %v5106_v59 }
0x257d   : > { %7813 = vmatprep.mubr.msk.f32.mxu1 %vm8183_vm0, %v8182_v1  ;;  %7848 = vmatprep.mubr.msk.f32.mxu0 %vm8183_vm0, %v8182_v1 }
0x2580   : > { %7814 = vmatmul.mubr.f32.gmra.mxu1 %v5126_v36  ;;  %7849 = vmatmul.mubr.f32.gmra.mxu0 %v5121_v37 }
0x2581   : > { %7816 = vmatprep.mubr.msk.f32.mxu1 %vm8183_vm0, %v8182_v1  ;;  %7893 = vmatprep.mubr.msk.f32.mxu0 %vm8183_vm0, %v8182_v1 }
0x2584   : > { %7817 = vmatmul.mubr.f32.gmra.mxu1 %v5127_v44 }
0x2585   : > { %7819 = vmatprep.mubr.msk.f32.mxu1 %vm8183_vm0, %v8182_v1 }
0x2588   : > { %7820 = vmatmul.mubr.f32.gmra.mxu1 %v5128_v52 }
0x2589   : > { %7859 = vmatprep.mubr.msk.f32.mxu1 %vm8183_vm0, %v8182_v1 }
0x259e   : > { %v9971_v43 = vpop.f32.mrf.mxu1 }
0x25a0   : > { %v7752_v40 = vpop.f32.mrf.mxu1 }
0x25a2   : > { %v9973_v35 = vpop.f32.mrf.mxu1 }
0x25a4   : > { %v7755_v34 = vpop.f32.mrf.mxu1 }
0x2628   : > { %v5303_v48 = vpop.f32.mrf.mxu0 }
0x262a   : > { %v7832_v50 = vpop.f32.mrf.mxu0 }
0x262c   : > { %v5308_v0 = vpop.f32.mrf.mxu0 }
0x262e   : > { %v7835_v60 = vpop.f32.mrf.mxu0 }
0x2630   : > { %v5203_v27 = vpop.f32.mrf.mxu1  ;;  %v5313_v62 = vpop.f32.mrf.mxu0 }
0x2631   : > { %v5304_v15 = vadd.f32 %v5303_v48, %v5203_v27 }
0x2632   : > { %v7803_v49 = vpop.f32.mrf.mxu1  ;;  %v7838_v51 = vpop.f32.mrf.mxu0 }
0x2633   : > { %v5339_v26 = vsel %vm614_vm3, %v5304_v15, 0.0 }
0x2634   : > { %v5208_v2 = vpop.f32.mrf.mxu1  ;;  %v5318_v21 = vpop.f32.mrf.mxu0 }
0x2635   : > { %v5309_v23 = vadd.f32 %v5308_v0, %v5208_v2 }
0x2636   : > { %v7806_v56 = vpop.f32.mrf.mxu1  ;;  %v7841_v55 = vpop.f32.mrf.mxu0 }
0x2637   : > { %v5340_v6 = vsel %vm614_vm3, %v5309_v23, 0.0 }
0x2638   : > { %v5213_v10 = vpop.f32.mrf.mxu1  ;;  %v5323_v5 = vpop.f32.mrf.mxu0  ;;  %v5341_v20 = vadd.f32 %v5340_v6, %v5339_v26 }
0x2639   : > { %v5314_v53 = vadd.f32 %v5313_v62, %v5213_v10 }
0x263a   : > { %v7809_v61 = vpop.f32.mrf.mxu1  ;;  %v7844_v63 = vpop.f32.mrf.mxu0 }
0x263b   : > { %v5342_v16 = vsel %vm614_vm3, %v5314_v53, 0.0 }
0x263c   : > { %v5218_v22 = vpop.f32.mrf.mxu1  ;;  %v5328_v7 = vpop.f32.mrf.mxu0  ;;  %v5343_v45 = vadd.f32 %v5342_v16, %v5341_v20 }
0x263d   : > { %v5319_v24 = vadd.f32 %v5318_v21, %v5218_v22 }
0x263e   : > { %v7812_v3 = vpop.f32.mrf.mxu1  ;;  %v7847_v54 = vpop.f32.mrf.mxu0 }
0x263f   : > { %v5344_v39 = vsel %vm614_vm3, %v5319_v24, 0.0 }
0x2640   : > { %v5223_v8 = vpop.f32.mrf.mxu1  ;;  %v5333_v18 = vpop.f32.mrf.mxu0  ;;  %v5345_v33 = vadd.f32 %v5344_v39, %v5343_v45 }
0x2641   : > { %v5324_v32 = vadd.f32 %v5323_v5, %v5223_v8 }
0x2642   : > { %v7815_v30 = vpop.f32.mrf.mxu1  ;;  %v7850_v59 = vpop.f32.mrf.mxu0 }
0x2643   : > { %v5346_v9 = vsel %vm614_vm3, %v5324_v32, 0.0 }
0x2644   : > { %v5228_v11 = vpop.f32.mrf.mxu1  ;;  %v5347_v44 = vadd.f32 %v5346_v9, %v5345_v33  ;;  %v5461_v33 = vld [vmem:[%s10454_s1 + $0xbc] sm:$0xff] }
0x2645   : > { %v5329_v14 = vadd.f32 %v5328_v7, %v5228_v11  ;;  %7852 = vmatpush3.msra.mxu1 %v5461_v33 }
0x2646   : > { %v7818_v36 = vpop.f32.mrf.mxu1  ;;  %7853 = vmatprep.subr.mxu1 %v8182_v1 }
0x2647   : > { %v5348_v37 = vsel %vm614_vm3, %v5329_v14, 0.0  ;;  %v5460_v36 = vld [vmem:[%s10454_s1 + $0xb4] sm:$0xff] }
0x2648   : > { %v5233_v52 = vpop.f32.mrf.mxu1  ;;  %v5349_v48 = vadd.f32 %v5348_v37, %v5347_v44  ;;  %7854 = vmatpush3.msra.mxu1 %v5460_v36 }
0x2649   : > { %v5334_v40 = vadd.f32 %v5333_v18, %v5233_v52  ;;  %7855 = vmatprep.subr.mxu1 %v8182_v1 }
0x264a   : > { %v7821_v34 = vpop.f32.mrf.mxu1 }
0x264b   : > { %v5350_v50 = vsel %vm626_vm4, %v5334_v40, 0.0 }
0x264c   : > { %v5351_v0 = vadd.f32 %v5350_v50, %v5349_v48 }
0x264e   : > { %5352 = vadd.xlane.f32.xlu1 %v5351_v0  ;;  %v5459_v0 = vld [vmem:[%s10454_s1 + $0xac] sm:$0xff] }
0x264f   : > { %7856 = vmatpush3.msra.mxu1 %v5459_v0  ;;  %v5745_v0 = vld [vmem:[%s10454_s1 + $0xfc] sm:$0xff] }
0x2650   : > { %7857 = vmatprep.subr.mxu1 %v8182_v1 }
0x26d7   : > { %v5353_v60 = vpop.xlane.xlu1 %5352 }
0x26d8   : > { %v5354_v27 = vrot.slane %v5353_v60, 4 }
0x26da   : > { %v5355_v62 = vadd.f32 %v5354_v27, %v5353_v60  ;;  %v5458_v60 = vld [vmem:[%s10454_s1 + $0xa4] sm:$0xff]  ;;  %v5646_v27 = vld [vmem:[%s10454_s1 + $0xdc] sm:$0xff] }
0x26db   : > { %7886 = vmatpush3.msra.mxu0 %v5646_v27  ;;  %7858 = vmatpush3.msra.mxu1 %v5458_v60  ;;  %v5744_v27 = vld [vmem:[%s10454_s1 + $0xf4] sm:$0xff] }
0x26dc   : > { %v5356_v49 = vrot.slane %v5355_v62, 2  ;;  %7887 = vmatprep.subr.mxu0 %v8182_v1  ;;  %7868 = vmatprep.subr.mxu1 %v8182_v1 }
0x26de   : > { %v5357_v51 = vadd.f32 %v5356_v49, %v5355_v62  ;;  %v5645_v62 = vld [vmem:[%s10454_s1 + $0xd4] sm:$0xff]  ;;  %v5644_v49 = vld [vmem:[%s10454_s1 + $0xcc] sm:$0xff] }
0x26df   : > { %7888 = vmatpush3.msra.mxu0 %v5645_v62  ;;  %v5743_v62 = vld [vmem:[%s10454_s1 + $0xec] sm:$0xff] }
0x26e0   : > { %v5358_v2 = vrot.slane %v5357_v51, 1  ;;  %7889 = vmatprep.subr.mxu0 %v8182_v1 }
0x26e1   : > { %7890 = vmatpush3.msra.mxu0 %v5644_v49 }
0x26e2   : > { %v5359_v21 = vadd.f32 %v5358_v2, %v5357_v51  ;;  %v5643_v51 = vld [vmem:[%s10454_s1 + $0xc4] sm:$0xff]  ;;  %7891 = vmatprep.subr.mxu0 %v8182_v1 }
0x26e3   : > { %7892 = vmatpush3.msra.mxu0 %v5643_v51  ;;  %v5742_v51 = vld [vmem:[%s10454_s1 + $0xe4] sm:$0xff] }
0x26e4   : > { %8075 = vpush %v5359_v21  ;;  %7919 = vmatprep.subr.mxu0 %v8182_v1 }
0x2715   : > { %s8076_s7 = spop %8075 }
0x2716   : > { %s5361_s8 = smul.f32 0.0006377551, %s8076_s7 }
0x2718   : > { %v5362_v56 = vstv %s5361_s8 }
0x2719   : > { %v9982_v55 = vsub.f32 %v5304_v15, %v5362_v56  ;;  %v9984_v10 = vsub.f32 %v5309_v23, %v5362_v56  ;;  %v9986_v5 = vsub.f32 %v5314_v53, %v5362_v56  ;;  %v9988_v61 = vsub.f32 %v5319_v24, %v5362_v56 }
0x271a   : > { %v9990_v63 = vsub.f32 %v5324_v32, %v5362_v56  ;;  %v9998_v54 = vsub.f32 %v5329_v14, %v5362_v56  ;;  %v5369_v24 = vsub.f32 %v5334_v40, %v5362_v56  ;;  %v6687_v56 = vld [vmem:[%s10454_s1 + $0x82] ss:$0 sm:$0xff] }
0x271b   : > { %v5370_v22 = vmul.f32 %v9982_v55, %v9982_v55  ;;  %v5371_v7 = vmul.f32 %v9984_v10, %v9984_v10  ;;  %v5372_v3 = vmul.f32 %v9986_v5, %v9986_v5  ;;  %v5373_v23 = vmul.f32 %v9988_v61, %v9988_v61 }
0x271c   : > { %v5374_v8 = vmul.f32 %v9990_v63, %v9990_v63  ;;  %v5375_v16 = vmul.f32 %v9998_v54, %v9998_v54  ;;  %v5376_v30 = vmul.f32 %v5369_v24, %v5369_v24 }
0x271d   : > { %v5377_v15 = vsel %vm614_vm3, %v5370_v22, 0.0  ;;  %v5378_v53 = vsel %vm614_vm3, %v5371_v7, 0.0  ;;  %v5380_v18 = vsel %vm614_vm3, %v5372_v3, 0.0  ;;  %v5382_v32 = vsel %vm614_vm3, %v5373_v23, 0.0 }
0x271e   : > { %v5379_v6 = vadd.f32 %v5378_v53, %v5377_v15  ;;  %v5384_v59 = vsel %vm614_vm3, %v5374_v8, 0.0  ;;  %v5386_v45 = vsel %vm614_vm3, %v5375_v16, 0.0  ;;  %v5388_v9 = vsel %vm626_vm4, %v5376_v30, 0.0  ;;  %v6688_v53 = vld [vmem:[%s10454_s1 + $0x83] ss:$0 sm:$0xff] }
0x2720   : > { %v5381_v26 = vadd.f32 %v5380_v18, %v5379_v6 }
0x2722   : > { %v5383_v20 = vadd.f32 %v5382_v32, %v5381_v26 }
0x2724   : > { %v5385_v39 = vadd.f32 %v5384_v59, %v5383_v20 }
0x2726   : > { %v5387_v11 = vadd.f32 %v5386_v45, %v5385_v39 }
0x2728   : > { %v5389_v14 = vadd.f32 %v5388_v9, %v5387_v11 }
0x272a   : > { %5390 = vadd.xlane.f32.xlu0 %v5389_v14 }
0x27b3   : > { %v5391_v37 = vpop.xlane.xlu0 %5390 }
0x27b4   : > { %v5392_v44 = vrot.slane %v5391_v37, 4 }
0x27b6   : > { %v5393_v52 = vadd.f32 %v5392_v44, %v5391_v37  ;;  %v5453_v37 = vld [vmem:[%s10454_s1 + $0x94] sm:$0xff] }
0x27b8   : > { %v5394_v40 = vrot.slane %v5393_v52, 2 }
0x27ba   : > { %v5395_v34 = vadd.f32 %v5394_v40, %v5393_v52  ;;  %v5452_v40 = vld [vmem:[%s10454_s1 + $0x8c] sm:$0xff] }
0x27bc   : > { %v5396_v48 = vrot.slane %v5395_v34, 1 }
0x27be   : > { %v5397_v50 = vadd.f32 %v5396_v48, %v5395_v34  ;;  %v5451_v34 = vld [vmem:[%s10454_s1 + $0x84] sm:$0xff] }
0x27c0   : > { %8077 = vpush %v5397_v50 }
0x27f1   : > { %s8078_s26 = spop %8077 }
0x27f2   : > { %s5399_s27 = smul.f32 0.0006377551, %s8078_s26 }
0x27f4   : > { %s5400_s4 = sadd.f32 1e-05, %s5399_s27 }
0x27f6   : > { %v5401_v2 = vstv %s5400_s4 }
0x27f7   : > { %8160 = vrsqrt.f32 %v5401_v2 }
0x2804   : > { %v8161_v21 = vpop.eup %8160 }
0x2805   : > { %8079 = vpush %v8161_v21 }
0x2836   : > { %s8080_s6 = spop %8079 }
0x2837   : > { %v5404_v22 = vstv %s8080_s6 }
0x2838   : > { %v5405_v7 = vmul.f32 %v5404_v22, %v9982_v55  ;;  %v5406_v3 = vmul.f32 %v5404_v22, %v9984_v10  ;;  %v5407_v23 = vmul.f32 %v5404_v22, %v9986_v5  ;;  %v5408_v15 = vmul.f32 %v5404_v22, %v9988_v61 }
0x2839   : > { %v5409_v6 = vmul.f32 %v5404_v22, %v9990_v63  ;;  %v5410_v24 = vmul.f32 %v5404_v22, %v9998_v54  ;;  %v5454_v54 = vld [vmem:[%s10454_s1 + $0x9c] sm:$0xff] }
0x283a   : > { %v5416_v8 = vmul.f32 %v6687_v56, %v5405_v7  ;;  %v5417_v18 = vmul.f32 %v6687_v56, %v5406_v3  ;;  %v5418_v26 = vmul.f32 %v6687_v56, %v5407_v23  ;;  %v5419_v16 = vmul.f32 %v6687_v56, %v5408_v15 }
0x283b   : > { %v5420_v32 = vmul.f32 %v6687_v56, %v5409_v6  ;;  %v5421_v55 = vmul.f32 %v6687_v56, %v5410_v24 }
0x283c   : > { %v5427_v20 = vadd.f32 %v6688_v53, %v5416_v8  ;;  %v5428_v10 = vadd.f32 %v6688_v53, %v5417_v18  ;;  %v5429_v30 = vadd.f32 %v6688_v53, %v5418_v26  ;;  %v5430_v5 = vadd.f32 %v6688_v53, %v5419_v16 }
0x283d   : > { %v5431_v59 = vadd.f32 %v6688_v53, %v5420_v32  ;;  %v5432_v61 = vadd.f32 %v6688_v53, %v5421_v55 }
0x283e   : > { %v5434_v39 = vmax.f32 %v5427_v20, 0.0  ;;  %v5435_v45 = vmax.f32 %v5428_v10, 0.0  ;;  %v5436_v11 = vmax.f32 %v5429_v30, 0.0  ;;  %v5437_v9 = vmax.f32 %v5430_v5, 0.0 }
0x283f   : > { %v5438_v14 = vmax.f32 %v5431_v59, 0.0  ;;  %v5439_v63 = vmax.f32 %v5432_v61, 0.0 }
0x2840   : > { %5441 = vst.msk [vmem:[#allocation3] sm:$0xff] %vm614_vm3, %v5434_v39  ;;  %5442 = vst.msk [vmem:[#allocation3 + $0x8] sm:$0xff] %vm614_vm3, %v5435_v45 }
0x2841   : > { %5443 = vst.msk [vmem:[#allocation3 + $0x10] sm:$0xff] %vm614_vm3, %v5436_v11  ;;  %5444 = vst.msk [vmem:[#allocation3 + $0x18] sm:$0xff] %vm614_vm3, %v5437_v9 }
0x2842   : > { %5445 = vst.msk [vmem:[#allocation3 + $0x20] sm:$0xff] %vm614_vm3, %v5438_v14  ;;  %5446 = vst.msk [vmem:[#allocation3 + $0x28] sm:$0xff] %vm614_vm3, %v5439_v63 }
0x2847   : > { %v5455_v33 = vld [vmem:[#allocation3 + $0x1] ss:$2 sm:$0xff]  ;;  %v5448_v60 = vld [vmem:[#allocation3] ss:$2 sm:$0xff] }
0x2848   : > { %v5640_v36 = vld [vmem:[#allocation3 + $0x2] ss:$2 sm:$0xff]  ;;  %7860 = vmatmul.mubr.msk.f32.vlgmr.msra.gmra.mxu1 %vm614_vm3, %v5455_v33  ;;  %v5456_v44 = vld [vmem:[#allocation3 + $0x11] ss:$2 sm:$0xff] }
0x2849   : > { %7894 = vmatmul.mubr.msk.f32.vlgmr.msra.gmra.mxu0 %vm614_vm3, %v5640_v36  ;;  %7869 = vmatpush3.msra.mxu1 %v5454_v54  ;;  %v5641_v52 = vld [vmem:[#allocation3 + $0x12] ss:$2 sm:$0xff]  ;;  %v5457_v48 = vld [vmem:[#allocation3 + $0x21] ss:$2 sm:$0x7f] }
0x284a   : > { %7862 = vmatprep.mubr.msk.f32.mxu1 %vm8183_vm0, %v8182_v1  ;;  %7870 = vmatprep.subr.mxu1 %v8182_v1  ;;  %v5642_v50 = vld [vmem:[#allocation3 + $0x22] ss:$2 sm:$0x7f]  ;;  %v5449_v49 = vld [vmem:[#allocation3 + $0x10] ss:$2 sm:$0xff] }
0x284b   : > { %7896 = vmatprep.mubr.msk.f32.mxu0 %vm8183_vm0, %v8182_v1  ;;  %7871 = vmatpush3.msra.mxu1 %v5453_v37  ;;  %v5450_v2 = vld [vmem:[#allocation3 + $0x20] ss:$2 sm:$0x7f]  ;;  %v5739_v21 = vld [vmem:[#allocation3 + $0x3] ss:$2 sm:$0xff] }
0x284c   : > { %7863 = vmatmul.mubr.msk.f32.gmra.mxu1 %vm614_vm3, %v5456_v44  ;;  %7872 = vmatprep.subr.mxu1 %v8182_v1  ;;  %v5740_v56 = vld [vmem:[#allocation3 + $0x13] ss:$2 sm:$0xff]  ;;  %v5741_v22 = vld [vmem:[#allocation3 + $0x23] ss:$2 sm:$0x7f] }
0x284d   : > { %7897 = vmatmul.mubr.msk.f32.gmra.mxu0 %vm614_vm3, %v5641_v52  ;;  %7865 = vmatprep.mubr.msk.f32.mxu1 %vm8183_vm0, %v8182_v1 }
0x284e   : > { %7873 = vmatpush3.msra.mxu1 %v5452_v40  ;;  %7899 = vmatprep.mubr.msk.f32.mxu0 %vm8183_vm0, %v8182_v1 }
0x284f   : > { %7874 = vmatprep.subr.mxu1 %v8182_v1 }
0x2850   : > { %7866 = vmatmul.mubr.msk.f32.gmra.mxu1 %vm614_vm3, %v5457_v48 }
0x2851   : > { %7900 = vmatmul.mubr.msk.f32.gmra.mxu0 %vm614_vm3, %v5642_v50  ;;  %7875 = vmatpush3.msra.mxu1 %v5451_v34 }
0x2852   : > { %7876 = vmatprep.mubr.msk.f32.mxu1 %vm8183_vm0, %v8182_v1  ;;  %7902 = vmatprep.subr.mxu1 %v8182_v1 }
0x2853   : > { %7935 = vmatprep.mubr.msk.f32.mxu0 %vm8183_vm0, %v8182_v1 }
0x2854   : > { %7877 = vmatmul.mubr.msk.f32.vlgmr.msra.gmra.mxu1 %vm614_vm3, %v5448_v60 }
0x2855   : > { %7903 = vmatpush3.msra.mxu1 %v5745_v0  ;;  %7879 = vmatprep.mubr.msk.f32.mxu1 %vm8183_vm0, %v8182_v1 }
0x2856   : > { %7904 = vmatprep.subr.mxu1 %v8182_v1 }
0x2857   : > { %7905 = vmatpush3.msra.mxu1 %v5744_v27 }
0x2858   : > { %7880 = vmatmul.mubr.msk.f32.gmra.mxu1 %vm614_vm3, %v5449_v49  ;;  %7906 = vmatprep.subr.mxu1 %v8182_v1 }
0x2859   : > { %7907 = vmatpush3.msra.mxu1 %v5743_v62  ;;  %7882 = vmatprep.mubr.msk.f32.mxu1 %vm8183_vm0, %v8182_v1 }
0x285a   : > { %7908 = vmatprep.subr.mxu1 %v8182_v1 }
0x285b   : > { %7909 = vmatpush3.msra.mxu1 %v5742_v51 }
0x285c   : > { %7883 = vmatmul.mubr.msk.f32.gmra.mxu1 %vm614_vm3, %v5450_v2  ;;  %7944 = vmatprep.subr.mxu1 %v8182_v1 }
0x285d   : > { %7910 = vmatprep.mubr.msk.f32.mxu1 %vm8183_vm0, %v8182_v1 }
0x2860   : > { %7911 = vmatmul.mubr.msk.f32.vlgmr.msra.gmra.mxu1 %vm614_vm3, %v5739_v21 }
0x2861   : > { %7913 = vmatprep.mubr.msk.f32.mxu1 %vm8183_vm0, %v8182_v1 }
0x2864   : > { %7914 = vmatmul.mubr.msk.f32.gmra.mxu1 %vm614_vm3, %v5740_v56 }
0x2865   : > { %7916 = vmatprep.mubr.msk.f32.mxu1 %vm8183_vm0, %v8182_v1 }
0x2868   : > { %7917 = vmatmul.mubr.msk.f32.gmra.mxu1 %vm614_vm3, %v5741_v22 }
0x2869   : > { %7952 = vmatprep.mubr.msk.f32.mxu1 %vm8183_vm0, %v8182_v1 }
0x2908   : > { %v5537_v7 = vpop.f32.mrf.mxu1 }
0x2909   : > { %v5722_v3 = vpop.f32.mrf.mxu0 }
0x290a   : > { %v7861_v23 = vpop.f32.mrf.mxu1 }
0x290b   : > { %v7895_v15 = vpop.f32.mrf.mxu0 }
0x290c   : > { %v5542_v53 = vpop.f32.mrf.mxu1 }
0x290d   : > { %v5727_v6 = vpop.f32.mrf.mxu0 }
0x290e   : > { %v7864_v24 = vpop.f32.mrf.mxu1 }
0x290f   : > { %v7898_v8 = vpop.f32.mrf.mxu0 }
0x2910   : > { %v5547_v18 = vpop.f32.mrf.mxu1 }
0x2911   : > { %v5732_v26 = vpop.f32.mrf.mxu0 }
0x2912   : > { %v7867_v16 = vpop.f32.mrf.mxu1 }
0x2913   : > { %v7901_v32 = vpop.f32.mrf.mxu0 }
0x2914   : > { %v5626_v55 = vpop.f32.mrf.mxu1 }
0x2915   : > { %v5627_v61 = vadd.f32 %v5626_v55, %v5537_v7 }
0x2916   : > { %v7878_v20 = vpop.f32.mrf.mxu1 }
0x2917   : > { %v5736_v14 = vadd.f32 %v5722_v3, %v5627_v61 }
0x2918   : > { %v5631_v10 = vpop.f32.mrf.mxu1 }
0x2919   : > { %v5632_v39 = vadd.f32 %v5631_v10, %v5542_v53 }
0x291a   : > { %v7881_v30 = vpop.f32.mrf.mxu1 }
0x291b   : > { %v5737_v63 = vadd.f32 %v5727_v6, %v5632_v39  ;;  %v5921_v39 = vld [vmem:[%s10454_s1 + $0x13e] sm:$0xff] }
0x291c   : > { %v5636_v5 = vpop.f32.mrf.mxu1  ;;  %7920 = vmatpush3.msra.mxu0 %v5921_v39 }
0x291d   : > { %v5637_v9 = vadd.f32 %v5636_v5, %v5547_v18  ;;  %7921 = vmatprep.subr.mxu0 %v8182_v1 }
0x291e   : > { %v7884_v59 = vpop.f32.mrf.mxu1 }
0x291f   : > { %v5738_v52 = vadd.f32 %v5732_v26, %v5637_v9  ;;  %v5918_v9 = vld [vmem:[%s10454_s1 + $0x126] sm:$0xff] }
0x2920   : > { %v5821_v45 = vpop.f32.mrf.mxu1 }
0x2921   : > { %v5835_v33 = vadd.f32 %v5821_v45, %v5736_v14  ;;  %v5920_v45 = vld [vmem:[%s10454_s1 + $0x136] sm:$0xff]  ;;  %v5917_v14 = vld [vmem:[%s10454_s1 + $0x11e] sm:$0xff] }
0x2922   : > { %v7912_v11 = vpop.f32.mrf.mxu1  ;;  %7922 = vmatpush3.msra.mxu0 %v5920_v45 }
0x2923   : > { %v5840_v34 = vsel %vm165_vm1, %v5835_v33, 0.0  ;;  %7923 = vmatprep.subr.mxu0 %v8182_v1  ;;  %v5919_v11 = vld [vmem:[%s10454_s1 + $0x12e] sm:$0xff] }
0x2924   : > { %v5826_v54 = vpop.f32.mrf.mxu1  ;;  %7924 = vmatpush3.msra.mxu0 %v5919_v11 }
0x2925   : > { %v5836_v36 = vadd.f32 %v5826_v54, %v5737_v63  ;;  %7925 = vmatprep.subr.mxu0 %v8182_v1  ;;  %v5916_v63 = vld [vmem:[%s10454_s1 + $0x116] sm:$0xff]  ;;  %v5915_v54 = vld [vmem:[%s10454_s1 + $0x10e] sm:$0xff] }
0x2926   : > { %v7915_v37 = vpop.f32.mrf.mxu1  ;;  %7926 = vmatpush3.msra.mxu0 %v5918_v9 }
0x2927   : > { %v5841_v44 = vsel %vm165_vm1, %v5836_v36, 0.0  ;;  %7927 = vmatprep.subr.mxu0 %v8182_v1 }
0x2928   : > { %v5831_v40 = vpop.f32.mrf.mxu1  ;;  %v5842_v0 = vadd.f32 %v5841_v44, %v5840_v34  ;;  %7928 = vmatpush3.msra.mxu0 %v5917_v14  ;;  %v6701_v44 = vld [vmem:[%s10454_s1 + $0x104] ss:$0 sm:$0xff] }
0x2929   : > { %v5837_v48 = vadd.f32 %v5831_v40, %v5738_v52  ;;  %7929 = vmatprep.subr.mxu0 %v8182_v1 }
0x292a   : > { %v7918_v50 = vpop.f32.mrf.mxu1  ;;  %7930 = vmatpush3.msra.mxu0 %v5916_v63 }
0x292b   : > { %v5843_v60 = vsel %vm1131_vm5, %v5837_v48, 0.0  ;;  %7931 = vmatprep.subr.mxu0 %v8182_v1  ;;  %v6702_v50 = vld [vmem:[%s10454_s1 + $0x105] ss:$0 sm:$0xff] }
0x292c   : > { %v5844_v27 = vadd.f32 %v5843_v60, %v5842_v0  ;;  %7932 = vmatpush3.msra.mxu0 %v5915_v54 }
0x292d   : > { %7933 = vmatprep.subr.mxu0 %v8182_v1 }
0x292e   : > { %5845 = vadd.xlane.f32.xlu0 %v5844_v27 }
0x29b7   : > { %v5846_v62 = vpop.xlane.xlu0 %5845 }
0x29b8   : > { %v5847_v49 = vrot.slane %v5846_v62, 4 }
0x29ba   : > { %v5848_v51 = vadd.f32 %v5847_v49, %v5846_v62 }
0x29bc   : > { %v5849_v2 = vrot.slane %v5848_v51, 2 }
0x29be   : > { %v5850_v21 = vadd.f32 %v5849_v2, %v5848_v51 }
0x29c0   : > { %v5851_v56 = vrot.slane %v5850_v21, 1 }
0x29c2   : > { %v5852_v22 = vadd.f32 %v5851_v56, %v5850_v21 }
0x29c4   : > { %8081 = vpush %v5852_v22 }
0x29f5   : > { %s8082_s25 = spop %8081 }
0x29f6   : > { %s5854_s26 = smul.f32 0.00067934784, %s8082_s25 }
0x29f8   : > { %v5855_v7 = vstv %s5854_s26 }
0x29f9   : > { %v5856_v3 = vsub.f32 %v5835_v33, %v5855_v7  ;;  %v5857_v23 = vsub.f32 %v5836_v36, %v5855_v7  ;;  %v5858_v15 = vsub.f32 %v5837_v48, %v5855_v7  ;;  %v5914_v33 = vld [vmem:[%s10454_s1 + $0x106] sm:$0xff] }
0x29fa   : > { %7934 = vmatpush3.msra.mxu0 %v5914_v33 }
0x29fb   : > { %v5859_v53 = vmul.f32 %v5856_v3, %v5856_v3  ;;  %v5860_v6 = vmul.f32 %v5857_v23, %v5857_v23  ;;  %v5861_v24 = vmul.f32 %v5858_v15, %v5858_v15  ;;  %7961 = vmatprep.subr.mxu0 %v8182_v1 }
0x29fd   : > { %v5862_v8 = vsel %vm165_vm1, %v5859_v53, 0.0  ;;  %v5863_v18 = vsel %vm165_vm1, %v5860_v6, 0.0  ;;  %v5865_v16 = vsel %vm1131_vm5, %v5861_v24, 0.0 }
0x29fe   : > { %v5864_v26 = vadd.f32 %v5863_v18, %v5862_v8 }
0x2a00   : > { %v5866_v32 = vadd.f32 %v5865_v16, %v5864_v26 }
0x2a02   : > { %5867 = vadd.xlane.f32.xlu0 %v5866_v32 }
0x2a8b   : > { %v5868_v55 = vpop.xlane.xlu0 %5867 }
0x2a8c   : > { %v5869_v20 = vrot.slane %v5868_v55, 4 }
0x2a8e   : > { %v5870_v10 = vadd.f32 %v5869_v20, %v5868_v55 }
0x2a90   : > { %v5871_v30 = vrot.slane %v5870_v10, 2 }
0x2a92   : > { %v5872_v5 = vadd.f32 %v5871_v30, %v5870_v10 }
0x2a94   : > { %v5873_v59 = vrot.slane %v5872_v5, 1 }
0x2a96   : > { %v5874_v61 = vadd.f32 %v5873_v59, %v5872_v5 }
0x2a98   : > { %8083 = vpush %v5874_v61 }
0x2ac9   : > { %s8084_s18 = spop %8083 }
0x2aca   : > { %s5876_s19 = smul.f32 0.00067934784, %s8084_s18 }
0x2acc   : > { %s5877_s20 = sadd.f32 1e-05, %s5876_s19 }
0x2ace   : > { %v5878_v36 = vstv %s5877_s20 }
0x2acf   : > { %8162 = vrsqrt.f32 %v5878_v36 }
0x2adc   : > { %v8163_v37 = vpop.eup %8162 }
0x2add   : > { %8085 = vpush %v8163_v37 }
0x2b0e   : > { %s8086_s21 = spop %8085 }
0x2b0f   : > { %v5881_v52 = vstv %s8086_s21 }
0x2b10   : > { %v5882_v40 = vmul.f32 %v5881_v52, %v5856_v3  ;;  %v5883_v34 = vmul.f32 %v5881_v52, %v5857_v23  ;;  %v5884_v48 = vmul.f32 %v5881_v52, %v5858_v15 }
0x2b12   : > { %v5889_v0 = vmul.f32 %v6701_v44, %v5882_v40  ;;  %v5890_v60 = vmul.f32 %v6701_v44, %v5883_v34  ;;  %v5891_v27 = vmul.f32 %v6701_v44, %v5884_v48 }
0x2b14   : > { %v5896_v62 = vadd.f32 %v6702_v50, %v5889_v0  ;;  %v5897_v49 = vadd.f32 %v6702_v50, %v5890_v60  ;;  %v5898_v51 = vadd.f32 %v6702_v50, %v5891_v27 }
0x2b16   : > { %v5899_v2 = vmax.f32 %v5896_v62, 0.0  ;;  %v5900_v21 = vmax.f32 %v5897_v49, 0.0  ;;  %v5901_v56 = vmax.f32 %v5898_v51, 0.0 }
0x2b18   : > { %v5902_v22 = vand.u32 2147483647, %v5899_v2  ;;  %v5903_v7 = vand.u32 2147483647, %v5900_v21  ;;  %v5904_v53 = vand.u32 2147483647, %v5901_v56 }
0x2b19   : > { %v6075_v2 = vld [vmem:[%s10454_s1 + $0x160] sm:$0xff]  ;;  %v6074_v21 = vld [vmem:[%s10454_s1 + $0x158] sm:$0xff] }
0x2b1a   : > { %v5905_v6 = vadd.f32 1.0, %v5902_v22  ;;  %v5906_v3 = vadd.f32 1.0, %v5903_v7  ;;  %v5907_v23 = vadd.f32 1.0, %v5904_v53  ;;  %7945 = vmatpush3.xpose.msk.msra.mxu1 %vm614_vm3, %v6075_v2 }
0x2b1b   : > { %7946 = vmatprep.subr.mxu1 %v8182_v1 }
0x2b1c   : > { %8164 = vlog2.f32 %v5905_v6 }
0x2b1d   : > { %8166 = vlog2.f32 %v5906_v3 }
0x2b1e   : > { %8168 = vlog2.f32 %v5907_v23  ;;  %7947 = vmatpush3.xpose.msk.msra.mxu1 %vm614_vm3, %v6074_v21 }
0x2b1f   : > { %7948 = vmatprep.subr.mxu1 %v8182_v1 }
0x2b29   : > { %v8165_v15 = vpop.eup %8164 }
0x2b2a   : > { %v5909_v24 = vmul.f32 0.6931472, %v8165_v15  ;;  %v8167_v8 = vpop.eup %8166 }
0x2b2b   : > { %v5911_v18 = vmul.f32 0.6931472, %v8167_v8  ;;  %v8169_v26 = vpop.eup %8168 }
0x2b2c   : > { %7936 = vmatmul.mubr.msk.f32.vlgmr.msra.gmra.mxu0 %vm165_vm1, %v5909_v24  ;;  %v5913_v16 = vmul.f32 0.6931472, %v8169_v26 }
0x2b2d   : > { %7938 = vmatprep.mubr.msk.f32.mxu0 %vm8183_vm0, %v8182_v1 }
0x2b30   : > { %7939 = vmatmul.mubr.msk.f32.gmra.mxu0 %vm165_vm1, %v5911_v18 }
0x2b31   : > { %7941 = vmatprep.mubr.msk.f32.mxu0 %vm8183_vm0, %v8182_v1 }
0x2b34   : > { %7942 = vmatmul.mubr.msk.f32.gmra.mxu0 %vm165_vm1, %v5913_v16 }
0x2b35   : > { %7969 = vmatprep.mubr.msk.f32.mxu0 %vm8183_vm0, %v8182_v1 }
0x2bec   : > { %v10184_v32 = vpop.f32.mrf.mxu0 }
0x2bed   : > { %v6013_v5 = vsel %vm614_vm3, %v10184_v32, 0.0 }
0x2bee   : > { %v7937_v55 = vpop.f32.mrf.mxu0 }
0x2bef   : > { %v6073_v55 = vld [vmem:[%s10454_s1 + $0x150] sm:$0xff] }
0x2bf0   : > { %v10186_v20 = vpop.f32.mrf.mxu0  ;;  %7949 = vmatpush3.xpose.msk.msra.mxu1 %vm614_vm3, %v6073_v55 }
0x2bf1   : > { %v6014_v10 = vsel %vm614_vm3, %v10186_v20, 0.0  ;;  %7950 = vmatprep.subr.mxu1 %v8182_v1 }
0x2bf2   : > { %v7940_v30 = vpop.f32.mrf.mxu0  ;;  %v6015_v61 = vadd.f32 %v6014_v10, %v6013_v5 }
0x2bf3   : > { %v6072_v30 = vld [vmem:[%s10454_s1 + $0x148] sm:$0xff] }
0x2bf4   : > { %v10192_v59 = vpop.f32.mrf.mxu0  ;;  %7951 = vmatpush3.xpose.msk.msra.mxu1 %vm614_vm3, %v6072_v30 }
0x2bf5   : > { %v6016_v39 = vsel %vm1305_vm6, %v10192_v59, 0.0 }
0x2bf6   : > { %v7943_v45 = vpop.f32.mrf.mxu0  ;;  %v6017_v11 = vadd.f32 %v6016_v39, %v6015_v61 }
0x2bf7   : > { %v10233_v45 = vld [vmem:[%s10454_s1 + $0x146] ss:$0 sm:$0xff] }
0x2bf8   : > { %6018 = vadd.xlane.f32.xlu1 %v6017_v11 }
0x2c09   : > { %6218 = vrot.lane.b32.xlu1 %v10184_v32, %s8184_s28 }
0x2c0d   : > { %6222 = vrot.lane.b32.xlu1 %v10192_v59, %s8184_s28 }
0x2c81   : > { %v6019_v9 = vpop.xlane.xlu1 %6018 }
0x2c82   : > { %v6020_v14 = vrot.slane %v6019_v9, 4 }
0x2c84   : > { %v6021_v63 = vadd.f32 %v6020_v14, %v6019_v9 }
0x2c85   : > { %v6219_v56 = vpop.permute.xlu1 %6218 }
0x2c86   : > { %v6022_v54 = vrot.slane %v6021_v63, 2  ;;  %v6227_v23 = vsel %vm614_vm3, %v6219_v56, 0.0 }
0x2c88   : > { %v6023_v33 = vadd.f32 %v6022_v54, %v6021_v63  ;;  %v10238_v63 = vld [vmem:[%s10454_s1 + $0x147] ss:$0 sm:$0xff] }
0x2c89   : > { %v6223_v6 = vpop.permute.xlu1 %6222 }
0x2c8a   : > { %v6024_v36 = vrot.slane %v6023_v33, 1  ;;  %v6230_v18 = vsel %vm1305_vm6, %v6223_v6, 0.0 }
0x2c8c   : > { %v6025_v37 = vadd.f32 %v6024_v36, %v6023_v33 }
0x2c8e   : > { %8087 = vpush %v6025_v37 }
0x2cbf   : > { %s8088_s26 = spop %8087 }
0x2cc0   : > { %s6027_s27 = smul.f32 0.0013586957, %s8088_s26 }
0x2cc2   : > { %v6028_v44 = vstv %s6027_s27 }
0x2cc3   : > { %v6029_v52 = vsub.f32 %v10184_v32, %v6028_v44  ;;  %v6030_v40 = vsub.f32 %v10186_v20, %v6028_v44  ;;  %v6031_v34 = vsub.f32 %v10192_v59, %v6028_v44 }
0x2cc5   : > { %v6032_v48 = vmul.f32 %v6029_v52, %v6029_v52  ;;  %v6033_v50 = vmul.f32 %v6030_v40, %v6030_v40  ;;  %v6034_v0 = vmul.f32 %v6031_v34, %v6031_v34 }
0x2cc7   : > { %v6035_v60 = vsel %vm614_vm3, %v6032_v48, 0.0  ;;  %v6036_v27 = vsel %vm614_vm3, %v6033_v50, 0.0  ;;  %v6038_v49 = vsel %vm1305_vm6, %v6034_v0, 0.0 }
0x2cc8   : > { %v6037_v62 = vadd.f32 %v6036_v27, %v6035_v60 }
0x2cca   : > { %v6039_v51 = vadd.f32 %v6038_v49, %v6037_v62 }
0x2ccc   : > { %6040 = vadd.xlane.f32.xlu0 %v6039_v51 }
0x2ce2   : > { %6220 = vrot.lane.b32.xlu0 %v10186_v20, %s8184_s28 }
0x2d55   : > { %v6041_v22 = vpop.xlane.xlu0 %6040 }
0x2d56   : > { %v6042_v7 = vrot.slane %v6041_v22, 4 }
0x2d58   : > { %v6043_v53 = vadd.f32 %v6042_v7, %v6041_v22 }
0x2d59   : > { %v6221_v3 = vpop.permute.xlu0 %6220 }
0x2d5a   : > { %v6044_v15 = vrot.slane %v6043_v53, 2  ;;  %v6228_v24 = vsel %vm614_vm3, %v6221_v3, 0.0 }
0x2d5b   : > { %v6229_v8 = vadd.f32 %v6228_v24, %v6227_v23 }
0x2d5c   : > { %v6045_v26 = vadd.f32 %v6044_v15, %v6043_v53 }
0x2d5d   : > { %v6231_v16 = vadd.f32 %v6230_v18, %v6229_v8 }
0x2d5e   : > { %v6046_v10 = vrot.slane %v6045_v26, 1 }
0x2d5f   : > { %6232 = vadd.xlane.f32.xlu1 %v6231_v16 }
0x2d60   : > { %v6047_v5 = vadd.f32 %v6046_v10, %v6045_v26 }
0x2d62   : > { %8089 = vpush %v6047_v5 }
0x2d93   : > { %s8090_s11 = spop %8089 }
0x2d94   : > { %s6049_s12 = smul.f32 0.0013586957, %s8090_s11  ;;  %s6508_s11 = sshll.u32 %s10457_s13, 1 }
0x2d96   : > { %s6050_s14 = sadd.f32 1e-05, %s6049_s12 }
0x2d98   : > { %v6051_v61 = vstv %s6050_s14 }
0x2d99   : > { %8170 = vrsqrt.f32 %v6051_v61 }
0x2da6   : > { %v8171_v39 = vpop.eup %8170 }
0x2da7   : > { %8091 = vpush %v8171_v39 }
0x2dd8   : > { %s8092_s15 = spop %8091 }
0x2dd9   : > { %v6054_v11 = vstv %s8092_s15  ;;  %s10386_s15 = scalar_lea.vmem %s10455_s2, %s6508_s11 }
0x2dda   : > { %v6055_v9 = vmul.f32 %v6054_v11, %v6029_v52  ;;  %v6056_v14 = vmul.f32 %v6054_v11, %v6030_v40  ;;  %v6057_v33 = vmul.f32 %v6054_v11, %v6031_v34 }
0x2ddc   : > { %v6062_v54 = vmul.f32 %v10233_v45, %v6055_v9  ;;  %v6063_v36 = vmul.f32 %v10233_v45, %v6056_v14  ;;  %v6064_v44 = vmul.f32 %v10233_v45, %v6057_v33  ;;  %v6301_v33 = vld [vmem:[%s10454_s1 + $0x180] sm:$0xff] }
0x2ddd   : > { %7962 = vmatpush3.xpose.msk.msra.mxu0 %vm614_vm3, %v6301_v33 }
0x2dde   : > { %v6069_v37 = vadd.f32 %v10238_v63, %v6062_v54  ;;  %v6070_v52 = vadd.f32 %v10238_v63, %v6063_v36  ;;  %v6071_v40 = vadd.f32 %v10238_v63, %v6064_v44  ;;  %7963 = vmatprep.subr.mxu0 %v8182_v1  ;;  %v6300_v36 = vld [vmem:[%s10454_s1 + $0x178] sm:$0xff]  ;;  %v6298_v44 = vld [vmem:[%s10454_s1 + $0x168] sm:$0xff] }
0x2de0   : > { %7953 = vmatmul.mubr.msk.f32.vlgmr.msra.gmra.mxu1 %vm614_vm3, %v6069_v37  ;;  %v6299_v37 = vld [vmem:[%s10454_s1 + $0x170] sm:$0xff] }
0x2de1   : > { %7955 = vmatprep.mubr.msk.f32.mxu1 %vm8183_vm0, %v8182_v1  ;;  %7964 = vmatpush3.xpose.msk.msra.mxu0 %vm614_vm3, %v6300_v36 }
0x2de2   : > { %7965 = vmatprep.subr.mxu0 %v8182_v1 }
0x2de4   : > { %7956 = vmatmul.mubr.msk.f32.gmra.mxu1 %vm614_vm3, %v6070_v52 }
0x2de5   : > { %7958 = vmatprep.mubr.msk.f32.mxu1 %vm8183_vm0, %v8182_v1  ;;  %7966 = vmatpush3.xpose.msk.msra.mxu0 %vm614_vm3, %v6299_v37 }
0x2de6   : > { %7967 = vmatprep.subr.mxu0 %v8182_v1 }
0x2de8   : > { %7959 = vmatmul.mubr.msk.f32.gmra.mxu1 %vm614_vm3, %v6071_v40  ;;  %v6233_v34 = vpop.xlane.xlu1 %6232 }
0x2de9   : > { %v6234_v48 = vrot.slane %v6233_v34, 4  ;;  %7968 = vmatpush3.xpose.msk.msra.mxu0 %vm614_vm3, %v6298_v44 }
0x2deb   : > { %v6235_v50 = vadd.f32 %v6234_v48, %v6233_v34 }
0x2ded   : > { %v6236_v0 = vrot.slane %v6235_v50, 2 }
0x2def   : > { %v6237_v60 = vadd.f32 %v6236_v0, %v6235_v50 }
0x2df1   : > { %v6238_v27 = vrot.slane %v6237_v60, 1 }
0x2df3   : > { %v6239_v62 = vadd.f32 %v6238_v27, %v6237_v60 }
0x2df5   : > { %8093 = vpush %v6239_v62 }
0x2e26   : > { %s8094_s19 = spop %8093 }
0x2e27   : > { %s6241_s20 = smul.f32 0.0013586957, %s8094_s19 }
0x2e29   : > { %v6242_v49 = vstv %s6241_s20 }
0x2e2a   : > { %v6243_v51 = vsub.f32 %v10184_v32, %v6242_v49  ;;  %v6244_v2 = vsub.f32 %v10186_v20, %v6242_v49  ;;  %v6245_v56 = vsub.f32 %v10192_v59, %v6242_v49 }
0x2e2c   : > { %v6246_v21 = vmul.f32 %v6243_v51, %v6243_v51  ;;  %v6247_v22 = vmul.f32 %v6244_v2, %v6244_v2  ;;  %v6248_v7 = vmul.f32 %v6245_v56, %v6245_v56 }
0x2e2e   : > { %6252 = vrot.lane.b32.xlu0 %v6246_v21, %s8184_s28 }
0x2e32   : > { %6254 = vrot.lane.b32.xlu0 %v6247_v22, %s8184_s28 }
0x2e36   : > { %6256 = vrot.lane.b32.xlu0 %v6248_v7, %s8184_s28 }
0x2ea0   : > { %v10259_v53 = vpop.f32.mrf.mxu1  ;;  %v6253_v6 = vpop.permute.xlu0 %6252 }
0x2ea1   : > { %v6261_v24 = vsel %vm614_vm3, %v6253_v6, 0.0 }
0x2ea2   : > { %v7954_v3 = vpop.f32.mrf.mxu1 }
0x2ea4   : > { %v10261_v23 = vpop.f32.mrf.mxu1  ;;  %v6255_v32 = vpop.permute.xlu0 %6254 }
0x2ea5   : > { %v6262_v20 = vsel %vm614_vm3, %v6255_v32, 0.0  ;;  %v1706_v32 = vmul.f32 2.0, %v8899_v46 }
0x2ea6   : > { %v7957_v15 = vpop.f32.mrf.mxu1  ;;  %v6263_v8 = vadd.f32 %v6262_v20, %v6261_v24  ;;  %v3044_v20 = vmul.f32 2.0, %v9286_v4  ;;  %v1708_v4 = vmul.f32 2.0, %v8919_v47  ;;  %v4612_v47 = vmul.f32 2.0, %v9808_v38 }
0x2ea7   : > { %v1707_v15 = vmul.f32 2.0, %v8917_v19  ;;  %v4842_v19 = vmul.f32 2.0, %v9953_v29  ;;  %v3275_v29 = vmul.f32 2.0, %v9440_v41  ;;  %v3276_v38 = vmul.f32 2.0, %v9442_v42 }
0x2ea8   : > { %v10265_v59 = vpop.f32.mrf.mxu1  ;;  %v6257_v18 = vpop.permute.xlu0 %6256 }
0x2ea9   : > { %v6264_v26 = vsel %vm1305_vm6, %v6257_v18, 0.0 }
0x2eaa   : > { %v7960_v16 = vpop.f32.mrf.mxu1  ;;  %v6265_v55 = vadd.f32 %v6264_v26, %v6263_v8  ;;  %v4610_v8 = vmul.f32 2.0, %v9803_v31  ;;  %v3043_v31 = vmul.f32 2.0, %v9282_v57  ;;  %v6178_v57 = vmul.f32 2.0, %v10259_v53 }
0x2eac   : > { %6266 = vadd.xlane.f32.xlu0 %v6265_v55 }
0x2f35   : > { %v6267_v10 = vpop.xlane.xlu0 %6266 }
0x2f36   : > { %v6268_v30 = vrot.slane %v6267_v10, 4 }
0x2f38   : > { %v6269_v5 = vadd.f32 %v6268_v30, %v6267_v10 }
0x2f3a   : > { %v6270_v61 = vrot.slane %v6269_v5, 2 }
0x2f3c   : > { %v6271_v39 = vadd.f32 %v6270_v61, %v6269_v5 }
0x2f3e   : > { %v6272_v11 = vrot.slane %v6271_v39, 1 }
0x2f40   : > { %v6273_v9 = vadd.f32 %v6272_v11, %v6271_v39 }
0x2f42   : > { %8095 = vpush %v6273_v9 }
0x2f73   : > { %s8096_s21 = spop %8095 }
0x2f74   : > { %s6275_s22 = smul.f32 0.0013586957, %s8096_s21 }
0x2f76   : > { %s6276_s23 = sadd.f32 1e-05, %s6275_s22 }
0x2f78   : > { %v6277_v14 = vstv %s6276_s23 }
0x2f79   : > { %8172 = vrsqrt.f32 %v6277_v14 }
0x2f86   : > { %v8173_v54 = vpop.eup %8172 }
0x2f87   : > { %8097 = vpush %v8173_v54 }
0x2fb8   : > { %s8098_s30 = spop %8097 }
0x2fb9   : > { %v6280_v52 = vstv %s8098_s30 }
0x2fba   : > { %v6281_v40 = vmul.f32 %v6280_v52, %v6243_v51  ;;  %v6282_v34 = vmul.f32 %v6280_v52, %v6244_v2  ;;  %v6283_v48 = vmul.f32 %v6280_v52, %v6245_v56  ;;  %v1469_v51 = vmul.f32 2.0, %v8751_v25  ;;  %v10300_v2 = vld [vmem:[%s10454_s1 + $0x188] ss:$0 sm:$0xff] }
0x2fbb   : > { %v3042_v56 = vmul.f32 2.0, %v9280_v17  ;;  %v3274_v25 = vmul.f32 2.0, %v9438_v13  ;;  %v10316_v17 = vld [vmem:[%s10454_s1 + $0x189] ss:$0 sm:$0xff]  ;;  %v3051_v26 = vsub.f32 %v10300_v2, %v3044_v20  ;;  %v4617_v30 = vsub.f32 %v10300_v2, %v4610_v8 }
0x2fbc   : > { %v6288_v50 = vmul.f32 %v10233_v45, %v6281_v40  ;;  %v6289_v0 = vmul.f32 %v10233_v45, %v6282_v34  ;;  %v6290_v60 = vmul.f32 %v10233_v45, %v6283_v48  ;;  %v1470_v45 = vmul.f32 2.0, %v8754_v28 }
0x2fbd   : > { %v1476_v21 = vsub.f32 %v10300_v2, %v1469_v51  ;;  %v3049_v3 = vsub.f32 %v10300_v2, %v3042_v56  ;;  %v3281_v13 = vsub.f32 %v10316_v17, %v3274_v25  ;;  %v1713_v46 = vsub.f32 %v10316_v17, %v1706_v32 }
0x2fbe   : > { %v6296_v27 = vadd.f32 %v10238_v63, %v6289_v0  ;;  %v6295_v62 = vadd.f32 %v10238_v63, %v6288_v50  ;;  %v6297_v49 = vadd.f32 %v10238_v63, %v6290_v60  ;;  %v1477_v7 = vsub.f32 %v10300_v2, %v1470_v45 }
0x2fbf   : > { %v1481_v22 = vsel %vm614_vm3, %v1476_v21, inf  ;;  %v1468_v63 = vmul.f32 2.0, %v8749_v58  ;;  %v3052_v58 = vsel %vm614_vm3, %v3049_v3, inf  ;;  %v3284_v18 = vsel %vm614_vm3, %v3281_v13, inf }
0x2fc0   : > { %6307 = vrot.lane.b32.xlu0 %v6296_v27, %s8184_s28  ;;  %6305 = vrot.lane.b32.xlu1 %v6295_v62, %s8184_s28  ;;  %v1484_v6 = vsel %vm1305_vm6, %v1477_v7, inf  ;;  %v1716_v16 = vsel %vm614_vm3, %v1713_v46, inf  ;;  %v1714_v55 = vsub.f32 %v10316_v17, %v1707_v15  ;;  %v3058_v10 = vsel %vm1305_vm6, %v3051_v26, inf }
0x2fc1   : > { %v1475_v28 = vsub.f32 %v10300_v2, %v1468_v63  ;;  %v1715_v61 = vsub.f32 %v10316_v17, %v1708_v4  ;;  %v4620_v39 = vsel %vm614_vm3, %v4617_v30, inf  ;;  %v4849_v11 = vsub.f32 %v10316_v17, %v4842_v19 }
0x2fc2   : > { %v1719_v5 = vsel %vm614_vm3, %v1714_v55, inf  ;;  %v3050_v14 = vsub.f32 %v10300_v2, %v3043_v31  ;;  %v4619_v33 = vsub.f32 %v10300_v2, %v4612_v47  ;;  %v3282_v37 = vsub.f32 %v10316_v17, %v3275_v29 }
0x2fc3   : > { %v1478_v24 = vsel %vm614_vm3, %v1475_v28, inf  ;;  %v1722_v9 = vsel %vm1305_vm6, %v1715_v61, inf  ;;  %v4852_v54 = vsel %vm614_vm3, %v4849_v11, inf  ;;  %v6185_v44 = vsub.f32 %v10300_v2, %v6178_v57 }
0x2fc4   : > { %6309 = vrot.lane.b32.xlu1 %v6297_v49, %s8184_s28  ;;  %v3055_v36 = vsel %vm614_vm3, %v3050_v14, inf  ;;  %v4626_v41 = vsel %vm1305_vm6, %v4619_v33, inf  ;;  %v4611_v52 = vmul.f32 2.0, %v9805_v12  ;;  %v3287_v53 = vsel %vm614_vm3, %v3282_v37, inf }
0x2fc5   : > { %v3283_v40 = vsub.f32 %v10316_v17, %v3276_v38  ;;  %v6188_v42 = vsel %vm614_vm3, %v6185_v44, inf  ;;  %v4843_v34 = vmul.f32 2.0, %v9971_v43  ;;  %v4844_v0 = vmul.f32 2.0, %v9973_v35 }
0x2fc6   : > { %v4618_v50 = vsub.f32 %v10300_v2, %v4611_v52  ;;  %v6179_v27 = vmul.f32 2.0, %v10261_v23  ;;  %v1487_v56 = vlaneseq }
0x2fc7   : > { %v3290_v48 = vsel %vm1305_vm6, %v3283_v40, inf  ;;  %v4850_v60 = vsub.f32 %v10316_v17, %v4843_v34  ;;  %v4851_v49 = vsub.f32 %v10316_v17, %v4844_v0 }
0x2fc8   : > { %v4623_v12 = vsel %vm614_vm3, %v4618_v50, inf  ;;  %v6186_v51 = vsub.f32 %v10300_v2, %v6179_v27  ;;  %v1490_v63 = vshrl.u32 %v1487_v56, 7 }
0x2fc9   : > { %v4855_v62 = vsel %vm614_vm3, %v4850_v60, inf  ;;  %v4858_v43 = vsel %vm1305_vm6, %v4851_v49, inf }
0x2fca   : > { %v6191_v45 = vsel %vm614_vm3, %v6186_v51, inf }
0x2fdf   : > { %1482 = vmin.index.xlane.f32.xlu0 %v1481_v22  ;;  %v1488_v22 = vand.u32 127, %v1487_v56 }
0x2fe1   : > { %v1493_v25 = vadd.s32 4294967288, %v1488_v22  ;;  %v10375_v28 = vsub.s32 %v1488_v22, %v1490_v63 }
0x2fe3   : > { %1485 = vmin.index.xlane.f32.xlu0 %v1484_v6  ;;  %v1500_v6 = vadd.s32 4294967280, %v1488_v22  ;;  %v10373_v32 = vsub.s32 %v1493_v25, %v1490_v63 }
0x2fe5   : > { %v10377_v20 = vsub.s32 %v1500_v6, %v1490_v63 }
0x2fe7   : > { %3053 = vmin.index.xlane.f32.xlu0 %v3052_v58 }
0x2fe8   : > { %1479 = vmin.index.xlane.f32.xlu1 %v1478_v24 }
0x2feb   : > { %3285 = vmin.index.xlane.f32.xlu0 %v3284_v18 }
0x2fec   : > { %1717 = vmin.index.xlane.f32.xlu1 %v1716_v16 }
0x2fef   : > { %3059 = vmin.index.xlane.f32.xlu0 %v3058_v10 }
0x2ff0   : > { %1720 = vmin.index.xlane.f32.xlu1 %v1719_v5 }
0x2ff3   : > { %4621 = vmin.index.xlane.f32.xlu0 %v4620_v39 }
0x2ff4   : > { %1723 = vmin.index.xlane.f32.xlu1 %v1722_v9 }
0x2ff7   : > { %4853 = vmin.index.xlane.f32.xlu0 %v4852_v54 }
0x2ff8   : > { %3056 = vmin.index.xlane.f32.xlu1 %v3055_v36 }
0x2ffb   : > { %4627 = vmin.index.xlane.f32.xlu0 %v4626_v41 }
0x2ffc   : > { %3288 = vmin.index.xlane.f32.xlu1 %v3287_v53 }
0x2fff   : > { %6189 = vmin.index.xlane.f32.xlu0 %v6188_v42 }
0x3000   : > { %3291 = vmin.index.xlane.f32.xlu1 %v3290_v48 }
0x3004   : > { %4624 = vmin.index.xlane.f32.xlu1 %v4623_v12 }
0x3008   : > { %4856 = vmin.index.xlane.f32.xlu1 %v4855_v62 }
0x300c   : > { %4859 = vmin.index.xlane.f32.xlu1 %v4858_v43 }
0x3010   : > { %6192 = vmin.index.xlane.f32.xlu1 %v6191_v45  ;;  %v6180_v45 = vmul.f32 2.0, %v10265_v59 }
0x3012   : > { %v6187_v22 = vsub.f32 %v10300_v2, %v6180_v45 }
0x3032   : > { %v6306_v35 = vpop.permute.xlu1 %6305  ;;  %v6308_v23 = vpop.permute.xlu0 %6307 }
0x3033   : > { %7970 = vmatmul.mubr.msk.f32.vlgmr.msra.gmra.mxu0 %vm614_vm3, %v6306_v35 }
0x3034   : > { %7972 = vmatprep.mubr.msk.f32.mxu0 %vm8183_vm0, %v8182_v1 }
0x3036   : > { %v6310_v21 = vpop.permute.xlu1 %6309 }
0x3037   : > { %7973 = vmatmul.mubr.msk.f32.gmra.mxu0 %vm614_vm3, %v6308_v23 }
0x3038   : > { %7975 = vmatprep.mubr.msk.f32.mxu0 %vm8183_vm0, %v8182_v1 }
0x303b   : > { %7976 = vmatmul.mubr.msk.f32.gmra.mxu0 %vm614_vm3, %v6310_v21 }
0x3068   : > { %v1483_v7 = vpop.xlane.xlu0 %1482 }
0x3069   : > { %v1497_v13 = vrot.slane %v1483_v7, %v10373_v32 }
0x306c   : > { %v1486_v3 = vpop.xlane.xlu0 %1485 }
0x306d   : > { %v1504_v24 = vrot.slane %v1486_v3, %v10377_v20 }
0x3070   : > { %v3054_v58 = vpop.xlane.xlu0 %3053 }
0x3071   : > { %v1480_v1 = vpop.xlane.xlu1 %1479  ;;  %v3064_v39 = vrot.slane %v3054_v58, %v10375_v28 }
0x3072   : > { %v1492_v15 = vrot.slane %v1480_v1, %v10375_v28  ;;  %v6194_v1 = vsel %vm1305_vm6, %v6187_v22, inf }
0x3074   : > { %v1499_v46 = vsel %vm1498_vm7, %v1497_v13, %v1492_v15  ;;  %v3286_v8 = vpop.xlane.xlu0 %3285 }
0x3075   : > { %v1506_v18 = vsel %vm1505_vm8, %v1504_v24, %v1499_v46  ;;  %v1718_v26 = vpop.xlane.xlu1 %1717  ;;  %v3296_v38 = vrot.slane %v3286_v8, %v10375_v28 }
0x3076   : > { %1508 = vst.msk [vmem:[%s10386_s15] sm:$0x1] %vm1507_vm9, %v1506_v18  ;;  %v1728_v19 = vrot.slane %v1718_v26, %v10375_v28 }
0x3078   : > { %v3060_v16 = vpop.xlane.xlu0 %3059 }
0x3079   : > { %v1721_v4 = vpop.xlane.xlu1 %1720  ;;  %v3073_v29 = vrot.slane %v3060_v16, %v10377_v20 }
0x307a   : > { %v1732_v55 = vrot.slane %v1721_v4, %v10373_v32 }
0x307c   : > { %v1733_v31 = vsel %vm1498_vm7, %v1732_v55, %v1728_v19  ;;  %v4622_v5 = vpop.xlane.xlu0 %4621 }
0x307d   : > { %v1724_v10 = vpop.xlane.xlu1 %1723  ;;  %v4632_v40 = vrot.slane %v4622_v5, %v10375_v28 }
0x307e   : > { %v1737_v30 = vrot.slane %v1724_v10, %v10377_v20 }
0x3080   : > { %v1738_v61 = vsel %vm1505_vm8, %v1737_v30, %v1733_v31  ;;  %v4854_v54 = vpop.xlane.xlu0 %4853 }
0x3081   : > { %1739 = vst.msk [vmem:[%s10386_s15 + $0x1] sm:$0x1] %vm1507_vm9, %v1738_v61  ;;  %v3057_v47 = vpop.xlane.xlu1 %3056  ;;  %v4864_v60 = vrot.slane %v4854_v54, %v10375_v28 }
0x3082   : > { %v3068_v11 = vrot.slane %v3057_v47, %v10373_v32 }
0x3084   : > { %v3069_v9 = vsel %vm1498_vm7, %v3068_v11, %v3064_v39  ;;  %v4628_v44 = vpop.xlane.xlu0 %4627 }
0x3085   : > { %v3074_v14 = vsel %vm1505_vm8, %v3073_v29, %v3069_v9  ;;  %v3289_v57 = vpop.xlane.xlu1 %3288  ;;  %v4641_v34 = vrot.slane %v4628_v44, %v10377_v20 }
0x3086   : > { %6602 = vst.msk [vmem:[%s10386_s15 + $0x2] sm:$0x1] %vm1507_vm9, %v3074_v14  ;;  %v3300_v33 = vrot.slane %v3289_v57, %v10373_v32 }
0x3088   : > { %v3301_v41 = vsel %vm1498_vm7, %v3300_v33, %v3296_v38  ;;  %v6190_v24 = vpop.xlane.xlu0 %6189 }
0x3089   : > { %v3292_v36 = vpop.xlane.xlu1 %3291  ;;  %v6200_v26 = vrot.slane %v6190_v24, %v10375_v28 }
0x308a   : > { %v3305_v37 = vrot.slane %v3292_v36, %v10377_v20 }
0x308c   : > { %v3306_v52 = vsel %vm1505_vm8, %v3305_v37, %v3301_v41 }
0x308d   : > { %6613 = vst.msk [vmem:[%s10386_s15 + $0x3] sm:$0x1] %vm1507_vm9, %v3306_v52  ;;  %v4625_v53 = vpop.xlane.xlu1 %4624 }
0x308e   : > { %v4636_v42 = vrot.slane %v4625_v53, %v10373_v32 }
0x3090   : > { %v4637_v48 = vsel %vm1498_vm7, %v4636_v42, %v4632_v40 }
0x3091   : > { %v4642_v50 = vsel %vm1505_vm8, %v4641_v34, %v4637_v48  ;;  %v4857_v0 = vpop.xlane.xlu1 %4856 }
0x3092   : > { %6659 = vst.msk [vmem:[%s10386_s15 + $0x4] sm:$0x1] %vm1507_vm9, %v4642_v50  ;;  %v4868_v12 = vrot.slane %v4857_v0, %v10373_v32 }
0x3094   : > { %v4869_v49 = vsel %vm1498_vm7, %v4868_v12, %v4864_v60 }
0x3095   : > { %v4860_v27 = vpop.xlane.xlu1 %4859 }
0x3096   : > { %v4873_v62 = vrot.slane %v4860_v27, %v10377_v20 }
0x3098   : > { %v4874_v43 = vsel %vm1505_vm8, %v4873_v62, %v4869_v49 }
0x3099   : > { %6670 = vst.msk [vmem:[%s10386_s15 + $0x5] sm:$0x1] %vm1507_vm9, %v4874_v43  ;;  %v6193_v46 = vpop.xlane.xlu1 %6192 }
0x309a   : > { %v6204_v18 = vrot.slane %v6193_v46, %v10373_v32 }
0x309c   : > { %v6205_v19 = vsel %vm1498_vm7, %v6204_v18, %v6200_v26 }
0x30f3   : > { %v6395_v51 = vpop.f32.mrf.mxu0 }
0x30f4   : > { %v6410_v35 = vmul.f32 2.0, %v6395_v51 }
0x30f5   : > { %v7971_v23 = vpop.f32.mrf.mxu0 }
0x30f6   : > { %v6417_v21 = vsub.f32 %v10316_v17, %v6410_v35 }
0x30f7   : > { %v6400_v56 = vpop.f32.mrf.mxu0 }
0x30f8   : > { %v6411_v7 = vmul.f32 2.0, %v6400_v56  ;;  %v6420_v63 = vsel %vm614_vm3, %v6417_v21, inf }
0x30f9   : > { %6421 = vmin.index.xlane.f32.xlu0 %v6420_v63  ;;  %v7974_v25 = vpop.f32.mrf.mxu0 }
0x30fa   : > { %v6418_v6 = vsub.f32 %v10316_v17, %v6411_v7 }
0x30fb   : > { %v6405_v3 = vpop.f32.mrf.mxu0 }
0x30fc   : > { %v6412_v58 = vmul.f32 2.0, %v6405_v3  ;;  %v6423_v59 = vsel %vm614_vm3, %v6418_v6, inf }
0x30fd   : > { %6195 = vmin.index.xlane.f32.xlu0 %v6194_v1  ;;  %6424 = vmin.index.xlane.f32.xlu1 %v6423_v59  ;;  %v7977_v13 = vpop.f32.mrf.mxu0 }
0x30fe   : > { %v6419_v15 = vsub.f32 %v10316_v17, %v6412_v58 }
0x3100   : > { %v6426_v2 = vsel %vm1305_vm6, %v6419_v15, inf }
0x3101   : > { %6427 = vmin.index.xlane.f32.xlu1 %v6426_v2 }
0x3182   : > { %v6422_v8 = vpop.xlane.xlu0 %6421 }
0x3183   : > { %v6432_v30 = vrot.slane %v6422_v8, %v10375_v28 }
0x3186   : > { %v6196_v4 = vpop.xlane.xlu0 %6195  ;;  %v6425_v16 = vpop.xlane.xlu1 %6424 }
0x3187   : > { %v6209_v55 = vrot.slane %v6196_v4, %v10377_v20  ;;  %v6436_v10 = vrot.slane %v6425_v16, %v10373_v32 }
0x3189   : > { %v6210_v17 = vsel %vm1505_vm8, %v6209_v55, %v6205_v19  ;;  %v6437_v61 = vsel %vm1498_vm7, %v6436_v10, %v6432_v30 }
0x318a   : > { %6716 = vst.msk [vmem:[%s10386_s15 + $0x6] sm:$0x1] %vm1507_vm9, %v6210_v17  ;;  %v6428_v31 = vpop.xlane.xlu1 %6427 }
0x318b   : > { %v6441_v5 = vrot.slane %v6428_v31, %v10377_v20 }
0x318d   : > { %v6442_v47 = vsel %vm1505_vm8, %v6441_v5, %v6437_v61 }
0x318e   : > { %6727 = vst.msk [vmem:[%s10386_s15 + $0x7] sm:$0x1] %vm1507_vm9, %v6442_v47 }
0x318f PF: > { %s12_s9 = sadd.s32 1, %s8180_s9  }
0x3190   : > { %p9_p4 = scmp.ge.s32.totalorder %s12_s9, 4  }
0x3192   :  { %11 = sbr.rel (!%p9_p4) target bundleno = 1 (0x1), region = 75 }

</bundles_post_ra>
